<compile_context>
chip_gen: v7x
topology: tpu7x:2x2x1
jax: 0.10.0
libtpu: 0.0.40
codegen_flags: <defaults>
</compile_context>

<pallas_src>
import functools

import numpy as np
import jax
import jax.numpy as jnp
from jax.experimental import pallas as pl
from jax.experimental.pallas import tpu as pltpu

_LANE = 128                       # TPU lane width (last dim)
_MAX_TN = 1024                    # wide, lane-dense last dim
_TILE_BYTES = 4 * 1024 * 1024     # ~4 MiB per tile
_VMEM_LIMIT = 32 * 1024 * 1024    # explicit scoped-VMEM limit (v5e/v6e/v7x safe)
_SMALL_BYPASS = 64 * 1024         # below this many elements, skip Pallas


def _round_up(x, m):
    return ((x + m - 1) // m) * m


def _cutoff_expr(d, inv_scale, cutoff):
    # Matches PyTorch: 0.5*(cos(d*pi/cutoff)+1) * (d < cutoff).float()
    # (multiply-by-mask, not where -> NaN inputs propagate like the reference).
    c = 0.5 * jnp.cos(d * inv_scale) + 0.5
    return c * (d < cutoff).astype(d.dtype)


def _cosine_cutoff_kernel(d_ref, o_ref, *, inv_scale, cutoff):
    # Purely elementwise: VPU + one EUP transcendental per element.
    o_ref[...] = _cutoff_expr(d_ref[...], inv_scale, cutoff).astype(o_ref.dtype)


def cosine_cutoff(distances, cutoff=3.0, *, min_pallas_elems=_SMALL_BYPASS):
    """Pallas equivalent of CosineCutoff.forward (elementwise, any shape)."""
    orig_shape = distances.shape
    dtype = distances.dtype
    itemsize = jnp.dtype(dtype).itemsize
    inv_scale = float(np.pi / cutoff)
    cutoff_f = float(cutoff)

    flat = distances.reshape(-1)
    total = flat.shape[0]

    # Tiny inputs: pad/reshape/pallas_call plumbing dwarfs the work.
    if total < min_pallas_elems:
        return _cutoff_expr(distances, inv_scale, cutoff_f)

    # Lane-dense last dim: prefer the largest multiple of 128 (<=1024) that
    # divides total exactly (zero-copy fast path); else fall back and pad the
    # tail by < tn elements.
    tn = None
    for cand in range(_MAX_TN, 0, -_LANE):
        if total % cand == 0:
            tn = cand
            break
    if tn is None:
        tn = min(_MAX_TN, _round_up(total, _LANE))

    rows = pl.cdiv(total, tn)
    padded_total = rows * tn
    if padded_total != total:
        flat = jnp.pad(flat, (0, padded_total - total))
    d2 = flat.reshape(rows, tn)

    # dtype-aware sublane packing (f32: 8, bf16/f16: 16, int8/fp8: 32).
    sublane = 8 * max(1, 4 // itemsize)

    # Row-tile from the ~4 MiB byte budget.
    max_tm = max(sublane, (_TILE_BYTES // (tn * itemsize)) // sublane * sublane)
    tm = min(max_tm, _round_up(rows, sublane))
    # Guarantee >= 2 grid steps (v7x megacore sharding) when there are enough rows.
    if rows >= 2 * sublane and pl.cdiv(rows, tm) < 2:
        tm = _round_up(pl.cdiv(rows, 2), sublane)

    grid = (pl.cdiv(rows, tm),)  # last block may be partial -> Pallas masks OOB

    kernel = functools.partial(
        _cosine_cutoff_kernel, inv_scale=inv_scale, cutoff=cutoff_f)

    out = pl.pallas_call(
        kernel,
        out_shape=jax.ShapeDtypeStruct((rows, tn), dtype),
        grid=grid,
        in_specs=[pl.BlockSpec((tm, tn), lambda i: (i, 0))],
        out_specs=pl.BlockSpec((tm, tn), lambda i: (i, 0)),
        compiler_params=pltpu.CompilerParams(
            dimension_semantics=("parallel",),
            vmem_limit_bytes=_VMEM_LIMIT),
        cost_estimate=pl.CostEstimate(
            flops=5 * total,
            transcendentals=total,
            bytes_accessed=2 * total * itemsize),
    )(d2)

    if padded_total != total:
        return out.reshape(-1)[:total].reshape(orig_shape)
    return out.reshape(orig_shape)


def _reference(distances, cutoff=3.0):
    c = 0.5 * (jnp.cos(distances * np.pi / cutoff) + 1.0)
    return c * (distances < cutoff).astype(c.dtype)


if __name__ == "__main__":
    key = jax.random.PRNGKey(0)
    k1, k2, k3 = jax.random.split(key, 3)
    cutoff = 3.0

    # 1) Pallas path, lane-divisible total (zero-copy fast path):
    #    (batch=4, atoms=64, neighbors=512) -> 131072 elems, tn=1024, 2 grid steps.
    d1 = jax.random.uniform(k1, (4, 64, 512), dtype=jnp.float32) * 5.0
    o1 = jax.block_until_ready(cosine_cutoff(d1, cutoff))
    assert o1.shape == d1.shape and o1.dtype == d1.dtype
    np.testing.assert_allclose(np.asarray(o1), np.asarray(_reference(d1, cutoff)),
                               rtol=1e-5, atol=1e-5)

    # 2) Pallas path, ragged total: pad-to-lane + partial last row-block masking.
    d2 = jax.random.uniform(k2, (7, 113, 97), dtype=jnp.float32) * 5.0
    o2 = jax.block_until_ready(cosine_cutoff(d2, cutoff))
    np.testing.assert_allclose(np.asarray(o2), np.asarray(_reference(d2, cutoff)),
                               rtol=1e-5, atol=1e-5)

    # 3) Tiny input (batch=2, atoms=8, neighbors=16): fused-XLA bypass path.
    d3 = jax.random.uniform(k3, (2, 8, 16), dtype=jnp.float32) * 5.0
    o3 = jax.block_until_ready(cosine_cutoff(d3, cutoff))
    np.testing.assert_allclose(np.asarray(o3), np.asarray(_reference(d3, cutoff)),
                               rtol=1e-5, atol=1e-5)

    print("KERNEL_OK")
</pallas_src>

<mosaic_0001>
module attributes {stable_mosaic.version = 11 : i64} {
  func.func @_cosine_cutoff_kernel(%arg0: i32, %arg1: memref<64x1024xf32, #tpu.memory_space<vmem>>, %arg2: memref<64x1024xf32, #tpu.memory_space<vmem>>) attributes {dimension_semantics = [#tpu.dimension_semantics<parallel>], iteration_bounds = array<i64: 2>, scalar_prefetch = 0 : i64, scratch_operands = 0 : i64, tpu.core_type = #tpu.core_type<tc>, window_params = [{transform_indices = @transform_0, window_bounds = array<i64: 64, 1024>}, {transform_indices = @transform_1, window_bounds = array<i64: 64, 1024>}]} {
    %c0 = arith.constant 0 : index
    %c0_0 = arith.constant 0 : index
    %0 = vector.load %arg1[%c0, %c0_0] : memref<64x1024xf32, #tpu.memory_space<vmem>>, vector<64x1024xf32>
    %cst = arith.constant 1.04719758 : f32
    %1 = vector.broadcast %cst : f32 to vector<64x1024xf32>
    %2 = arith.mulf %0, %1 : vector<64x1024xf32>
    %3 = math.cos %2 : vector<64x1024xf32>
    %cst_1 = arith.constant 5.000000e-01 : f32
    %4 = vector.broadcast %cst_1 : f32 to vector<64x1024xf32>
    %5 = arith.mulf %4, %3 : vector<64x1024xf32>
    %cst_2 = arith.constant 5.000000e-01 : f32
    %6 = vector.broadcast %cst_2 : f32 to vector<64x1024xf32>
    %7 = arith.addf %5, %6 : vector<64x1024xf32>
    %cst_3 = arith.constant 3.000000e+00 : f32
    %8 = vector.broadcast %cst_3 : f32 to vector<64x1024xf32>
    %9 = arith.cmpf olt, %0, %8 : vector<64x1024xf32>
    %10 = arith.extui %9 : vector<64x1024xi1> to vector<64x1024xi32>
    %11 = arith.sitofp %10 : vector<64x1024xi32> to vector<64x1024xf32>
    %12 = arith.mulf %7, %11 : vector<64x1024xf32>
    %c0_4 = arith.constant 0 : index
    %c0_5 = arith.constant 0 : index
    %13 = vector.load %arg2[%c0_4, %c0_5] : memref<64x1024xf32, #tpu.memory_space<vmem>>, vector<64x1024xf32>
    tpu.vector_store %arg2[%c0_4, %c0_5], %12 {strides = array<i32>} : memref<64x1024xf32, #tpu.memory_space<vmem>>, vector<64x1024xf32>,
    return
  }
  func.func @transform_0(%arg0: i32) -> (i32, i32) {
    %c0_i32 = arith.constant 0 : i32
    %c0_i32_0 = arith.constant 0 : i32
    return %arg0, %c0_i32 : i32, i32
  }
  func.func @transform_1(%arg0: i32) -> (i32, i32) {
    %c0_i32 = arith.constant 0 : i32
    %c0_i32_0 = arith.constant 0 : i32
    return %arg0, %c0_i32 : i32, i32
  }
}

</mosaic_0001>

<bundles_post_ra>
// kernel: tpu_custom_call.1
= control target key start
LH: loop header
LB: loop body
LE: loop exit
PB: predicated region body
PF: predicated region fallthrough
CT: control target
= control target key end

     0   :  { %6 = vsyncpa [#allocation3], 0  ;;  %s18292_s0 = inlined_call_operand.hbm [shape: f32[128,1024], index: 0, kind: input, shape index: {}]   ;;  %s18293_s1 = inlined_call_operand.hbm [shape: f32[128,1024], index: 1, kind: output, shape index: {}]  }
   0x1   :  { %8 = vsyncpa [#allocation3 + $0x1], 0 }
   0x2   :  { %9 = vsyncpa [#allocation4], 0 }
   0x3   :  { %11 = vsyncpa [#allocation4 + $0x1], 0  ;;  %s8488_s6 = smov 0   ;;  %s8490_s7 = smov 0  }
   0x4   :  { %s8492_s8 = smov 0   ;;  %s8494_s9 = smov 0  }
   0x5 LB: > { %s8509_s10 = sadd.s32 4294967295, %s8463_s9   ;;  %s7394_s11 = sadd.s32 4294967294, %s8463_s9   ;;  %s8463_s9 = sphi %s8494_s9, %s19240_s9   ;;  %s8459_s8 = sphi %s8492_s8, %s19239_s8   ;;  %s8455_s7 = sphi %s8490_s7, %s19238_s7   ;;  %s8451_s6 = sphi %s8488_s6, %s19237_s6  }
   0x6   : > { %s8513_s12 = sadd.s32 1, %s8463_s9   ;;  %s24_s13 = sadd.s32 1, %s8459_s8 }
   0x7   : > { %s21_s14 = ssub.s32 %s8463_s9, %s8513_s12  ;;  %p31_p0 = scmp.ne.s32.totalorder %s8459_s8, %s8455_s7 }
   0x8   : > { %p22_p1 = scmp.eq.s32.totalorder %s21_s14, 0  ;;  %p32_p2 = scmp.eq.s32.totalorder %s8463_s9, 0 }
   0x9   : > { %p37_p3 = scmp.ne.s32.totalorder %s8455_s7, %s8451_s6  ;;  %p38_p4 = scmp.eq.s32.totalorder %s8509_s10, 0 }
   0xa   : > { %s8525_s15 = scalar_select %p22_p1, %s8459_s8, %s24_s13  }
   0xb   : > { %p8527_p5 = por %p32_p2, %p31_p0  ;;  %p8531_p6 = por %p38_p4, %p37_p3 }
   0xc   : > { %p61_p7 = scmp.eq.s32.totalorder %s8509_s10, 1  ;;  %p67_p8 = scmp.eq.s32.totalorder %s7394_s11, 1 }
   0xd   : > { %p8002_p10 = scmp.lt.s32.totalorder %s8463_s9, 2  ;;  %s87_s20 = sand.u32 1, %s8459_s8  }
   0xe   : > { %p8538_p11 = por %p61_p7, %p31_p0  ;;  %p8542_p12 = por %p67_p8, %p37_p3 }
   0xf   : > { %s7731_s21 = sshll.u32 %s8463_s9, 13  ;;  %s7397_s22 = sshll.u32 %s87_s20, 9 }
  0x10   : > { %s18475_s18 = scalar_select %p8538_p11, 1, 0 }
  0x11   : > { %s18476_s19 = scalar_select %p8542_p12, 1, 0 }
  0x12   : > { %s8551_s25 = scalar_lea.hbm %s18292_s0, %s7731_s21  ;;  %s91_s26 = scalar_lea.vmem [#allocation2], %s7397_s22 }
  0x13   : > { %s99_s27 = sshll.u32 %s91_s26, 4  ;;  %p8555_p13 = pnand %p8002_p10, %p8527_p5  ;;  %s8559_s27 = int_to_ptr.vmem [resolvable:$true] %s99_s27 }
  0x14   : > { %s8561_s29 = scalar_lea.sflag [#allocation3], %s87_s20  ;;  %s8367_s30 = scalar_lea.hbm %s8551_s25, 8192 }
  0x15   : > { %p8368_p0 = scmp.ne.s32.totalorder %s8551_s25, %s8367_s30  ;;  %p8369_p1 = pneg %p8555_p13 }
  0x16   : > { %s8372_s4 = scalar_lea.hbm %s18292_s0, 16384  ;;  %p8373_p4 = scmp.lt.u32.totalorder %s8551_s25, %s18292_s0 }
  0x17   : > { %p8370_p2 = pnand %p8369_p1, %p8368_p0  ;;  %p8374_p5 = scmp.lt.u32.totalorder %s8372_s4, %s8367_s30 }
  0x18   : > { %p8376_p8 = scmp.lt.u32.totalorder %s8367_s30, %s8551_s25 }
  0x19   : > { %p8371_p3 = pneg %p8370_p2  ;;  %p8375_p7 = por %p8374_p5, %p8373_p4 }
  0x1b   : > { %p8377_p10 = por %p8376_p8, %p8375_p7 }
  0x1d   : > { %p8378_p9 = pnand %p8377_p10, %p8371_p3 }
  0x1f   : > { %8381 = shalt.err (!%p8378_p9)
}
  0x20   : > { %s8382_s13 = scalar_lea.vmem %s8559_s27, 8192  ;;  %s8465_s14 = smov [#allocation2]  }
  0x21   : > { %p8383_p0 = scmp.ne.s32.totalorder %s8559_s27, %s8382_s13  ;;  %s8387_s16 = sshll.u32 %s8465_s14, 4  ;;  %s8388_s16 = int_to_ptr.vmem [resolvable:$false] %s8387_s16 }
  0x22   : > { %s8389_s20 = scalar_lea.vmem %s8388_s16, 16384  ;;  %p8390_p11 = scmp.lt.s32.totalorder %s8559_s27, %s8388_s16 }
  0x23   : > { %p8385_p2 = pnand %p8383_p0, %p8369_p1  ;;  %p8391_p4 = scmp.lt.s32.totalorder %s8389_s20, %s8382_s13 }
  0x25   : > { %p8386_p12 = pneg %p8385_p2  ;;  %p8392_p5 = por %p8391_p4, %p8390_p11 }
  0x27   : > { %p8393_p7 = pnand %p8392_p5, %p8386_p12 }
  0x29   : > { %8396 = shalt.err (!%p8393_p7)
}
  0x2a   : > { %s8466_s21 = smov 1024   ;;  %s8467_s22 = smov 64  }
  0x2b   : > { %7997 = dma.hbm_to_vmem [thread:$0]  (!%p8555_p13), %s8551_s25, 8192, %s8559_s27, %s8561_s29, %s8466_s21, %s8466_s21, %s8467_s22  }
  0x2c   : > { %p7401_p9 = scmp.ge.s32.totalorder %s8463_s9, 1  ;;  %p107_p1 = scmp.lt.s32.totalorder %s8463_s9, 3 }
  0x2e   : > { %p108_p3 = pnand %p7401_p9, %p107_p1 }
  0x30   : > { %111 = sbr.rel (%p108_p3) target bundleno = 1785 (0x6f9), region = 24 }
  0x37   : > { %s8592_s23 = sand.u32 1, %s8455_s7  }
  0x38   : > { %s7402_s24 = sshll.u32 %s8592_s23, 9  ;;  %s114_s26 = scalar_lea.sflag [#allocation3], %s8592_s23 }
  0x39   : > { %s8598_s30 = scalar_lea.vmem [#allocation2], %s7402_s24 }
  0x3a   : > { %8442 = dma.done.wait (%p8531_p6), %s114_s26, 8192  }
  0x3b   : > { %8444 = vsyncadd (%p8531_p6), %s114_s26, 4294959104  ;;  %v138_v0 = vld [vmem:[%s8598_s30] sm:$0xff]  ;;  %v139_v5 = vld [vmem:[%s8598_s30 + $0x8] sm:$0xff]  ;;  %v18309_v16 = vmov 2102212464   ;;  %s18071_s17 = scalar_lea.vmem [#allocation5], %s7402_s24 }
  0x3c   : > { %v8605_v1 = vmul.f32 1.0471976, %v138_v0  ;;  %v8609_v7 = vmul.f32 1.0471976, %v139_v5  ;;  %v140_v14 = vld [vmem:[%s8598_s30 + $0x10] sm:$0xff]  ;;  %s7733_s25 = sshll.u32 %s8509_s10, 13 }
  0x3d   : > { %v18305_v18 = vmov 920167782   ;;  %v8618_v22 = vmul.f32 1.0471976, %v140_v14  ;;  %v18307_v23 = vmov 683565275   ;;  %s18226_s29 = scalar_lea.hbm %s18293_s1, %s7733_s25 }
  0x3e   : > { %v269_v2 = vand.u32 2139095040, %v8605_v1  ;;  %v372_v8 = vand.u32 2139095040, %v8609_v7  ;;  %v18298_v20 = vand.u32 2147483647, %v8605_v1  ;;  %v18301_v25 = vmov 2475754826  }
  0x3f   : > { %v18299_v27 = vmov 2131351028   ;;  %v18303_v34 = vmov 1326507024   ;;  %v475_v41 = vand.u32 2139095040, %v8618_v22  ;;  %s7321_s27 = sshll.u32 %s18071_s17, 4  ;;  %s18228_s27 = int_to_ptr.vmem [resolvable:$true] %s7321_s27 }
  0x40   : > { %v270_v3 = vshrl.u32 %v269_v2, 23  ;;  %v373_v10 = vshrl.u32 %v372_v8, 23  ;;  %v273_v36 = vand.u32 8388607, %v18298_v20  ;;  %v18297_v56 = vand.u32 2147483647, %v8609_v7 }
  0x41   : > { %v476_v48 = vshrl.u32 %v475_v41, 23  ;;  %s7307_s2 = scalar_lea.sflag [#allocation4], %s8592_s23  ;;  %s8397_s3 = scalar_lea.vmem %s18228_s27, 8192 }
  0x42   : > { %v7404_v4 = vadd.s32 4294967169, %v270_v3  ;;  %v7408_v12 = vadd.s32 4294967169, %v373_v10  ;;  %v274_v44 = vor.u32 8388608, %v273_v36  ;;  %p8398_p6 = scmp.ne.s32.totalorder %s18228_s27, %s8397_s3  ;;  %p19234_p11 = scmp.ne.s32.totalorder %s18475_s18, 0 }
  0x43   : > { %v7412_v55 = vadd.s32 4294967169, %v476_v48  ;;  %s8475_s4 = smov [#allocation5]  }
  0x44   : > { %v276_v6 = vadd.s32 1, %v7404_v4  ;;  %v379_v15 = vadd.s32 1, %v7408_v12  ;;  %v8643_v50 = vshll.u32 %v274_v44, 8  ;;  %p8399_p12 = pnand %p8398_p6, %p19234_p11  ;;  %s8401_s5 = sshll.u32 %s8475_s4, 4  ;;  %s8402_s5 = int_to_ptr.vmem [resolvable:$false] %s8401_s5 }
  0x45   : > { %v482_v5 = vadd.s32 1, %v7412_v55  ;;  %s8403_s11 = scalar_lea.vmem %s8402_s5, 16384  ;;  %p8404_p8 = scmp.lt.s32.totalorder %s18228_s27, %s8402_s5 }
  0x46   : > { %vm277_vm0 = vcmp.gt.s32.totalorder %v276_v6, 0  ;;  %vm380_vm1 = vcmp.gt.s32.totalorder %v379_v15, 0  ;;  %p8400_p13 = pneg %p8399_p12  ;;  %p8405_p10 = scmp.lt.s32.totalorder %s8403_s11, %s8397_s3 }
  0x47   : > { %v278_v9 = vsel %vm277_vm0, %v276_v6, 0  ;;  %v381_v37 = vsel %vm380_vm1, %v379_v15, 0  ;;  %v376_v15 = vand.u32 8388607, %v18297_v56  ;;  %vm483_vm7 = vcmp.gt.s32.totalorder %v482_v5, 0 }
  0x48   : > { %v280_v11 = vand.u32 31, %v278_v9  ;;  %v8616_v21 = vshrl.u32 %v278_v9, 5  ;;  %v383_v45 = vand.u32 31, %v381_v37  ;;  %v8661_v62 = vshrl.u32 %v381_v37, 5  ;;  %p8406_p0 = por %p8405_p10, %p8404_p8 }
  0x4a   : > { %v281_v13 = vsub.s32 32, %v280_v11  ;;  %v292_v17 = vshll.u32 %v18309_v16, %v280_v11  ;;  %v283_v24 = vshll.u32 %v18307_v23, %v280_v11  ;;  %v286_v26 = vshll.u32 %v18301_v25, %v280_v11  ;;  %p8407_p2 = pnand %p8406_p0, %p8400_p13 }
  0x4b   : > { %v289_v28 = vshll.u32 %v18299_v27, %v280_v11  ;;  %v295_v33 = vshll.u32 %v18305_v18, %v280_v11  ;;  %vm301_vm2 = vcmp.lt.s32.totalorder %v8616_v21, 4  ;;  %vm298_vm3 = vcmp.lt.s32.totalorder %v8616_v21, 1 }
  0x4c   : > { %v293_v19 = vshrl.u32 %v18305_v18, %v281_v13  ;;  %v284_v29 = vshrl.u32 %v18301_v25, %v281_v13  ;;  %v287_v30 = vshrl.u32 %v18299_v27, %v281_v13  ;;  %v290_v31 = vshrl.u32 %v18309_v16, %v281_v13 }
  0x4d   : > { %v296_v35 = vshrl.u32 %v18303_v34, %v281_v13  ;;  %vm300_vm4 = vcmp.lt.s32.totalorder %v8616_v21, 3  ;;  %vm299_vm5 = vcmp.lt.s32.totalorder %v8616_v21, 2  ;;  %v384_v51 = vsub.s32 32, %v383_v45 }
  0x4e   : > { %v294_v32 = vor.u32 %v293_v19, %v292_v17  ;;  %v285_v38 = vor.u32 %v284_v29, %v283_v24  ;;  %v288_v39 = vor.u32 %v287_v30, %v286_v26  ;;  %v291_v40 = vor.u32 %v290_v31, %v289_v28 }
  0x4f   : > { %v297_v42 = vor.u32 %v296_v35, %v295_v33  ;;  %v395_v59 = vshll.u32 %v18309_v16, %v383_v45  ;;  %v396_v60 = vshrl.u32 %v18305_v18, %v384_v51  ;;  %v398_v63 = vshll.u32 %v18305_v18, %v383_v45  ;;  %v141_v35 = vld [vmem:[%s8598_s30 + $0x18] sm:$0xff] }
  0x50   : > { %v307_v43 = vsel %vm301_vm2, %v294_v32, 920167782  ;;  %v306_v46 = vsel %vm298_vm3, %v285_v38, %v288_v39  ;;  %v310_v53 = vsel %vm298_vm3, %v288_v39, %v291_v40  ;;  %v399_v0 = vshrl.u32 %v18303_v34, %v384_v51 }
  0x51   : > { %v308_v47 = vsel %vm300_vm4, %v291_v40, %v307_v43  ;;  %v311_v49 = vsel %vm301_vm2, %v297_v42, 1326507024  ;;  %v282_v2 = vshrl.u32 %v18307_v23, %v281_v13  ;;  %v386_v3 = vshll.u32 %v18307_v23, %v383_v45 }
  0x52   : > { %v309_v52 = vsel %vm299_vm5, %v306_v46, %v308_v47  ;;  %v312_v54 = vsel %vm300_vm4, %v294_v32, %v311_v49  ;;  %v389_v4 = vshll.u32 %v18301_v25, %v383_v45  ;;  %v387_v6 = vshrl.u32 %v18301_v25, %v384_v51 }
  0x53   : > { %v8653_v57 = vmul.u32.u64.low %v8643_v50, %v309_v52  ;;  %v8654_v58 = vmul.u32.u64.high %v8643_v50, %v309_v52, %v8653_v57  ;;  %v313_v61 = vsel %vm299_vm5, %v310_v53, %v312_v54  ;;  %v390_v8 = vshrl.u32 %v18299_v27, %v384_v51 }
  0x54   : > { %v392_v9 = vshll.u32 %v18299_v27, %v383_v45  ;;  %v393_v10 = vshrl.u32 %v18309_v16, %v384_v51  ;;  %v303_v11 = vsel %vm301_vm2, %v291_v40, 2102212464  ;;  %v397_v13 = vor.u32 %v396_v60, %v395_v59 }
  0x55   : > { %v8675_v12 = vmul.u32.u64.low %v8643_v50, %v313_v61  ;;  %v8676_v14 = vmul.u32.u64.high %v8643_v50, %v313_v61, %v8675_v12  ;;  %v400_v17 = vor.u32 %v399_v0, %v398_v63  ;;  %vm404_vm6 = vcmp.lt.s32.totalorder %v8661_v62, 4 }
  0x56   : > { %v302_v19 = vsel %vm298_vm3, %v282_v2, %v285_v38  ;;  %v304_v24 = vsel %vm300_vm4, %v288_v39, %v303_v11  ;;  %v388_v26 = vor.u32 %v387_v6, %v386_v3  ;;  %v391_v28 = vor.u32 %v390_v8, %v389_v4 }
  0x57   : > { %v394_v29 = vor.u32 %v393_v10, %v392_v9  ;;  %vm401_vm8 = vcmp.lt.s32.totalorder %v8661_v62, 1  ;;  %vm403_vm9 = vcmp.lt.s32.totalorder %v8661_v62, 3  ;;  %v410_v30 = vsel %vm404_vm6, %v397_v13, 920167782 }
  0x58   : > { %v377_v31 = vor.u32 8388608, %v376_v15  ;;  %v414_v32 = vsel %vm404_vm6, %v400_v17, 1326507024  ;;  %v484_v33 = vsel %vm483_vm7, %v482_v5, 0  ;;  %v305_v36 = vsel %vm299_vm5, %v302_v19, %v304_v24 }
  0x59   : > { %v324_v37 = vadd.s32 1, %v8654_v58  ;;  %vm402_vm10 = vcmp.lt.s32.totalorder %v8661_v62, 2  ;;  %v409_v38 = vsel %vm401_vm8, %v388_v26, %v391_v28  ;;  %v411_v39 = vsel %vm403_vm9, %v394_v29, %v410_v30 }
  0x5a   : > { %vm323_vm11 = vc.u32 %v8676_v14, %v8653_v57  ;;  %v413_v40 = vsel %vm401_vm8, %v391_v28, %v394_v29  ;;  %v415_v21 = vsel %vm403_vm9, %v397_v13, %v414_v32  ;;  %v486_v41 = vand.u32 31, %v484_v33 }
  0x5b   : > { %v8706_v42 = vmul.f32 1.0471976, %v141_v35  ;;  %v417_v43 = vshll.u32 %v377_v31, 8  ;;  %v321_v44 = vmul.u32 %v8643_v50, %v305_v36  ;;  %v412_v45 = vsel %vm402_vm10, %v409_v38, %v411_v39 }
  0x5c   : > { %v325_v46 = vsel %vm323_vm11, %v324_v37, %v8654_v58  ;;  %v416_v47 = vsel %vm402_vm10, %v413_v40, %v415_v21  ;;  %v385_v48 = vshrl.u32 %v18307_v23, %v384_v51  ;;  %v487_v49 = vsub.s32 32, %v486_v41 }
  0x5d   : > { %v406_v52 = vsel %vm404_vm6, %v394_v29, 2102212464  ;;  %v8717_v53 = vmul.u32.u64.low %v417_v43, %v412_v45  ;;  %v8718_v54 = vmul.u32.u64.high %v417_v43, %v412_v45, %v8717_v53  ;;  %v578_v50 = vand.u32 2139095040, %v8706_v42  ;;  %v142_v45 = vld [vmem:[%s8598_s30 + $0x20] sm:$0xff] }
  0x5e   : > { %v326_v55 = vadd.s32 %v325_v46, %v321_v44  ;;  %v8722_v59 = vmul.u32.u64.low %v417_v43, %v416_v47  ;;  %v8723_v60 = vmul.u32.u64.high %v417_v43, %v416_v47, %v8722_v59  ;;  %v18296_v58 = vand.u32 2147483647, %v8618_v22 }
  0x5f   : > { %v405_v61 = vsel %vm401_vm8, %v385_v48, %v388_v26  ;;  %v407_v51 = vsel %vm403_vm9, %v391_v28, %v406_v52  ;;  %v498_v63 = vshll.u32 %v18309_v16, %v486_v41  ;;  %v499_v0 = vshrl.u32 %v18305_v18, %v487_v49 }
  0x60   : > { %v8732_v2 = vshrl.u32 %v484_v33, 5  ;;  %v501_v3 = vshll.u32 %v18305_v18, %v486_v41  ;;  %v502_v4 = vshrl.u32 %v18303_v34, %v487_v49  ;;  %v579_v5 = vshrl.u32 %v578_v50, 23 }
  0x61   : > { %v327_v6 = vadd.s32 536870912, %v326_v55  ;;  %v489_v8 = vshll.u32 %v18307_v23, %v486_v41  ;;  %v492_v9 = vshll.u32 %v18301_v25, %v486_v41  ;;  %v490_v10 = vshrl.u32 %v18301_v25, %v487_v49 }
  0x62   : > { %v493_v11 = vshrl.u32 %v18299_v27, %v487_v49  ;;  %v495_v12 = vshll.u32 %v18299_v27, %v486_v41  ;;  %v496_v13 = vshrl.u32 %v18309_v16, %v487_v49  ;;  %v408_v15 = vsel %vm402_vm10, %v405_v61, %v407_v51 }
  0x63   : > { %v479_v17 = vand.u32 8388607, %v18296_v58  ;;  %v500_v19 = vor.u32 %v499_v0, %v498_v63  ;;  %v427_v24 = vadd.s32 1, %v8718_v54  ;;  %v503_v26 = vor.u32 %v502_v4, %v501_v3 }
  0x64   : > { %vm507_vm12 = vcmp.lt.s32.totalorder %v8732_v2, 4  ;;  %v7416_v28 = vadd.s32 4294967169, %v579_v5  ;;  %vm426_vm13 = vc.u32 %v8723_v60, %v8717_v53  ;;  %v8750_v29 = vshrl.u32 %v327_v6, 30 }
  0x65   : > { %v491_v30 = vor.u32 %v490_v10, %v489_v8  ;;  %v494_v31 = vor.u32 %v493_v11, %v492_v9  ;;  %v497_v32 = vor.u32 %v496_v13, %v495_v12  ;;  %v424_v62 = vmul.u32 %v417_v43, %v408_v15  ;;  %v143_v9 = vld [vmem:[%s8598_s30 + $0x28] sm:$0xff]  ;;  %v144_v10 = vld [vmem:[%s8598_s30 + $0x30] sm:$0xff] }
  0x66   : > { %vm504_vm14 = vcmp.lt.s32.totalorder %v8732_v2, 1  ;;  %vm506_vm15 = vcmp.lt.s32.totalorder %v8732_v2, 3  ;;  %v513_v33 = vsel %vm507_vm12, %v500_v19, 920167782  ;;  %v428_v35 = vsel %vm426_vm13, %v427_v24, %v8718_v54 }
  0x67   : > { %v480_v36 = vor.u32 8388608, %v479_v17  ;;  %v517_v37 = vsel %vm507_vm12, %v503_v26, 1326507024  ;;  %v585_v38 = vadd.s32 1, %v7416_v28  ;;  %vm505_vm0 = vcmp.lt.s32.totalorder %v8732_v2, 2  ;;  %v146_v2 = vld [vmem:[%s8598_s30 + $0x40] sm:$0xff] }
  0x68   : > { %v512_v39 = vsel %vm504_vm14, %v491_v30, %v494_v31  ;;  %v514_v40 = vsel %vm506_vm15, %v497_v32, %v513_v33  ;;  %v329_v21 = vshll.u32 %v8750_v29, 30  ;;  %v429_v41 = vadd.s32 %v428_v35, %v424_v62  ;;  %v145_v35 = vld [vmem:[%s8598_s30 + $0x38] sm:$0xff] }
  0x69   : > { %v516_v43 = vsel %vm504_vm14, %v494_v31, %v497_v32  ;;  %v518_v44 = vsel %vm506_vm15, %v500_v19, %v517_v37  ;;  %v8770_v46 = vshll.u32 %v480_v36, 8  ;;  %vm586_vm1 = vcmp.gt.s32.totalorder %v585_v38, 0 }
  0x6a   : > { %v515_v47 = vsel %vm505_vm0, %v512_v39, %v514_v40  ;;  %v519_v48 = vsel %vm505_vm0, %v516_v43, %v518_v44  ;;  %v8776_v52 = vmul.f32 1.0471976, %v142_v45  ;;  %v8778_v54 = vsub.s32 %v326_v55, %v329_v21  ;;  %v147_v40 = vld [vmem:[%s8598_s30 + $0x48] sm:$0xff] }
  0x6b   : > { %v430_v50 = vadd.s32 536870912, %v429_v41  ;;  %v587_v59 = vsel %vm586_vm1, %v585_v38, 0  ;;  %v8781_v61 = vmul.u32.u64.low %v8770_v46, %v515_v47  ;;  %v8782_v51 = vmul.u32.u64.high %v8770_v46, %v515_v47, %v8781_v61  ;;  %v148_v47 = vld [vmem:[%s8598_s30 + $0x50] sm:$0xff] }
  0x6c   : > { %18478 = vst [vmem:[#allocation8_spill] sm:$0xff] %v8776_v52  ;;  %v8786_v63 = vmul.u32.u64.low %v8770_v46, %v519_v48  ;;  %v8787_v0 = vmul.u32.u64.high %v8770_v46, %v519_v48, %v8786_v63  ;;  %v488_v3 = vshrl.u32 %v18307_v23, %v487_v49  ;;  %v589_v4 = vand.u32 31, %v587_v59  ;;  %v149_v48 = vld [vmem:[%s8598_s30 + $0x58] sm:$0xff] }
  0x6d   : > { %v332_v5 = vsub.s32 0, %v8778_v54  ;;  %v8791_v6 = vshrl.u32 %v430_v50, 30  ;;  %v509_v55 = vsel %vm507_vm12, %v497_v32, 2102212464  ;;  %v681_v8 = vand.u32 2139095040, %v8776_v52 }
  0x6e   : > { %v508_v11 = vsel %vm504_vm14, %v488_v3, %v491_v30  ;;  %v510_v12 = vsel %vm506_vm15, %v494_v31, %v509_v55  ;;  %v8802_v49 = vsub.s32 32, %v589_v4  ;;  %v8806_v19 = vmul.f32 1.0471976, %v143_v9 }
  0x6f   : > { %v7405_v13 = vmin.u32 %v332_v5, %v8778_v54  ;;  %v432_v15 = vshll.u32 %v8791_v6, 30  ;;  %v682_v17 = vshrl.u32 %v681_v8, 23  ;;  %v530_v24 = vadd.s32 1, %v8782_v51 }
  0x70   : > { %18479 = vst [vmem:[#allocation9_spill] sm:$0xff] %v8806_v19  ;;  %v8809_v26 = vmul.f32 1.0471976, %v144_v10  ;;  %v511_v28 = vsel %vm505_vm0, %v508_v11, %v510_v12  ;;  %vm529_vm2 = vc.u32 %v8787_v0, %v8781_v61  ;;  %v18295_v30 = vand.u32 2147483647, %v8706_v42  ;;  %v151_v10 = vld [vmem:[%s8598_s30 + $0x68] sm:$0xff] }
  0x71   : > { %v601_v31 = vshll.u32 %v18309_v16, %v589_v4  ;;  %v602_v32 = vshrl.u32 %v18305_v18, %v8802_v49  ;;  %v604_v62 = vshll.u32 %v18305_v18, %v589_v4  ;;  %v605_v33 = vshrl.u32 %v18303_v34, %v8802_v49 }
  0x72   : > { %18480 = vst [vmem:[#allocation10_spill] sm:$0xff] %v8809_v26  ;;  %v334_v36 = vclz %v7405_v13  ;;  %v8824_v37 = vsub.s32 %v429_v41, %v432_v15  ;;  %v8826_v38 = vshrl.u32 %v587_v59, 5  ;;  %v7420_v39 = vadd.s32 4294967169, %v682_v17  ;;  %v152_v17 = vld [vmem:[%s8598_s30 + $0x70] sm:$0xff] }
  0x73   : > { %v527_v21 = vmul.u32 %v8770_v46, %v511_v28  ;;  %v531_v43 = vsel %vm529_vm2, %v530_v24, %v8782_v51  ;;  %v592_v44 = vshll.u32 %v18307_v23, %v589_v4  ;;  %v595_v45 = vshll.u32 %v18301_v25, %v589_v4  ;;  %v150_v51 = vld [vmem:[%s8598_s30 + $0x60] sm:$0xff]  ;;  %v153_v24 = vld [vmem:[%s8598_s30 + $0x78] sm:$0xff] }
  0x74   : > { %v593_v50 = vshrl.u32 %v18301_v25, %v8802_v49  ;;  %v596_v41 = vshrl.u32 %v18299_v27, %v8802_v49  ;;  %v598_v59 = vshll.u32 %v18299_v27, %v589_v4  ;;  %v599_v46 = vshrl.u32 %v18309_v16, %v8802_v49  ;;  %v154_v28 = vld [vmem:[%s8598_s30 + $0x80] sm:$0xff] }
  0x75   : > { %v8843_v63 = vmul.f32 1.0471976, %v145_v35  ;;  %v8845_v3 = vmul.f32 1.0471976, %v146_v2  ;;  %v603_v5 = vor.u32 %v602_v32, %v601_v31  ;;  %v606_v55 = vor.u32 %v605_v33, %v604_v62  ;;  %v155_v35 = vld [vmem:[%s8598_s30 + $0x88] sm:$0xff] }
  0x76   : > { %v8847_v8 = vmul.f32 1.0471976, %v147_v40  ;;  %v582_v9 = vand.u32 8388607, %v18295_v30  ;;  %vm610_vm3 = vcmp.lt.s32.totalorder %v8826_v38, 4  ;;  %v688_v4 = vadd.s32 1, %v7420_v39 }
  0x77   : > { %18481 = vst [vmem:[#allocation11_spill] sm:$0xff] %v8845_v3  ;;  %v8853_v11 = vmul.f32 1.0471976, %v148_v47  ;;  %v8855_v12 = vmul.f32 1.0471976, %v149_v48  ;;  %v435_v13 = vsub.s32 0, %v8824_v37  ;;  %v8858_v15 = vadd.s32 %v531_v43, %v527_v21 }
  0x78   : > { %18482 = vst [vmem:[#allocation12_spill] sm:$0xff] %v8847_v8  ;;  %v7406_v31 = vadd.s32 4294967294, %v334_v36  ;;  %v8863_v32 = vor.u32 %v593_v50, %v592_v44  ;;  %v8865_v62 = vor.u32 %v596_v41, %v595_v45  ;;  %v600_v33 = vor.u32 %v599_v46, %v598_v59  ;;  %v156_v43 = vld [vmem:[%s8598_s30 + $0x90] sm:$0xff]  ;;  %v157_v44 = vld [vmem:[%s8598_s30 + $0x98] sm:$0xff]  ;;  %v158_v50 = vld [vmem:[%s8598_s30 + $0xa0] sm:$0xff] }
  0x79   : > { %18483 = vst [vmem:[#allocation13_spill] sm:$0xff] %v8853_v11  ;;  %18484 = vst [vmem:[#allocation14_spill] sm:$0xff] %v8855_v12  ;;  %vm607_vm4 = vcmp.lt.s32.totalorder %v8826_v38, 1  ;;  %vm609_vm5 = vcmp.lt.s32.totalorder %v8826_v38, 3  ;;  %v616_v2 = vsel %vm610_vm3, %v603_v5, 920167782  ;;  %v7409_v47 = vmin.u32 %v435_v13, %v8824_v37 }
  0x7a   : > { %v620_v39 = vsel %vm610_vm3, %v606_v55, 1326507024  ;;  %v8874_v36 = vmul.f32 1.0471976, %v150_v51  ;;  %v8876_v40 = vmul.f32 1.0471976, %v151_v10  ;;  %v615_v46 = vsel %vm607_vm4, %v8863_v32, %v8865_v62 }
  0x7b   : > { %v583_v21 = vor.u32 8388608, %v582_v9  ;;  %vm689_vm6 = vcmp.gt.s32.totalorder %v688_v4, 0  ;;  %v8880_v45 = vmul.f32 1.0471976, %v152_v17  ;;  %v533_v48 = vadd.s32 536870912, %v8858_v15  ;;  %v159_v41 = vld [vmem:[%s8598_s30 + $0xa8] sm:$0xff] }
  0x7c   : > { %18485 = vst [vmem:[#allocation15_spill] sm:$0xff] %v8874_v36  ;;  %18486 = vst [vmem:[#allocation16_spill] sm:$0xff] %v8876_v40  ;;  %vm608_vm7 = vcmp.lt.s32.totalorder %v8826_v38, 2  ;;  %v160_v59 = vld [vmem:[%s8598_s30 + $0xb0] sm:$0xff]  ;;  %v617_v51 = vsel %vm609_vm5, %v600_v33, %v616_v2  ;;  %v619_v55 = vsel %vm607_vm4, %v8865_v62, %v600_v33  ;;  %v621_v9 = vsel %vm609_vm5, %v603_v5, %v620_v39  ;;  %v161_v30 = vld [vmem:[%s8598_s30 + $0xb8] sm:$0xff] }
  0x7d   : > { %18487 = vst [vmem:[#allocation17_spill] sm:$0xff] %v8880_v45  ;;  %v8899_v10 = vmul.f32 1.0471976, %v153_v24  ;;  %v8901_v13 = vmul.f32 1.0471976, %v154_v28  ;;  %vm7407_vm8 = vcmp.lt.s32.totalorder %v7406_v31, 0  ;;  %v618_v5 = vsel %vm608_vm7, %v615_v46, %v617_v51 }
  0x7e   : > { %v690_v17 = vsel %vm689_vm6, %v688_v4, 0  ;;  %v8905_v58 = vmul.f32 1.0471976, %v155_v35  ;;  %v8907_v2 = vmul.f32 1.0471976, %v156_v43  ;;  %v8909_v56 = vshll.u32 %v583_v21, 8 }
  0x7f   : > { %18488 = vst [vmem:[#allocation18_spill] sm:$0xff] %v8899_v10  ;;  %18489 = vst [vmem:[#allocation19_spill] sm:$0xff] %v8901_v13  ;;  %v8911_v20 = vmul.f32 1.0471976, %v157_v44  ;;  %v8913_v27 = vmul.f32 1.0471976, %v158_v50  ;;  %v622_v4 = vsel %vm608_vm7, %v619_v55, %v621_v9  ;;  %v437_v21 = vclz %v7409_v47 }
  0x80   : > { %18490 = vst [vmem:[#allocation20_spill] sm:$0xff] %v8905_v58  ;;  %18491 = vst [vmem:[#allocation21_spill] sm:$0xff] %v8907_v2  ;;  %v162_v24 = vld [vmem:[%s8598_s30 + $0xc0] sm:$0xff]  ;;  %v163_v28 = vld [vmem:[%s8598_s30 + $0xc8] sm:$0xff]  ;;  %v8922_v39 = vsel %vm7407_vm8, 0, %v7406_v31  ;;  %v8924_v43 = vshrl.u32 %v533_v48, 30  ;;  %v591_v46 = vshrl.u32 %v18307_v23, %v8802_v49 }
  0x81   : > { %18492 = vst [vmem:[#allocation22_spill] sm:$0xff] %v8911_v20  ;;  %18493 = vst [vmem:[#allocation23_spill] sm:$0xff] %v8913_v27  ;;  %v164_v35 = vld [vmem:[%s8598_s30 + $0xd0] sm:$0xff]  ;;  %v692_v44 = vand.u32 31, %v690_v17  ;;  %v8926_v25 = vmul.f32 1.0471976, %v159_v41  ;;  %v8938_v18 = vmul.u32.u64.low %v8909_v56, %v622_v4  ;;  %v8939_v31 = vmul.u32.u64.high %v8909_v56, %v622_v4, %v8938_v18 }
  0x82   : > { %v8928_v50 = vmul.f32 1.0471976, %v160_v59  ;;  %v8930_v34 = vmul.f32 1.0471976, %v161_v30  ;;  %v165_v51 = vld [vmem:[%s8598_s30 + $0xd8] sm:$0xff]  ;;  %v166_v55 = vld [vmem:[%s8598_s30 + $0xe0] sm:$0xff]  ;;  %v8942_v47 = vmul.u32.u64.low %v8909_v56, %v618_v5  ;;  %v8943_v48 = vmul.u32.u64.high %v8909_v56, %v618_v5, %v8942_v47 }
  0x83   : > { %18494 = vst [vmem:[#allocation24_spill] sm:$0xff] %v8926_v25  ;;  %v167_v9 = vld [vmem:[%s8598_s30 + $0xe8] sm:$0xff]  ;;  %v168_v41 = vld [vmem:[%s8598_s30 + $0xf0] sm:$0xff]  ;;  %v8947_v59 = vmul.f32 1.0471976, %v162_v24  ;;  %v342_v30 = vsub.s32 4294967266, %v8922_v39  ;;  %v339_v40 = vshll.u32 %v8778_v54, %v8922_v39 }
  0x84   : > { %18495 = vst [vmem:[#allocation25_spill] sm:$0xff] %v8928_v50  ;;  %18496 = vst [vmem:[#allocation26_spill] sm:$0xff] %v8930_v34  ;;  %v612_v49 = vsel %vm610_vm3, %v600_v33, 2102212464  ;;  %v8952_v23 = vmul.f32 1.0471976, %v163_v28  ;;  %v611_v33 = vsel %vm607_vm4, %v591_v46, %v8863_v32  ;;  %vm632_vm10 = vc.u32 %v8939_v31, %v8942_v47 }
  0x85   : > { %18497 = vst [vmem:[#allocation27_spill] sm:$0xff] %v8947_v59  ;;  %v7410_v16 = vadd.s32 4294967294, %v437_v21  ;;  %v535_v34 = vshll.u32 %v8924_v43, 30  ;;  %v8955_v4 = vsub.s32 32, %v692_v44  ;;  %v8957_v18 = vmul.f32 1.0471976, %v164_v35 }
  0x86   : > { %18498 = vst [vmem:[#allocation28_spill] sm:$0xff] %v8952_v23  ;;  %v8959_v5 = vmul.f32 1.0471976, %v165_v51  ;;  %v8961_v24 = vmul.f32 1.0471976, %v166_v55  ;;  %v613_v28 = vsel %vm609_vm5, %v8865_v62, %v612_v49  ;;  %v322_v35 = vadd.s32 %v8653_v57, %v8676_v14 }
  0x87   : > { %18499 = vst [vmem:[#allocation29_spill] sm:$0xff] %v8957_v18  ;;  %v8963_v59 = vmul.f32 1.0471976, %v167_v9  ;;  %v8965_v50 = vmul.f32 1.0471976, %v168_v41  ;;  %v338_v21 = vsub.s32 32, %v8922_v39  ;;  %v8978_v9 = vsub.s32 %v8858_v15, %v535_v34 }
  0x88   : > { %18500 = vst [vmem:[#allocation30_spill] sm:$0xff] %v8959_v5  ;;  %18501 = vst [vmem:[#allocation31_spill] sm:$0xff] %v8961_v24  ;;  %v343_v51 = vadd.s32 127, %v342_v30  ;;  %vm7411_vm9 = vcmp.lt.s32.totalorder %v7410_v16, 0  ;;  %v18504_v41 = vmov 2102212464   ;;  %v614_v62 = vsel %vm608_vm7, %v611_v33, %v613_v28 }
  0x89   : > { %18502 = vst [vmem:[#allocation32_spill] sm:$0xff] %v8963_v59  ;;  %18503 = vst [vmem:[#allocation33_spill] sm:$0xff] %v8965_v50  ;;  %v704_v50 = vshll.u32 %v18504_v41, %v692_v44  ;;  %v18505_v32 = vmov 920167782   ;;  %v169_v59 = vld [vmem:[%s8598_s30 + $0xf8] sm:$0xff]  ;;  %v170_v24 = vld [vmem:[%s8598_s30 + $0x100] sm:$0xff]  ;;  %v702_v23 = vshrl.u32 %v18504_v41, %v8955_v4  ;;  %v630_v58 = vmul.u32 %v8909_v56, %v614_v62 }
  0x8a   : > { %v705_v46 = vshrl.u32 %v18505_v32, %v8955_v4  ;;  %v8987_v57 = vshrl.u32 %v690_v17, 5  ;;  %v707_v14 = vshll.u32 %v18505_v32, %v692_v44  ;;  %v18506_v30 = vmov 1326507024   ;;  %v172_v56 = vld [vmem:[%s8598_s30 + $0x110] sm:$0xff] }
  0x8b   : > { %v708_v49 = vshrl.u32 %v18506_v30, %v8955_v4  ;;  %v633_v34 = vadd.s32 1, %v8943_v48  ;;  %v18507_v15 = vmov 683565275   ;;  %v18508_v5 = vmov 2475754826  }
  0x8c   : > { %v695_v55 = vshll.u32 %v18507_v15, %v692_v44  ;;  %v698_v18 = vshll.u32 %v18508_v5, %v692_v44  ;;  %v696_v38 = vshrl.u32 %v18508_v5, %v8955_v4  ;;  %v18509_v17 = vmov 2131351028  }
  0x8d   : > { %v699_v33 = vshrl.u32 %v18509_v17, %v8955_v4  ;;  %v701_v28 = vshll.u32 %v18509_v17, %v692_v44  ;;  %v9004_v25 = vmul.f32 1.0471976, %v169_v59  ;;  %v9006_v27 = vmul.f32 1.0471976, %v170_v24  ;;  %v171_v44 = vld [vmem:[%s8598_s30 + $0x108] sm:$0xff] }
  0x8e   : > { %v9009_v20 = vsel %vm7411_vm9, 0, %v7410_v16  ;;  %v706_v2 = vor.u32 %v705_v46, %v704_v50  ;;  %v18512_v13 = vand.u32 2147483647, %v8776_v52  ;;  %v709_v45 = vor.u32 %v708_v49, %v707_v14 }
  0x8f   : > { %18510 = vst [vmem:[#allocation34_spill] sm:$0xff] %v9004_v25  ;;  %18511 = vst [vmem:[#allocation35_spill] sm:$0xff] %v9006_v27  ;;  %vm713_vm11 = vcmp.lt.s32.totalorder %v8987_v57, 4  ;;  %v340_v59 = vshrl.u32 %v322_v35, %v338_v21  ;;  %v344_v24 = vshll.u32 %v343_v51, 23  ;;  %v634_v16 = vsel %vm632_vm10, %v633_v34, %v8943_v48  ;;  %v174_v51 = vld [vmem:[%s8598_s30 + $0x120] sm:$0xff] }
  0x90   : > { %v685_v10 = vand.u32 8388607, %v18512_v13  ;;  %v538_v50 = vsub.s32 0, %v8978_v9  ;;  %v9024_v13 = vor.u32 %v696_v38, %v695_v55  ;;  %v9026_v46 = vor.u32 %v699_v33, %v698_v18  ;;  %v175_v38 = vld [vmem:[%s8598_s30 + $0x128] sm:$0xff]  ;;  %v176_v33 = vld [vmem:[%s8598_s30 + $0x130] sm:$0xff] }
  0x91   : > { %v703_v62 = vor.u32 %v702_v23, %v701_v28  ;;  %v445_v54 = vsub.s32 4294967266, %v9009_v20  ;;  %vm710_vm12 = vcmp.lt.s32.totalorder %v8987_v57, 1  ;;  %vm712_vm13 = vcmp.lt.s32.totalorder %v8987_v57, 3  ;;  %v173_v23 = vld [vmem:[%s8598_s30 + $0x118] sm:$0xff] }
  0x92   : > { %v719_v39 = vsel %vm713_vm11, %v706_v2, 920167782  ;;  %v9033_v48 = vmul.f32 1.0471976, %v171_v44  ;;  %v9035_v35 = vadd.s32 %v634_v16, %v630_v58  ;;  %v686_v21 = vor.u32 8388608, %v685_v10 }
  0x93   : > { %v723_v18 = vsel %vm713_vm11, %v709_v45, 1326507024  ;;  %v9041_v55 = vmul.f32 1.0471976, %v172_v56  ;;  %v341_v14 = vor.u32 %v340_v59, %v339_v40  ;;  %v345_v49 = vor.u32 4788187, %v344_v24 }
  0x94   : > { %18513 = vst [vmem:[#allocation36_spill] sm:$0xff] %v9033_v48  ;;  %v425_v34 = vadd.s32 %v8717_v53, %v8723_v60  ;;  %v7413_v28 = vmin.u32 %v538_v50, %v8978_v9  ;;  %vm711_vm14 = vcmp.lt.s32.totalorder %v8987_v57, 2  ;;  %v718_v58 = vsel %vm710_vm12, %v9024_v13, %v9026_v46  ;;  %v177_v40 = vld [vmem:[%s8598_s30 + $0x138] sm:$0xff]  ;;  %v178_v50 = vld [vmem:[%s8598_s30 + $0x140] sm:$0xff] }
  0x95   : > { %18514 = vst [vmem:[#allocation37_spill] sm:$0xff] %v9041_v55  ;;  %v720_v45 = vsel %vm712_vm13, %v703_v62, %v719_v39  ;;  %v441_v10 = vsub.s32 32, %v9009_v20  ;;  %v446_v44 = vadd.s32 127, %v445_v54  ;;  %v722_v53 = vsel %vm710_vm12, %v9026_v46, %v703_v62 }
  0x96   : > { %v724_v60 = vsel %vm712_vm13, %v706_v2, %v723_v18  ;;  %v9062_v59 = vmul.f32 1.0471976, %v173_v23  ;;  %v9064_v24 = vmul.f32 1.0471976, %v174_v51  ;;  %v636_v16 = vadd.s32 536870912, %v9035_v35 }
  0x97   : > { %v9067_v56 = vshll.u32 %v686_v21, 8  ;;  %v9070_v39 = vmul.f32 1.0471976, %v175_v38  ;;  %v9072_v54 = vmul.f32 1.0471976, %v176_v33  ;;  %v721_v55 = vsel %vm711_vm14, %v718_v58, %v720_v45  ;;  %v180_v45 = vld [vmem:[%s8598_s30 + $0x150] sm:$0xff] }
  0x98   : > { %18515 = vst [vmem:[#allocation38_spill] sm:$0xff] %v9062_v59  ;;  %18516 = vst [vmem:[#allocation39_spill] sm:$0xff] %v9064_v24  ;;  %v784_v2 = vand.u32 2139095040, %v8806_v19  ;;  %v9077_v18 = vmul.f32 1.0471976, %v177_v40  ;;  %v348_v23 = vcvt.s32.f32 %v341_v14  ;;  %v540_v51 = vclz %v7413_v28  ;;  %v179_v24 = vld [vmem:[%s8598_s30 + $0x148] sm:$0xff] }
  0x99   : > { %18517 = vst [vmem:[#allocation40_spill] sm:$0xff] %v9070_v39  ;;  %18518 = vst [vmem:[#allocation41_spill] sm:$0xff] %v9072_v54  ;;  %v725_v21 = vsel %vm711_vm14, %v722_v53, %v724_v60  ;;  %v346_v38 = vand.u32 2147483647, %v345_v49  ;;  %v442_v33 = vshll.u32 %v8824_v37, %v9009_v20  ;;  %v443_v54 = vshrl.u32 %v425_v34, %v441_v10  ;;  %v181_v49 = vld [vmem:[%s8598_s30 + $0x158] sm:$0xff]  ;;  %v182_v53 = vld [vmem:[%s8598_s30 + $0x160] sm:$0xff] }
  0x9a   : > { %18519 = vst [vmem:[#allocation42_spill] sm:$0xff] %v9077_v18  ;;  %v447_v58 = vshll.u32 %v446_v44, 23  ;;  %v9085_v39 = vmul.f32 1.0471976, %v178_v50  ;;  %vm268_vm15 = vcmp.lt.s32.totalorder %v8605_v1, 0  ;;  %v9088_v14 = vshrl.u32 %v636_v16, 30 }
  0x9b   : > { %v9091_v28 = vmul.u32.u64.low %v9067_v56, %v721_v55  ;;  %v9092_v40 = vmul.u32.u64.high %v9067_v56, %v721_v55, %v9091_v28  ;;  %v694_v20 = vshrl.u32 %v18507_v15, %v8955_v4  ;;  %v785_v10 = vshrl.u32 %v784_v2, 23  ;;  %v183_v44 = vld [vmem:[%s8598_s30 + $0x168] sm:$0xff]  ;;  %v184_v50 = vld [vmem:[%s8598_s30 + $0x170] sm:$0xff] }
  0x9c   : > { %18520 = vst [vmem:[#allocation43_spill] sm:$0xff] %v9085_v39  ;;  %v9100_v37 = vmul.u32.u64.low %v9067_v56, %v725_v21  ;;  %v9101_v34 = vmul.u32.u64.high %v9067_v56, %v725_v21, %v9100_v37  ;;  %v9104_v60 = vmul.f32 1.0471976, %v179_v24  ;;  %v7414_v16 = vadd.s32 4294967294, %v540_v51  ;;  %v185_v39 = vld [vmem:[%s8598_s30 + $0x178] sm:$0xff]  ;;  %v187_v51 = vld [vmem:[%s8598_s30 + $0x188] sm:$0xff] }
  0x9d   : > { %v715_v55 = vsel %vm713_vm11, %v703_v62, 2102212464  ;;  %v9110_v18 = vmul.f32 1.0471976, %v180_v45  ;;  %v349_v4 = vmul.f32 %v348_v23, %v346_v38  ;;  %v444_v59 = vor.u32 %v443_v54, %v442_v33  ;;  %v186_v37 = vld [vmem:[%s8598_s30 + $0x180] sm:$0xff]  ;;  %v189_v38 = vld [vmem:[%s8598_s30 + $0x198] sm:$0xff] }
  0x9e   : > { %18521 = vst [vmem:[#allocation44_spill] sm:$0xff] %v9104_v60  ;;  %v448_v21 = vor.u32 4788187, %v447_v58  ;;  %v9113_v48 = vmul.f32 1.0471976, %v181_v49  ;;  %v638_v24 = vshll.u32 %v9088_v14, 30  ;;  %v714_v45 = vsel %vm710_vm12, %v694_v20, %v9024_v13 }
  0x9f   : > { %18522 = vst [vmem:[#allocation45_spill] sm:$0xff] %v9110_v18  ;;  %v9115_v2 = vmul.f32 1.0471976, %v182_v53  ;;  %v188_v60 = vld [vmem:[%s8598_s30 + $0x190] sm:$0xff]  ;;  %v9120_v62 = vmul.f32 1.0471976, %v183_v44  ;;  %v716_v54 = vsel %vm712_vm13, %v9026_v46, %v715_v55  ;;  %v451_v13 = vcvt.s32.f32 %v444_v59 }
  0xa0   : > { %18523 = vst [vmem:[#allocation46_spill] sm:$0xff] %v9113_v48  ;;  %v7424_v23 = vadd.s32 4294967169, %v785_v10  ;;  %v9129_v33 = vmul.f32 1.0471976, %v184_v50  ;;  %v9131_v58 = vmul.f32 1.0471976, %v185_v39  ;;  %v9140_v46 = vsub.s32 %v9035_v35, %v638_v24 }
  0xa1   : > { %18524 = vst [vmem:[#allocation47_spill] sm:$0xff] %v9115_v2  ;;  %18525 = vst [vmem:[#allocation48_spill] sm:$0xff] %v9120_v62  ;;  %vm7415_vm0 = vcmp.lt.s32.totalorder %v7414_v16, 0  ;;  %v190_v49 = vld [vmem:[%s8598_s30 + $0x1a0] sm:$0xff]  ;;  %v9134_v53 = vmul.f32 1.0471976, %v186_v37  ;;  %v717_v10 = vsel %vm711_vm14, %v714_v45, %v716_v54  ;;  %vm735_vm1 = vc.u32 %v9101_v34, %v9091_v28 }
  0xa2   : > { %18526 = vst [vmem:[#allocation49_spill] sm:$0xff] %v9129_v33  ;;  %18527 = vst [vmem:[#allocation50_spill] sm:$0xff] %v9131_v58  ;;  %v350_v44 = vxor.u32 2147483648, %v349_v4  ;;  %v449_v62 = vand.u32 2147483647, %v448_v21  ;;  %v191_v20 = vld [vmem:[%s8598_s30 + $0x1a8] sm:$0xff]  ;;  %v733_v54 = vmul.u32 %v9067_v56, %v717_v10 }
  0xa3   : > { %18528 = vst [vmem:[#allocation51_spill] sm:$0xff] %v9134_v53  ;;  %v9137_v2 = vmul.f32 1.0471976, %v187_v51  ;;  %v736_v39 = vadd.s32 1, %v9092_v40  ;;  %v192_v55 = vld [vmem:[%s8598_s30 + $0x1b0] sm:$0xff]  ;;  %v193_v50 = vld [vmem:[%s8598_s30 + $0x1b8] sm:$0xff] }
  0xa4   : > { %v9147_v58 = vmul.f32 1.0471976, %v188_v60  ;;  %v9149_v37 = vsel %vm7415_vm0, 0, %v7414_v16  ;;  %v791_v59 = vadd.s32 1, %v7424_v23  ;;  %v9153_v21 = vmul.f32 1.0471976, %v189_v38 }
  0xa5   : > { %18529 = vst [vmem:[#allocation52_spill] sm:$0xff] %v9137_v2  ;;  %v9155_v35 = vmul.f32 1.0471976, %v190_v49  ;;  %v18533_v57 = vand.u32 2147483647, %v8605_v1  ;;  %v194_v60 = vld [vmem:[%s8598_s30 + $0x1c0] sm:$0xff]  ;;  %v351_v16 = vsel %vm268_vm15, %v350_v44, %v349_v4  ;;  %v452_v45 = vmul.f32 %v451_v13, %v449_v62 }
  0xa6   : > { %18530 = vst [vmem:[#allocation53_spill] sm:$0xff] %v9147_v58  ;;  %18531 = vst [vmem:[#allocation54_spill] sm:$0xff] %v9153_v21  ;;  %v352_v51 = vsub.s32 4, %v8750_v29  ;;  %v9168_v23 = vmul.f32 1.0471976, %v191_v20  ;;  %v548_v38 = vsub.s32 4294967266, %v9149_v37 }
  0xa7   : > { %18532 = vst [vmem:[#allocation55_spill] sm:$0xff] %v9155_v35  ;;  %vm9159_vm2 = vcmp.le.f32.partialorder %v18533_v57, 0.7853982  ;;  %v641_v49 = vsub.s32 0, %v9140_v46  ;;  %v737_v57 = vsel %vm735_vm1, %v736_v39, %v9092_v40  ;;  %v9173_v35 = vmul.f32 1.0471976, %v192_v55 }
  0xa8   : > { %18536 = vst [vmem:[#allocation56_spill] sm:$0xff] %v9168_v23  ;;  %v9175_v21 = vmul.f32 1.0471976, %v193_v50  ;;  %vm371_vm3 = vcmp.lt.s32.totalorder %v8609_v7, 0  ;;  %vm792_vm4 = vcmp.gt.s32.totalorder %v791_v59, 0  ;;  %v195_v4 = vld [vmem:[%s8598_s30 + $0x1c8] sm:$0xff]  ;;  %v354_v56 = vsel %vm9159_vm2, %v8605_v1, %v351_v16 }
  0xa9   : > { %18537 = vst [vmem:[#allocation57_spill] sm:$0xff] %v9173_v35  ;;  %v196_v44 = vld [vmem:[%s8598_s30 + $0x1d0] sm:$0xff]  ;;  %v9180_v62 = vmul.f32 1.0471976, %v194_v60  ;;  %v455_v13 = vsub.s32 4, %v8791_v6  ;;  %v887_v40 = vand.u32 2139095040, %v8809_v26  ;;  %v353_v20 = vsel %vm268_vm15, %v352_v51, %v8750_v29 }
  0xaa   : > { %18538 = vst [vmem:[#allocation58_spill] sm:$0xff] %v9175_v21  ;;  %v453_v10 = vxor.u32 2147483648, %v452_v45  ;;  %v528_v39 = vadd.s32 %v8781_v61, %v8787_v0  ;;  %v9192_v55 = vadd.s32 %v737_v57, %v733_v54  ;;  %v544_v50 = vsub.s32 32, %v9149_v37  ;;  %v197_v61 = vld [vmem:[%s8598_s30 + $0x1d8] sm:$0xff]  ;;  %v198_v0 = vld [vmem:[%s8598_s30 + $0x1e0] sm:$0xff] }
  0xab   : > { %18539 = vst [vmem:[#allocation59_spill] sm:$0xff] %v9180_v62  ;;  %v549_v60 = vadd.s32 127, %v548_v38  ;;  %v7417_v16 = vmin.u32 %v641_v49, %v9140_v46  ;;  %v793_v62 = vsel %vm792_vm4, %v791_v59, 0  ;;  %v9196_v21 = vmul.f32 1.0471976, %v195_v4 }
  0xac   : > { %v9198_v35 = vmul.f32 1.0471976, %v196_v44  ;;  %8047 = vcosq.f32 %v354_v56  ;;  %v18542_v29 = vand.u32 2147483647, %v8609_v7  ;;  %v355_v54 = vsel %vm9159_vm2, 0, %v353_v20 }
  0xad   : > { %18540 = vst [vmem:[#allocation60_spill] sm:$0xff] %v9196_v21  ;;  %8049 = vsinq.f32 %v354_v56  ;;  %v456_v59 = vsel %vm371_vm3, %v455_v13, %v8791_v6  ;;  %v888_v38 = vshrl.u32 %v887_v40, 23  ;;  %v454_v49 = vsel %vm371_vm3, %v453_v10, %v452_v45  ;;  %v200_v21 = vld [vmem:[%s8598_s30 + $0x1f0] sm:$0xff] }
  0xae   : > { %18541 = vst [vmem:[#allocation61_spill] sm:$0xff] %v9198_v35  ;;  %vm9202_vm5 = vcmp.le.f32.partialorder %v18542_v29, 0.7853982  ;;  %v558_v57 = vsub.s32 4, %v8924_v43  ;;  %v739_v4 = vadd.s32 536870912, %v9192_v55  ;;  %v795_v44 = vand.u32 31, %v793_v62 }
  0xaf   : > { %v199_v29 = vld [vmem:[%s8598_s30 + $0x1e8] sm:$0xff]  ;;  %v545_v35 = vshll.u32 %v8978_v9, %v9149_v37  ;;  %v546_v24 = vshrl.u32 %v528_v39, %v544_v50  ;;  %v550_v20 = vshll.u32 %v549_v60, 23  ;;  %v643_v56 = vclz %v7417_v16 }
  0xb0   : > { %v9221_v23 = vmul.f32 1.0471976, %v197_v61  ;;  %v9223_v6 = vmul.f32 1.0471976, %v198_v0  ;;  %v9225_v13 = vand.u32 3, %v355_v54  ;;  %v457_v45 = vsel %vm9202_vm5, %v8609_v7, %v454_v49 }
  0xb1   : > { %v458_v40 = vsel %vm9202_vm5, 0, %v456_v59  ;;  %vm474_vm6 = vcmp.lt.s32.totalorder %v8618_v22, 0  ;;  %v7428_v9 = vadd.s32 4294967169, %v888_v38  ;;  %v9233_v37 = vmul.f32 1.0471976, %v199_v29 }
  0xb2   : > { %18545 = vst [vmem:[#allocation62_spill] sm:$0xff] %v9221_v23  ;;  %18546 = vst [vmem:[#allocation63_spill] sm:$0xff] %v9223_v6  ;;  %v559_v10 = vsel %vm474_vm6, %v558_v57, %v8924_v43  ;;  %v9238_v39 = vshrl.u32 %v739_v4, 30  ;;  %v9240_v50 = vsub.s32 32, %v795_v44  ;;  %v9242_v60 = vmul.f32 1.0471976, %v200_v21 }
  0xb3   : > { %18547 = vst [vmem:[#allocation64_spill] sm:$0xff] %v9233_v37  ;;  %v547_v16 = vor.u32 %v546_v24, %v545_v35  ;;  %v551_v61 = vor.u32 4788187, %v550_v20  ;;  %v7418_v0 = vadd.s32 4294967294, %v643_v56  ;;  %vm364_vm7 = vcmp.eq.s32.totalorder %v9225_v13, 2 }
  0xb4   : > { %18548 = vst [vmem:[#allocation65_spill] sm:$0xff] %v9242_v60  ;;  %8051 = vcosq.f32 %v457_v45  ;;  %v9245_v51 = vand.u32 3, %v458_v40  ;;  %v18549_v54 = vand.u32 2147483647, %v8618_v22  ;;  %vm361_vm9 = vcmp.eq.s32.totalorder %v9225_v13, 0 }
  0xb5   : > { %8053 = vsinq.f32 %v457_v45  ;;  %v894_v35 = vadd.s32 1, %v7428_v9  ;;  %v741_v49 = vshll.u32 %v9238_v39, 30  ;;  %v807_v57 = vshll.u32 %v18504_v41, %v795_v44 }
  0xb6   : > { %vm9249_vm8 = vcmp.le.f32.partialorder %v18549_v54, 0.7853982  ;;  %v8048_v38 = vpop.eup %8047  ;;  %v808_v4 = vshrl.u32 %v18505_v32, %v9240_v50  ;;  %v990_v29 = vand.u32 2139095040, %v8843_v63  ;;  %v552_v20 = vand.u32 2147483647, %v551_v61 }
  0xb7   : > { %v561_v43 = vsel %vm9249_vm8, 0, %v559_v10  ;;  %v8050_v24 = vpop.eup %8049  ;;  %v554_v56 = vcvt.s32.f32 %v547_v16  ;;  %vm7419_vm10 = vcmp.lt.s32.totalorder %v7418_v0, 0  ;;  %v9262_v45 = vshrl.u32 %v793_v62, 5 }
  0xb8   : > { %v798_v40 = vshll.u32 %v18507_v15, %v795_v44  ;;  %v799_v9 = vshrl.u32 %v18508_v5, %v9240_v50  ;;  %v801_v10 = vshll.u32 %v18508_v5, %v795_v44  ;;  %v804_v54 = vshll.u32 %v18509_v17, %v795_v44 }
  0xb9   : > { %v802_v21 = vshrl.u32 %v18509_v17, %v9240_v50  ;;  %v805_v60 = vshrl.u32 %v18504_v41, %v9240_v50  ;;  %v810_v16 = vshll.u32 %v18505_v32, %v795_v44  ;;  %vm895_vm11 = vcmp.gt.s32.totalorder %v894_v35, 0 }
  0xba   : > { %v9275_v62 = vsub.s32 %v9192_v55, %v741_v49  ;;  %v809_v61 = vor.u32 %v808_v4, %v807_v57  ;;  %v811_v37 = vshrl.u32 %v18506_v30, %v9240_v50  ;;  %v991_v6 = vshrl.u32 %v990_v29, 23 }
  0xbb   : > { %v362_v23 = vxor.u32 2147483648, %v8050_v24  ;;  %v365_v58 = vxor.u32 2147483648, %v8048_v38  ;;  %v18552_v2 = vand.u32 2147483647, %v8806_v19  ;;  %vm816_vm12 = vcmp.lt.s32.totalorder %v9262_v45, 4 }
  0xbc   : > { %v555_v33 = vmul.f32 %v554_v56, %v552_v20  ;;  %v9283_v48 = vsel %vm7419_vm10, 0, %v7418_v0  ;;  %vm813_vm13 = vcmp.lt.s32.totalorder %v9262_v45, 1  ;;  %v896_v55 = vsel %vm895_vm11, %v894_v35, 0 }
  0xbd   : > { %v788_v53 = vand.u32 8388607, %v18552_v2  ;;  %v800_v44 = vor.u32 %v799_v9, %v798_v40  ;;  %v803_v49 = vor.u32 %v802_v21, %v801_v10  ;;  %v806_v57 = vor.u32 %v805_v60, %v804_v54 }
  0xbe   : > { %vm815_vm14 = vcmp.lt.s32.totalorder %v9262_v45, 3  ;;  %v9287_v4 = vpop.eup %8051  ;;  %v744_v29 = vsub.s32 0, %v9275_v62  ;;  %v812_v18 = vor.u32 %v811_v37, %v810_v16  ;;  %v822_v2 = vsel %vm816_vm12, %v809_v61, 920167782 }
  0xbf   : > { %v7432_v20 = vadd.s32 4294967169, %v991_v6  ;;  %v9292_v56 = vpop.eup %8053  ;;  %v9296_v0 = vsel %vm364_vm7, %v365_v58, %v8050_v24  ;;  %v9298_v35 = vand.u32 3, %v561_v43  ;;  %v789_v60 = vor.u32 8388608, %v788_v53 }
  0xc0   : > { %v898_v21 = vand.u32 31, %v896_v55  ;;  %v9302_v40 = vsel %vm361_vm9, %v8048_v38, %v362_v23  ;;  %v556_v9 = vxor.u32 2147483648, %v555_v33  ;;  %v631_v37 = vadd.s32 %v8942_v47, %v8939_v31 }
  0xc1   : > { %v647_v6 = vsub.s32 32, %v9283_v48  ;;  %v651_v10 = vsub.s32 4294967266, %v9283_v48  ;;  %vm814_vm15 = vcmp.lt.s32.totalorder %v9262_v45, 2  ;;  %v821_v58 = vsel %vm813_vm13, %v800_v44, %v803_v49 }
  0xc2   : > { %v823_v53 = vsel %vm815_vm14, %v806_v57, %v822_v2  ;;  %v7421_v43 = vmin.u32 %v744_v29, %v9275_v62  ;;  %v797_v23 = vshrl.u32 %v18507_v15, %v9240_v50  ;;  %v826_v31 = vsel %vm816_vm12, %v812_v18, 1326507024 }
  0xc3   : > { %v997_v47 = vadd.s32 1, %v7432_v20  ;;  %v9320_v54 = vshll.u32 %v789_v60, 8  ;;  %v9322_v16 = vsub.s32 32, %v898_v21  ;;  %v557_v2 = vsel %vm474_vm6, %v556_v9, %v555_v33 }
  0xc4   : > { %v648_v29 = vshll.u32 %v9140_v46, %v9283_v48  ;;  %v824_v50 = vsel %vm814_vm15, %v821_v58, %v823_v53  ;;  %v649_v20 = vshrl.u32 %v631_v37, %v647_v6  ;;  %v652_v27 = vadd.s32 127, %v651_v10 }
  0xc5   : > { %v825_v38 = vsel %vm813_vm13, %v803_v49, %v806_v57  ;;  %v827_v60 = vsel %vm815_vm14, %v809_v61, %v826_v31  ;;  %v746_v24 = vclz %v7421_v43  ;;  %v817_v33 = vsel %vm813_vm13, %v797_v23, %v800_v44 }
  0xc6   : > { %v818_v48 = vsel %vm816_vm12, %v806_v57, 2102212464  ;;  %vm998_vm0 = vcmp.gt.s32.totalorder %v997_v47, 0  ;;  %v9340_v46 = vmul.u32.u64.low %v9320_v54, %v824_v50  ;;  %v9341_v9 = vmul.u32.u64.high %v9320_v54, %v824_v50, %v9340_v46 }
  0xc7   : > { %v910_v37 = vshll.u32 %v18504_v41, %v898_v21  ;;  %v911_v6 = vshrl.u32 %v18505_v32, %v9322_v16  ;;  %v828_v61 = vsel %vm814_vm15, %v825_v38, %v827_v60  ;;  %v9349_v10 = vshrl.u32 %v896_v55, 5 }
  0xc8   : > { %18553 = vst [vmem:[#allocation66_spill] sm:$0xff] %v9340_v46  ;;  %v913_v44 = vshll.u32 %v18505_v32, %v898_v21  ;;  %v914_v57 = vshrl.u32 %v18506_v30, %v9322_v16  ;;  %v819_v58 = vsel %vm815_vm14, %v803_v49, %v818_v48  ;;  %v901_v53 = vshll.u32 %v18507_v15, %v898_v21 }
  0xc9   : > { %v904_v43 = vshll.u32 %v18508_v5, %v898_v21  ;;  %v999_v23 = vsel %vm998_vm0, %v997_v47, 0  ;;  %v902_v31 = vshrl.u32 %v18508_v5, %v9322_v16  ;;  %v905_v55 = vshrl.u32 %v18509_v17, %v9322_v16 }
  0xca   : > { %v907_v38 = vshll.u32 %v18509_v17, %v898_v21  ;;  %v908_v50 = vshrl.u32 %v18504_v41, %v9322_v16  ;;  %v7422_v60 = vadd.s32 4294967294, %v746_v24  ;;  %v912_v48 = vor.u32 %v911_v6, %v910_v37 }
  0xcb   : > { %v9366_v18 = vmul.u32.u64.low %v9320_v54, %v828_v61  ;;  %v9367_v49 = vmul.u32.u64.high %v9320_v54, %v828_v61, %v9366_v18  ;;  %v18554_v25 = vand.u32 2147483647, %v8809_v26  ;;  %v915_v36 = vor.u32 %v914_v57, %v913_v44 }
  0xcc   : > { %vm919_vm1 = vcmp.lt.s32.totalorder %v9349_v10, 4  ;;  %v1001_v12 = vand.u32 31, %v999_v23  ;;  %v9375_v21 = vsel %vm9249_vm8, %v8618_v22, %v557_v2  ;;  %v9377_v19 = vor.u32 %v649_v20, %v648_v29 }
  0xcd   : > { %v891_v47 = vand.u32 8388607, %v18554_v25  ;;  %v653_v24 = vshll.u32 %v652_v27, 23  ;;  %v820_v18 = vsel %vm814_vm15, %v817_v33, %v819_v58  ;;  %v9382_v37 = vor.u32 %v902_v31, %v901_v53 }
  0xce   : > { %v9384_v25 = vor.u32 %v905_v55, %v904_v43  ;;  %v909_v6 = vor.u32 %v908_v50, %v907_v38  ;;  %vm916_vm2 = vcmp.lt.s32.totalorder %v9349_v10, 1  ;;  %vm918_vm3 = vcmp.lt.s32.totalorder %v9349_v10, 3 }
  0xcf   : > { %v925_v59 = vsel %vm919_vm1, %v912_v48, 920167782  ;;  %v18371_v2 = vand.u32 2147483647, %v8843_v63  ;;  %vm7423_vm4 = vcmp.lt.s32.totalorder %v7422_v60, 0  ;;  %v892_v27 = vor.u32 8388608, %v891_v47 }
  0xd0   : > { %v929_v45 = vsel %vm919_vm1, %v915_v36, 1326507024  ;;  %v9393_v29 = vsub.s32 32, %v1001_v12  ;;  %v654_v20 = vor.u32 4788187, %v653_v24  ;;  %v657_v33 = vcvt.s32.f32 %v9377_v19 }
  0xd1   : > { %v9398_v61 = vadd.s32 %v9091_v28, %v9101_v34  ;;  %v836_v44 = vmul.u32 %v9320_v54, %v820_v18  ;;  %vm917_vm5 = vcmp.lt.s32.totalorder %v9349_v10, 2  ;;  %v924_v57 = vsel %vm916_vm2, %v9382_v37, %v9384_v25  ;;  %v201_v10 = vld [vmem:[%s8598_s30 + $0x1f8] sm:$0xff] }
  0xd2   : > { %v926_v36 = vsel %vm918_vm3, %v909_v6, %v925_v59  ;;  %v1093_v58 = vand.u32 2139095040, %v8845_v3  ;;  %v9409_v53 = vsel %vm7423_vm4, 0, %v7422_v60  ;;  %v839_v19 = vadd.s32 1, %v9341_v9 }
  0xd3   : > { %v928_v28 = vsel %vm916_vm2, %v9384_v25, %v909_v6  ;;  %v930_v34 = vsel %vm918_vm3, %v912_v48, %v929_v45  ;;  %vm838_vm6 = vc.u32 %v9367_v49, %v9340_v46  ;;  %v9419_v54 = vshll.u32 %v892_v27, 8 }
  0xd4   : > { %v1013_v43 = vshll.u32 %v18504_v41, %v1001_v12  ;;  %v1014_v31 = vshrl.u32 %v18505_v32, %v9393_v29  ;;  %v927_v55 = vsel %vm917_vm5, %v924_v57, %v926_v36  ;;  %v9426_v38 = vshrl.u32 %v999_v23, 5 }
  0xd5   : > { %v1016_v50 = vshll.u32 %v18505_v32, %v1001_v12  ;;  %v1017_v60 = vshrl.u32 %v18506_v30, %v9393_v29  ;;  %vm467_vm7 = vcmp.eq.s32.totalorder %v9245_v51, 2  ;;  %v931_v48 = vsel %vm917_vm5, %v928_v28, %v930_v34 }
  0xd6   : > { %v1004_v47 = vshll.u32 %v18507_v15, %v1001_v12  ;;  %v1005_v24 = vshrl.u32 %v18508_v5, %v9393_v29  ;;  %v1094_v18 = vshrl.u32 %v1093_v58, 23  ;;  %v1007_v59 = vshll.u32 %v18508_v5, %v1001_v12 }
  0xd7   : > { %v1008_v23 = vshrl.u32 %v18509_v17, %v9393_v29  ;;  %v1010_v27 = vshll.u32 %v18509_v17, %v1001_v12  ;;  %v1011_v45 = vshrl.u32 %v18504_v41, %v9393_v29  ;;  %v655_v57 = vand.u32 2147483647, %v654_v20 }
  0xd8   : > { %v840_v36 = vsel %vm838_vm6, %v839_v19, %v9341_v9  ;;  %v994_v28 = vand.u32 8388607, %v18371_v2  ;;  %v1015_v58 = vor.u32 %v1014_v31, %v1013_v43  ;;  %vm464_vm8 = vcmp.eq.s32.totalorder %v9245_v51, 0 }
  0xd9   : > { %v9451_v34 = vmul.u32.u64.low %v9419_v54, %v927_v55  ;;  %v9452_v11 = vmul.u32.u64.high %v9419_v54, %v927_v55, %v9451_v34  ;;  %v1018_v12 = vor.u32 %v1017_v60, %v1016_v50  ;;  %vm1022_vm9 = vcmp.lt.s32.totalorder %v9426_v38, 4 }
  0xda   : > { %v754_v20 = vsub.s32 4294967266, %v9409_v53  ;;  %v9458_v26 = vmul.u32.u64.low %v9419_v54, %v931_v48  ;;  %v9459_v46 = vmul.u32.u64.high %v9419_v54, %v931_v48, %v9458_v26  ;;  %v7436_v9 = vadd.s32 4294967169, %v1094_v18 }
  0xdb   : > { %vm577_vm10 = vcmp.lt.s32.totalorder %v8706_v42, 0  ;;  %v9462_v19 = vadd.s32 %v840_v36, %v836_v44  ;;  %v9464_v43 = vor.u32 %v1005_v24, %v1004_v47  ;;  %v9466_v31 = vor.u32 %v1008_v23, %v1007_v59 }
  0xdc   : > { %v1012_v55 = vor.u32 %v1011_v45, %v1010_v27  ;;  %v900_v50 = vshrl.u32 %v18507_v15, %v9322_v16  ;;  %vm1019_vm11 = vcmp.lt.s32.totalorder %v9426_v38, 1  ;;  %vm1021_vm12 = vcmp.lt.s32.totalorder %v9426_v38, 3 }
  0xdd   : > { %v1028_v26 = vsel %vm1022_vm9, %v1015_v58, 920167782  ;;  %v750_v60 = vsub.s32 32, %v9409_v53  ;;  %v921_v44 = vsel %vm919_vm1, %v909_v6, 2102212464  ;;  %v995_v48 = vor.u32 8388608, %v994_v28 }
  0xde   : > { %v1032_v47 = vsel %vm1022_vm9, %v1018_v12, 1326507024  ;;  %vm360_vm13 = vcmp.lt.s32.totalorder %v9225_v13, 2  ;;  %vm463_vm14 = vcmp.lt.s32.totalorder %v9245_v51, 2  ;;  %8055 = vcosq.f32 %v9375_v21 }
  0xdf   : > { %v658_v16 = vmul.f32 %v657_v33, %v655_v57  ;;  %v755_v24 = vadd.s32 127, %v754_v20  ;;  %v1100_v18 = vadd.s32 1, %v7436_v9  ;;  %v842_v59 = vadd.s32 536870912, %v9462_v19 }
  0xe0   : > { %vm1020_vm15 = vcmp.lt.s32.totalorder %v9426_v38, 2  ;;  %v1027_v6 = vsel %vm1019_vm11, %v9464_v43, %v9466_v31  ;;  %v1029_v23 = vsel %vm1021_vm12, %v1012_v55, %v1028_v26  ;;  %v920_v27 = vsel %vm916_vm2, %v900_v50, %v9382_v37 }
  0xe1   : > { %v922_v33 = vsel %vm918_vm3, %v9384_v25, %v921_v44  ;;  %v1031_v45 = vsel %vm1019_vm11, %v9466_v31, %v1012_v55  ;;  %v1033_v57 = vsel %vm1021_vm12, %v1015_v58, %v1032_v47  ;;  %vm358_vm0 = vweird.f32 %v8605_v1 }
  0xe2   : > { %vm461_vm1 = vweird.f32 %v8609_v7  ;;  %v18555_v36 = vxor.u32 2147483648, %v9287_v4  ;;  %v751_v25 = vshll.u32 %v9275_v62, %v9409_v53  ;;  %v752_v28 = vshrl.u32 %v9398_v61, %v750_v60 }
  0xe3   : > { %v9511_v12 = vshll.u32 %v995_v48, 8  ;;  %8057 = vsinq.f32 %v9375_v21  ;;  %v756_v58 = vshll.u32 %v755_v24, 23  ;;  %v1030_v20 = vsel %vm1020_vm15, %v1027_v6, %v1029_v23 }
  0xe4   : > { %v469_v37 = vsel %vm467_vm7, %v18555_v36, %v9292_v56  ;;  %vm1101_vm2 = vcmp.gt.s32.totalorder %v1100_v18, 0  ;;  %v9516_v9 = vshrl.u32 %v842_v59, 30  ;;  %v923_v50 = vsel %vm917_vm5, %v920_v27, %v922_v33 }
  0xe5   : > { %v942_v26 = vadd.s32 1, %v9452_v11  ;;  %v1034_v62 = vsel %vm1020_vm15, %v1031_v45, %v1033_v57  ;;  %v18556_v61 = vxor.u32 2147483648, %v9292_v56  ;;  %v659_v53 = vxor.u32 2147483648, %v658_v16 }
  0xe6   : > { %v18557_v60 = vsub.s32 4, %v9088_v14  ;;  %vm941_vm3 = vc.u32 %v9459_v46, %v9451_v34  ;;  %v753_v48 = vor.u32 %v752_v28, %v751_v25  ;;  %v1102_v56 = vsel %vm1101_vm2, %v1100_v18, 0 }
  0xe7   : > { %v466_v21 = vsel %vm464_vm8, %v9287_v4, %v18556_v61  ;;  %v9537_v47 = vmul.u32.u64.low %v9511_v12, %v1030_v20  ;;  %v9538_v24 = vmul.u32.u64.high %v9511_v12, %v1030_v20, %v9537_v47  ;;  %v939_v4 = vmul.u32 %v9419_v54, %v923_v50 }
  0xe8   : > { %v662_v44 = vsel %vm577_vm10, %v18557_v60, %v9088_v14  ;;  %v1003_v59 = vshrl.u32 %v18507_v15, %v9393_v29  ;;  %v9545_v6 = vmul.u32.u64.low %v9511_v12, %v1034_v62  ;;  %v9546_v23 = vmul.u32.u64.high %v9511_v12, %v1034_v62, %v9545_v6  ;;  %v8056_v57 = vpop.eup %8055 }
  0xe9   : > { %v757_v14 = vor.u32 4788187, %v756_v58  ;;  %v844_v27 = vshll.u32 %v9516_v9, 30  ;;  %v943_v33 = vsel %vm941_vm3, %v942_v26, %v9452_v11  ;;  %v1024_v45 = vsel %vm1022_vm9, %v1012_v55, 2102212464 }
  0xea   : > { %v9552_v36 = vmul.f32 1.0471976, %v201_v10  ;;  %v18559_v54 = vand.u32 2147483647, %v8706_v42  ;;  %v660_v29 = vsel %vm577_vm10, %v659_v53, %v658_v16  ;;  %v1104_v25 = vand.u32 31, %v1102_v56 }
  0xeb   : > { %v367_v11 = vsel %vm360_vm13, %v9302_v40, %v9296_v0  ;;  %v470_v55 = vsel %vm463_vm14, %v466_v21, %v469_v37  ;;  %vm567_vm5 = vcmp.eq.s32.totalorder %v9298_v35, 0  ;;  %v9571_v58 = vadd.s32 %v943_v33, %v939_v4 }
  0xec   : > { %18558 = vst [vmem:[#allocation67_spill] sm:$0xff] %v9552_v36  ;;  %vm9556_vm4 = vcmp.le.f32.partialorder %v18559_v54, 0.7853982  ;;  %v1023_v16 = vsel %vm1019_vm11, %v1003_v59, %v9464_v43  ;;  %v1025_v20 = vsel %vm1021_vm12, %v9466_v31, %v1024_v45  ;;  %v1196_v13 = vand.u32 2139095040, %v8847_v8 }
  0xed   : > { %v664_v28 = vsel %vm9556_vm4, 0, %v662_v44  ;;  %v663_v51 = vsel %vm9556_vm4, %v8706_v42, %v660_v29  ;;  %v758_v0 = vand.u32 2147483647, %v757_v14  ;;  %v760_v40 = vcvt.s32.f32 %v753_v48  ;;  %v8058_v50 = vpop.eup %8057 }
  0xee   : > { %v9584_v37 = vsub.s32 %v9462_v19, %v844_v27  ;;  %v9588_v26 = vsel %vm358_vm0, nan, %v367_v11  ;;  %v9592_v43 = vsel %vm461_vm1, nan, %v470_v55  ;;  %vm570_vm6 = vcmp.eq.s32.totalorder %v9298_v35, 2 }
  0xef   : > { %18562 = vst [vmem:[#allocation68_spill] sm:$0xff] %v9588_v26  ;;  %18563 = vst [vmem:[#allocation69_spill] sm:$0xff] %v9592_v43  ;;  %v9595_v31 = vsub.s32 32, %v1104_v25  ;;  %v571_v62 = vxor.u32 2147483648, %v8056_v57  ;;  %v9597_v61 = vand.u32 3, %v664_v28  ;;  %v1026_v19 = vsel %vm1020_vm15, %v1023_v16, %v1025_v20 }
  0xf0   : > { %v1045_v21 = vadd.s32 1, %v9538_v24  ;;  %vm566_vm7 = vcmp.lt.s32.totalorder %v9298_v35, 2  ;;  %8059 = vcosq.f32 %v663_v51  ;;  %v945_v1 = vadd.s32 536870912, %v9571_v58 }
  0xf1   : > { %vm1044_vm8 = vc.u32 %v9546_v23, %v9537_v47  ;;  %v1197_v7 = vshrl.u32 %v1196_v13, 23  ;;  %v568_v53 = vxor.u32 2147483648, %v8058_v50  ;;  %8061 = vsinq.f32 %v663_v51 }
  0xf2   : > { %vm680_vm9 = vcmp.lt.s32.totalorder %v8776_v52, 0  ;;  %v761_v60 = vmul.f32 %v760_v40, %v758_v0  ;;  %v847_v44 = vsub.s32 0, %v9584_v37  ;;  %v1042_v38 = vmul.u32 %v9511_v12, %v1026_v19 }
  0xf3   : > { %v18370_v10 = vand.u32 2147483647, %v8845_v3  ;;  %v1116_v48 = vshll.u32 %v18504_v41, %v1104_v25  ;;  %v1117_v4 = vshrl.u32 %v18505_v32, %v9595_v31  ;;  %v1046_v59 = vsel %vm1044_vm8, %v1045_v21, %v9538_v24 }
  0xf4   : > { %v9614_v6 = vshrl.u32 %v1102_v56, 5  ;;  %v1119_v14 = vshll.u32 %v18505_v32, %v1104_v25  ;;  %v1120_v27 = vshrl.u32 %v18506_v30, %v9595_v31  ;;  %v18564_v33 = vand.u32 2147483647, %v8776_v52 }
  0xf5   : > { %v9625_v45 = vshrl.u32 %v945_v1, 30  ;;  %v1107_v54 = vshll.u32 %v18507_v15, %v1104_v25  ;;  %v1110_v18 = vshll.u32 %v18508_v5, %v1104_v25  ;;  %v7440_v24 = vadd.s32 4294967169, %v1197_v7  ;;  %v18567_v7 = vld [vmem:[#allocation13_spill] sm:$0xff] }
  0xf6   : > { %vm9621_vm10 = vcmp.le.f32.partialorder %v18564_v33, 0.7853982  ;;  %vm564_vm11 = vweird.f32 %v8618_v22  ;;  %v1108_v56 = vshrl.u32 %v18508_v5, %v9595_v31  ;;  %v1111_v29 = vshrl.u32 %v18509_v17, %v9595_v31 }
  0xf7   : > { %v1113_v11 = vshll.u32 %v18509_v17, %v1104_v25  ;;  %v1114_v55 = vshrl.u32 %v18504_v41, %v9595_v31  ;;  %v569_v28 = vsel %vm567_vm5, %v8056_v57, %v568_v53  ;;  %v572_v16 = vsel %vm570_vm6, %v571_v62, %v8058_v50 }
  0xf8   : > { %v9641_v20 = vadd.s32 %v1046_v59, %v1042_v38  ;;  %v1118_v13 = vor.u32 %v1117_v4, %v1116_v48  ;;  %vm673_vm12 = vcmp.eq.s32.totalorder %v9597_v61, 2  ;;  %v7425_v51 = vmin.u32 %v847_v44, %v9584_v37 }
  0xf9   : > { %v1097_v0 = vand.u32 8388607, %v18370_v10  ;;  %v1121_v25 = vor.u32 %v1120_v27, %v1119_v14  ;;  %vm1125_vm13 = vcmp.lt.s32.totalorder %v9614_v6, 4  ;;  %v762_v40 = vxor.u32 2147483648, %v761_v60 }
  0xfa   : > { %v764_v19 = vsub.s32 4, %v9238_v39  ;;  %v947_v57 = vshll.u32 %v9625_v45, 30  ;;  %v1203_v21 = vadd.s32 1, %v7440_v24  ;;  %vm670_vm14 = vcmp.eq.s32.totalorder %v9597_v61, 0  ;;  %v8060_v44 = vpop.eup %8059  ;;  %v18568_v24 = vld [vmem:[#allocation9_spill] sm:$0xff] }
  0xfb   : > { %v1109_v50 = vor.u32 %v1108_v56, %v1107_v54  ;;  %v1112_v62 = vor.u32 %v1111_v29, %v1110_v18  ;;  %v1115_v1 = vor.u32 %v1114_v55, %v1113_v11  ;;  %v1299_v53 = vand.u32 2139095040, %v18567_v7  ;;  %v8062_v4 = vpop.eup %8061 }
  0xfc   : > { %v1048_v38 = vadd.s32 536870912, %v9641_v20  ;;  %vm1122_vm15 = vcmp.lt.s32.totalorder %v9614_v6, 1  ;;  %vm1124_vm0 = vcmp.lt.s32.totalorder %v9614_v6, 3  ;;  %v1131_v48 = vsel %vm1125_vm13, %v1118_v13, 920167782 }
  0xfd   : > { %v573_v59 = vsel %vm566_vm7, %v569_v28, %v572_v16  ;;  %v849_v14 = vclz %v7425_v51  ;;  %v1098_v27 = vor.u32 8388608, %v1097_v0  ;;  %v1135_v33 = vsel %vm1125_vm13, %v1121_v25, 1326507024 }
  0xfe   : > { %vm669_vm1 = vcmp.lt.s32.totalorder %v9597_v61, 2  ;;  %v763_v54 = vsel %vm680_vm9, %v762_v40, %v761_v60  ;;  %v765_v18 = vsel %vm680_vm9, %v764_v19, %v9238_v39  ;;  %vm783_vm2 = vcmp.lt.s32.totalorder %v18568_v24, 0 }
  0xff   : > { %v9669_v56 = vsub.s32 %v9571_v58, %v947_v57  ;;  %vm1204_vm3 = vcmp.gt.s32.totalorder %v1203_v21, 0  ;;  %vm1123_vm4 = vcmp.lt.s32.totalorder %v9614_v6, 2  ;;  %v1130_v35 = vsel %vm1122_vm15, %v1109_v50, %v1112_v62 }
 0x100   : > { %v1132_v29 = vsel %vm1124_vm0, %v1115_v1, %v1131_v48  ;;  %v1300_v11 = vshrl.u32 %v1299_v53, 23  ;;  %v674_v60 = vxor.u32 2147483648, %v8060_v44  ;;  %v9676_v55 = vshrl.u32 %v1048_v38, 30 }
 0x101   : > { %v1134_v39 = vsel %vm1122_vm15, %v1112_v62, %v1115_v1  ;;  %v1136_v58 = vsel %vm1124_vm0, %v1118_v13, %v1135_v33  ;;  %v766_v28 = vsel %vm9621_vm10, %v8776_v52, %v763_v54  ;;  %v18569_v16 = vand.u32 2147483647, %v18568_v24 }
 0x102   : > { %v7426_v0 = vadd.s32 4294967294, %v849_v14  ;;  %v9691_v25 = vshll.u32 %v1098_v27, 8  ;;  %v1205_v40 = vsel %vm1204_vm3, %v1203_v21, 0  ;;  %v9695_v19 = vsel %vm564_vm11, nan, %v573_v59 }
 0x103   : > { %vm9687_vm5 = vcmp.le.f32.partialorder %v18569_v16, 0.7853982  ;;  %18572 = vst [vmem:[#allocation9_spill] sm:$0xff] %v9695_v19  ;;  %v671_v57 = vxor.u32 2147483648, %v8062_v4  ;;  %v767_v13 = vsel %vm9621_vm10, 0, %v765_v18  ;;  %v1133_v53 = vsel %vm1123_vm4, %v1130_v35, %v1132_v29 }
 0x104   : > { %v867_v38 = vsub.s32 4, %v9516_v9  ;;  %v950_v48 = vsub.s32 0, %v9669_v56  ;;  %v1137_v14 = vsel %vm1123_vm4, %v1134_v39, %v1136_v58  ;;  %v7444_v27 = vadd.s32 4294967169, %v1300_v11 }
 0x105   : > { %v675_v22 = vsel %vm673_vm12, %v674_v60, %v8062_v4  ;;  %8063 = vcosq.f32 %v766_v28  ;;  %v1050_v21 = vshll.u32 %v9676_v55, 30  ;;  %v1207_v59 = vand.u32 31, %v1205_v40 }
 0x106   : > { %vm7427_vm6 = vcmp.lt.s32.totalorder %v7426_v0, 0  ;;  %v1106_v12 = vshrl.u32 %v18507_v15, %v9595_v31  ;;  %v9711_v33 = vmul.u32.u64.low %v9691_v25, %v1133_v53  ;;  %v9712_v54 = vmul.u32.u64.high %v9691_v25, %v1133_v53, %v9711_v33 }
 0x107   : > { %v672_v18 = vsel %vm670_vm14, %v8060_v44, %v671_v57  ;;  %v1127_v35 = vsel %vm1125_vm13, %v1115_v1, 2102212464  ;;  %v9720_v4 = vmul.u32.u64.low %v9691_v25, %v1137_v14  ;;  %v9721_v29 = vmul.u32.u64.high %v9691_v25, %v1137_v14, %v9720_v4 }
 0x108   : > { %v9726_v11 = vsel %vm783_vm2, %v867_v38, %v9516_v9  ;;  %v7429_v31 = vmin.u32 %v950_v48, %v9669_v56  ;;  %v18369_v60 = vand.u32 2147483647, %v8847_v8  ;;  %v1306_v39 = vadd.s32 1, %v7444_v27  ;;  %v18573_v9 = vld [vmem:[#allocation66_spill] sm:$0xff] }
 0x109   : > { %v9730_v58 = vand.u32 3, %v767_v13  ;;  %v852_v44 = vsel %vm7427_vm6, 0, %v7426_v0  ;;  %v9733_v16 = vsub.s32 %v9641_v20, %v1050_v21  ;;  %v9735_v1 = vsub.s32 32, %v1207_v59 }
 0x10a   : > { %v9739_v57 = vsel %vm669_vm1, %v672_v18, %v675_v22  ;;  %v837_v53 = vadd.s32 %v18573_v9, %v9367_v49  ;;  %v1126_v38 = vsel %vm1122_vm15, %v1106_v12, %v1109_v50  ;;  %v1128_v13 = vsel %vm1124_vm0, %v1112_v62, %v1127_v35 }
 0x10b   : > { %8065 = vsinq.f32 %v766_v28  ;;  %v853_v0 = vsub.s32 32, %v852_v44  ;;  %v854_v20 = vshll.u32 %v9584_v37, %v852_v44  ;;  %v857_v61 = vsub.s32 4294967266, %v852_v44 }
 0x10c   : > { %v952_v14 = vclz %v7429_v31  ;;  %v1200_v27 = vand.u32 8388607, %v18369_v60  ;;  %vm1307_vm7 = vcmp.gt.s32.totalorder %v1306_v39, 0  ;;  %v1053_v49 = vsub.s32 0, %v9733_v16 }
 0x10d   : > { %v1129_v50 = vsel %vm1123_vm4, %v1126_v38, %v1128_v13  ;;  %v1219_v62 = vshll.u32 %v18504_v41, %v1207_v59  ;;  %v1220_v37 = vshrl.u32 %v18505_v32, %v9735_v1  ;;  %v1148_v28 = vadd.s32 1, %v9712_v54 }
 0x10e   : > { %v9760_v22 = vshrl.u32 %v1205_v40, 5  ;;  %v1222_v21 = vshll.u32 %v18505_v32, %v1207_v59  ;;  %v1223_v12 = vshrl.u32 %v18506_v30, %v9735_v1  ;;  %vm1147_vm8 = vc.u32 %v9721_v29, %v9711_v33 }
 0x10f   : > { %v9765_v18 = vpop.eup %8063  ;;  %v1210_v6 = vshll.u32 %v18507_v15, %v1207_v59  ;;  %v1211_v35 = vshrl.u32 %v18508_v5, %v9735_v1  ;;  %v1308_v4 = vsel %vm1307_vm7, %v1306_v39, 0  ;;  %v1213_v31 = vshll.u32 %v18508_v5, %v1207_v59 }
 0x110   : > { %v1214_v40 = vshrl.u32 %v18509_v17, %v9735_v1  ;;  %v1216_v44 = vshll.u32 %v18509_v17, %v1207_v59  ;;  %v1217_v9 = vshrl.u32 %v18504_v41, %v9735_v1  ;;  %v855_v38 = vshrl.u32 %v837_v53, %v853_v0 }
 0x111   : > { %v858_v13 = vadd.s32 127, %v857_v61  ;;  %v1145_v60 = vmul.u32 %v9691_v25, %v1129_v50  ;;  %v1221_v10 = vor.u32 %v1220_v37, %v1219_v62  ;;  %v1149_v2 = vsel %vm1147_vm8, %v1148_v28, %v9712_v54 }
 0x112   : > { %v1224_v48 = vor.u32 %v1223_v12, %v1222_v21  ;;  %vm1228_vm9 = vcmp.lt.s32.totalorder %v9760_v22, 4  ;;  %v1310_v39 = vand.u32 31, %v1308_v4  ;;  %v9784_v43 = vadd.s32 %v9451_v34, %v9459_v46 }
 0x113   : > { %v7430_v59 = vadd.s32 4294967294, %v952_v14  ;;  %v7433_v26 = vmin.u32 %v1053_v49, %v9733_v16  ;;  %v1201_v53 = vor.u32 8388608, %v1200_v27  ;;  %v1212_v0 = vor.u32 %v1211_v35, %v1210_v6  ;;  %v18574_v27 = vld [vmem:[#allocation14_spill] sm:$0xff] }
 0x114   : > { %v1215_v61 = vor.u32 %v1214_v40, %v1213_v31  ;;  %v1218_v25 = vor.u32 %v1217_v9, %v1216_v44  ;;  %v9789_v54 = vadd.s32 %v1149_v2, %v1145_v60  ;;  %vm1225_vm10 = vcmp.lt.s32.totalorder %v9760_v22, 1 }
 0x115   : > { %v9787_v50 = vpop.eup %8065  ;;  %vm1227_vm11 = vcmp.lt.s32.totalorder %v9760_v22, 3  ;;  %v1234_v62 = vsel %vm1228_vm9, %v1221_v10, 920167782  ;;  %v9795_v46 = vor.u32 %v855_v38, %v854_v20  ;;  %v1238_v34 = vsel %vm1228_vm9, %v1224_v48, 1326507024 }
 0x116   : > { %v9799_v14 = vsub.s32 32, %v1310_v39  ;;  %v1402_v49 = vand.u32 2139095040, %v18574_v27  ;;  %v859_v37 = vshll.u32 %v858_v13, 23  ;;  %vm7431_vm12 = vcmp.lt.s32.totalorder %v7430_v59, 0 }
 0x117   : > { %v1055_v2 = vclz %v7433_v26  ;;  %v18372_v60 = vand.u32 2147483647, %v18567_v7  ;;  %vm1226_vm13 = vcmp.lt.s32.totalorder %v9760_v22, 2  ;;  %v1233_v28 = vsel %vm1225_vm10, %v1212_v0, %v1215_v61 }
 0x118   : > { %v1235_v20 = vsel %vm1227_vm11, %v1218_v25, %v1234_v62  ;;  %v9808_v21 = vshll.u32 %v1201_v53, 8  ;;  %v1151_v48 = vadd.s32 536870912, %v9789_v54  ;;  %v1209_v12 = vshrl.u32 %v18507_v15, %v9735_v1 }
 0x119   : > { %v1237_v26 = vsel %vm1225_vm10, %v1215_v61, %v1218_v25  ;;  %v1239_v6 = vsel %vm1227_vm11, %v1221_v10, %v1238_v34  ;;  %v1230_v35 = vsel %vm1228_vm9, %v1218_v25, 2102212464  ;;  %v1322_v31 = vshll.u32 %v18504_v41, %v1310_v39 }
 0x11a   : > { %v1323_v40 = vshrl.u32 %v18505_v32, %v9799_v14  ;;  %v1403_v44 = vshrl.u32 %v1402_v49, 23  ;;  %v1236_v9 = vsel %vm1226_vm13, %v1233_v28, %v1235_v20  ;;  %v9824_v38 = vshrl.u32 %v1308_v4, 5 }
 0x11b   : > { %v1325_v1 = vshll.u32 %v18505_v32, %v1310_v39  ;;  %v1326_v13 = vshrl.u32 %v18506_v30, %v9799_v14  ;;  %v1240_v10 = vsel %vm1226_vm13, %v1237_v26, %v1239_v6  ;;  %v1303_v53 = vand.u32 8388607, %v18372_v60 }
 0x11c   : > { %v1313_v25 = vshll.u32 %v18507_v15, %v1310_v39  ;;  %v1316_v62 = vshll.u32 %v18508_v5, %v1310_v39  ;;  %v1314_v34 = vshrl.u32 %v18508_v5, %v9799_v14  ;;  %v1317_v4 = vshrl.u32 %v18509_v17, %v9799_v14 }
 0x11d   : > { %v1319_v49 = vshll.u32 %v18509_v17, %v1310_v39  ;;  %v1320_v28 = vshrl.u32 %v18504_v41, %v9799_v14  ;;  %v9843_v20 = vmul.u32.u64.low %v9808_v21, %v1236_v9  ;;  %v9844_v26 = vmul.u32.u64.high %v9808_v21, %v1236_v9, %v9843_v20 }
 0x11e   : > { %v1324_v6 = vor.u32 %v1323_v40, %v1322_v31  ;;  %v7448_v60 = vadd.s32 4294967169, %v1403_v44  ;;  %v9848_v19 = vmul.u32.u64.low %v9808_v21, %v1240_v10  ;;  %v9849_v36 = vmul.u32.u64.high %v9808_v21, %v1240_v10, %v9848_v19 }
 0x11f   : > { %v1327_v7 = vor.u32 %v1326_v13, %v1325_v1  ;;  %vm1331_vm14 = vcmp.lt.s32.totalorder %v9824_v38, 4  ;;  %v860_v39 = vor.u32 4788187, %v859_v37  ;;  %v955_v8 = vsel %vm7431_vm12, 0, %v7430_v59 }
 0x120   : > { %v1229_v3 = vsel %vm1225_vm10, %v1209_v12, %v1212_v0  ;;  %v1231_v9 = vsel %vm1227_vm11, %v1215_v61, %v1230_v35  ;;  %v9858_v31 = vor.u32 %v1314_v34, %v1313_v25  ;;  %v9860_v40 = vor.u32 %v1317_v4, %v1316_v62  ;;  %v18576_v25 = vld [vmem:[#allocation10_spill] sm:$0xff] }
 0x121   : > { %v1321_v44 = vor.u32 %v1320_v28, %v1319_v49  ;;  %vm667_vm15 = vweird.f32 %v8706_v42  ;;  %vm1328_vm0 = vcmp.lt.s32.totalorder %v9824_v38, 1  ;;  %vm1330_vm1 = vcmp.lt.s32.totalorder %v9824_v38, 3 }
 0x122   : > { %v1337_v19 = vsel %vm1331_vm14, %v1324_v6, 920167782  ;;  %v1409_v59 = vadd.s32 1, %v7448_v60  ;;  %v7434_v37 = vadd.s32 4294967294, %v1055_v2  ;;  %v9867_v0 = vshrl.u32 %v1151_v48, 30 }
 0x123   : > { %v1304_v12 = vor.u32 8388608, %v1303_v53  ;;  %v1341_v61 = vsel %vm1331_vm14, %v1327_v7, 1326507024  ;;  %vm773_vm3 = vcmp.eq.s32.totalorder %v9730_v58, 0  ;;  %vm776_vm4 = vcmp.eq.s32.totalorder %v9730_v58, 2 }
 0x124   : > { %18575 = vst [vmem:[#allocation66_spill] sm:$0xff] %v9867_v0  ;;  %v861_v35 = vand.u32 2147483647, %v860_v39  ;;  %v863_v1 = vcvt.s32.f32 %v9795_v46  ;;  %v956_v13 = vsub.s32 32, %v955_v8  ;;  %v960_v10 = vsub.s32 4294967266, %v955_v8 }
 0x125   : > { %vm886_vm6 = vcmp.lt.s32.totalorder %v18576_v25, 0  ;;  %v1232_v2 = vsel %vm1226_vm13, %v1229_v3, %v1231_v9  ;;  %vm1329_vm7 = vcmp.lt.s32.totalorder %v9824_v38, 2  ;;  %v1336_v7 = vsel %vm1328_vm0, %v9858_v31, %v9860_v40 }
 0x126   : > { %v1338_v60 = vsel %vm1330_vm1, %v1321_v44, %v1337_v19  ;;  %v1251_v48 = vadd.s32 1, %v9844_v26  ;;  %v1340_v46 = vsel %vm1328_vm0, %v9860_v40, %v1321_v44  ;;  %v1342_v22 = vsel %vm1330_vm1, %v1324_v6, %v1341_v61  ;;  %v18580_v6 = vld [vmem:[#allocation15_spill] sm:$0xff] }
 0x127   : > { %vm1410_vm8 = vcmp.gt.s32.totalorder %v1409_v59, 0  ;;  %vm7435_vm9 = vcmp.lt.s32.totalorder %v7434_v37, 0  ;;  %v1153_v3 = vshll.u32 %v9867_v0, 30  ;;  %vm1250_vm10 = vc.u32 %v9849_v36, %v9843_v20 }
 0x128   : > { %v9893_v53 = vshll.u32 %v1304_v12, 8  ;;  %v864_v62 = vmul.f32 %v863_v1, %v861_v35  ;;  %v18577_v34 = vand.u32 2147483647, %v18576_v25  ;;  %v970_v49 = vsub.s32 4, %v9625_v45 }
 0x129   : > { %v1339_v28 = vsel %vm1329_vm7, %v1336_v7, %v1338_v60  ;;  %v1505_v39 = vand.u32 2139095040, %v18580_v6  ;;  %v957_v9 = vshll.u32 %v9669_v56, %v955_v8  ;;  %v1248_v19 = vmul.u32 %v9808_v21, %v1232_v2 }
 0x12a   : > { %vm9897_vm11 = vcmp.le.f32.partialorder %v18577_v34, 0.7853982  ;;  %v1343_v12 = vsel %vm1329_vm7, %v1340_v46, %v1342_v22  ;;  %v1411_v61 = vsel %vm1410_vm8, %v1409_v59, 0  ;;  %v958_v35 = vshrl.u32 %v9784_v43, %v956_v13 }
 0x12b   : > { %v961_v1 = vadd.s32 127, %v960_v10  ;;  %v9910_v34 = vsel %vm7435_vm9, 0, %v7434_v37  ;;  %v1252_v52 = vsel %vm1250_vm10, %v1251_v48, %v9844_v26  ;;  %v9914_v0 = vsub.s32 %v9789_v54, %v1153_v3 }
 0x12c   : > { %v1312_v7 = vshrl.u32 %v18507_v15, %v9799_v14  ;;  %v9919_v8 = vmul.u32.u64.low %v9893_v53, %v1339_v28  ;;  %v9920_v56 = vmul.u32.u64.high %v9893_v53, %v1339_v28, %v9919_v8  ;;  %v1413_v43 = vand.u32 31, %v1411_v61 }
 0x12d   : > { %v9924_v21 = vmul.u32.u64.low %v9893_v53, %v1343_v12  ;;  %v9925_v59 = vmul.u32.u64.high %v9893_v53, %v1343_v12, %v9924_v21  ;;  %v1506_v37 = vshrl.u32 %v1505_v39, 23  ;;  %v9930_v26 = vsel %vm667_vm15, nan, %v9739_v57 }
 0x12e   : > { %18581 = vst [vmem:[#allocation10_spill] sm:$0xff] %v9930_v26  ;;  %v865_v54 = vxor.u32 2147483648, %v864_v62  ;;  %v9932_v13 = vadd.s32 %v1252_v52, %v1248_v19  ;;  %v1333_v14 = vsel %vm1331_vm14, %v1321_v44, 2102212464  ;;  %v9936_v10 = vor.u32 %v958_v35, %v957_v9 }
 0x12f   : > { %v962_v2 = vshll.u32 %v961_v1, 23  ;;  %v9941_v60 = vsel %vm886_vm6, %v970_v49, %v9625_v45  ;;  %v1063_v48 = vsub.s32 4294967266, %v9910_v34  ;;  %v18582_v42 = vxor.u32 2147483648, %v9787_v50 }
 0x130   : > { %v18584_v57 = vxor.u32 2147483648, %v9765_v18  ;;  %v18586_v45 = vsel %vm9687_vm5, 0, %v9726_v11  ;;  %v1156_v22 = vsub.s32 0, %v9914_v0  ;;  %v1332_v3 = vsel %vm1328_vm0, %v1312_v7, %v9858_v31 }
 0x131   : > { %v9949_v52 = vsel %vm773_vm3, %v9765_v18, %v18582_v42  ;;  %v9962_v46 = vand.u32 3, %v18586_v45  ;;  %v1334_v18 = vsel %vm1330_vm1, %v9860_v40, %v1333_v14  ;;  %v9971_v49 = vsub.s32 32, %v1413_v43 }
 0x132   : > { %18583 = vst [vmem:[#allocation70_spill] sm:$0xff] %v9949_v52  ;;  %v9956_v44 = vsel %vm776_vm4, %v18584_v57, %v9787_v50  ;;  %v7452_v50 = vadd.s32 4294967169, %v1506_v37  ;;  %v866_v28 = vsel %vm783_vm2, %v865_v54, %v864_v62  ;;  %v1043_v39 = vadd.s32 %v9537_v47, %v9546_v23 }
 0x133   : > { %18585 = vst [vmem:[#allocation71_spill] sm:$0xff] %v9956_v44  ;;  %v1254_v9 = vadd.s32 536870912, %v9932_v13  ;;  %v963_v31 = vor.u32 4788187, %v962_v2  ;;  %v966_v19 = vcvt.s32.f32 %v9936_v10  ;;  %v1059_v40 = vsub.s32 32, %v9910_v34 }
 0x134   : > { %v1064_v12 = vadd.s32 127, %v1063_v48  ;;  %v7437_v35 = vmin.u32 %v1156_v22, %v9914_v0  ;;  %v1335_v62 = vsel %vm1329_vm7, %v1332_v3, %v1334_v18  ;;  %v1354_v1 = vadd.s32 1, %v9920_v56 }
 0x135   : > { %v18383_v7 = vand.u32 2147483647, %v18574_v27  ;;  %vm1353_vm2 = vc.u32 %v9925_v59, %v9919_v8  ;;  %v1425_v47 = vshll.u32 %v18504_v41, %v1413_v43  ;;  %v1426_v23 = vshrl.u32 %v18505_v32, %v9971_v49 }
 0x136   : > { %v1512_v21 = vadd.s32 1, %v7452_v50  ;;  %v9993_v37 = vshrl.u32 %v1254_v9, 30  ;;  %v9995_v54 = vshrl.u32 %v1411_v61, 5  ;;  %v1428_v38 = vshll.u32 %v18505_v32, %v1413_v43 }
 0x137   : > { %v1429_v14 = vshrl.u32 %v18506_v30, %v9971_v49  ;;  %v1351_v10 = vmul.u32 %v9893_v53, %v1335_v62  ;;  %v1416_v2 = vshll.u32 %v18507_v15, %v1413_v43  ;;  %v1419_v48 = vshll.u32 %v18508_v5, %v1413_v43 }
 0x138   : > { %v1422_v42 = vshll.u32 %v18509_v17, %v1413_v43  ;;  %v1355_v57 = vsel %vm1353_vm2, %v1354_v1, %v9920_v56  ;;  %v1417_v45 = vshrl.u32 %v18508_v5, %v9971_v49  ;;  %v1420_v61 = vshrl.u32 %v18509_v17, %v9971_v49 }
 0x139   : > { %v1423_v22 = vshrl.u32 %v18504_v41, %v9971_v49  ;;  %v964_v3 = vand.u32 2147483647, %v963_v31  ;;  %v1060_v53 = vshll.u32 %v9733_v16, %v9910_v34  ;;  %v1427_v18 = vor.u32 %v1426_v23, %v1425_v47  ;;  %v18587_v34 = vld [vmem:[#allocation16_spill] sm:$0xff] }
 0x13a   : > { %vm1513_vm12 = vcmp.gt.s32.totalorder %v1512_v21, 0  ;;  %v1158_v50 = vclz %v7437_v35  ;;  %v1406_v43 = vand.u32 8388607, %v18383_v7  ;;  %v1430_v56 = vor.u32 %v1429_v14, %v1428_v38 }
 0x13b   : > { %vm1434_vm13 = vcmp.lt.s32.totalorder %v9995_v54, 4  ;;  %v1061_v9 = vshrl.u32 %v1043_v39, %v1059_v40  ;;  %v1065_v62 = vshll.u32 %v1064_v12, 23  ;;  %v1256_v1 = vshll.u32 %v9993_v37, 30 }
 0x13c   : > { %v10017_v11 = vadd.s32 %v1355_v57, %v1351_v10  ;;  %v1418_v26 = vor.u32 %v1417_v45, %v1416_v2  ;;  %v1421_v31 = vor.u32 %v1420_v61, %v1419_v48  ;;  %v1424_v52 = vor.u32 %v1423_v22, %v1422_v42 }
 0x13d   : > { %v1514_v44 = vsel %vm1513_vm12, %v1512_v21, 0  ;;  %vm1431_vm14 = vcmp.lt.s32.totalorder %v9995_v54, 1  ;;  %vm1433_vm15 = vcmp.lt.s32.totalorder %v9995_v54, 3  ;;  %v1440_v16 = vsel %vm1434_vm13, %v1427_v18, 920167782 }
 0x13e   : > { %v1608_v35 = vand.u32 2139095040, %v18587_v34  ;;  %v869_v39 = vsel %vm9687_vm5, %v18568_v24, %v866_v28  ;;  %v7438_v40 = vadd.s32 4294967294, %v1158_v50  ;;  %v1407_v12 = vor.u32 8388608, %v1406_v43 }
 0x13f   : > { %v1444_v47 = vsel %vm1434_vm13, %v1430_v56, 1326507024  ;;  %v967_v23 = vmul.f32 %v966_v19, %v964_v3  ;;  %v1062_v21 = vor.u32 %v1061_v9, %v1060_v53  ;;  %v1066_v38 = vor.u32 4788187, %v1065_v62 }
 0x140   : > { %v1516_v14 = vand.u32 31, %v1514_v44  ;;  %v1357_v10 = vadd.s32 536870912, %v10017_v11  ;;  %vm1432_vm0 = vcmp.lt.s32.totalorder %v9995_v54, 2  ;;  %v1439_v2 = vsel %vm1431_vm14, %v1418_v26, %v1421_v31 }
 0x141   : > { %v1441_v51 = vsel %vm1433_vm15, %v1424_v52, %v1440_v16  ;;  %v10036_v28 = vsub.s32 %v9932_v13, %v1256_v1  ;;  %v1443_v48 = vsel %vm1431_vm14, %v1421_v31, %v1424_v52  ;;  %v1445_v19 = vsel %vm1433_vm15, %v1427_v18, %v1444_v47 }
 0x142   : > { %v1609_v42 = vshrl.u32 %v1608_v35, 23  ;;  %8067 = vcosq.f32 %v869_v39  ;;  %vm7439_vm5 = vcmp.lt.s32.totalorder %v7438_v40, 0  ;;  %v1415_v57 = vshrl.u32 %v18507_v15, %v9971_v49 }
 0x143   : > { %v10044_v45 = vshll.u32 %v1407_v12, 8  ;;  %8069 = vsinq.f32 %v869_v39  ;;  %v968_v61 = vxor.u32 2147483648, %v967_v23  ;;  %v1442_v13 = vsel %vm1432_vm0, %v1439_v2, %v1441_v51 }
 0x144   : > { %v10048_v22 = vsub.s32 32, %v1516_v14  ;;  %v1067_v3 = vand.u32 2147483647, %v1066_v38  ;;  %v1069_v53 = vcvt.s32.f32 %v1062_v21  ;;  %v10050_v50 = vshrl.u32 %v1357_v10, 30 }
 0x145   : > { %v1446_v18 = vsel %vm1432_vm0, %v1443_v48, %v1445_v19  ;;  %v10054_v43 = vsel %vm7439_vm5, 0, %v7438_v40  ;;  %v1259_v49 = vsub.s32 0, %v10036_v28  ;;  %v18388_v56 = vand.u32 2147483647, %v18580_v6 }
 0x146   : > { %18588 = vst [vmem:[#allocation72_spill] sm:$0xff] %v10050_v50  ;;  %v7456_v9 = vadd.s32 4294967169, %v1609_v42  ;;  %v1435_v62 = vsel %vm1431_vm14, %v1415_v57, %v1418_v26  ;;  %v1436_v1 = vsel %vm1434_vm13, %v1424_v52, 2102212464  ;;  %v1528_v12 = vshll.u32 %v18504_v41, %v1516_v14 }
 0x147   : > { %v10063_v16 = vmul.u32.u64.low %v10044_v45, %v1442_v13  ;;  %v10064_v35 = vmul.u32.u64.high %v10044_v45, %v1442_v13, %v10063_v16  ;;  %v10068_v39 = vmul.u32.u64.low %v10044_v45, %v1446_v18  ;;  %v10069_v40 = vmul.u32.u64.high %v10044_v45, %v1446_v18, %v10068_v39 }
 0x148   : > { %v1529_v47 = vshrl.u32 %v18505_v32, %v10048_v22  ;;  %v1359_v21 = vshll.u32 %v10050_v50, 30  ;;  %v10075_v26 = vshrl.u32 %v1514_v44, 5  ;;  %v1531_v52 = vshll.u32 %v18505_v32, %v1516_v14 }
 0x149   : > { %v1532_v38 = vshrl.u32 %v18506_v30, %v10048_v22  ;;  %v1437_v10 = vsel %vm1433_vm15, %v1421_v31, %v1436_v1  ;;  %v1519_v2 = vshll.u32 %v18507_v15, %v1516_v14  ;;  %v1522_v51 = vshll.u32 %v18508_v5, %v1516_v14 }
 0x14a   : > { %v1615_v48 = vadd.s32 1, %v7456_v9  ;;  %vm989_vm1 = vcmp.lt.s32.totalorder %v8843_v63, 0  ;;  %v1520_v19 = vshrl.u32 %v18508_v5, %v10048_v22  ;;  %v1523_v44 = vshrl.u32 %v18509_v17, %v10048_v22 }
 0x14b   : > { %v1525_v42 = vshll.u32 %v18509_v17, %v1516_v14  ;;  %v1526_v57 = vshrl.u32 %v18504_v41, %v10048_v22  ;;  %v969_v31 = vsel %vm886_vm6, %v968_v61, %v967_v23  ;;  %v1073_v13 = vsub.s32 4, %v9676_v55 }
 0x14c   : > { %v1146_v18 = vadd.s32 %v9711_v33, %v9721_v29  ;;  %v1530_v9 = vor.u32 %v1529_v47, %v1528_v12  ;;  %v10097_v1 = vpop.eup %8067  ;;  %v1070_v39 = vmul.f32 %v1069_v53, %v1067_v3  ;;  %v1509_v7 = vand.u32 8388607, %v18388_v56 }
 0x14d   : > { %v1533_v27 = vor.u32 %v1532_v38, %v1531_v52  ;;  %vm1537_vm3 = vcmp.lt.s32.totalorder %v10075_v26, 4  ;;  %v10102_v14 = vpop.eup %8069  ;;  %v1166_v50 = vsub.s32 4294967266, %v10054_v43  ;;  %v7441_v23 = vmin.u32 %v1259_v49, %v10036_v28 }
 0x14e   : > { %v10107_v61 = vsub.s32 %v10017_v11, %v1359_v21  ;;  %v1438_v33 = vsel %vm1432_vm0, %v1435_v62, %v1437_v10  ;;  %v1521_v29 = vor.u32 %v1520_v19, %v1519_v2  ;;  %v1524_v3 = vor.u32 %v1523_v44, %v1522_v51 }
 0x14f   : > { %v1527_v53 = vor.u32 %v1526_v57, %v1525_v42  ;;  %vm1616_vm4 = vcmp.gt.s32.totalorder %v1615_v48, 0  ;;  %v18589_v12 = vand.u32 2147483647, %v8843_v63  ;;  %v1457_v52 = vadd.s32 1, %v10064_v35 }
 0x150   : > { %vm1534_vm7 = vcmp.lt.s32.totalorder %v10075_v26, 1  ;;  %vm1536_vm8 = vcmp.lt.s32.totalorder %v10075_v26, 3  ;;  %v1543_v11 = vsel %vm1537_vm3, %v1530_v9, 920167782  ;;  %v1071_v54 = vxor.u32 2147483648, %v1070_v39 }
 0x151   : > { %vm10113_vm6 = vcmp.le.f32.partialorder %v18589_v12, 0.7853982  ;;  %vm1456_vm9 = vc.u32 %v10069_v40, %v10063_v16  ;;  %v1510_v49 = vor.u32 8388608, %v1509_v7  ;;  %v1547_v62 = vsel %vm1537_vm3, %v1533_v27, 1326507024 }
 0x152   : > { %v1162_v21 = vsub.s32 32, %v10054_v43  ;;  %v1167_v38 = vadd.s32 127, %v1166_v50  ;;  %v1261_v10 = vclz %v7441_v23  ;;  %v1617_v2 = vsel %vm1616_vm4, %v1615_v48, 0 }
 0x153   : > { %v1454_v51 = vmul.u32 %v10044_v45, %v1438_v33  ;;  %vm1535_vm10 = vcmp.lt.s32.totalorder %v10075_v26, 2  ;;  %v1542_v19 = vsel %vm1534_vm7, %v1521_v29, %v1524_v3  ;;  %v1544_v44 = vsel %vm1536_vm8, %v1527_v53, %v1543_v11 }
 0x154   : > { %v1362_v7 = vsub.s32 0, %v10107_v61  ;;  %v1458_v42 = vsel %vm1456_vm9, %v1457_v52, %v10064_v35  ;;  %v1546_v27 = vsel %vm1534_vm7, %v1524_v3, %v1527_v53  ;;  %v1548_v50 = vsel %vm1536_vm8, %v1530_v9, %v1547_v62 }
 0x155   : > { %v880_v45 = vxor.u32 2147483648, %v10097_v1  ;;  %v18592_v48 = vsel %vm9897_vm11, 0, %v9941_v60  ;;  %v10146_v23 = vshll.u32 %v1510_v49, 8  ;;  %v1619_v33 = vand.u32 31, %v1617_v2 }
 0x156   : > { %v10144_v57 = vand.u32 3, %v18592_v48  ;;  %v972_v35 = vsel %vm9897_vm11, %v18576_v25, %v969_v31  ;;  %v1072_v12 = vsel %vm989_vm1, %v1071_v54, %v1070_v39  ;;  %v10156_v9 = vsel %vm989_vm1, %v1073_v13, %v9676_v55 }
 0x157   : > { %v1545_v60 = vsel %vm1535_vm10, %v1542_v19, %v1544_v44  ;;  %v1163_v52 = vshll.u32 %v9914_v0, %v10054_v43  ;;  %v1164_v11 = vshrl.u32 %v1146_v18, %v1162_v21  ;;  %v10162_v49 = vadd.s32 %v1458_v42, %v1454_v51 }
 0x158   : > { %v1549_v4 = vsel %vm1535_vm10, %v1546_v27, %v1548_v50  ;;  %v1168_v31 = vshll.u32 %v1167_v38, 23  ;;  %v7442_v62 = vadd.s32 4294967294, %v1261_v10  ;;  %v7445_v39 = vmin.u32 %v1362_v7, %v10107_v61 }
 0x159   : > { %v1518_v55 = vshrl.u32 %v18507_v15, %v10048_v22  ;;  %v1539_v13 = vsel %vm1537_vm3, %v1527_v53, 2102212464  ;;  %v10172_v54 = vmul.u32.u64.low %v10146_v23, %v1545_v60  ;;  %v10173_v19 = vmul.u32.u64.high %v10146_v23, %v1545_v60, %v10172_v54 }
 0x15a   : > { %v10176_v0 = vsub.s32 32, %v1619_v33  ;;  %v877_v43 = vxor.u32 2147483648, %v10102_v14  ;;  %8071 = vcosq.f32 %v972_v35  ;;  %v1075_v22 = vsel %vm10113_vm6, %v8843_v63, %v1072_v12 }
 0x15b   : > { %v10180_v18 = vmul.u32.u64.low %v10146_v23, %v1549_v4  ;;  %v10181_v21 = vmul.u32.u64.high %v10146_v23, %v1549_v4, %v10180_v18  ;;  %8073 = vsinq.f32 %v972_v35  ;;  %v1076_v53 = vsel %vm10113_vm6, 0, %v10156_v9 }
 0x15c   : > { %v1460_v38 = vadd.s32 536870912, %v10162_v49  ;;  %v1165_v10 = vor.u32 %v1164_v11, %v1163_v52  ;;  %v1169_v51 = vor.u32 4788187, %v1168_v31  ;;  %v1538_v44 = vsel %vm1534_vm7, %v1518_v55, %v1521_v29 }
 0x15d   : > { %v1540_v7 = vsel %vm1536_vm8, %v1524_v3, %v1539_v13  ;;  %vm7443_vm11 = vcmp.lt.s32.totalorder %v7442_v62, 0  ;;  %v1364_v42 = vclz %v7445_v39  ;;  %v1631_v27 = vshll.u32 %v18504_v41, %v1619_v33 }
 0x15e   : > { %v1632_v50 = vshrl.u32 %v18505_v32, %v10176_v0  ;;  %v18387_v47 = vand.u32 2147483647, %v18587_v34  ;;  %v10198_v48 = vshrl.u32 %v1617_v2, 5  ;;  %v1634_v35 = vshll.u32 %v18505_v32, %v1619_v33 }
 0x15f   : > { %v1635_v12 = vshrl.u32 %v18506_v30, %v10176_v0  ;;  %vm879_vm2 = vcmp.eq.s32.totalorder %v9962_v46, 2  ;;  %v10204_v29 = vshrl.u32 %v1460_v38, 30  ;;  %v1541_v3 = vsel %vm1535_vm10, %v1538_v44, %v1540_v7 }
 0x160   : > { %v1622_v9 = vshll.u32 %v18507_v15, %v1619_v33  ;;  %v1625_v60 = vshll.u32 %v18508_v5, %v1619_v33  ;;  %vm876_vm12 = vcmp.eq.s32.totalorder %v9962_v46, 0  ;;  %v1623_v2 = vshrl.u32 %v18508_v5, %v10176_v0 }
 0x161   : > { %v1626_v52 = vshrl.u32 %v18509_v17, %v10176_v0  ;;  %v1628_v11 = vshll.u32 %v18509_v17, %v1619_v33  ;;  %v1629_v4 = vshrl.u32 %v18504_v41, %v10176_v0  ;;  %v1170_v31 = vand.u32 2147483647, %v1169_v51 }
 0x162   : > { %v1172_v26 = vcvt.s32.f32 %v1165_v10  ;;  %v1560_v39 = vadd.s32 1, %v10173_v19  ;;  %v1633_v55 = vor.u32 %v1632_v50, %v1631_v27  ;;  %vm1559_vm13 = vc.u32 %v10181_v21, %v10172_v54 }
 0x163   : > { %v1612_v13 = vand.u32 8388607, %v18387_v47  ;;  %v1636_v18 = vor.u32 %v1635_v12, %v1634_v35  ;;  %vm1640_vm14 = vcmp.lt.s32.totalorder %v10198_v48, 4  ;;  %v10225_v38 = vsel %vm7443_vm11, 0, %v7442_v62 }
 0x164   : > { %v7446_v33 = vadd.s32 4294967294, %v1364_v42  ;;  %v1462_v44 = vshll.u32 %v10204_v29, 30  ;;  %v1557_v10 = vmul.u32 %v10146_v23, %v1541_v3  ;;  %v10229_v51 = vpop.eup %8071  ;;  %vm982_vm15 = vcmp.eq.s32.totalorder %v10144_v57, 2  ;;  %v18593_v23 = vld [vmem:[#allocation17_spill] sm:$0xff] }
 0x165   : > { %v10232_v7 = vor.u32 %v1623_v2, %v1622_v9  ;;  %v10234_v27 = vor.u32 %v1626_v52, %v1625_v60  ;;  %v1630_v50 = vor.u32 %v1629_v4, %v1628_v11  ;;  %vm1637_vm0 = vcmp.lt.s32.totalorder %v10198_v48, 1  ;;  %v8074_v35 = vpop.eup %8073 }
 0x166   : > { %v1561_v62 = vsel %vm1559_vm13, %v1560_v39, %v10173_v19  ;;  %vm1639_vm5 = vcmp.lt.s32.totalorder %v10198_v48, 3  ;;  %v1646_v42 = vsel %vm1640_vm14, %v1633_v55, 920167782  ;;  %v1711_v12 = vand.u32 2139095040, %v18593_v23 }
 0x167   : > { %8075 = vcosq.f32 %v1075_v22  ;;  %v10242_v3 = vand.u32 3, %v1076_v53  ;;  %v1613_v9 = vor.u32 8388608, %v1612_v13  ;;  %v1650_v60 = vsel %vm1640_vm14, %v1636_v18, 1326507024  ;;  %v18594_v13 = vld [vmem:[#allocation11_spill] sm:$0xff] }
 0x168   : > { %vm979_vm1 = vcmp.eq.s32.totalorder %v10144_v57, 0  ;;  %8077 = vsinq.f32 %v1075_v22  ;;  %v1173_v2 = vmul.f32 %v1172_v26, %v1170_v31  ;;  %v1269_v19 = vsub.s32 4294967266, %v10225_v38 }
 0x169   : > { %vm7447_vm3 = vcmp.lt.s32.totalorder %v7446_v33, 0  ;;  %v10248_v52 = vadd.s32 %v1561_v62, %v1557_v10  ;;  %vm1638_vm4 = vcmp.lt.s32.totalorder %v10198_v48, 2  ;;  %v1645_v53 = vsel %vm1637_vm0, %v10232_v7, %v10234_v27 }
 0x16a   : > { %v1647_v11 = vsel %vm1639_vm5, %v1630_v50, %v1646_v42  ;;  %v10258_v4 = vsub.s32 %v10162_v49, %v1462_v44  ;;  %v1649_v22 = vsel %vm1637_vm0, %v10234_v27, %v1630_v50  ;;  %v1651_v31 = vsel %vm1639_vm5, %v1633_v55, %v1650_v60 }
 0x16b   : > { %v1712_v26 = vshrl.u32 %v1711_v12, 23  ;;  %v10270_v39 = vsel %vm879_vm2, %v880_v45, %v10102_v14  ;;  %v18595_v18 = vand.u32 2147483647, %v18594_v13  ;;  %vm1092_vm7 = vcmp.lt.s32.totalorder %v18594_v13, 0 }
 0x16c   : > { %v10279_v44 = vshll.u32 %v1613_v9, 8  ;;  %v10286_v55 = vsel %vm876_vm12, %v10097_v1, %v877_v43  ;;  %v983_v45 = vxor.u32 2147483648, %v10229_v51  ;;  %v10289_v10 = vsel %vm7447_vm3, 0, %v7446_v33 }
 0x16d   : > { %vm10274_vm6 = vcmp.le.f32.partialorder %v18595_v18, 0.7853982  ;;  %v1648_v62 = vsel %vm1638_vm4, %v1645_v53, %v1647_v11  ;;  %vm1085_vm8 = vcmp.eq.s32.totalorder %v10242_v3, 2  ;;  %v1249_v42 = vadd.s32 %v9843_v20, %v9849_v36 }
 0x16e   : > { %v1265_v12 = vsub.s32 32, %v10225_v38  ;;  %v1563_v14 = vadd.s32 536870912, %v10248_v52  ;;  %v1652_v1 = vsel %vm1638_vm4, %v1649_v22, %v1651_v31  ;;  %vm1082_vm9 = vcmp.eq.s32.totalorder %v10242_v3, 0 }
 0x16f   : > { %v1174_v43 = vxor.u32 2147483648, %v1173_v2  ;;  %v1270_v33 = vadd.s32 127, %v1269_v19  ;;  %v1465_v9 = vsub.s32 0, %v10258_v4  ;;  %v7460_v60 = vadd.s32 4294967169, %v1712_v26 }
 0x170   : > { %v980_v53 = vxor.u32 2147483648, %v8074_v35  ;;  %v1372_v11 = vsub.s32 4294967266, %v10289_v10  ;;  %v10304_v18 = vmul.u32.u64.low %v10279_v44, %v1648_v62  ;;  %v10305_v36 = vmul.u32.u64.high %v10279_v44, %v1648_v62, %v10304_v18 }
 0x171   : > { %v10310_v20 = vsel %vm982_vm15, %v983_v45, %v8074_v35  ;;  %v1621_v22 = vshrl.u32 %v18507_v15, %v10176_v0  ;;  %v10315_v19 = vmul.u32.u64.low %v10279_v44, %v1652_v1  ;;  %v10316_v31 = vmul.u32.u64.high %v10279_v44, %v1652_v1, %v10315_v19  ;;  %v8076_v26 = vpop.eup %8075 }
 0x172   : > { %vm772_vm10 = vcmp.lt.s32.totalorder %v9730_v58, 2  ;;  %v1266_v47 = vshll.u32 %v10036_v28, %v10225_v38  ;;  %v1267_v62 = vshrl.u32 %v1249_v42, %v1265_v12  ;;  %v10321_v56 = vshrl.u32 %v1563_v14, 30  ;;  %v8078_v45 = vpop.eup %8077  ;;  %v18598_v38 = vld [vmem:[#allocation12_spill] sm:$0xff] }
 0x173   : > { %v1642_v35 = vsel %vm1640_vm14, %v1630_v50, 2102212464  ;;  %vm875_vm11 = vcmp.lt.s32.totalorder %v9962_v46, 2  ;;  %vm978_vm2 = vcmp.lt.s32.totalorder %v10144_v57, 2  ;;  %v1175_v0 = vsel %vm1092_vm7, %v1174_v43, %v1173_v2  ;;  %v18599_v2 = vld [vmem:[#allocation66_spill] sm:$0xff] }
 0x174   : > { %v1271_v1 = vshll.u32 %v1270_v33, 23  ;;  %v7449_v19 = vmin.u32 %v1465_v9, %v10258_v4  ;;  %v1718_v34 = vadd.s32 1, %v7460_v60  ;;  %v981_v28 = vsel %vm979_vm1, %v10229_v51, %v980_v53  ;;  %v18600_v9 = vld [vmem:[#allocation8_spill] sm:$0xff] }
 0x175   : > { %vm1081_vm12 = vcmp.lt.s32.totalorder %v10242_v3, 2  ;;  %vm1195_vm13 = vcmp.lt.s32.totalorder %v18598_v38, 0  ;;  %v1352_v50 = vadd.s32 %v9919_v8, %v9925_v59  ;;  %v1368_v42 = vsub.s32 32, %v10289_v10 }
 0x176   : > { %v1373_v12 = vadd.s32 127, %v1372_v11  ;;  %v1086_v14 = vxor.u32 2147483648, %v8076_v26  ;;  %v1176_v43 = vsub.s32 4, %v18599_v2  ;;  %v1641_v33 = vsel %vm1637_vm0, %v1621_v22, %v10232_v7 }
 0x177   : > { %v1643_v51 = vsel %vm1639_vm5, %v10234_v27, %v1642_v35  ;;  %vm770_vm14 = vweird.f32 %v18600_v9  ;;  %vm873_vm15 = vweird.f32 %v18568_v24  ;;  %v1083_v60 = vxor.u32 2147483648, %v8078_v45 }
 0x178   : > { %v1178_v8 = vsel %vm10274_vm6, %v18594_v13, %v1175_v0  ;;  %v1268_v59 = vor.u32 %v1267_v62, %v1266_v47  ;;  %v1565_v53 = vshll.u32 %v10321_v56, 30  ;;  %vm976_vm1 = vweird.f32 %v18576_v25  ;;  %v18603_v13 = vld [vmem:[#allocation70_spill] sm:$0xff] }
 0x179   : > { %v1272_v11 = vor.u32 4788187, %v1271_v1  ;;  %v1369_v7 = vshll.u32 %v10107_v61, %v10289_v10  ;;  %v1467_v22 = vclz %v7449_v19  ;;  %vm1719_vm0 = vcmp.gt.s32.totalorder %v1718_v34, 0 }
 0x17a   : > { %vm1079_vm5 = vweird.f32 %v8843_v63  ;;  %v1370_v27 = vshrl.u32 %v1352_v50, %v1368_v42  ;;  %v1374_v35 = vshll.u32 %v1373_v12, 23  ;;  %v1644_v6 = vsel %vm1638_vm4, %v1641_v33, %v1643_v51  ;;  %v18601_v42 = vld [vmem:[#allocation18_spill] sm:$0xff]  ;;  %v18602_v51 = vld [vmem:[#allocation71_spill] sm:$0xff] }
 0x17b   : > { %v1663_v0 = vadd.s32 1, %v10305_v36  ;;  %v1087_v47 = vsel %vm1085_vm8, %v1086_v14, %v8078_v45  ;;  %v1177_v62 = vsel %vm1092_vm7, %v1176_v43, %v18599_v2  ;;  %v1279_v61 = vsub.s32 4, %v9993_v37 }
 0x17c   : > { %vm1662_vm3 = vc.u32 %v10316_v31, %v10304_v18  ;;  %v1084_v10 = vsel %vm1082_vm9, %v8076_v26, %v1083_v60  ;;  %8079 = vcosq.f32 %v1178_v8  ;;  %v10369_v48 = vsub.s32 %v10248_v52, %v1565_v53 }
 0x17d   : > { %v1720_v1 = vsel %vm1719_vm0, %v1718_v34, 0  ;;  %v1275_v19 = vcvt.s32.f32 %v1268_v59  ;;  %v7450_v50 = vadd.s32 4294967294, %v1467_v22  ;;  %v1660_v45 = vmul.u32 %v10279_v44, %v1644_v6 }
 0x17e   : > { %v1814_v12 = vand.u32 2139095040, %v18601_v42  ;;  %v1273_v14 = vand.u32 2147483647, %v1272_v11  ;;  %v1371_v2 = vor.u32 %v1370_v27, %v1369_v7  ;;  %v1375_v43 = vor.u32 4788187, %v1374_v35 }
 0x17f   : > { %v1664_v33 = vsel %vm1662_vm3, %v1663_v0, %v10305_v36  ;;  %v779_v26 = vsel %vm772_vm10, %v18603_v13, %v18602_v51  ;;  %v18604_v52 = vand.u32 2147483647, %v18598_v38  ;;  %v1280_v6 = vsel %vm1195_vm13, %v1279_v61, %v9993_v37  ;;  %v18611_v0 = vld [vmem:[#allocation13_spill] sm:$0xff] }
 0x180   : > { %v1722_v44 = vand.u32 31, %v1720_v1  ;;  %v882_v36 = vsel %vm875_vm11, %v10286_v55, %v10270_v39  ;;  %v985_v58 = vsel %vm978_vm2, %v981_v28, %v10310_v20  ;;  %v1179_v13 = vsel %vm10274_vm6, 0, %v1177_v62 }
 0x181   : > { %vm10380_vm4 = vcmp.le.f32.partialorder %v18604_v52, 0.7853982  ;;  %v1568_v60 = vsub.s32 0, %v10369_v48  ;;  %v1088_v59 = vsel %vm1081_vm12, %v1084_v10, %v1087_v47  ;;  %vm7451_vm7 = vcmp.lt.s32.totalorder %v7450_v50, 0 }
 0x182   : > { %v10399_v37 = vadd.s32 %v1664_v33, %v1660_v45  ;;  %v1815_v53 = vshrl.u32 %v1814_v12, 23  ;;  %v1276_v11 = vmul.f32 %v1275_v19, %v1273_v14  ;;  %v1282_v46 = vsel %vm10380_vm4, 0, %v1280_v6 }
 0x183   : > { %v1376_v39 = vand.u32 2147483647, %v1375_v43  ;;  %v1378_v55 = vcvt.s32.f32 %v1371_v2  ;;  %v10405_v57 = vsel %vm770_vm14, nan, %v779_v26  ;;  %v10409_v49 = vsel %vm873_vm15, nan, %v882_v36 }
 0x184   : > { %18607 = vst [vmem:[#allocation17_spill] sm:$0xff] %v10405_v57  ;;  %18608 = vst [vmem:[#allocation12_spill] sm:$0xff] %v10409_v49  ;;  %8081 = vsinq.f32 %v1178_v8  ;;  %v10411_v3 = vsub.s32 32, %v1722_v44  ;;  %v10415_v20 = vsel %vm976_vm1, nan, %v985_v58  ;;  %v10417_v28 = vand.u32 3, %v1179_v13 }
 0x185   : > { %18609 = vst [vmem:[#allocation66_spill] sm:$0xff] %v10415_v20  ;;  %v10419_v7 = vsel %vm7451_vm7, 0, %v7450_v50  ;;  %v7453_v22 = vmin.u32 %v1568_v60, %v10369_v48  ;;  %v10424_v9 = vsel %vm1079_vm5, nan, %v1088_v59  ;;  %v10426_v24 = vand.u32 3, %v1282_v46 }
 0x186   : > { %18610 = vst [vmem:[#allocation8_spill] sm:$0xff] %v10424_v9  ;;  %v1666_v8 = vadd.s32 536870912, %v10399_v37  ;;  %v7464_v27 = vadd.s32 4294967169, %v1815_v53  ;;  %v10429_v35 = vpop.eup %8079  ;;  %v1277_v25 = vxor.u32 2147483648, %v1276_v11  ;;  %vm1298_vm6 = vcmp.lt.s32.totalorder %v18611_v0, 0 }
 0x187   : > { %v1379_v47 = vmul.f32 %v1378_v55, %v1376_v39  ;;  %v1455_v62 = vadd.s32 %v10063_v16, %v10069_v40  ;;  %v18393_v61 = vand.u32 2147483647, %v18593_v23  ;;  %v1471_v63 = vsub.s32 32, %v10419_v7 }
 0x188   : > { %v1475_v10 = vsub.s32 4294967266, %v10419_v7  ;;  %v1734_v19 = vshll.u32 %v18504_v41, %v1722_v44  ;;  %v1735_v50 = vshrl.u32 %v18505_v32, %v10411_v3  ;;  %v1570_v45 = vclz %v7453_v22 }
 0x189   : > { %v10440_v12 = vshrl.u32 %v1720_v1, 5  ;;  %v1737_v14 = vshll.u32 %v18505_v32, %v1722_v44  ;;  %v1738_v2 = vshrl.u32 %v18506_v30, %v10411_v3  ;;  %vm1188_vm8 = vcmp.eq.s32.totalorder %v10417_v28, 2 }
 0x18a   : > { %v10446_v16 = vshrl.u32 %v1666_v8, 30  ;;  %v1725_v40 = vshll.u32 %v18507_v15, %v1722_v44  ;;  %v1728_v43 = vshll.u32 %v18508_v5, %v1722_v44  ;;  %v1821_v33 = vadd.s32 1, %v7464_v27 }
 0x18b   : > { %vm1185_vm9 = vcmp.eq.s32.totalorder %v10417_v28, 0  ;;  %v1726_v1 = vshrl.u32 %v18508_v5, %v10411_v3  ;;  %v1729_v51 = vshrl.u32 %v18509_v17, %v10411_v3  ;;  %v1731_v26 = vshll.u32 %v18509_v17, %v1722_v44 }
 0x18c   : > { %v1732_v52 = vshrl.u32 %v18504_v41, %v10411_v3  ;;  %v1189_v6 = vxor.u32 2147483648, %v10429_v35  ;;  %v1278_v36 = vsel %vm1195_vm13, %v1277_v25, %v1276_v11  ;;  %v18612_v58 = vand.u32 2147483647, %v18611_v0 }
 0x18d   : > { %v1476_v60 = vadd.s32 127, %v1475_v10  ;;  %v1736_v59 = vor.u32 %v1735_v50, %v1734_v19  ;;  %v1380_v53 = vxor.u32 2147483648, %v1379_v47  ;;  %v1715_v44 = vand.u32 8388607, %v18393_v61 }
 0x18e   : > { %vm10463_vm10 = vcmp.le.f32.partialorder %v18612_v58, 0.7853982  ;;  %v1739_v46 = vor.u32 %v1738_v2, %v1737_v14  ;;  %vm1743_vm11 = vcmp.lt.s32.totalorder %v10440_v12, 4  ;;  %v8082_v39 = vpop.eup %8081  ;;  %v1472_v55 = vshll.u32 %v10258_v4, %v10419_v7  ;;  %v18615_v14 = vld [vmem:[#allocation72_spill] sm:$0xff] }
 0x18f   : > { %v1473_v11 = vshrl.u32 %v1455_v62, %v1471_v63  ;;  %v7454_v22 = vadd.s32 4294967294, %v1570_v45  ;;  %v1668_v8 = vshll.u32 %v10446_v16, 30  ;;  %v1727_v27 = vor.u32 %v1726_v1, %v1725_v40 }
 0x190   : > { %v1730_v25 = vor.u32 %v1729_v51, %v1728_v43  ;;  %v1733_v58 = vor.u32 %v1732_v52, %v1731_v26  ;;  %vm1822_vm2 = vcmp.gt.s32.totalorder %v1821_v33, 0  ;;  %v1477_v10 = vshll.u32 %v1476_v60, 23 }
 0x191   : > { %vm1740_vm12 = vcmp.lt.s32.totalorder %v10440_v12, 1  ;;  %vm1742_vm13 = vcmp.lt.s32.totalorder %v10440_v12, 3  ;;  %v1749_v19 = vsel %vm1743_vm11, %v1736_v59, 920167782  ;;  %v1186_v50 = vxor.u32 2147483648, %v8082_v39 }
 0x192   : > { %v1382_v2 = vsub.s32 4, %v18615_v14  ;;  %v1716_v4 = vor.u32 8388608, %v1715_v44  ;;  %v1753_v7 = vsel %vm1743_vm11, %v1739_v46, 1326507024  ;;  %v1281_v62 = vsel %vm10380_vm4, %v18598_v38, %v1278_v36 }
 0x193   : > { %v1381_v63 = vsel %vm1298_vm6, %v1380_v53, %v1379_v47  ;;  %vm7455_vm14 = vcmp.lt.s32.totalorder %v7454_v22, 0  ;;  %v1823_v45 = vsel %vm1822_vm2, %v1821_v33, 0  ;;  %v10486_v40 = vsub.s32 %v10399_v37, %v1668_v8 }
 0x194   : > { %vm1741_vm15 = vcmp.lt.s32.totalorder %v10440_v12, 2  ;;  %v1748_v43 = vsel %vm1740_vm12, %v1727_v27, %v1730_v25  ;;  %v1750_v1 = vsel %vm1742_vm13, %v1733_v58, %v1749_v19  ;;  %v1474_v51 = vor.u32 %v1473_v11, %v1472_v55 }
 0x195   : > { %v1478_v26 = vor.u32 4788187, %v1477_v10  ;;  %v1752_v34 = vsel %vm1740_vm12, %v1730_v25, %v1733_v58  ;;  %v1754_v47 = vsel %vm1742_vm13, %v1736_v59, %v1753_v7  ;;  %v10499_v37 = vsel %vm1188_vm8, %v1189_v6, %v8082_v39 }
 0x196   : > { %v10501_v33 = vsel %vm7455_vm14, 0, %v7454_v22  ;;  %v10503_v52 = vshll.u32 %v1716_v4, 8  ;;  %v1825_v36 = vand.u32 31, %v1823_v45  ;;  %v10508_v60 = vsel %vm1185_vm9, %v10429_v35, %v1186_v50  ;;  %v18616_v4 = vld [vmem:[#allocation19_spill] sm:$0xff] }
 0x197   : > { %8083 = vcosq.f32 %v1281_v62  ;;  %v10513_v53 = vsel %vm1298_vm6, %v1382_v2, %v18615_v14  ;;  %v1751_v6 = vsel %vm1741_vm15, %v1748_v43, %v1750_v1  ;;  %v1384_v59 = vsel %vm10463_vm10, %v18611_v0, %v1381_v63  ;;  %v18617_v43 = vld [vmem:[#allocation14_spill] sm:$0xff] }
 0x198   : > { %8085 = vsinq.f32 %v1281_v62  ;;  %v1671_v44 = vsub.s32 0, %v10486_v40  ;;  %v1755_v35 = vsel %vm1741_vm15, %v1752_v34, %v1754_v47  ;;  %v1479_v46 = vand.u32 2147483647, %v1478_v26 }
 0x199   : > { %v1481_v39 = vcvt.s32.f32 %v1474_v51  ;;  %v1578_v55 = vsub.s32 4294967266, %v10501_v33  ;;  %v18392_v11 = vand.u32 2147483647, %v18601_v42  ;;  %v1724_v22 = vshrl.u32 %v18507_v15, %v10411_v3 }
 0x19a   : > { %v10528_v8 = vmul.u32.u64.low %v10503_v52, %v1751_v6  ;;  %v10529_v10 = vmul.u32.u64.high %v10503_v52, %v1751_v6, %v10528_v8  ;;  %v10532_v19 = vsub.s32 32, %v1825_v36  ;;  %v1745_v50 = vsel %vm1743_vm11, %v1733_v58, 2102212464 }
 0x19b   : > { %v10537_v14 = vmul.u32.u64.low %v10503_v52, %v1755_v35  ;;  %v10538_v2 = vmul.u32.u64.high %v10503_v52, %v1755_v35, %v10537_v14  ;;  %v1917_v7 = vand.u32 2139095040, %v18616_v4  ;;  %8087 = vcosq.f32 %v1384_v59 }
 0x19c   : > { %v1558_v3 = vadd.s32 %v10172_v54, %v10181_v21  ;;  %v1574_v62 = vsub.s32 32, %v10501_v33  ;;  %v7457_v63 = vmin.u32 %v1671_v44, %v10486_v40  ;;  %vm1401_vm1 = vcmp.lt.s32.totalorder %v18617_v43, 0 }
 0x19d   : > { %v1482_v1 = vmul.f32 %v1481_v39, %v1479_v46  ;;  %v1575_v58 = vshll.u32 %v10369_v48, %v10501_v33  ;;  %v1579_v51 = vadd.s32 127, %v1578_v55  ;;  %v10550_v26 = vand.u32 8388607, %v18392_v11 }
 0x19e   : > { %v1744_v34 = vsel %vm1740_vm12, %v1724_v22, %v1727_v27  ;;  %v1746_v54 = vsel %vm1742_vm13, %v1730_v25, %v1745_v50  ;;  %v1837_v21 = vshll.u32 %v18504_v41, %v1825_v36  ;;  %v1838_v47 = vshrl.u32 %v18505_v32, %v10532_v19 }
 0x19f   : > { %v10559_v6 = vshrl.u32 %v1823_v45, 5  ;;  %v1840_v48 = vshll.u32 %v18505_v32, %v1825_v36  ;;  %v1841_v33 = vshrl.u32 %v18506_v30, %v10532_v19  ;;  %v1918_v44 = vshrl.u32 %v1917_v7, 23 }
 0x1a0   : > { %v1576_v35 = vshrl.u32 %v1558_v3, %v1574_v62  ;;  %v1673_v46 = vclz %v7457_v63  ;;  %v1828_v27 = vshll.u32 %v18507_v15, %v1825_v36  ;;  %v1831_v39 = vshll.u32 %v18508_v5, %v1825_v36 }
 0x1a1   : > { %v10566_v25 = vpop.eup %8083  ;;  %vm1184_vm0 = vcmp.lt.s32.totalorder %v10417_v28, 2  ;;  %v18618_v55 = vand.u32 2147483647, %v18617_v43  ;;  %v1829_v22 = vshrl.u32 %v18508_v5, %v10532_v19  ;;  %v1832_v50 = vshrl.u32 %v18509_v17, %v10532_v19 }
 0x1a2   : > { %v1834_v14 = vshll.u32 %v18509_v17, %v1825_v36  ;;  %v1835_v7 = vshrl.u32 %v18504_v41, %v10532_v19  ;;  %v8086_v3 = vpop.eup %8085  ;;  %v1580_v62 = vshll.u32 %v1579_v51, 23  ;;  %v1747_v63 = vsel %vm1741_vm15, %v1744_v34, %v1746_v54 }
 0x1a3   : > { %vm10571_vm5 = vcmp.le.f32.partialorder %v18618_v55, 0.7853982  ;;  %v1766_v55 = vadd.s32 1, %v10529_v10  ;;  %v1839_v11 = vor.u32 %v1838_v47, %v1837_v21  ;;  %vm1288_vm3 = vcmp.eq.s32.totalorder %v10426_v24, 0 }
 0x1a4   : > { %vm1291_vm4 = vcmp.eq.s32.totalorder %v10426_v24, 2  ;;  %vm1765_vm7 = vc.u32 %v10538_v2, %v10528_v8  ;;  %v1842_v61 = vor.u32 %v1841_v33, %v1840_v48  ;;  %vm1846_vm6 = vcmp.lt.s32.totalorder %v10559_v6, 4 }
 0x1a5   : > { %v7468_v36 = vadd.s32 4294967169, %v1918_v44  ;;  %8089 = vsinq.f32 %v1384_v59  ;;  %v1483_v9 = vxor.u32 2147483648, %v1482_v1  ;;  %v7458_v51 = vadd.s32 4294967294, %v1673_v46  ;;  %v10596_v20 = vpop.eup %8087 }
 0x1a6   : > { %v1819_v12 = vor.u32 8388608, %v10550_v26  ;;  %v1763_v34 = vmul.u32 %v10503_v52, %v1747_v63  ;;  %v10592_v54 = vor.u32 %v1829_v22, %v1828_v27  ;;  %v10594_v21 = vor.u32 %v1832_v50, %v1831_v39 }
 0x1a7   : > { %v1836_v47 = vor.u32 %v1835_v7, %v1834_v14  ;;  %v1767_v49 = vsel %vm1765_vm7, %v1766_v55, %v10529_v10  ;;  %vm1843_vm8 = vcmp.lt.s32.totalorder %v10559_v6, 1  ;;  %vm1845_vm9 = vcmp.lt.s32.totalorder %v10559_v6, 3 }
 0x1a8   : > { %v1852_v59 = vsel %vm1846_vm6, %v1839_v11, 920167782  ;;  %v1577_v48 = vor.u32 %v1576_v35, %v1575_v58  ;;  %v1581_v26 = vor.u32 4788187, %v1580_v62  ;;  %v1856_v52 = vsel %vm1846_vm6, %v1842_v61, 1326507024 }
 0x1a9   : > { %v1924_v33 = vadd.s32 1, %v7468_v36  ;;  %v1289_v44 = vxor.u32 2147483648, %v8086_v3  ;;  %v1292_v46 = vxor.u32 2147483648, %v10566_v25  ;;  %v1385_v10 = vsel %vm10463_vm10, 0, %v10513_v53 }
 0x1aa   : > { %v1484_v27 = vsel %vm1401_vm1, %v1483_v9, %v1482_v1  ;;  %v10611_v39 = vadd.s32 %v1767_v49, %v1763_v34  ;;  %vm1844_vm11 = vcmp.lt.s32.totalorder %v10559_v6, 2  ;;  %v1851_v61 = vsel %vm1843_vm8, %v10592_v54, %v10594_v21 }
 0x1ab   : > { %v1853_v58 = vsel %vm1845_vm9, %v1836_v47, %v1852_v59  ;;  %v1485_v35 = vsub.s32 4, %v10204_v29  ;;  %vm7459_vm2 = vcmp.lt.s32.totalorder %v7458_v51, 0  ;;  %v1855_v13 = vsel %vm1843_vm8, %v10594_v21, %v1836_v47 }
 0x1ac   : > { %v1857_v49 = vsel %vm1845_vm9, %v1839_v11, %v1856_v52  ;;  %v1582_v9 = vand.u32 2147483647, %v1581_v26  ;;  %v1584_v53 = vcvt.s32.f32 %v1577_v48  ;;  %v10626_v1 = vshll.u32 %v1819_v12, 8 }
 0x1ad   : > { %vm1925_vm10 = vcmp.gt.s32.totalorder %v1924_v33, 0  ;;  %v10632_v22 = vsel %vm1184_vm0, %v10508_v60, %v10499_v37  ;;  %vm1287_vm12 = vcmp.lt.s32.totalorder %v10426_v24, 2  ;;  %v1487_v50 = vsel %vm10571_vm5, %v18617_v43, %v1484_v27 }
 0x1ae   : > { %v1854_v11 = vsel %vm1844_vm11, %v1851_v61, %v1853_v58  ;;  %v10640_v14 = vand.u32 3, %v1385_v10  ;;  %v10642_v7 = vsel %vm7459_vm2, 0, %v7458_v51  ;;  %v1769_v62 = vadd.s32 536870912, %v10611_v39 }
 0x1af   : > { %v1858_v28 = vsel %vm1844_vm11, %v1855_v13, %v1857_v49  ;;  %v8090_v37 = vpop.eup %8089  ;;  %v1290_v60 = vsel %vm1288_vm3, %v10566_v25, %v1289_v44  ;;  %v1293_v63 = vsel %vm1291_vm4, %v1292_v46, %v8086_v3  ;;  %v1486_v55 = vsel %vm1401_vm1, %v1485_v35, %v10204_v29  ;;  %v18621_v46 = vld [vmem:[#allocation15_spill] sm:$0xff]  ;;  %v18625_v49 = vld [vmem:[#allocation20_spill] sm:$0xff] }
 0x1b0   : > { %v1926_v36 = vsel %vm1925_vm10, %v1924_v33, 0  ;;  %8091 = vcosq.f32 %v1487_v50  ;;  %v1585_v51 = vmul.f32 %v1584_v53, %v1582_v9  ;;  %v1681_v59 = vsub.s32 4294967266, %v10642_v7 }
 0x1b1   : > { %v10656_v12 = vmul.u32.u64.low %v10626_v1, %v1854_v11  ;;  %v10657_v34 = vmul.u32.u64.high %v10626_v1, %v1854_v11, %v10656_v12  ;;  %v1827_v25 = vshrl.u32 %v18507_v15, %v10532_v19  ;;  %vm1391_vm13 = vcmp.eq.s32.totalorder %v10640_v14, 0 }
 0x1b2   : > { %v10664_v48 = vmul.u32.u64.low %v10626_v1, %v1858_v28  ;;  %v10665_v3 = vmul.u32.u64.high %v10626_v1, %v1858_v28, %v10664_v48  ;;  %v10668_v29 = vshrl.u32 %v1769_v62, 30  ;;  %v1848_v26 = vsel %vm1846_vm6, %v1836_v47, 2102212464 }
 0x1b3   : > { %v1928_v52 = vand.u32 31, %v1926_v36  ;;  %v1392_v33 = vxor.u32 2147483648, %v8090_v37  ;;  %vm1394_vm14 = vcmp.eq.s32.totalorder %v10640_v14, 2  ;;  %v1395_v44 = vxor.u32 2147483648, %v10596_v20 }
 0x1b4   : > { %vm1504_vm15 = vcmp.lt.s32.totalorder %v18621_v46, 0  ;;  %v10677_v19 = vsel %vm1287_vm12, %v1290_v60, %v1293_v63  ;;  %v1488_v10 = vsel %vm10571_vm5, 0, %v1486_v55  ;;  %v1586_v27 = vxor.u32 2147483648, %v1585_v51 }
 0x1b5   : > { %v1661_v61 = vadd.s32 %v10304_v18, %v10316_v31  ;;  %v18622_v47 = vand.u32 2147483647, %v18621_v46  ;;  %v1677_v35 = vsub.s32 32, %v10642_v7  ;;  %v1682_v13 = vadd.s32 127, %v1681_v59 }
 0x1b6   : > { %v1847_v24 = vsel %vm1843_vm8, %v1827_v25, %v10592_v54  ;;  %v1849_v45 = vsel %vm1845_vm9, %v10594_v21, %v1848_v26  ;;  %8093 = vsinq.f32 %v1487_v50  ;;  %v1771_v18 = vshll.u32 %v10668_v29, 30 }
 0x1b7   : > { %vm10685_vm1 = vcmp.le.f32.partialorder %v18622_v47, 0.7853982  ;;  %v10697_v31 = vsub.s32 32, %v1928_v52  ;;  %v2020_v9 = vand.u32 2139095040, %v18625_v49  ;;  %v10703_v53 = vsel %vm1391_vm13, %v10596_v20, %v1392_v33 }
 0x1b8   : > { %v10707_v11 = vsel %vm1394_vm14, %v1395_v44, %v8090_v37  ;;  %v10709_v54 = vand.u32 3, %v1488_v10  ;;  %v1588_v21 = vsub.s32 4, %v10321_v56  ;;  %v1587_v50 = vsel %vm1504_vm15, %v1586_v27, %v1585_v51 }
 0x1b9   : > { %v1678_v62 = vshll.u32 %v10486_v40, %v10642_v7  ;;  %v1850_v28 = vsel %vm1844_vm11, %v1847_v24, %v1849_v45  ;;  %v1869_v20 = vadd.s32 1, %v10657_v34  ;;  %v1679_v60 = vshrl.u32 %v1661_v61, %v1677_v35  ;;  %v18626_v61 = vld [vmem:[#allocation21_spill] sm:$0xff] }
 0x1ba   : > { %v1683_v63 = vshll.u32 %v1682_v13, 23  ;;  %vm1868_vm0 = vc.u32 %v10665_v3, %v10656_v12  ;;  %v18394_v37 = vand.u32 2147483647, %v18616_v4  ;;  %v10722_v55 = vpop.eup %8091  ;;  %v10725_v59 = vsub.s32 %v10611_v39, %v1771_v18 }
 0x1bb   : > { %v1940_v51 = vshll.u32 %v18504_v41, %v1928_v52  ;;  %v1941_v40 = vshrl.u32 %v18505_v32, %v10697_v31  ;;  %v2021_v6 = vshrl.u32 %v2020_v9, 23  ;;  %v1866_v7 = vmul.u32 %v10626_v1, %v1850_v28 }
 0x1bc   : > { %v10731_v25 = vshrl.u32 %v1926_v36, 5  ;;  %v1943_v48 = vshll.u32 %v18505_v32, %v1928_v52  ;;  %v1944_v26 = vshrl.u32 %v18506_v30, %v10697_v31  ;;  %v1870_v33 = vsel %vm1868_vm0, %v1869_v20, %v10657_v34 }
 0x1bd   : > { %v1931_v39 = vshll.u32 %v18507_v15, %v1928_v52  ;;  %v1934_v44 = vshll.u32 %v18508_v5, %v1928_v52  ;;  %v1937_v10 = vshll.u32 %v18509_v17, %v1928_v52  ;;  %vm1390_vm5 = vcmp.lt.s32.totalorder %v10640_v14, 2 }
 0x1be   : > { %v1932_v1 = vshrl.u32 %v18508_v5, %v10697_v31  ;;  %v1935_v36 = vshrl.u32 %v18509_v17, %v10697_v31  ;;  %v1938_v27 = vshrl.u32 %v18504_v41, %v10697_v31  ;;  %v2123_v47 = vand.u32 2139095040, %v18626_v61 }
 0x1bf   : > { %vm1497_vm3 = vcmp.eq.s32.totalorder %v10709_v54, 2  ;;  %v1498_v34 = vxor.u32 2147483648, %v10722_v55  ;;  %v10753_v52 = vsel %vm1504_vm15, %v1588_v21, %v10321_v56  ;;  %v1942_v35 = vor.u32 %v1941_v40, %v1940_v51  ;;  %v18627_v21 = vld [vmem:[#allocation16_spill] sm:$0xff] }
 0x1c0   : > { %v7472_v13 = vadd.s32 4294967169, %v2021_v6  ;;  %v10755_v24 = vadd.s32 %v1870_v33, %v1866_v7  ;;  %v1921_v45 = vand.u32 8388607, %v18394_v37  ;;  %v1945_v18 = vor.u32 %v1944_v26, %v1943_v48  ;;  %v8094_v9 = vpop.eup %8093  ;;  %v18628_v33 = vld [vmem:[#allocation11_spill] sm:$0xff] }
 0x1c1   : > { %vm1949_vm4 = vcmp.lt.s32.totalorder %v10731_v25, 4  ;;  %v10763_v28 = vsel %vm10685_vm1, %v18621_v46, %v1587_v50  ;;  %v1680_v20 = vor.u32 %v1679_v60, %v1678_v62  ;;  %v1684_v57 = vor.u32 4788187, %v1683_v63 }
 0x1c2   : > { %v1774_v56 = vsub.s32 0, %v10725_v59  ;;  %vm1607_vm7 = vcmp.lt.s32.totalorder %v18627_v21, 0  ;;  %v1933_v51 = vor.u32 %v1932_v1, %v1931_v39  ;;  %v1936_v40 = vor.u32 %v1935_v36, %v1934_v44 }
 0x1c3   : > { %v1939_v6 = vor.u32 %v1938_v27, %v1937_v10  ;;  %v2124_v7 = vshrl.u32 %v2123_v47, 23  ;;  %vm1182_vm6 = vweird.f32 %v18628_v33  ;;  %vm1946_vm8 = vcmp.lt.s32.totalorder %v10731_v25, 1 }
 0x1c4   : > { %vm1948_vm9 = vcmp.lt.s32.totalorder %v10731_v25, 3  ;;  %v1955_v50 = vsel %vm1949_vm4, %v1942_v35, 920167782  ;;  %v2027_v48 = vadd.s32 1, %v7472_v13  ;;  %v1495_v62 = vxor.u32 2147483648, %v8094_v9 }
 0x1c5   : > { %v1872_v60 = vadd.s32 536870912, %v10755_v24  ;;  %v1922_v63 = vor.u32 8388608, %v1921_v45  ;;  %v1959_v26 = vsel %vm1949_vm4, %v1945_v18, 1326507024  ;;  %vm1285_vm11 = vweird.f32 %v18598_v38 }
 0x1c6   : > { %vm1388_vm2 = vweird.f32 %v18611_v0  ;;  %8095 = vcosq.f32 %v10763_v28  ;;  %v1687_v39 = vcvt.s32.f32 %v1680_v20  ;;  %v1691_v44 = vsub.s32 4, %v10446_v16 }
 0x1c7   : > { %v7461_v10 = vmin.u32 %v1774_v56, %v10725_v59  ;;  %vm1491_vm10 = vweird.f32 %v18617_v43  ;;  %vm1947_vm12 = vcmp.lt.s32.totalorder %v10731_v25, 2  ;;  %v1954_v1 = vsel %vm1946_vm8, %v1933_v51, %v1936_v40 }
 0x1c8   : > { %v1956_v36 = vsel %vm1948_vm9, %v1939_v6, %v1955_v50  ;;  %v7476_v27 = vadd.s32 4294967169, %v2124_v7  ;;  %v1685_v47 = vand.u32 2147483647, %v1684_v57  ;;  %v1958_v13 = vsel %vm1946_vm8, %v1936_v40, %v1939_v6 }
 0x1c9   : > { %v1960_v45 = vsel %vm1948_vm9, %v1942_v35, %v1959_v26  ;;  %vm2028_vm13 = vcmp.gt.s32.totalorder %v2027_v48, 0  ;;  %vm1493_vm14 = vcmp.lt.s32.totalorder %v10709_v54, 2  ;;  %vm1494_vm15 = vcmp.eq.s32.totalorder %v10709_v54, 0 }
 0x1ca   : > { %v10792_v18 = vshrl.u32 %v1872_v60, 30  ;;  %v10794_v20 = vshll.u32 %v1922_v63, 8  ;;  %v1397_v57 = vsel %vm1390_vm5, %v10703_v53, %v10707_v11  ;;  %v1591_v56 = vsel %vm10685_vm1, 0, %v10753_v52 }
 0x1cb   : > { %v1776_v7 = vclz %v7461_v10  ;;  %v1957_v35 = vsel %vm1947_vm12, %v1954_v1, %v1956_v36  ;;  %v1499_v50 = vsel %vm1497_vm3, %v1498_v34, %v8094_v9  ;;  %v1961_v60 = vsel %vm1947_vm12, %v1958_v13, %v1960_v45 }
 0x1cc   : > { %v2029_v63 = vsel %vm2028_vm13, %v2027_v48, 0  ;;  %v2130_v26 = vadd.s32 1, %v7476_v27  ;;  %v1496_v37 = vsel %vm1494_vm15, %v10722_v55, %v1495_v62  ;;  %v1688_v14 = vmul.f32 %v1687_v39, %v1685_v47 }
 0x1cd   : > { %v1692_v58 = vsel %vm1607_vm7, %v1691_v44, %v10446_v16  ;;  %v1930_v53 = vshrl.u32 %v18507_v15, %v10697_v31  ;;  %v1874_v11 = vshll.u32 %v10792_v18, 30  ;;  %v1951_v34 = vsel %vm1949_vm4, %v1939_v6, 2102212464 }
 0x1ce   : > { %v10819_v52 = vmul.u32.u64.low %v10794_v20, %v1957_v35  ;;  %v10820_v9 = vmul.u32.u64.high %v10794_v20, %v1957_v35, %v10819_v52  ;;  %v7462_v48 = vadd.s32 4294967294, %v1776_v7  ;;  %v2031_v39 = vand.u32 31, %v2029_v63 }
 0x1cf   : > { %v10824_v55 = vmul.u32.u64.low %v10794_v20, %v1961_v60  ;;  %v10825_v62 = vmul.u32.u64.high %v10794_v20, %v1961_v60, %v10824_v55  ;;  %v10830_v16 = vsel %vm1182_vm6, nan, %v10632_v22  ;;  %v1500_v31 = vsel %vm1493_vm14, %v1496_v37, %v1499_v50 }
 0x1d0   : > { %18629 = vst [vmem:[#allocation18_spill] sm:$0xff] %v10830_v16  ;;  %v18630_v6 = vand.u32 2147483647, %v18627_v21  ;;  %vm2131_vm0 = vcmp.gt.s32.totalorder %v2130_v26, 0  ;;  %v10840_v10 = vpop.eup %8095  ;;  %v1689_v1 = vxor.u32 2147483648, %v1688_v14  ;;  %v1950_v22 = vsel %vm1946_vm8, %v1930_v53, %v1933_v51 }
 0x1d1   : > { %v1952_v54 = vsel %vm1948_vm9, %v1936_v40, %v1951_v34  ;;  %v10851_v37 = vsel %vm1285_vm11, nan, %v10677_v19  ;;  %v10855_v33 = vsel %vm1388_vm2, nan, %v1397_v57  ;;  %v10857_v27 = vand.u32 3, %v1591_v56 }
 0x1d2   : > { %vm10836_vm1 = vcmp.le.f32.partialorder %v18630_v6, 0.7853982  ;;  %18633 = vst [vmem:[#allocation71_spill] sm:$0xff] %v10851_v37  ;;  %18634 = vst [vmem:[#allocation70_spill] sm:$0xff] %v10855_v33  ;;  %v10860_v47 = vsub.s32 %v10755_v24, %v1874_v11  ;;  %v10864_v51 = vsel %vm1491_vm10, nan, %v1500_v31  ;;  %vm7463_vm5 = vcmp.lt.s32.totalorder %v7462_v48, 0 }
 0x1d3   : > { %v1694_v36 = vsel %vm10836_vm1, 0, %v1692_v58  ;;  %18635 = vst [vmem:[#allocation13_spill] sm:$0xff] %v10864_v51  ;;  %v10866_v40 = vsub.s32 32, %v2031_v39  ;;  %v2132_v13 = vsel %vm2131_vm0, %v2130_v26, 0  ;;  %8097 = vsinq.f32 %v10763_v28 }
 0x1d4   : > { %v10869_v38 = vand.u32 3, %v1694_v36  ;;  %v10873_v0 = vadd.s32 %v10528_v8, %v10538_v2  ;;  %v1953_v19 = vsel %vm1947_vm12, %v1950_v22, %v1952_v54  ;;  %v10880_v43 = vsel %vm1607_vm7, %v1689_v1, %v1688_v14  ;;  %v18636_v14 = vld [vmem:[#allocation22_spill] sm:$0xff] }
 0x1d5   : > { %v18395_v45 = vand.u32 2147483647, %v18625_v49  ;;  %v10884_v28 = vsel %vm7463_vm5, 0, %v7462_v48  ;;  %v1877_v56 = vsub.s32 0, %v10860_v47  ;;  %v1972_v8 = vadd.s32 1, %v10820_v9 }
 0x1d6   : > { %v2134_v2 = vand.u32 31, %v2132_v13  ;;  %v1969_v25 = vmul.u32 %v10794_v20, %v1953_v19  ;;  %vm1971_vm3 = vc.u32 %v10825_v62, %v10819_v52  ;;  %v2043_v7 = vshll.u32 %v18504_v41, %v2031_v39 }
 0x1d7   : > { %v2044_v35 = vshrl.u32 %v18505_v32, %v10866_v40  ;;  %v10894_v50 = vshrl.u32 %v2029_v63, 5  ;;  %v2046_v60 = vshll.u32 %v18505_v32, %v2031_v39  ;;  %v2047_v26 = vshrl.u32 %v18506_v30, %v10866_v40 }
 0x1d8   : > { %v2226_v58 = vand.u32 2139095040, %v18636_v14  ;;  %v2034_v53 = vshll.u32 %v18507_v15, %v2031_v39  ;;  %v2035_v20 = vshrl.u32 %v18508_v5, %v10866_v40  ;;  %v2037_v11 = vshll.u32 %v18508_v5, %v2031_v39 }
 0x1d9   : > { %v2038_v34 = vshrl.u32 %v18509_v17, %v10866_v40  ;;  %v1973_v63 = vsel %vm1971_vm3, %v1972_v8, %v10820_v9  ;;  %v2040_v48 = vshll.u32 %v18509_v17, %v2031_v39  ;;  %v2041_v55 = vshrl.u32 %v18504_v41, %v10866_v40 }
 0x1da   : > { %v10910_v31 = vsub.s32 32, %v2134_v2  ;;  %v1784_v1 = vsub.s32 4294967266, %v10884_v28  ;;  %v2024_v36 = vand.u32 8388607, %v18395_v45  ;;  %v2045_v22 = vor.u32 %v2044_v35, %v2043_v7 }
 0x1db   : > { %v7465_v54 = vmin.u32 %v1877_v56, %v10860_v47  ;;  %v2048_v19 = vor.u32 %v2047_v26, %v2046_v60  ;;  %vm2052_vm4 = vcmp.lt.s32.totalorder %v10894_v50, 4  ;;  %v2227_v9 = vshrl.u32 %v2226_v58, 23 }
 0x1dc   : > { %v10918_v39 = vadd.s32 %v1973_v63, %v1969_v25  ;;  %v10920_v8 = vor.u32 %v2035_v20, %v2034_v53  ;;  %v10922_v24 = vor.u32 %v2038_v34, %v2037_v11  ;;  %vm2049_vm7 = vcmp.lt.s32.totalorder %v10894_v50, 1 }
 0x1dd   : > { %v10925_v6 = vpop.eup %8097  ;;  %v2042_v57 = vor.u32 %v2041_v55, %v2040_v48  ;;  %vm2051_vm6 = vcmp.lt.s32.totalorder %v10894_v50, 3  ;;  %v2146_v7 = vshll.u32 %v18504_v41, %v2134_v2  ;;  %v2147_v56 = vshrl.u32 %v18505_v32, %v10910_v31 }
 0x1de   : > { %v2058_v25 = vsel %vm2052_vm4, %v2045_v22, 920167782  ;;  %v10933_v35 = vshrl.u32 %v2132_v13, 5  ;;  %v2149_v60 = vshll.u32 %v18505_v32, %v2134_v2  ;;  %v2150_v26 = vshrl.u32 %v18506_v30, %v10910_v31 }
 0x1df   : > { %v2062_v58 = vsel %vm2052_vm4, %v2048_v19, 1326507024  ;;  %v2137_v53 = vshll.u32 %v18507_v15, %v2134_v2  ;;  %v2140_v20 = vshll.u32 %v18508_v5, %v2134_v2  ;;  %v7480_v11 = vadd.s32 4294967169, %v2227_v9 }
 0x1e0   : > { %v2138_v34 = vshrl.u32 %v18508_v5, %v10910_v31  ;;  %v2141_v13 = vshrl.u32 %v18509_v17, %v10910_v31  ;;  %v2143_v63 = vshll.u32 %v18509_v17, %v2134_v2  ;;  %v2144_v48 = vshrl.u32 %v18504_v41, %v10910_v31 }
 0x1e1   : > { %v1879_v55 = vclz %v7465_v54  ;;  %v1975_v45 = vadd.s32 536870912, %v10918_v39  ;;  %v2025_v19 = vor.u32 8388608, %v2024_v36  ;;  %v2148_v51 = vor.u32 %v2147_v56, %v2146_v7 }
 0x1e2   : > { %vm2050_vm8 = vcmp.lt.s32.totalorder %v10894_v50, 2  ;;  %v18637_v9 = vand.u32 2147483647, %v18626_v61  ;;  %v2151_v37 = vor.u32 %v2150_v26, %v2149_v60  ;;  %vm2155_vm9 = vcmp.lt.s32.totalorder %v10933_v35, 4  ;;  %v18641_v50 = vld [vmem:[#allocation23_spill] sm:$0xff] }
 0x1e3   : > { %v2057_v2 = vsel %vm2049_vm7, %v10920_v8, %v10922_v24  ;;  %v2059_v54 = vsel %vm2051_vm6, %v2042_v57, %v2058_v25  ;;  %v2061_v36 = vsel %vm2049_vm7, %v10922_v24, %v2042_v57  ;;  %v2063_v7 = vsel %vm2051_vm6, %v2045_v22, %v2062_v58 }
 0x1e4   : > { %v2127_v33 = vand.u32 8388607, %v18637_v9  ;;  %v2139_v56 = vor.u32 %v2138_v34, %v2137_v53  ;;  %v2142_v9 = vor.u32 %v2141_v13, %v2140_v20  ;;  %v2145_v60 = vor.u32 %v2144_v48, %v2143_v63 }
 0x1e5   : > { %v2233_v26 = vadd.s32 1, %v7480_v11  ;;  %vm1597_vm11 = vcmp.eq.s32.totalorder %v10857_v27, 0  ;;  %vm1600_vm2 = vcmp.eq.s32.totalorder %v10857_v27, 2  ;;  %v10967_v16 = vshll.u32 %v2025_v19, 8 }
 0x1e6   : > { %vm2152_vm10 = vcmp.lt.s32.totalorder %v10933_v35, 1  ;;  %vm2154_vm12 = vcmp.lt.s32.totalorder %v10933_v35, 3  ;;  %v2161_v25 = vsel %vm2155_vm9, %v2148_v51, 920167782  ;;  %v1785_v61 = vadd.s32 127, %v1784_v1 }
 0x1e7   : > { %v2060_v22 = vsel %vm2050_vm8, %v2057_v2, %v2059_v54  ;;  %v2128_v58 = vor.u32 8388608, %v2127_v33  ;;  %v2165_v53 = vsel %vm2155_vm9, %v2151_v37, 1326507024  ;;  %v7466_v20 = vadd.s32 4294967294, %v1879_v55 }
 0x1e8   : > { %v10977_v11 = vshrl.u32 %v1975_v45, 30  ;;  %v2033_v34 = vshrl.u32 %v18507_v15, %v10866_v40  ;;  %v2064_v13 = vsel %vm2050_vm8, %v2061_v36, %v2063_v7  ;;  %vm2153_vm13 = vcmp.lt.s32.totalorder %v10933_v35, 2 }
 0x1e9   : > { %v2160_v1 = vsel %vm2152_vm10, %v2139_v56, %v2142_v9  ;;  %v2162_v33 = vsel %vm2154_vm12, %v2145_v60, %v2161_v25  ;;  %vm2234_vm14 = vcmp.gt.s32.totalorder %v2233_v26, 0  ;;  %v2164_v40 = vsel %vm2152_vm10, %v2142_v9, %v2145_v60 }
 0x1ea   : > { %v10989_v37 = vmul.u32.u64.low %v10967_v16, %v2060_v22  ;;  %v10990_v63 = vmul.u32.u64.high %v10967_v16, %v2060_v22, %v10989_v37  ;;  %v2166_v45 = vsel %vm2154_vm12, %v2148_v51, %v2165_v53  ;;  %v2054_v48 = vsel %vm2052_vm4, %v2042_v57, 2102212464 }
 0x1eb   : > { %v11000_v55 = vmul.u32.u64.low %v10967_v16, %v2064_v13  ;;  %v11001_v19 = vmul.u32.u64.high %v10967_v16, %v2064_v13, %v11000_v55  ;;  %v11003_v2 = vshll.u32 %v2128_v58, 8  ;;  %v1781_v54 = vshll.u32 %v10725_v59, %v10884_v28 }
 0x1ec   : > { %v18638_v36 = vsub.s32 32, %v10884_v28  ;;  %v2163_v25 = vsel %vm2153_vm13, %v2160_v1, %v2162_v33  ;;  %v2235_v51 = vsel %vm2234_vm14, %v2233_v26, 0  ;;  %v1598_v22 = vxor.u32 2147483648, %v10925_v6 }
 0x1ed   : > { %v1693_v57 = vsel %vm10836_vm1, %v18627_v21, %v10880_v43  ;;  %v1786_v58 = vshll.u32 %v1785_v61, 23  ;;  %v2167_v53 = vsel %vm2153_vm13, %v2164_v40, %v2166_v45  ;;  %vm7467_vm15 = vcmp.lt.s32.totalorder %v7466_v20, 0 }
 0x1ee   : > { %v1782_v7 = vshrl.u32 %v10873_v0, %v18638_v36  ;;  %v1977_v59 = vshll.u32 %v10977_v11, 30  ;;  %v2053_v0 = vsel %vm2049_vm7, %v2033_v34, %v10920_v8  ;;  %v2055_v28 = vsel %vm2051_vm6, %v10922_v24, %v2054_v48 }
 0x1ef   : > { %v2136_v26 = vshrl.u32 %v18507_v15, %v10910_v31  ;;  %v11029_v44 = vmul.u32.u64.low %v11003_v2, %v2163_v25  ;;  %v11030_v61 = vmul.u32.u64.high %v11003_v2, %v2163_v25, %v11029_v44  ;;  %v2237_v43 = vand.u32 31, %v2235_v51 }
 0x1f0   : > { %v1783_v13 = vor.u32 %v1782_v7, %v1781_v54  ;;  %v2157_v1 = vsel %vm2155_vm9, %v2145_v60, 2102212464  ;;  %v11036_v33 = vmul.u32.u64.low %v11003_v2, %v2167_v53  ;;  %v11037_v8 = vmul.u32.u64.high %v11003_v2, %v2167_v53, %v11036_v33 }
 0x1f1   : > { %18639 = vst [vmem:[#allocation72_spill] sm:$0xff] %v11029_v44  ;;  %v11042_v24 = vsel %vm1597_vm11, %v10840_v10, %v1598_v22  ;;  %v18640_v31 = vxor.u32 2147483648, %v10840_v10  ;;  %8099 = vcosq.f32 %v1693_v57  ;;  %v1787_v40 = vor.u32 4788187, %v1786_v58 }
 0x1f2   : > { %v11052_v60 = vsel %vm7467_vm15, 0, %v7466_v20  ;;  %v11055_v45 = vsub.s32 %v10918_v39, %v1977_v59  ;;  %v2056_v48 = vsel %vm2050_vm8, %v2053_v0, %v2055_v28  ;;  %v2075_v55 = vadd.s32 1, %v10990_v63 }
 0x1f3   : > { %v11049_v34 = vsel %vm1600_vm2, %v18640_v31, %v10925_v6  ;;  %vm2074_vm1 = vc.u32 %v11001_v19, %v10989_v37  ;;  %v2156_v10 = vsel %vm2152_vm10, %v2136_v26, %v2139_v56  ;;  %v2158_v6 = vsel %vm2154_vm12, %v2142_v9, %v2157_v1 }
 0x1f4   : > { %v11066_v54 = vsub.s32 32, %v2237_v43  ;;  %8101 = vsinq.f32 %v1693_v57  ;;  %v1790_v20 = vcvt.s32.f32 %v1783_v13  ;;  %v1867_v39 = vadd.s32 %v10656_v12, %v10665_v3 }
 0x1f5   : > { %v2329_v36 = vand.u32 2139095040, %v18641_v50  ;;  %v1788_v7 = vand.u32 2147483647, %v1787_v40  ;;  %v1883_v25 = vsub.s32 32, %v11052_v60  ;;  %v1887_v22 = vsub.s32 4294967266, %v11052_v60 }
 0x1f6   : > { %v2072_v58 = vmul.u32 %v10967_v16, %v2056_v48  ;;  %v1980_v56 = vsub.s32 0, %v11055_v45  ;;  %v2076_v9 = vsel %vm2074_vm1, %v2075_v55, %v10990_v63  ;;  %v2159_v57 = vsel %vm2153_vm13, %v2156_v10, %v2158_v6 }
 0x1f7   : > { %v18399_v53 = vand.u32 2147483647, %v18636_v14  ;;  %v2178_v12 = vadd.s32 1, %v11030_v61  ;;  %v11080_v3 = vshrl.u32 %v2235_v51, 5  ;;  %v2249_v59 = vshll.u32 %v18504_v41, %v2237_v43 }
 0x1f8   : > { %v2250_v0 = vshrl.u32 %v18505_v32, %v11066_v54  ;;  %vm1596_vm0 = vcmp.lt.s32.totalorder %v10857_v27, 2  ;;  %vm2177_vm5 = vc.u32 %v11037_v8, %v11029_v44  ;;  %v2252_v16 = vshll.u32 %v18505_v32, %v2237_v43 }
 0x1f9   : > { %v2253_v35 = vshrl.u32 %v18506_v30, %v11066_v54  ;;  %v2330_v63 = vshrl.u32 %v2329_v36, 23  ;;  %v11091_v28 = vadd.s32 %v2076_v9, %v2072_v58  ;;  %v2175_v51 = vmul.u32 %v11003_v2, %v2159_v57 }
 0x1fa   : > { %v2240_v26 = vshll.u32 %v18507_v15, %v2237_v43  ;;  %v2243_v13 = vshll.u32 %v18508_v5, %v2237_v43  ;;  %v2241_v1 = vshrl.u32 %v18508_v5, %v11066_v54  ;;  %v2244_v33 = vshrl.u32 %v18509_v17, %v11066_v54 }
 0x1fb   : > { %v2246_v31 = vshll.u32 %v18509_v17, %v2237_v43  ;;  %v2247_v40 = vshrl.u32 %v18504_v41, %v11066_v54  ;;  %v11103_v48 = vpop.eup %8099  ;;  %vm1710_vm3 = vcmp.lt.s32.totalorder %v18593_v23, 0  ;;  %v1888_v2 = vadd.s32 127, %v1887_v22 }
 0x1fc   : > { %v7469_v55 = vmin.u32 %v1980_v56, %v11055_v45  ;;  %v2179_v10 = vsel %vm2177_vm5, %v2178_v12, %v11030_v61  ;;  %v2251_v6 = vor.u32 %v2250_v0, %v2249_v59  ;;  %v2230_v36 = vand.u32 8388607, %v18399_v53 }
 0x1fd   : > { %v2254_v43 = vor.u32 %v2253_v35, %v2252_v16  ;;  %vm2258_vm4 = vcmp.lt.s32.totalorder %v11080_v3, 4  ;;  %v7484_v58 = vadd.s32 4294967169, %v2330_v63  ;;  %v1791_v9 = vmul.f32 %v1790_v20, %v1788_v7 }
 0x1fe   : > { %v1884_v57 = vshll.u32 %v10860_v47, %v11052_v60  ;;  %v1885_v22 = vshrl.u32 %v1867_v39, %v1883_v25  ;;  %v2078_v56 = vadd.s32 536870912, %v11091_v28  ;;  %v11117_v49 = vpop.eup %8101  ;;  %v18642_v44 = vand.u32 2147483647, %v18593_v23 }
 0x1ff   : > { %v11125_v12 = vadd.s32 %v2179_v10, %v2175_v51  ;;  %v11127_v59 = vor.u32 %v2241_v1, %v2240_v26  ;;  %v11129_v0 = vor.u32 %v2244_v33, %v2243_v13  ;;  %v2248_v20 = vor.u32 %v2247_v40, %v2246_v31 }
 0x200   : > { %vm11121_vm7 = vcmp.le.f32.partialorder %v18642_v44, 0.7853982  ;;  %v1982_v7 = vclz %v7469_v55  ;;  %vm2255_vm6 = vcmp.lt.s32.totalorder %v11080_v3, 1  ;;  %vm2257_vm8 = vcmp.lt.s32.totalorder %v11080_v3, 3 }
 0x201   : > { %v2264_v47 = vsel %vm2258_vm4, %v2251_v6, 920167782  ;;  %v1889_v60 = vshll.u32 %v1888_v2, 23  ;;  %v2231_v44 = vor.u32 8388608, %v2230_v36  ;;  %v2268_v39 = vsel %vm2258_vm4, %v2254_v43, 1326507024 }
 0x202   : > { %v2336_v25 = vadd.s32 1, %v7484_v58  ;;  %vm1700_vm9 = vcmp.eq.s32.totalorder %v10869_v38, 0  ;;  %vm1703_vm11 = vcmp.eq.s32.totalorder %v10869_v38, 2  ;;  %v1792_v16 = vxor.u32 2147483648, %v1791_v9 }
 0x203   : > { %v1794_v35 = vsub.s32 4, %v10668_v29  ;;  %v11140_v63 = vshrl.u32 %v2078_v56, 30  ;;  %vm1594_vm2 = vweird.f32 %v18621_v46  ;;  %v2181_v51 = vadd.s32 536870912, %v11125_v12 }
 0x204   : > { %vm2256_vm10 = vcmp.lt.s32.totalorder %v11080_v3, 2  ;;  %v2263_v26 = vsel %vm2255_vm6, %v11127_v59, %v11129_v0  ;;  %v2265_v13 = vsel %vm2257_vm8, %v2248_v20, %v2264_v47  ;;  %v1603_v1 = vsel %vm1596_vm0, %v11042_v24, %v11049_v34  ;;  %v18648_v47 = vld [vmem:[#allocation24_spill] sm:$0xff] }
 0x205   : > { %vm1813_vm12 = vcmp.lt.s32.totalorder %v18601_v42, 0  ;;  %v7470_v33 = vadd.s32 4294967294, %v1982_v7  ;;  %v2267_v31 = vsel %vm2255_vm6, %v11129_v0, %v2248_v20  ;;  %v2269_v40 = vsel %vm2257_vm8, %v2251_v6, %v2268_v39 }
 0x206   : > { %vm1699_vm13 = vcmp.lt.s32.totalorder %v10869_v38, 2  ;;  %v1886_v2 = vor.u32 %v1885_v22, %v1884_v57  ;;  %v1890_v55 = vor.u32 4788187, %v1889_v60  ;;  %v11162_v10 = vshll.u32 %v2231_v44, 8 }
 0x207   : > { %vm2337_vm14 = vcmp.gt.s32.totalorder %v2336_v25, 0  ;;  %v1704_v27 = vxor.u32 2147483648, %v11103_v48  ;;  %v1795_v24 = vsel %vm1710_vm3, %v1794_v35, %v10668_v29  ;;  %v2080_v34 = vshll.u32 %v11140_v63, 30 }
 0x208   : > { %v2266_v36 = vsel %vm2256_vm10, %v2263_v26, %v2265_v13  ;;  %v1701_v6 = vxor.u32 2147483648, %v11117_v49  ;;  %v1793_v43 = vsel %vm1710_vm3, %v1792_v16, %v1791_v9  ;;  %v18645_v58 = vand.u32 2147483647, %v18601_v42 }
 0x209   : > { %v11180_v22 = vshrl.u32 %v2181_v51, 30  ;;  %v2270_v29 = vsel %vm2256_vm10, %v2267_v31, %v2269_v40  ;;  %v1897_v56 = vsub.s32 4, %v10792_v18  ;;  %vm7471_vm1 = vcmp.lt.s32.totalorder %v7470_v33, 0 }
 0x20a   : > { %vm11176_vm15 = vcmp.le.f32.partialorder %v18645_v58, 0.7853982  ;;  %v2338_v7 = vsel %vm2337_vm14, %v2336_v25, 0  ;;  %v2432_v60 = vand.u32 2139095040, %v18648_v47  ;;  %v1891_v44 = vand.u32 2147483647, %v1890_v55 }
 0x20b   : > { %v1893_v39 = vcvt.s32.f32 %v1886_v2  ;;  %v11187_v9 = vmul.u32.u64.low %v11162_v10, %v2266_v36  ;;  %v11188_v16 = vmul.u32.u64.high %v11162_v10, %v2266_v36, %v11187_v9  ;;  %v1796_v35 = vsel %vm11121_vm7, %v18593_v23, %v1793_v43 }
 0x20c   : > { %v11195_v51 = vsub.s32 %v11091_v28, %v2080_v34  ;;  %v11198_v26 = vmul.u32.u64.low %v11162_v10, %v2270_v29  ;;  %v11199_v13 = vmul.u32.u64.high %v11162_v10, %v2270_v29, %v11198_v26  ;;  %v11201_v25 = vsel %vm7471_vm1, 0, %v7470_v33 }
 0x20d   : > { %v2183_v31 = vshll.u32 %v11180_v22, 30  ;;  %v2239_v40 = vshrl.u32 %v18507_v15, %v11066_v54  ;;  %v2340_v2 = vand.u32 31, %v2338_v7  ;;  %v1705_v55 = vsel %vm1703_vm11, %v1704_v27, %v11117_v49 }
 0x20e   : > { %v1797_v28 = vsel %vm11121_vm7, 0, %v1795_v24  ;;  %v2260_v34 = vsel %vm2258_vm4, %v2248_v20, 2102212464  ;;  %v2433_v36 = vshrl.u32 %v2432_v60, 23  ;;  %v1702_v33 = vsel %vm1700_vm9, %v11103_v48, %v1701_v6 }
 0x20f   : > { %8103 = vcosq.f32 %v1796_v35  ;;  %v1894_v43 = vmul.f32 %v1893_v39, %v1891_v44  ;;  %v1898_v54 = vsel %vm1813_vm12, %v1897_v56, %v10792_v18  ;;  %v11221_v49 = vsel %vm1594_vm2, nan, %v1603_v1 }
 0x210   : > { %18649 = vst [vmem:[#allocation19_spill] sm:$0xff] %v11221_v49  ;;  %8105 = vsinq.f32 %v1796_v35  ;;  %v1990_v61 = vsub.s32 4294967266, %v11201_v25  ;;  %v2083_v20 = vsub.s32 0, %v11195_v51  ;;  %v11226_v27 = vsub.s32 %v11125_v12, %v2183_v31 }
 0x211   : > { %v2259_v48 = vsel %vm2255_vm6, %v2239_v40, %v11127_v59  ;;  %v2261_v18 = vsel %vm2257_vm8, %v11129_v0, %v2260_v34  ;;  %v11234_v24 = vsub.s32 32, %v2340_v2  ;;  %v11238_v46 = vsel %vm1699_vm13, %v1702_v33, %v1705_v55 }
 0x212   : > { %v11240_v1 = vand.u32 3, %v1797_v28  ;;  %v1900_v12 = vsel %vm11176_vm15, 0, %v1898_v54  ;;  %v7488_v6 = vadd.s32 4294967169, %v2433_v36  ;;  %v1895_v58 = vxor.u32 2147483648, %v1894_v43 }
 0x213   : > { %v1970_v59 = vadd.s32 %v10819_v52, %v10825_v62  ;;  %v1986_v29 = vsub.s32 32, %v11201_v25  ;;  %v2281_v0 = vadd.s32 1, %v11188_v16  ;;  %v1991_v56 = vadd.s32 127, %v1990_v61 }
 0x214   : > { %v7473_v60 = vmin.u32 %v2083_v20, %v11195_v51  ;;  %v2262_v38 = vsel %vm2256_vm10, %v2259_v48, %v2261_v18  ;;  %vm2280_vm0 = vc.u32 %v11199_v13, %v11187_v9  ;;  %v2186_v44 = vsub.s32 0, %v11226_v27 }
 0x215   : > { %v18401_v39 = vand.u32 2147483647, %v18641_v50  ;;  %v2352_v35 = vshll.u32 %v18504_v41, %v2340_v2  ;;  %v2353_v52 = vshrl.u32 %v18505_v32, %v11234_v24  ;;  %v11258_v62 = vshrl.u32 %v2338_v7, 5 }
 0x216   : > { %v2355_v26 = vshll.u32 %v18505_v32, %v2340_v2  ;;  %v2356_v3 = vshrl.u32 %v18506_v30, %v11234_v24  ;;  %v2439_v31 = vadd.s32 1, %v7488_v6  ;;  %vm1803_vm5 = vcmp.eq.s32.totalorder %v11240_v1, 0 }
 0x217   : > { %vm1806_vm3 = vcmp.eq.s32.totalorder %v11240_v1, 2  ;;  %v2278_v40 = vmul.u32 %v11162_v10, %v2262_v38  ;;  %v2282_v55 = vsel %vm2280_vm0, %v2281_v0, %v11188_v16  ;;  %v2343_v28 = vshll.u32 %v18507_v15, %v2340_v2 }
 0x218   : > { %v2346_v34 = vshll.u32 %v18508_v5, %v2340_v2  ;;  %v2344_v7 = vshrl.u32 %v18508_v5, %v11234_v24  ;;  %v2347_v36 = vshrl.u32 %v18509_v17, %v11234_v24  ;;  %v2349_v33 = vshll.u32 %v18509_v17, %v2340_v2 }
 0x219   : > { %v2350_v54 = vshrl.u32 %v18504_v41, %v11234_v24  ;;  %v8104_v61 = vpop.eup %8103  ;;  %v1896_v10 = vsel %vm1813_vm12, %v1895_v58, %v1894_v43  ;;  %v11278_v16 = vand.u32 3, %v1900_v12  ;;  %v1987_v20 = vshll.u32 %v11055_v45, %v11201_v25 }
 0x21a   : > { %v2354_v48 = vor.u32 %v2353_v52, %v2352_v35  ;;  %v8106_v18 = vpop.eup %8105  ;;  %v2333_v6 = vand.u32 8388607, %v18401_v39  ;;  %v2357_v0 = vor.u32 %v2356_v3, %v2355_v26  ;;  %vm2361_vm4 = vcmp.lt.s32.totalorder %v11258_v62, 4 }
 0x21b   : > { %vm2440_vm7 = vcmp.gt.s32.totalorder %v2439_v31, 0  ;;  %v1988_v2 = vshrl.u32 %v1970_v59, %v1986_v29  ;;  %v2085_v38 = vclz %v7473_v60  ;;  %v7477_v53 = vmin.u32 %v2186_v44, %v11226_v27 }
 0x21c   : > { %v11286_v49 = vadd.s32 %v2282_v55, %v2278_v40  ;;  %v1992_v43 = vshll.u32 %v1991_v56, 23  ;;  %v2345_v12 = vor.u32 %v2344_v7, %v2343_v28  ;;  %v2348_v58 = vor.u32 %v2347_v36, %v2346_v34 }
 0x21d   : > { %v2351_v14 = vor.u32 %v2350_v54, %v2349_v33  ;;  %vm2358_vm6 = vcmp.lt.s32.totalorder %v11258_v62, 1  ;;  %vm2360_vm8 = vcmp.lt.s32.totalorder %v11258_v62, 3  ;;  %v2367_v45 = vsel %vm2361_vm4, %v2354_v48, 920167782 }
 0x21e   : > { %v2441_v25 = vsel %vm2440_vm7, %v2439_v31, 0  ;;  %v1804_v35 = vxor.u32 2147483648, %v8106_v18  ;;  %v1807_v52 = vxor.u32 2147483648, %v8104_v61  ;;  %v2334_v59 = vor.u32 8388608, %v2333_v6 }
 0x21f   : > { %v2371_v29 = vsel %vm2361_vm4, %v2357_v0, 1326507024  ;;  %v1899_v56 = vsel %vm11176_vm15, %v18601_v42, %v1896_v10  ;;  %v7474_v60 = vadd.s32 4294967294, %v2085_v38  ;;  %v2188_v44 = vclz %v7477_v53 }
 0x220   : > { %v2284_v26 = vadd.s32 536870912, %v11286_v49  ;;  %vm2359_vm9 = vcmp.lt.s32.totalorder %v11258_v62, 2  ;;  %v2366_v3 = vsel %vm2358_vm6, %v2345_v12, %v2348_v58  ;;  %v2368_v31 = vsel %vm2360_vm8, %v2351_v14, %v2367_v45 }
 0x221   : > { %v2443_v40 = vand.u32 31, %v2441_v25  ;;  %v1989_v55 = vor.u32 %v1988_v2, %v1987_v20  ;;  %v1993_v28 = vor.u32 4788187, %v1992_v43  ;;  %v2370_v34 = vsel %vm2358_vm6, %v2348_v58, %v2351_v14 }
 0x222   : > { %v2372_v57 = vsel %vm2360_vm8, %v2354_v48, %v2371_v29  ;;  %v11309_v53 = vsel %vm1803_vm5, %v8104_v61, %v1804_v35  ;;  %v11313_v7 = vsel %vm1806_vm3, %v1807_v52, %v8106_v18  ;;  %8107 = vcosq.f32 %v1899_v56  ;;  %v18650_v35 = vld [vmem:[#allocation25_spill] sm:$0xff] }
 0x223   : > { %v11315_v36 = vshll.u32 %v2334_v59, 8  ;;  %8109 = vsinq.f32 %v1899_v56  ;;  %vm7475_vm11 = vcmp.lt.s32.totalorder %v7474_v60, 0  ;;  %v2369_v54 = vsel %vm2359_vm9, %v2366_v3, %v2368_v31 }
 0x224   : > { %v7478_v10 = vadd.s32 4294967294, %v2188_v44  ;;  %v11320_v20 = vshrl.u32 %v2284_v26, 30  ;;  %v2373_v61 = vsel %vm2359_vm9, %v2370_v34, %v2372_v57  ;;  %v11324_v48 = vsub.s32 32, %v2443_v40 }
 0x225   : > { %v1994_v18 = vand.u32 2147483647, %v1993_v28  ;;  %v1996_v6 = vcvt.s32.f32 %v1989_v55  ;;  %v11328_v0 = vadd.s32 %v10989_v37, %v11001_v19  ;;  %v2342_v2 = vshrl.u32 %v18507_v15, %v11234_v24 }
 0x226   : > { %v11332_v38 = vsel %vm7475_vm11, 0, %v7474_v60  ;;  %v11335_v43 = vmul.u32.u64.low %v11315_v36, %v2369_v54  ;;  %v11336_v45 = vmul.u32.u64.high %v11315_v36, %v2369_v54, %v11335_v43  ;;  %v2535_v52 = vand.u32 2139095040, %v18650_v35 }
 0x227   : > { %v2363_v59 = vsel %vm2361_vm4, %v2351_v14, 2102212464  ;;  %v11343_v29 = vmul.u32.u64.low %v11315_v36, %v2373_v61  ;;  %v11344_v56 = vmul.u32.u64.high %v11315_v36, %v2373_v61, %v11343_v29  ;;  %v18404_v37 = vand.u32 2147483647, %v18648_v47 }
 0x228   : > { %vm7479_vm2 = vcmp.lt.s32.totalorder %v7478_v10, 0  ;;  %v2286_v19 = vshll.u32 %v11320_v20, 30  ;;  %v2455_v24 = vshll.u32 %v18504_v41, %v2443_v40  ;;  %v2456_v60 = vshrl.u32 %v18505_v32, %v11324_v48 }
 0x229   : > { %v2362_v44 = vsel %vm2358_vm6, %v2342_v2, %v2345_v12  ;;  %v11353_v26 = vshrl.u32 %v2441_v25, 5  ;;  %v2458_v14 = vshll.u32 %v18505_v32, %v2443_v40  ;;  %v2459_v3 = vshrl.u32 %v18506_v30, %v11324_v48 }
 0x22a   : > { %vm1697_vm10 = vweird.f32 %v18627_v21  ;;  %v2364_v31 = vsel %vm2360_vm8, %v2348_v58, %v2363_v59  ;;  %v2446_v55 = vshll.u32 %v18507_v15, %v2443_v40  ;;  %v2449_v28 = vshll.u32 %v18508_v5, %v2443_v40 }
 0x22b   : > { %v2536_v34 = vshrl.u32 %v2535_v52, 23  ;;  %vm1802_vm12 = vcmp.lt.s32.totalorder %v11240_v1, 2  ;;  %v2447_v12 = vshrl.u32 %v18508_v5, %v11324_v48  ;;  %v2450_v25 = vshrl.u32 %v18509_v17, %v11324_v48 }
 0x22c   : > { %v2452_v57 = vshll.u32 %v18509_v17, %v2443_v40  ;;  %v2453_v54 = vshrl.u32 %v18504_v41, %v11324_v48  ;;  %v11371_v61 = vpop.eup %8107  ;;  %vm1916_vm13 = vcmp.lt.s32.totalorder %v18616_v4, 0  ;;  %v1997_v58 = vmul.f32 %v1996_v6, %v1994_v18 }
 0x22d   : > { %v2089_v2 = vsub.s32 32, %v11332_v38  ;;  %v11376_v52 = vsub.s32 %v11286_v49, %v2286_v19  ;;  %v2457_v59 = vor.u32 %v2456_v60, %v2455_v24  ;;  %v11378_v29 = vpop.eup %8109  ;;  %v2093_v39 = vsub.s32 4294967266, %v11332_v38 }
 0x22e   : > { %v2436_v40 = vand.u32 8388607, %v18404_v37  ;;  %v2460_v33 = vor.u32 %v2459_v3, %v2458_v14  ;;  %vm2464_vm14 = vcmp.lt.s32.totalorder %v11353_v26, 4  ;;  %v11385_v50 = vsel %vm7479_vm2, 0, %v7478_v10 }
 0x22f   : > { %v2365_v18 = vsel %vm2359_vm9, %v2362_v44, %v2364_v31  ;;  %v2384_v49 = vadd.s32 1, %v11336_v45  ;;  %v7492_v6 = vadd.s32 4294967169, %v2536_v34  ;;  %v18651_v19 = vand.u32 2147483647, %v18616_v4 }
 0x230   : > { %vm2383_vm1 = vc.u32 %v11344_v56, %v11335_v43  ;;  %v11398_v60 = vor.u32 %v2447_v12, %v2446_v55  ;;  %v11400_v14 = vor.u32 %v2450_v25, %v2449_v28  ;;  %v2454_v10 = vor.u32 %v2453_v54, %v2452_v57 }
 0x231   : > { %vm11392_vm15 = vcmp.le.f32.partialorder %v18651_v19, 0.7853982  ;;  %v2289_v62 = vsub.s32 0, %v11376_v52  ;;  %vm2461_vm0 = vcmp.lt.s32.totalorder %v11353_v26, 1  ;;  %vm2463_vm5 = vcmp.lt.s32.totalorder %v11353_v26, 3 }
 0x232   : > { %v2470_v44 = vsel %vm2464_vm14, %v2457_v59, 920167782  ;;  %v1998_v3 = vxor.u32 2147483648, %v1997_v58  ;;  %v2381_v31 = vmul.u32 %v11315_v36, %v2365_v18  ;;  %v2437_v34 = vor.u32 8388608, %v2436_v40 }
 0x233   : > { %v2474_v55 = vsel %vm2464_vm14, %v2460_v33, 1326507024  ;;  %vm1800_vm3 = vweird.f32 %v18593_v23  ;;  %v2090_v28 = vshll.u32 %v11195_v51, %v11332_v38  ;;  %v2094_v12 = vadd.s32 127, %v2093_v39 }
 0x234   : > { %v2385_v25 = vsel %vm2383_vm1, %v2384_v49, %v11336_v45  ;;  %v2542_v57 = vadd.s32 1, %v7492_v6  ;;  %v2196_v54 = vsub.s32 4294967266, %v11385_v50  ;;  %vm2462_vm4 = vcmp.lt.s32.totalorder %v11353_v26, 2 }
 0x235   : > { %v2469_v36 = vsel %vm2461_vm0, %v11398_v60, %v11400_v14  ;;  %v2471_v33 = vsel %vm2463_vm5, %v2454_v10, %v2470_v44  ;;  %v2091_v40 = vshrl.u32 %v11328_v0, %v2089_v2  ;;  %v7481_v51 = vmin.u32 %v2289_v62, %v11376_v52 }
 0x236   : > { %v2473_v39 = vsel %vm2461_vm0, %v11400_v14, %v2454_v10  ;;  %v2475_v38 = vsel %vm2463_vm5, %v2457_v59, %v2474_v55  ;;  %v11432_v45 = vsel %vm1697_vm10, nan, %v11238_v46  ;;  %v18655_v18 = vsub.s32 4, %v10977_v11  ;;  %v18656_v46 = vld [vmem:[#allocation72_spill] sm:$0xff] }
 0x237   : > { %18654 = vst [vmem:[#allocation14_spill] sm:$0xff] %v11432_v45  ;;  %v11439_v2 = vadd.s32 %v2385_v25, %v2381_v31  ;;  %v11441_v49 = vshll.u32 %v2437_v34, 8  ;;  %v1809_v59 = vsel %vm1802_vm12, %v11309_v53, %v11313_v7  ;;  %v2095_v6 = vshll.u32 %v2094_v12, 23 }
 0x238   : > { %v2001_v0 = vsel %vm1916_vm13, %v18655_v18, %v10977_v11  ;;  %v2472_v21 = vsel %vm2462_vm4, %v2469_v36, %v2471_v33  ;;  %vm2543_vm7 = vcmp.gt.s32.totalorder %v2542_v57, 0  ;;  %vm1906_vm6 = vcmp.eq.s32.totalorder %v11278_v16, 0 }
 0x239   : > { %v2176_v19 = vadd.s32 %v18656_v46, %v11037_v8  ;;  %v2192_v11 = vsub.s32 32, %v11385_v50  ;;  %v2197_v62 = vadd.s32 127, %v2196_v54  ;;  %v2476_v44 = vsel %vm2462_vm4, %v2473_v39, %v2475_v38  ;;  %v18658_v38 = vld [vmem:[#allocation26_spill] sm:$0xff] }
 0x23a   : > { %v1999_v1 = vsel %vm1916_vm13, %v1998_v3, %v1997_v58  ;;  %v2003_v53 = vsel %vm11392_vm15, 0, %v2001_v0  ;;  %v2092_v7 = vor.u32 %v2091_v40, %v2090_v28  ;;  %v2291_v31 = vclz %v7481_v51 }
 0x23b   : > { %v2387_v34 = vadd.s32 536870912, %v11439_v2  ;;  %v11461_v55 = vmul.u32.u64.low %v11441_v49, %v2472_v21  ;;  %v11462_v12 = vmul.u32.u64.high %v11441_v49, %v2472_v21, %v11461_v55  ;;  %v2544_v8 = vsel %vm2543_vm7, %v2542_v57, 0 }
 0x23c   : > { %v2096_v25 = vor.u32 4788187, %v2095_v6  ;;  %v2445_v54 = vshrl.u32 %v18507_v15, %v11324_v48  ;;  %v11468_v36 = vmul.u32.u64.low %v11441_v49, %v2476_v44  ;;  %v11469_v58 = vmul.u32.u64.high %v11441_v49, %v2476_v44, %v11468_v36  ;;  %v18659_v6 = vld [vmem:[#allocation20_spill] sm:$0xff] }
 0x23d   : > { %v2193_v3 = vshll.u32 %v11226_v27, %v11385_v50  ;;  %v2194_v28 = vshrl.u32 %v2176_v19, %v2192_v11  ;;  %v2198_v33 = vshll.u32 %v2197_v62, 23  ;;  %v2466_v40 = vsel %vm2464_vm14, %v2454_v10, 2102212464 }
 0x23e   : > { %vm1909_vm8 = vcmp.eq.s32.totalorder %v11278_v16, 2  ;;  %v1910_v57 = vxor.u32 2147483648, %v11371_v61  ;;  %v7482_v51 = vadd.s32 4294967294, %v2291_v31  ;;  %v2546_v39 = vand.u32 31, %v2544_v8 }
 0x23f   : > { %v11479_v48 = vsel %vm1800_vm3, nan, %v1809_v59  ;;  %vm1905_vm9 = vcmp.lt.s32.totalorder %v11278_v16, 2  ;;  %v2002_v50 = vsel %vm11392_vm15, %v18616_v4, %v1999_v1  ;;  %v11485_v27 = vshrl.u32 %v2387_v34, 30 }
 0x240   : > { %18657 = vst [vmem:[#allocation15_spill] sm:$0xff] %v11479_v48  ;;  %v2638_v10 = vand.u32 2139095040, %v18658_v38  ;;  %v1907_v18 = vxor.u32 2147483648, %v11378_v29  ;;  %v11489_v0 = vand.u32 3, %v2003_v53  ;;  %v2465_v23 = vsel %vm2461_vm0, %v2445_v54, %v11398_v60 }
 0x241   : > { %v2467_v59 = vsel %vm2463_vm5, %v11400_v14, %v2466_v40  ;;  %vm2019_vm11 = vcmp.lt.s32.totalorder %v18659_v6, 0  ;;  %v2097_v24 = vand.u32 2147483647, %v2096_v25  ;;  %v2099_v21 = vcvt.s32.f32 %v2092_v7 }
 0x242   : > { %v2195_v46 = vor.u32 %v2194_v28, %v2193_v3  ;;  %v2199_v19 = vor.u32 4788187, %v2198_v33  ;;  %v1911_v11 = vsel %vm1909_vm8, %v1910_v57, %v11378_v29  ;;  %8111 = vcosq.f32 %v2002_v50 }
 0x243   : > { %vm7483_vm2 = vcmp.lt.s32.totalorder %v7482_v51, 0  ;;  %v11501_v62 = vsub.s32 32, %v2546_v39  ;;  %v2389_v60 = vshll.u32 %v11485_v27, 30  ;;  %v2468_v44 = vsel %vm2462_vm4, %v2465_v23, %v2467_v59 }
 0x244   : > { %v2487_v14 = vadd.s32 1, %v11462_v12  ;;  %v2639_v1 = vshrl.u32 %v2638_v10, 23  ;;  %v1908_v53 = vsel %vm1906_vm6, %v11371_v61, %v1907_v18  ;;  %8113 = vsinq.f32 %v2002_v50 }
 0x245   : > { %v2103_v7 = vsub.s32 4, %v11140_v63  ;;  %vm2486_vm10 = vc.u32 %v11469_v58, %v11461_v55  ;;  %v2100_v29 = vmul.f32 %v2099_v21, %v2097_v24  ;;  %v2200_v31 = vand.u32 2147483647, %v2199_v19  ;;  %v18663_v21 = vld [vmem:[#allocation21_spill] sm:$0xff] }
 0x246   : > { %v2202_v34 = vcvt.s32.f32 %v2195_v46  ;;  %v18403_v25 = vand.u32 2147483647, %v18650_v35  ;;  %v11514_v26 = vsel %vm7483_vm2, 0, %v7482_v51  ;;  %v2484_v54 = vmul.u32 %v11441_v49, %v2468_v44 }
 0x247   : > { %v2558_v36 = vshll.u32 %v18504_v41, %v2546_v39  ;;  %v2559_v61 = vshrl.u32 %v18505_v32, %v11501_v62  ;;  %vm1903_vm12 = vweird.f32 %v18601_v42  ;;  %v11522_v3 = vsub.s32 %v11439_v2, %v2389_v60 }
 0x248   : > { %v2488_v28 = vsel %vm2486_vm10, %v2487_v14, %v11462_v12  ;;  %v11525_v33 = vshrl.u32 %v2544_v8, 5  ;;  %v7496_v40 = vadd.s32 4294967169, %v2639_v1  ;;  %v2549_v57 = vshll.u32 %v18507_v15, %v2546_v39 }
 0x249   : > { %v2552_v51 = vshll.u32 %v18508_v5, %v2546_v39  ;;  %v2561_v49 = vshll.u32 %v18505_v32, %v2546_v39  ;;  %v2562_v50 = vshrl.u32 %v18506_v30, %v11501_v62  ;;  %v18660_v10 = vand.u32 2147483647, %v18659_v6 }
 0x24a   : > { %v2550_v2 = vshrl.u32 %v18508_v5, %v11501_v62  ;;  %v2553_v12 = vshrl.u32 %v18509_v17, %v11501_v62  ;;  %v2555_v8 = vshll.u32 %v18509_v17, %v2546_v39  ;;  %v2556_v23 = vshrl.u32 %v18504_v41, %v11501_v62 }
 0x24b   : > { %vm11534_vm13 = vcmp.le.f32.partialorder %v18660_v10, 0.7853982  ;;  %v1912_v59 = vsel %vm1905_vm9, %v1908_v53, %v1911_v11  ;;  %v11550_v24 = vsel %vm2019_vm11, %v2103_v7, %v11140_v63  ;;  %vm2122_vm14 = vcmp.lt.s32.totalorder %v18663_v21, 0 }
 0x24c   : > { %v11553_v46 = vadd.s32 %v2488_v28, %v2484_v54  ;;  %v2560_v19 = vor.u32 %v2559_v61, %v2558_v36  ;;  %v2101_v60 = vxor.u32 2147483648, %v2100_v29  ;;  %v2203_v44 = vmul.f32 %v2202_v34, %v2200_v31  ;;  %v11558_v14 = vpop.eup %8111 }
 0x24d   : > { %v2539_v39 = vand.u32 8388607, %v18403_v25  ;;  %vm2567_vm15 = vcmp.lt.s32.totalorder %v11525_v33, 4  ;;  %v2206_v16 = vsub.s32 4, %v11180_v22  ;;  %v2299_v11 = vsub.s32 4294967266, %v11514_v26 }
 0x24e   : > { %v2563_v63 = vor.u32 %v2562_v50, %v2561_v49  ;;  %v2645_v1 = vadd.s32 1, %v7496_v40  ;;  %v18664_v53 = vand.u32 2147483647, %v18663_v21  ;;  %v2392_v31 = vsub.s32 0, %v11522_v3  ;;  %v8114_v61 = vpop.eup %8113 }
 0x24f   : > { %v2551_v34 = vor.u32 %v2550_v2, %v2549_v57  ;;  %v2554_v54 = vor.u32 %v2553_v12, %v2552_v51  ;;  %v2557_v36 = vor.u32 %v2556_v23, %v2555_v8  ;;  %v2490_v28 = vadd.s32 536870912, %v11553_v46 }
 0x250   : > { %vm11564_vm1 = vcmp.le.f32.partialorder %v18664_v53, 0.7853982  ;;  %vm2564_vm0 = vcmp.lt.s32.totalorder %v11525_v33, 1  ;;  %vm2566_vm5 = vcmp.lt.s32.totalorder %v11525_v33, 3  ;;  %v2573_v40 = vsel %vm2567_vm15, %v2560_v19, 920167782 }
 0x251   : > { %v2102_v49 = vsel %vm2019_vm11, %v2101_v60, %v2100_v29  ;;  %v2204_v50 = vxor.u32 2147483648, %v2203_v44  ;;  %v2279_v10 = vadd.s32 %v11187_v9, %v11199_v13  ;;  %v2540_v57 = vor.u32 8388608, %v2539_v39 }
 0x252   : > { %vm2012_vm3 = vcmp.eq.s32.totalorder %v11489_v0, 2  ;;  %v2295_v51 = vsub.s32 32, %v11514_v26  ;;  %v2300_v2 = vadd.s32 127, %v2299_v11  ;;  %v2577_v12 = vsel %vm2567_vm15, %v2563_v63, 1326507024 }
 0x253   : > { %vm2646_vm4 = vcmp.gt.s32.totalorder %v2645_v1, 0  ;;  %vm2009_vm7 = vcmp.eq.s32.totalorder %v11489_v0, 0  ;;  %v7485_v8 = vmin.u32 %v2392_v31, %v11522_v3  ;;  %vm2565_vm6 = vcmp.lt.s32.totalorder %v11525_v33, 2 }
 0x254   : > { %v2572_v29 = vsel %vm2564_vm0, %v2551_v34, %v2554_v54  ;;  %v2574_v9 = vsel %vm2566_vm5, %v2557_v36, %v2573_v40  ;;  %v11591_v13 = vsel %vm1903_vm12, nan, %v1912_v59  ;;  %v2013_v23 = vxor.u32 2147483648, %v11558_v14 }
 0x255   : > { %18667 = vst [vmem:[#allocation16_spill] sm:$0xff] %v11591_v13  ;;  %v2106_v60 = vsel %vm11534_vm13, 0, %v11550_v24  ;;  %v11597_v39 = vshrl.u32 %v2490_v28, 30  ;;  %v2576_v11 = vsel %vm2564_vm0, %v2554_v54, %v2557_v36  ;;  %v2578_v63 = vsel %vm2566_vm5, %v2560_v19, %v2577_v12 }
 0x256   : > { %v11603_v53 = vshll.u32 %v2540_v57, 8  ;;  %v2647_v31 = vsel %vm2646_vm4, %v2645_v1, 0  ;;  %v2105_v42 = vsel %vm11534_vm13, %v18659_v6, %v2102_v49  ;;  %v2296_v59 = vshll.u32 %v11376_v52, %v11514_v26 }
 0x257   : > { %v2297_v40 = vshrl.u32 %v2279_v10, %v2295_v51  ;;  %v2575_v24 = vsel %vm2565_vm6, %v2572_v29, %v2574_v9  ;;  %v2205_v28 = vsel %vm2122_vm14, %v2204_v50, %v2203_v44  ;;  %v2207_v19 = vsel %vm2122_vm14, %v2206_v16, %v11180_v22 }
 0x258   : > { %v2301_v57 = vshll.u32 %v2300_v2, 23  ;;  %v2394_v1 = vclz %v7485_v8  ;;  %v2010_v12 = vxor.u32 2147483648, %v8114_v61  ;;  %v2492_v18 = vshll.u32 %v11597_v39, 30 }
 0x259   : > { %v2579_v49 = vsel %vm2565_vm6, %v2576_v11, %v2578_v63  ;;  %v2649_v52 = vand.u32 31, %v2647_v31  ;;  %vm2008_vm8 = vcmp.lt.s32.totalorder %v11489_v0, 2  ;;  %8115 = vcosq.f32 %v2105_v42 }
 0x25a   : > { %v2548_v26 = vshrl.u32 %v18507_v15, %v11501_v62  ;;  %v11624_v44 = vmul.u32.u64.low %v11603_v53, %v2575_v24  ;;  %v11625_v50 = vmul.u32.u64.high %v11603_v53, %v2575_v24, %v11624_v44  ;;  %v2208_v22 = vsel %vm11564_vm1, %v18663_v21, %v2205_v28 }
 0x25b   : > { %v2209_v16 = vsel %vm11564_vm1, 0, %v2207_v19  ;;  %v2298_v10 = vor.u32 %v2297_v40, %v2296_v59  ;;  %v2569_v51 = vsel %vm2567_vm15, %v2557_v36, 2102212464  ;;  %v2302_v2 = vor.u32 4788187, %v2301_v57 }
 0x25c   : > { %v7486_v8 = vadd.s32 4294967294, %v2394_v1  ;;  %v11636_v62 = vmul.u32.u64.low %v11603_v53, %v2579_v49  ;;  %v11637_v29 = vmul.u32.u64.high %v11603_v53, %v2579_v49, %v11636_v62  ;;  %8117 = vsinq.f32 %v2105_v42 }
 0x25d   : > { %v11639_v9 = vand.u32 3, %v2106_v60  ;;  %v11642_v11 = vsub.s32 %v11553_v46, %v2492_v18  ;;  %v11644_v63 = vsub.s32 32, %v2649_v52  ;;  %v2014_v7 = vsel %vm2012_vm3, %v2013_v23, %v8114_v61  ;;  %v18668_v46 = vld [vmem:[#allocation27_spill] sm:$0xff] }
 0x25e   : > { %8119 = vcosq.f32 %v2208_v22  ;;  %v2568_v36 = vsel %vm2564_vm0, %v2548_v26, %v2551_v34  ;;  %v2570_v59 = vsel %vm2566_vm5, %v2554_v54, %v2569_v51  ;;  %v2011_v60 = vsel %vm2009_vm7, %v11558_v14, %v2010_v12 }
 0x25f   : > { %8121 = vsinq.f32 %v2208_v22  ;;  %v11655_v42 = vand.u32 3, %v2209_v16  ;;  %v2741_v40 = vand.u32 2139095040, %v18668_v46  ;;  %v2303_v24 = vand.u32 2147483647, %v2302_v2 }
 0x260   : > { %v2305_v28 = vcvt.s32.f32 %v2298_v10  ;;  %vm7487_vm9 = vcmp.lt.s32.totalorder %v7486_v8, 0  ;;  %v18405_v61 = vand.u32 2147483647, %v18658_v38  ;;  %v2495_v23 = vsub.s32 0, %v11642_v11 }
 0x261   : > { %v2571_v34 = vsel %vm2565_vm6, %v2568_v36, %v2570_v59  ;;  %v2661_v54 = vshll.u32 %v18504_v41, %v2649_v52  ;;  %v2662_v14 = vshrl.u32 %v18505_v32, %v11644_v63  ;;  %v2590_v19 = vadd.s32 1, %v11625_v50  ;;  %v18669_v36 = vld [vmem:[#allocation22_spill] sm:$0xff] }
 0x262   : > { %v11666_v57 = vshrl.u32 %v2647_v31, 5  ;;  %v2664_v1 = vshll.u32 %v18505_v32, %v2649_v52  ;;  %v2665_v12 = vshrl.u32 %v18506_v30, %v11644_v63  ;;  %vm2112_vm11 = vcmp.eq.s32.totalorder %v11639_v9, 0 }
 0x263   : > { %vm2115_vm2 = vcmp.eq.s32.totalorder %v11639_v9, 2  ;;  %v2652_v33 = vshll.u32 %v18507_v15, %v2649_v52  ;;  %v2655_v18 = vshll.u32 %v18508_v5, %v2649_v52  ;;  %v2658_v49 = vshll.u32 %v18509_v17, %v2649_v52  ;;  %v8116_v22 = vpop.eup %8115 }
 0x264   : > { %v2742_v26 = vshrl.u32 %v2741_v40, 23  ;;  %vm2589_vm10 = vc.u32 %v11637_v29, %v11624_v44  ;;  %v2653_v31 = vshrl.u32 %v18508_v5, %v11644_v63  ;;  %v2656_v16 = vshrl.u32 %v18509_v17, %v11644_v63 }
 0x265   : > { %v2659_v10 = vshrl.u32 %v18504_v41, %v11644_v63  ;;  %v11686_v51 = vsel %vm2008_vm8, %v2011_v60, %v2014_v7  ;;  %v11689_v52 = vsel %vm7487_vm9, 0, %v7486_v8  ;;  %v7489_v2 = vmin.u32 %v2495_v23, %v11642_v11 }
 0x266   : > { %v2663_v62 = vor.u32 %v2662_v14, %v2661_v54  ;;  %vm2225_vm12 = vcmp.lt.s32.totalorder %v18669_v36, 0  ;;  %v2587_v59 = vmul.u32 %v11603_v53, %v2571_v34  ;;  %v2642_v40 = vand.u32 8388607, %v18405_v61  ;;  %v8118_v37 = vpop.eup %8117 }
 0x267   : > { %v2666_v25 = vor.u32 %v2665_v12, %v2664_v1  ;;  %vm2670_vm13 = vcmp.lt.s32.totalorder %v11666_v57, 4  ;;  %v2116_v0 = vxor.u32 2147483648, %v8116_v22  ;;  %v2306_v7 = vmul.f32 %v2305_v28, %v2303_v24 }
 0x268   : > { %v2591_v8 = vsel %vm2589_vm10, %v2590_v19, %v11625_v50  ;;  %v7500_v60 = vadd.s32 4294967169, %v2742_v26  ;;  %v8120_v23 = vpop.eup %8119  ;;  %vm2218_vm14 = vcmp.eq.s32.totalorder %v11655_v42, 2  ;;  %v2402_v53 = vsub.s32 4294967266, %v11689_v52 }
 0x269   : > { %v11703_v34 = vor.u32 %v2653_v31, %v2652_v33  ;;  %v11705_v54 = vor.u32 %v2656_v16, %v2655_v18  ;;  %v2660_v14 = vor.u32 %v2659_v10, %v2658_v49  ;;  %v8122_v1 = vpop.eup %8121  ;;  %vm2215_vm15 = vcmp.eq.s32.totalorder %v11655_v42, 0 }
 0x26a   : > { %v2497_v24 = vclz %v7489_v2  ;;  %vm2667_vm1 = vcmp.lt.s32.totalorder %v11666_v57, 1  ;;  %vm2669_vm0 = vcmp.lt.s32.totalorder %v11666_v57, 3  ;;  %v2676_v50 = vsel %vm2670_vm13, %v2663_v62, 920167782 }
 0x26b   : > { %v2113_v28 = vxor.u32 2147483648, %v8118_v37  ;;  %v18670_v19 = vand.u32 2147483647, %v18669_v36  ;;  %v11718_v33 = vadd.s32 %v2591_v8, %v2587_v59  ;;  %v2643_v18 = vor.u32 8388608, %v2642_v40 }
 0x26c   : > { %v2680_v49 = vsel %vm2670_vm13, %v2666_v25, 1326507024  ;;  %vm2006_vm3 = vweird.f32 %v18616_v4  ;;  %vm2111_vm4 = vcmp.lt.s32.totalorder %v11639_v9, 2  ;;  %v2309_v26 = vsub.s32 4, %v11320_v20  ;;  %v18675_v9 = vld [vmem:[#allocation23_spill] sm:$0xff] }
 0x26d   : > { %vm11714_vm5 = vcmp.le.f32.partialorder %v18670_v19, 0.7853982  ;;  %v2382_v31 = vadd.s32 %v11335_v43, %v11344_v56  ;;  %v2398_v16 = vsub.s32 32, %v11689_v52  ;;  %v2748_v10 = vadd.s32 1, %v7500_v60 }
 0x26e   : > { %vm2214_vm7 = vcmp.lt.s32.totalorder %v11655_v42, 2  ;;  %v2403_v2 = vadd.s32 127, %v2402_v53  ;;  %vm2668_vm6 = vcmp.lt.s32.totalorder %v11666_v57, 2  ;;  %v2675_v25 = vsel %vm2667_vm1, %v11703_v34, %v11705_v54 }
 0x26f   : > { %v2677_v59 = vsel %vm2669_vm0, %v2660_v14, %v2676_v50  ;;  %v2307_v40 = vxor.u32 2147483648, %v2306_v7  ;;  %v7490_v8 = vadd.s32 4294967294, %v2497_v24  ;;  %v2679_v43 = vsel %vm2667_vm1, %v11705_v54, %v2660_v14 }
 0x270   : > { %v2681_v56 = vsel %vm2669_vm0, %v2663_v62, %v2680_v49  ;;  %v2114_v60 = vsel %vm2112_vm11, %v8116_v22, %v2113_v28  ;;  %v2117_v53 = vsel %vm2115_vm2, %v2116_v0, %v8118_v37  ;;  %v2593_v19 = vadd.s32 536870912, %v11718_v33  ;;  %v18673_v49 = vld [vmem:[#allocation28_spill] sm:$0xff] }
 0x271   : > { %v11746_v61 = vshll.u32 %v2643_v18, 8  ;;  %vm2109_vm8 = vweird.f32 %v18659_v6  ;;  %v2216_v24 = vxor.u32 2147483648, %v8122_v1  ;;  %v2219_v50 = vxor.u32 2147483648, %v8120_v23 }
 0x272   : > { %v2678_v13 = vsel %vm2668_vm6, %v2675_v25, %v2677_v59  ;;  %vm2749_vm9 = vcmp.gt.s32.totalorder %v2748_v10, 0  ;;  %vm2212_vm10 = vweird.f32 %v18663_v21  ;;  %v2399_v22 = vshll.u32 %v11522_v3, %v11689_v52 }
 0x273   : > { %v2400_v62 = vshrl.u32 %v2382_v31, %v2398_v16  ;;  %v2404_v28 = vshll.u32 %v2403_v2, 23  ;;  %v2682_v37 = vsel %vm2668_vm6, %v2679_v43, %v2681_v56  ;;  %v2308_v0 = vsel %vm2225_vm12, %v2307_v40, %v2306_v7 }
 0x274   : > { %v2310_v18 = vsel %vm2225_vm12, %v2309_v26, %v11320_v20  ;;  %vm7491_vm11 = vcmp.lt.s32.totalorder %v7490_v8, 0  ;;  %v2844_v25 = vand.u32 2139095040, %v18673_v49  ;;  %v11762_v59 = vshrl.u32 %v2593_v19, 30 }
 0x275   : > { %v11765_v48 = vmul.u32.u64.low %v11746_v61, %v2678_v13  ;;  %v11766_v3 = vmul.u32.u64.high %v11746_v61, %v2678_v13, %v11765_v48  ;;  %v2750_v52 = vsel %vm2749_vm9, %v2748_v10, 0  ;;  %v2220_v31 = vsel %vm2218_vm14, %v2219_v50, %v8122_v1 }
 0x276   : > { %v2651_v7 = vshrl.u32 %v18507_v15, %v11644_v63  ;;  %v11774_v16 = vmul.u32.u64.low %v11746_v61, %v2682_v37  ;;  %v11775_v20 = vmul.u32.u64.high %v11746_v61, %v2682_v37, %v11774_v16  ;;  %v2217_v26 = vsel %vm2215_vm15, %v8120_v23, %v2216_v24 }
 0x277   : > { %v2401_v2 = vor.u32 %v2400_v62, %v2399_v22  ;;  %v2405_v40 = vor.u32 4788187, %v2404_v28  ;;  %v2672_v13 = vsel %vm2670_vm13, %v2660_v14, 2102212464  ;;  %v2311_v10 = vsel %vm11714_vm5, %v18669_v36, %v2308_v0 }
 0x278   : > { %v11784_v1 = vsel %vm7491_vm11, 0, %v7490_v8  ;;  %v2752_v43 = vand.u32 31, %v2750_v52  ;;  %v2845_v63 = vshrl.u32 %v2844_v25, 23  ;;  %v11789_v56 = vsel %vm2006_vm3, nan, %v11686_v51 }
 0x279   : > { %18674 = vst [vmem:[#allocation11_spill] sm:$0xff] %v11789_v56  ;;  %v2118_v23 = vsel %vm2111_vm4, %v2114_v60, %v2117_v53  ;;  %v2312_v19 = vsel %vm11714_vm5, 0, %v2310_v18  ;;  %v2595_v14 = vshll.u32 %v11762_v59, 30  ;;  %v2221_v24 = vsel %vm2214_vm7, %v2217_v26, %v2220_v31 }
 0x27a   : > { %v2412_v8 = vsub.s32 4, %v11485_v27  ;;  %v2671_v50 = vsel %vm2667_vm1, %v2651_v7, %v11703_v34  ;;  %v2673_v4 = vsel %vm2669_vm0, %v11705_v54, %v2672_v13  ;;  %8123 = vcosq.f32 %v2311_v10 }
 0x27b   : > { %v18676_v51 = vand.u32 2147483647, %v18675_v9  ;;  %v2406_v60 = vand.u32 2147483647, %v2405_v40  ;;  %v2408_v42 = vcvt.s32.f32 %v2401_v2  ;;  %v2505_v53 = vsub.s32 4294967266, %v11784_v1 }
 0x27c   : > { %8125 = vsinq.f32 %v2311_v10  ;;  %vm2328_vm12 = vcmp.lt.s32.totalorder %v18675_v9, 0  ;;  %v11813_v22 = vsub.s32 32, %v2752_v43  ;;  %v7504_v34 = vadd.s32 4294967169, %v2845_v63 }
 0x27d   : > { %vm11807_vm2 = vcmp.le.f32.partialorder %v18676_v51, 0.7853982  ;;  %v11817_v54 = vsel %vm2109_vm8, nan, %v2118_v23  ;;  %v11820_v62 = vsub.s32 %v11718_v33, %v2595_v14  ;;  %v2674_v28 = vsel %vm2668_vm6, %v2671_v50, %v2673_v4 }
 0x27e   : > { %18679 = vst [vmem:[#allocation24_spill] sm:$0xff] %v11817_v54  ;;  %v2693_v37 = vadd.s32 1, %v11766_v3  ;;  %v11827_v0 = vsel %vm2212_vm10, nan, %v2221_v24  ;;  %v11829_v18 = vand.u32 3, %v2312_v19  ;;  %v2413_v6 = vsel %vm2328_vm12, %v2412_v8, %v11485_v27 }
 0x27f   : > { %18680 = vst [vmem:[#allocation25_spill] sm:$0xff] %v11827_v0  ;;  %vm2692_vm13 = vc.u32 %v11775_v20, %v11765_v48  ;;  %v2409_v33 = vmul.f32 %v2408_v42, %v2406_v60  ;;  %v2485_v57 = vadd.s32 %v11461_v55, %v11469_v58  ;;  %v2501_v25 = vsub.s32 32, %v11784_v1 }
 0x280   : > { %v2506_v31 = vadd.s32 127, %v2505_v53  ;;  %v2690_v21 = vmul.u32 %v11746_v61, %v2674_v28  ;;  %v2764_v7 = vshll.u32 %v18504_v41, %v2752_v43  ;;  %v2765_v16 = vshrl.u32 %v18505_v32, %v11813_v22 }
 0x281   : > { %v2851_v26 = vadd.s32 1, %v7504_v34  ;;  %v2598_v27 = vsub.s32 0, %v11820_v62  ;;  %v2694_v2 = vsel %vm2692_vm13, %v2693_v37, %v11766_v3  ;;  %v18406_v40 = vand.u32 2147483647, %v18668_v46 }
 0x282   : > { %v11846_v13 = vshrl.u32 %v2750_v52, 5  ;;  %vm2321_vm14 = vcmp.eq.s32.totalorder %v11829_v18, 2  ;;  %v2755_v55 = vshll.u32 %v18507_v15, %v2752_v43  ;;  %v2758_v58 = vshll.u32 %v18508_v5, %v2752_v43 }
 0x283   : > { %v2767_v61 = vshll.u32 %v18505_v32, %v2752_v43  ;;  %v2768_v10 = vshrl.u32 %v18506_v30, %v11813_v22  ;;  %vm2318_vm15 = vcmp.eq.s32.totalorder %v11829_v18, 0  ;;  %v2756_v3 = vshrl.u32 %v18508_v5, %v11813_v22 }
 0x284   : > { %v2759_v52 = vshrl.u32 %v18509_v17, %v11813_v22  ;;  %v2761_v63 = vshll.u32 %v18509_v17, %v2752_v43  ;;  %v2762_v23 = vshrl.u32 %v18504_v41, %v11813_v22  ;;  %v2415_v19 = vsel %vm11807_vm2, 0, %v2413_v6  ;;  %v8124_v8 = vpop.eup %8123 }
 0x285   : > { %v11864_v14 = vadd.s32 %v2694_v2, %v2690_v21  ;;  %v2766_v24 = vor.u32 %v2765_v16, %v2764_v7  ;;  %vm2852_vm1 = vcmp.gt.s32.totalorder %v2851_v26, 0  ;;  %v2410_v50 = vxor.u32 2147483648, %v2409_v33 }
 0x286   : > { %vm2431_vm0 = vcmp.lt.s32.totalorder %v18648_v47, 0  ;;  %v2502_v4 = vshll.u32 %v11642_v11, %v11784_v1  ;;  %v2745_v43 = vand.u32 8388607, %v18406_v40  ;;  %vm2773_vm5 = vcmp.lt.s32.totalorder %v11846_v13, 4  ;;  %v8126_v51 = vpop.eup %8125 }
 0x287   : > { %v2503_v60 = vshrl.u32 %v2485_v57, %v2501_v25  ;;  %v2507_v42 = vshll.u32 %v2506_v31, 23  ;;  %v7493_v53 = vmin.u32 %v2598_v27, %v11820_v62  ;;  %v2769_v34 = vor.u32 %v2768_v10, %v2767_v61  ;;  %v18681_v61 = vld [vmem:[#allocation29_spill] sm:$0xff] }
 0x288   : > { %v2757_v28 = vor.u32 %v2756_v3, %v2755_v55  ;;  %v2760_v37 = vor.u32 %v2759_v52, %v2758_v58  ;;  %v2763_v6 = vor.u32 %v2762_v23, %v2761_v63  ;;  %v2853_v21 = vsel %vm2852_vm1, %v2851_v26, 0 }
 0x289   : > { %v2696_v7 = vadd.s32 536870912, %v11864_v14  ;;  %vm2770_vm3 = vcmp.lt.s32.totalorder %v11846_v13, 1  ;;  %vm2772_vm4 = vcmp.lt.s32.totalorder %v11846_v13, 3  ;;  %v2779_v11 = vsel %vm2773_vm5, %v2766_v24, 920167782 }
 0x28a   : > { %v2319_v1 = vxor.u32 2147483648, %v8126_v51  ;;  %v2322_v16 = vxor.u32 2147483648, %v8124_v8  ;;  %v2515_v57 = vsub.s32 4, %v11597_v39  ;;  %v2746_v25 = vor.u32 8388608, %v2745_v43 }
 0x28b   : > { %v2504_v31 = vor.u32 %v2503_v60, %v2502_v4  ;;  %v2508_v27 = vor.u32 4788187, %v2507_v42  ;;  %v2783_v2 = vsel %vm2773_vm5, %v2769_v34, 1326507024  ;;  %v2855_v26 = vand.u32 31, %v2853_v21 }
 0x28c   : > { %vm2771_vm7 = vcmp.lt.s32.totalorder %v11846_v13, 2  ;;  %v2778_v55 = vsel %vm2770_vm3, %v2757_v28, %v2760_v37  ;;  %v2780_v58 = vsel %vm2772_vm4, %v2763_v6, %v2779_v11  ;;  %v2947_v10 = vand.u32 2139095040, %v18681_v61 }
 0x28d   : > { %v2411_v3 = vsel %vm2328_vm12, %v2410_v50, %v2409_v33  ;;  %v11889_v52 = vand.u32 3, %v2415_v19  ;;  %v2600_v63 = vclz %v7493_v53  ;;  %v11891_v23 = vshrl.u32 %v2696_v7, 30 }
 0x28e   : > { %v11895_v4 = vsel %vm2321_vm14, %v2322_v16, %v8126_v51  ;;  %v2782_v43 = vsel %vm2770_vm3, %v2760_v37, %v2763_v6  ;;  %v2784_v60 = vsel %vm2772_vm4, %v2766_v24, %v2783_v2  ;;  %v11901_v42 = vshll.u32 %v2746_v25, 8 }
 0x28f   : > { %v11905_v33 = vsel %vm2318_vm15, %v8124_v8, %v2319_v1  ;;  %v11910_v19 = vsel %vm2431_vm0, %v2515_v57, %v11597_v39  ;;  %v2781_v50 = vsel %vm2771_vm7, %v2778_v55, %v2780_v58  ;;  %v11914_v51 = vsub.s32 32, %v2855_v26 }
 0x290   : > { %v2414_v24 = vsel %vm11807_vm2, %v18675_v9, %v2411_v3  ;;  %v2509_v53 = vand.u32 2147483647, %v2508_v27  ;;  %v2511_v34 = vcvt.s32.f32 %v2504_v31  ;;  %v2948_v7 = vshrl.u32 %v2947_v10, 23 }
 0x291   : > { %v7494_v11 = vadd.s32 4294967294, %v2600_v63  ;;  %v2698_v8 = vshll.u32 %v11891_v23, 30  ;;  %v2785_v1 = vsel %vm2771_vm7, %v2782_v43, %v2784_v60  ;;  %v2754_v16 = vshrl.u32 %v18507_v15, %v11813_v22 }
 0x292   : > { %v2775_v57 = vsel %vm2773_vm5, %v2763_v6, 2102212464  ;;  %v11928_v12 = vmul.u32.u64.low %v11901_v42, %v2781_v50  ;;  %v11929_v25 = vmul.u32.u64.high %v11901_v42, %v2781_v50, %v11928_v12  ;;  %v2867_v31 = vshll.u32 %v18504_v41, %v2855_v26 }
 0x293   : > { %v2868_v27 = vshrl.u32 %v18505_v32, %v11914_v51  ;;  %v2870_v2 = vshll.u32 %v18505_v32, %v2855_v26  ;;  %v2871_v55 = vshrl.u32 %v18506_v30, %v11914_v51  ;;  %v11942_v6 = vshrl.u32 %v2853_v21, 5 }
 0x294   : > { %v11939_v22 = vmul.u32.u64.low %v11901_v42, %v2785_v1  ;;  %v11940_v58 = vmul.u32.u64.high %v11901_v42, %v2785_v1, %v11939_v22  ;;  %v7508_v10 = vadd.s32 4294967169, %v2948_v7  ;;  %vm2317_vm6 = vcmp.lt.s32.totalorder %v11829_v18, 2 }
 0x295   : > { %v2858_v3 = vshll.u32 %v18507_v15, %v2855_v26  ;;  %v2859_v63 = vshrl.u32 %v18508_v5, %v11914_v51  ;;  %v2861_v43 = vshll.u32 %v18508_v5, %v2855_v26  ;;  %v2862_v60 = vshrl.u32 %v18509_v17, %v11914_v51 }
 0x296   : > { %8127 = vcosq.f32 %v2414_v24  ;;  %v2512_v50 = vmul.f32 %v2511_v34, %v2509_v53  ;;  %v2864_v1 = vshll.u32 %v18509_v17, %v2855_v26  ;;  %v2865_v21 = vshrl.u32 %v18504_v41, %v11914_v51 }
 0x297   : > { %v18682_v7 = vand.u32 2147483647, %v18648_v47  ;;  %v2774_v40 = vsel %vm2770_vm3, %v2754_v16, %v2757_v28  ;;  %v2776_v39 = vsel %vm2772_vm4, %v2760_v37, %v2775_v57  ;;  %v2869_v0 = vor.u32 %v2868_v27, %v2867_v31  ;;  %v18686_v27 = vld [vmem:[#allocation30_spill] sm:$0xff] }
 0x298   : > { %v2872_v54 = vor.u32 %v2871_v55, %v2870_v2  ;;  %8129 = vsinq.f32 %v2414_v24  ;;  %v18685_v26 = vand.u32 2147483647, %v18673_v49  ;;  %vm2876_vm9 = vcmp.lt.s32.totalorder %v11942_v6, 4 }
 0x299   : > { %vm11956_vm8 = vcmp.le.f32.partialorder %v18682_v7, 0.7853982  ;;  %v2954_v34 = vadd.s32 1, %v7508_v10  ;;  %vm7495_vm10 = vcmp.lt.s32.totalorder %v7494_v11, 0  ;;  %v11968_v7 = vsub.s32 %v11864_v14, %v2698_v8 }
 0x29a   : > { %v2848_v53 = vand.u32 8388607, %v18685_v26  ;;  %v2860_v56 = vor.u32 %v2859_v63, %v2858_v3  ;;  %v2863_v45 = vor.u32 %v2862_v60, %v2861_v43  ;;  %v2513_v46 = vxor.u32 2147483648, %v2512_v50 }
 0x29b   : > { %v2777_v28 = vsel %vm2771_vm7, %v2774_v40, %v2776_v39  ;;  %v2866_v37 = vor.u32 %v2865_v21, %v2864_v1  ;;  %vm2873_vm11 = vcmp.lt.s32.totalorder %v11942_v6, 1  ;;  %v2796_v24 = vadd.s32 1, %v11929_v25 }
 0x29c   : > { %vm2875_vm2 = vcmp.lt.s32.totalorder %v11942_v6, 3  ;;  %v2882_v16 = vsel %vm2876_vm9, %v2869_v0, 920167782  ;;  %v2886_v14 = vsel %vm2876_vm9, %v2872_v54, 1326507024  ;;  %v11979_v8 = vsel %vm7495_vm10, 0, %v7494_v11 }
 0x29d   : > { %vm2795_vm12 = vc.u32 %v11940_v58, %v11928_v12  ;;  %v2849_v13 = vor.u32 8388608, %v2848_v53  ;;  %vm2955_vm13 = vcmp.gt.s32.totalorder %v2954_v34, 0  ;;  %v2701_v40 = vsub.s32 0, %v11968_v7 }
 0x29e   : > { %v2793_v39 = vmul.u32 %v11901_v42, %v2777_v28  ;;  %vm2874_vm14 = vcmp.lt.s32.totalorder %v11942_v6, 2  ;;  %v2881_v57 = vsel %vm2873_vm11, %v2860_v56, %v2863_v45  ;;  %v2883_v31 = vsel %vm2875_vm2, %v2866_v37, %v2882_v16 }
 0x29f   : > { %v2885_v54 = vsel %vm2873_vm11, %v2863_v45, %v2866_v37  ;;  %v2887_v11 = vsel %vm2875_vm2, %v2869_v0, %v2886_v14  ;;  %v3050_v2 = vand.u32 2139095040, %v18686_v27  ;;  %vm2424_vm15 = vcmp.eq.s32.totalorder %v11889_v52, 2 }
 0x2a0   : > { %vm2534_vm1 = vcmp.lt.s32.totalorder %v18650_v35, 0  ;;  %v2797_v42 = vsel %vm2795_vm12, %v2796_v24, %v11929_v25  ;;  %v2956_v55 = vsel %vm2955_vm13, %v2954_v34, 0  ;;  %v11998_v10 = vpop.eup %8127  ;;  %v12004_v3 = vsel %vm2317_vm6, %v11905_v33, %v11895_v4 }
 0x2a1   : > { %18687 = vst [vmem:[#allocation72_spill] sm:$0xff] %v12004_v3  ;;  %v2514_v0 = vsel %vm2431_vm0, %v2513_v46, %v2512_v50  ;;  %v2518_v63 = vsel %vm11956_vm8, 0, %v11910_v19  ;;  %v12011_v43 = vshll.u32 %v2849_v13, 8  ;;  %v2608_v25 = vsub.s32 4294967266, %v11979_v8 }
 0x2a2   : > { %v7497_v60 = vmin.u32 %v2701_v40, %v11968_v7  ;;  %v2884_v1 = vsel %vm2874_vm14, %v2881_v57, %v2883_v31  ;;  %v2888_v18 = vsel %vm2874_vm14, %v2885_v54, %v2887_v11  ;;  %v12019_v4 = vpop.eup %8129  ;;  %v2588_v46 = vadd.s32 %v11624_v44, %v11637_v29 }
 0x2a3   : > { %v12023_v33 = vadd.s32 %v2797_v42, %v2793_v39  ;;  %v2958_v19 = vand.u32 31, %v2956_v55  ;;  %v3051_v50 = vshrl.u32 %v3050_v2, 23  ;;  %v2425_v21 = vxor.u32 2147483648, %v11998_v10 }
 0x2a4   : > { %v2517_v26 = vsel %vm11956_vm8, %v18648_v47, %v2514_v0  ;;  %v2618_v53 = vsub.s32 4, %v11762_v59  ;;  %v2857_v34 = vshrl.u32 %v18507_v15, %v11914_v51  ;;  %v2604_v16 = vsub.s32 32, %v11979_v8 }
 0x2a5   : > { %v12033_v28 = vmul.u32.u64.low %v12011_v43, %v2888_v18  ;;  %v12034_v24 = vmul.u32.u64.high %v12011_v43, %v2888_v18, %v12033_v28  ;;  %v12037_v44 = vmul.u32.u64.low %v12011_v43, %v2884_v1  ;;  %v12038_v29 = vmul.u32.u64.high %v12011_v43, %v2884_v1, %v12037_v44 }
 0x2a6   : > { %v2609_v14 = vadd.s32 127, %v2608_v25  ;;  %v2703_v13 = vclz %v7497_v60  ;;  %v2878_v22 = vsel %vm2876_vm9, %v2866_v37, 2102212464  ;;  %v12044_v40 = vand.u32 3, %v2518_v63 }
 0x2a7   : > { %18688 = vst [vmem:[#allocation26_spill] sm:$0xff] %v12034_v24  ;;  %18689 = vst [vmem:[#allocation20_spill] sm:$0xff] %v12037_v44  ;;  %v2799_v51 = vadd.s32 536870912, %v12023_v33  ;;  %v12047_v39 = vsub.s32 32, %v2958_v19  ;;  %v7512_v57 = vadd.s32 4294967169, %v3051_v50  ;;  %v2422_v31 = vxor.u32 2147483648, %v12019_v4 }
 0x2a8   : > { %v12053_v54 = vsel %vm2424_vm15, %v2425_v21, %v12019_v4  ;;  %8131 = vcosq.f32 %v2517_v26  ;;  %v12058_v11 = vsel %vm2534_vm1, %v2618_v53, %v11762_v59  ;;  %v2877_v37 = vsel %vm2873_vm11, %v2857_v34, %v2860_v56 }
 0x2a9   : > { %18690 = vst [vmem:[#allocation21_spill] sm:$0xff] %v12058_v11  ;;  %8133 = vsinq.f32 %v2517_v26  ;;  %v2879_v2 = vsel %vm2875_vm2, %v2863_v45, %v2878_v22  ;;  %v18408_v42 = vand.u32 2147483647, %v18681_v61  ;;  %v2605_v0 = vshll.u32 %v11820_v62, %v11979_v8 }
 0x2aa   : > { %v2606_v63 = vshrl.u32 %v2588_v46, %v2604_v16  ;;  %v2610_v25 = vshll.u32 %v2609_v14, 23  ;;  %v7498_v60 = vadd.s32 4294967294, %v2703_v13  ;;  %v12067_v1 = vshrl.u32 %v2799_v51, 30 }
 0x2ab   : > { %v2970_v59 = vshll.u32 %v18504_v41, %v2958_v19  ;;  %v2971_v18 = vshrl.u32 %v18505_v32, %v12047_v39  ;;  %v3057_v50 = vadd.s32 1, %v7512_v57  ;;  %v2880_v56 = vsel %vm2874_vm14, %v2877_v37, %v2879_v2 }
 0x2ac   : > { %18691 = vst [vmem:[#allocation22_spill] sm:$0xff] %v12067_v1  ;;  %v12074_v45 = vshrl.u32 %v2956_v55, 5  ;;  %v2973_v21 = vshll.u32 %v18505_v32, %v2958_v19  ;;  %v2974_v62 = vshrl.u32 %v18506_v30, %v12047_v39  ;;  %vm2421_vm0 = vcmp.eq.s32.totalorder %v11889_v52, 0 }
 0x2ad   : > { %vm2898_vm5 = vc.u32 %v12034_v24, %v12037_v44  ;;  %v2899_v8 = vadd.s32 1, %v12038_v29  ;;  %v2961_v46 = vshll.u32 %v18507_v15, %v2958_v19  ;;  %v2964_v26 = vshll.u32 %v18508_v5, %v2958_v19 }
 0x2ae   : > { %v2962_v6 = vshrl.u32 %v18508_v5, %v12047_v39  ;;  %v2965_v55 = vshrl.u32 %v18509_v17, %v12047_v39  ;;  %v2967_v53 = vshll.u32 %v18509_v17, %v2958_v19  ;;  %v2968_v34 = vshrl.u32 %v18504_v41, %v12047_v39 }
 0x2af   : > { %v18692_v28 = vand.u32 2147483647, %v18650_v35  ;;  %v2607_v14 = vor.u32 %v2606_v63, %v2605_v0  ;;  %v2691_v13 = vadd.s32 %v11765_v48, %v11775_v20  ;;  %v2972_v22 = vor.u32 %v2971_v18, %v2970_v59 }
 0x2b0   : > { %vm3058_vm4 = vcmp.gt.s32.totalorder %v3057_v50, 0  ;;  %v2896_v51 = vmul.u32 %v12011_v43, %v2880_v56  ;;  %v2951_v19 = vand.u32 8388607, %v18408_v42  ;;  %v2975_v57 = vor.u32 %v2974_v62, %v2973_v21  ;;  %v18695_v56 = vld [vmem:[#allocation31_spill] sm:$0xff] }
 0x2b1   : > { %vm12094_vm3 = vcmp.le.f32.partialorder %v18692_v28, 0.7853982  ;;  %vm2979_vm7 = vcmp.lt.s32.totalorder %v12074_v45, 4  ;;  %v2611_v37 = vor.u32 4788187, %v2610_v25  ;;  %vm7499_vm6 = vcmp.lt.s32.totalorder %v7498_v60, 0 }
 0x2b2   : > { %v2801_v2 = vshll.u32 %v12067_v1, 30  ;;  %v2900_v0 = vsel %vm2898_vm5, %v2899_v8, %v12038_v29  ;;  %v12109_v48 = vpop.eup %8131  ;;  %v2963_v20 = vor.u32 %v2962_v6, %v2961_v46  ;;  %v2966_v63 = vor.u32 %v2965_v55, %v2964_v26 }
 0x2b3   : > { %v2969_v43 = vor.u32 %v2968_v34, %v2967_v53  ;;  %v3059_v59 = vsel %vm3058_vm4, %v3057_v50, 0  ;;  %v12111_v18 = vpop.eup %8133  ;;  %vm2976_vm8 = vcmp.lt.s32.totalorder %v12074_v45, 1  ;;  %vm2978_vm9 = vcmp.lt.s32.totalorder %v12074_v45, 3 }
 0x2b4   : > { %v2985_v25 = vsel %vm2979_vm7, %v2972_v22, 920167782  ;;  %v3153_v21 = vand.u32 2139095040, %v18695_v56  ;;  %v2614_v62 = vcvt.s32.f32 %v2607_v14  ;;  %v12118_v28 = vadd.s32 %v2900_v0, %v2896_v51 }
 0x2b5   : > { %v2952_v29 = vor.u32 8388608, %v2951_v19  ;;  %v2989_v8 = vsel %vm2979_vm7, %v2975_v57, 1326507024  ;;  %v2612_v46 = vand.u32 2147483647, %v2611_v37  ;;  %v2706_v50 = vsel %vm7499_vm6, 0, %v7498_v60 }
 0x2b6   : > { %v3061_v26 = vand.u32 31, %v3059_v59  ;;  %v3154_v6 = vshrl.u32 %v3153_v21, 23  ;;  %v2707_v55 = vsub.s32 32, %v2706_v50  ;;  %vm2977_vm10 = vcmp.lt.s32.totalorder %v12074_v45, 2 }
 0x2b7   : > { %v2984_v53 = vsel %vm2976_vm8, %v2963_v20, %v2966_v63  ;;  %v2986_v34 = vsel %vm2978_vm9, %v2969_v43, %v2985_v25  ;;  %v12129_v14 = vsub.s32 %v12023_v33, %v2801_v2  ;;  %v2988_v51 = vsel %vm2976_vm8, %v2966_v63, %v2969_v43 }
 0x2b8   : > { %v2990_v60 = vsel %vm2978_vm9, %v2972_v22, %v2989_v8  ;;  %v7516_v19 = vadd.s32 4294967169, %v3154_v6  ;;  %v12140_v57 = vsel %vm2421_vm0, %v11998_v10, %v2422_v31  ;;  %v2902_v33 = vadd.s32 536870912, %v12118_v28 }
 0x2b9   : > { %18696 = vst [vmem:[#allocation23_spill] sm:$0xff] %v12140_v57  ;;  %v12146_v2 = vshll.u32 %v2952_v29, 8  ;;  %v2528_v0 = vxor.u32 2147483648, %v12109_v48  ;;  %v12149_v25 = vmul.f32 %v2614_v62, %v2612_v46  ;;  %v2987_v4 = vsel %vm2977_vm10, %v2984_v53, %v2986_v34 }
 0x2ba   : > { %v12153_v22 = vsub.s32 32, %v3061_v26  ;;  %v2708_v10 = vshll.u32 %v11968_v7, %v2706_v50  ;;  %v2711_v31 = vsub.s32 4294967266, %v2706_v50  ;;  %v2991_v21 = vsel %vm2977_vm10, %v2988_v51, %v2990_v60 }
 0x2bb   : > { %v3160_v8 = vadd.s32 1, %v7516_v19  ;;  %v2709_v6 = vshrl.u32 %v2691_v13, %v2707_v55  ;;  %v2804_v29 = vsub.s32 0, %v12129_v14  ;;  %v2960_v42 = vshrl.u32 %v18507_v15, %v12047_v39 }
 0x2bc   : > { %vm2527_vm11 = vcmp.eq.s32.totalorder %v12044_v40, 2  ;;  %v12163_v46 = vshrl.u32 %v2902_v33, 30  ;;  %v2981_v7 = vsel %vm2979_vm7, %v2969_v43, 2102212464  ;;  %v3073_v39 = vshll.u32 %v18504_v41, %v3061_v26 }
 0x2bd   : > { %v12168_v50 = vmul.u32.u64.low %v12146_v2, %v2987_v4  ;;  %v12169_v53 = vmul.u32.u64.high %v12146_v2, %v2987_v4, %v12168_v50  ;;  %v12173_v13 = vmul.u32.u64.low %v12146_v2, %v2991_v21  ;;  %v12174_v55 = vmul.u32.u64.high %v12146_v2, %v2991_v21, %v12173_v13 }
 0x2be   : > { %v3074_v34 = vshrl.u32 %v18505_v32, %v12153_v22  ;;  %vm2524_vm2 = vcmp.eq.s32.totalorder %v12044_v40, 0  ;;  %v12180_v51 = vshrl.u32 %v3059_v59, 5  ;;  %v3076_v43 = vshll.u32 %v18505_v32, %v3061_v26 }
 0x2bf   : > { %18697 = vst [vmem:[#allocation31_spill] sm:$0xff] %v12168_v50  ;;  %v3077_v60 = vshrl.u32 %v18506_v30, %v12153_v22  ;;  %vm3161_vm12 = vcmp.gt.s32.totalorder %v3160_v8, 0  ;;  %v2980_v19 = vsel %vm2976_vm8, %v2960_v42, %v2963_v20  ;;  %v2982_v33 = vsel %vm2978_vm9, %v2966_v63, %v2981_v7 }
 0x2c0   : > { %v3064_v4 = vshll.u32 %v18507_v15, %v3061_v26  ;;  %v3067_v21 = vshll.u32 %v18508_v5, %v3061_v26  ;;  %v3065_v59 = vshrl.u32 %v18508_v5, %v12153_v22  ;;  %v3068_v13 = vshrl.u32 %v18509_v17, %v12153_v22 }
 0x2c1   : > { %v3070_v37 = vshll.u32 %v18509_v17, %v3061_v26  ;;  %v3071_v62 = vshrl.u32 %v18504_v41, %v12153_v22  ;;  %v2525_v42 = vxor.u32 2147483648, %v12111_v18  ;;  %v2616_v20 = vxor.u32 2147483648, %v12149_v25 }
 0x2c2   : > { %v3075_v63 = vor.u32 %v3074_v34, %v3073_v39  ;;  %v3162_v7 = vsel %vm3161_vm12, %v3160_v8, 0  ;;  %v2712_v61 = vadd.s32 127, %v2711_v31  ;;  %v18698_v49 = vand.u32 2147483647, %v18686_v27 }
 0x2c3   : > { %v3078_v44 = vor.u32 %v3077_v60, %v3076_v43  ;;  %vm3082_vm13 = vcmp.lt.s32.totalorder %v12180_v51, 4  ;;  %v12203_v24 = vor.u32 %v2709_v6, %v2708_v10  ;;  %v7501_v26 = vmin.u32 %v2804_v29, %v12129_v14 }
 0x2c4   : > { %v3054_v1 = vand.u32 8388607, %v18698_v49  ;;  %v2904_v3 = vshll.u32 %v12163_v46, 30  ;;  %v2983_v11 = vsel %vm2977_vm10, %v2980_v19, %v2982_v33  ;;  %v12209_v57 = vor.u32 %v3065_v59, %v3064_v4 }
 0x2c5   : > { %v12211_v39 = vor.u32 %v3068_v13, %v3067_v21  ;;  %v3072_v31 = vor.u32 %v3071_v62, %v3070_v37  ;;  %v3164_v8 = vand.u32 31, %v3162_v7  ;;  %v3002_v49 = vadd.s32 1, %v12169_v53 }
 0x2c6   : > { %vm3079_vm14 = vcmp.lt.s32.totalorder %v12180_v51, 1  ;;  %vm3081_vm15 = vcmp.lt.s32.totalorder %v12180_v51, 3  ;;  %v3088_v10 = vsel %vm3082_vm13, %v3075_v63, 920167782  ;;  %v2713_v6 = vshll.u32 %v2712_v61, 23 }
 0x2c7   : > { %vm3001_vm0 = vc.u32 %v12174_v55, %v12168_v50  ;;  %v3055_v45 = vor.u32 8388608, %v3054_v1  ;;  %v3092_v29 = vsel %vm3082_vm13, %v3078_v44, 1326507024  ;;  %v12225_v37 = vsel %vm2527_vm11, %v2528_v0, %v12111_v18 }
 0x2c8   : > { %v2806_v62 = vclz %v7501_v26  ;;  %v12228_v34 = vsub.s32 %v12118_v28, %v2904_v3  ;;  %v2999_v43 = vmul.u32 %v12146_v2, %v2983_v11  ;;  %vm3080_vm5 = vcmp.lt.s32.totalorder %v12180_v51, 2 }
 0x2c9   : > { %v3087_v61 = vsel %vm3079_vm14, %v12209_v57, %v12211_v39  ;;  %v3089_v44 = vsel %vm3081_vm15, %v3072_v31, %v3088_v10  ;;  %v12238_v1 = vsub.s32 32, %v3164_v8  ;;  %v12243_v18 = vsel %vm2524_vm2, %v12109_v48, %v2525_v42 }
 0x2ca   : > { %v3003_v3 = vsel %vm3001_vm0, %v3002_v49, %v12169_v53  ;;  %v3091_v11 = vsel %vm3079_vm14, %v12211_v39, %v3072_v31  ;;  %v3093_v28 = vsel %vm3081_vm15, %v3075_v63, %v3092_v29  ;;  %v2617_v2 = vsel %vm2534_vm1, %v2616_v20, %v12149_v25  ;;  %v18699_v63 = vld [vmem:[#allocation32_spill] sm:$0xff] }
 0x2cb   : > { %v2714_v0 = vor.u32 4788187, %v2713_v6  ;;  %v2717_v60 = vcvt.s32.f32 %v12203_v24  ;;  %v12255_v19 = vshll.u32 %v3055_v45, 8  ;;  %v7502_v48 = vadd.s32 4294967294, %v2806_v62 }
 0x2cc   : > { %v2907_v33 = vsub.s32 0, %v12228_v34  ;;  %v3090_v53 = vsel %vm3080_vm5, %v3087_v61, %v3089_v44  ;;  %v18418_v4 = vand.u32 2147483647, %v18695_v56  ;;  %v12261_v21 = vadd.s32 %v3003_v3, %v2999_v43 }
 0x2cd   : > { %v3094_v59 = vsel %vm3080_vm5, %v3091_v11, %v3093_v28  ;;  %v3176_v25 = vshll.u32 %v18504_v41, %v3164_v8  ;;  %v3177_v24 = vshrl.u32 %v18505_v32, %v12238_v1  ;;  %v12268_v13 = vshrl.u32 %v3162_v7, 5 }
 0x2ce   : > { %v3179_v42 = vshll.u32 %v18505_v32, %v3164_v8  ;;  %v3180_v20 = vshrl.u32 %v18506_v30, %v12238_v1  ;;  %v3256_v26 = vand.u32 2139095040, %v18699_v63  ;;  %v3167_v6 = vshll.u32 %v18507_v15, %v3164_v8 }
 0x2cf   : > { %v12275_v49 = vmul.u32.u64.low %v12255_v19, %v3090_v53  ;;  %v12276_v10 = vmul.u32.u64.high %v12255_v19, %v3090_v53, %v12275_v49  ;;  %v3170_v45 = vshll.u32 %v18508_v5, %v3164_v8  ;;  %v3168_v7 = vshrl.u32 %v18508_v5, %v12238_v1 }
 0x2d0   : > { %v3171_v29 = vshrl.u32 %v18509_v17, %v12238_v1  ;;  %v3173_v62 = vshll.u32 %v18509_v17, %v3164_v8  ;;  %v3174_v43 = vshrl.u32 %v18504_v41, %v12238_v1  ;;  %v3063_v61 = vshrl.u32 %v18507_v15, %v12153_v22 }
 0x2d1   : > { %v12291_v44 = vmul.u32.u64.low %v12255_v19, %v3094_v59  ;;  %v12292_v3 = vmul.u32.u64.high %v12255_v19, %v3094_v59, %v12291_v44  ;;  %v3178_v11 = vor.u32 %v3177_v24, %v3176_v25  ;;  %vm2637_vm1 = vcmp.lt.s32.totalorder %v18658_v38, 0 }
 0x2d2   : > { %v3157_v28 = vand.u32 8388607, %v18418_v4  ;;  %v3181_v53 = vor.u32 %v3180_v20, %v3179_v42  ;;  %vm3185_vm4 = vcmp.lt.s32.totalorder %v12268_v13, 4  ;;  %v3257_v8 = vshrl.u32 %v3256_v26, 23 }
 0x2d3   : > { %v2715_v27 = vand.u32 2147483647, %v2714_v0  ;;  %vm7503_vm7 = vcmp.lt.s32.totalorder %v7502_v48, 0  ;;  %v7505_v50 = vmin.u32 %v2907_v33, %v12228_v34  ;;  %v3084_v22 = vsel %vm3082_vm13, %v3072_v31, 2102212464 }
 0x2d4   : > { %v3005_v59 = vadd.s32 536870912, %v12261_v21  ;;  %v12302_v44 = vor.u32 %v3168_v7, %v3167_v6  ;;  %v12304_v25 = vor.u32 %v3171_v29, %v3170_v45  ;;  %v3175_v24 = vor.u32 %v3174_v43, %v3173_v62 }
 0x2d5   : > { %vm2420_vm6 = vcmp.lt.s32.totalorder %v11889_v52, 2  ;;  %v3083_v42 = vsel %vm3079_vm14, %v3063_v61, %v12209_v57  ;;  %vm3182_vm8 = vcmp.lt.s32.totalorder %v12268_v13, 1  ;;  %vm3184_vm9 = vcmp.lt.s32.totalorder %v12268_v13, 3 }
 0x2d6   : > { %v3191_v31 = vsel %vm3185_vm4, %v3178_v11, 920167782  ;;  %v3085_v0 = vsel %vm3081_vm15, %v12211_v39, %v3084_v22  ;;  %v3158_v33 = vor.u32 8388608, %v3157_v28  ;;  %v3195_v20 = vsel %vm3185_vm4, %v3181_v53, 1326507024 }
 0x2d7   : > { %v7520_v26 = vadd.s32 4294967169, %v3257_v8  ;;  %vm2523_vm10 = vcmp.lt.s32.totalorder %v12044_v40, 2  ;;  %v2620_v57 = vsel %vm12094_vm3, %v18650_v35, %v2617_v2  ;;  %v2718_v6 = vmul.f32 %v2717_v60, %v2715_v27 }
 0x2d8   : > { %v2721_v45 = vsub.s32 4, %v11891_v23  ;;  %v12325_v7 = vsel %vm7503_vm7, 0, %v7502_v48  ;;  %v2909_v29 = vclz %v7505_v50  ;;  %vm3183_vm11 = vcmp.lt.s32.totalorder %v12268_v13, 2 }
 0x2d9   : > { %v3190_v39 = vsel %vm3182_vm8, %v12302_v44, %v12304_v25  ;;  %v3192_v62 = vsel %vm3184_vm9, %v3175_v24, %v3191_v31  ;;  %vm2315_vm2 = vweird.f32 %v18669_v36  ;;  %vm2418_vm12 = vweird.f32 %v18675_v9 }
 0x2da   : > { %v18700_v27 = vand.u32 2147483647, %v18658_v38  ;;  %v3086_v50 = vsel %vm3080_vm5, %v3083_v42, %v3085_v0  ;;  %v3105_v60 = vadd.s32 1, %v12276_v10  ;;  %v3194_v48 = vsel %vm3182_vm8, %v12304_v25, %v3175_v24 }
 0x2db   : > { %v3196_v43 = vsel %vm3184_vm9, %v3178_v11, %v3195_v20  ;;  %vm2521_vm14 = vweird.f32 %v18648_v47  ;;  %v12351_v61 = vshrl.u32 %v3005_v59, 30  ;;  %vm3104_vm15 = vc.u32 %v12292_v3, %v12275_v49 }
 0x2dc   : > { %vm12338_vm13 = vcmp.le.f32.partialorder %v18700_v27, 0.7853982  ;;  %v12355_v28 = vshll.u32 %v3158_v33, 8  ;;  %v3263_v51 = vadd.s32 1, %v7520_v26  ;;  %8135 = vcosq.f32 %v2620_v57  ;;  %v18704_v27 = vld [vmem:[#allocation21_spill] sm:$0xff] }
 0x2dd   : > { %v2722_v53 = vsel %vm2637_vm1, %v2721_v45, %v11891_v23  ;;  %v2814_v8 = vsub.s32 4294967266, %v12325_v7  ;;  %v3193_v11 = vsel %vm3183_vm11, %v3190_v39, %v3192_v62  ;;  %8137 = vsinq.f32 %v2620_v57 }
 0x2de   : > { %v7506_v22 = vadd.s32 4294967294, %v2909_v29  ;;  %v3102_v59 = vmul.u32 %v12255_v19, %v3086_v50  ;;  %v3197_v42 = vsel %vm3183_vm11, %v3194_v48, %v3196_v43  ;;  %v2719_v31 = vxor.u32 2147483648, %v2718_v6 }
 0x2df   : > { %v2794_v0 = vadd.s32 %v11928_v12, %v11940_v58  ;;  %v2810_v33 = vsub.s32 32, %v12325_v7  ;;  %v3106_v23 = vsel %vm3104_vm15, %v3105_v60, %v12276_v10  ;;  %v3007_v20 = vshll.u32 %v12351_v61, 30  ;;  %v18703_v12 = vld [vmem:[#allocation23_spill] sm:$0xff] }
 0x2e0   : > { %v12372_v26 = vmul.u32.u64.low %v12355_v28, %v3193_v11  ;;  %v12373_v45 = vmul.u32.u64.high %v12355_v28, %v3193_v11, %v12372_v26  ;;  %vm3264_vm0 = vcmp.gt.s32.totalorder %v3263_v51, 0  ;;  %v2815_v19 = vadd.s32 127, %v2814_v8 }
 0x2e1   : > { %v3166_v57 = vshrl.u32 %v18507_v15, %v12238_v1  ;;  %v12379_v29 = vmul.u32.u64.low %v12355_v28, %v3197_v42  ;;  %v12380_v39 = vmul.u32.u64.high %v12355_v28, %v3197_v42, %v12379_v29  ;;  %v2427_v58 = vsel %vm2420_vm6, %v18703_v12, %v12053_v54  ;;  %v18712_v12 = vld [vmem:[#allocation33_spill] sm:$0xff] }
 0x2e2   : > { %vm7507_vm5 = vcmp.lt.s32.totalorder %v7506_v22, 0  ;;  %v12386_v10 = vadd.s32 %v3106_v23, %v3102_v59  ;;  %v3187_v62 = vsel %vm3185_vm4, %v3175_v24, 2102212464  ;;  %v18705_v50 = vsel %vm12094_vm3, 0, %v18704_v27 }
 0x2e3   : > { %v12394_v1 = vand.u32 3, %v18705_v50  ;;  %v2811_v60 = vshll.u32 %v12129_v14, %v12325_v7  ;;  %v2812_v48 = vshrl.u32 %v2794_v0, %v2810_v33  ;;  %v3265_v43 = vsel %vm3264_vm0, %v3263_v51, 0  ;;  %v18710_v0 = vld [vmem:[#allocation26_spill] sm:$0xff]  ;;  %v18711_v33 = vld [vmem:[#allocation20_spill] sm:$0xff] }
 0x2e4   : > { %v2530_v52 = vsel %vm2523_vm10, %v12243_v18, %v12225_v37  ;;  %v2720_v54 = vsel %vm2637_vm1, %v2719_v31, %v2718_v6  ;;  %v2724_v16 = vsel %vm12338_vm13, 0, %v2722_v53  ;;  %v12407_v24 = vsub.s32 %v12261_v21, %v3007_v20  ;;  %v18706_v37 = vld [vmem:[#allocation72_spill] sm:$0xff] }
 0x2e5   : > { %v2816_v8 = vshll.u32 %v2815_v19, 23  ;;  %v12409_v11 = vsel %vm7507_vm5, 0, %v7506_v22  ;;  %v3186_v14 = vsel %vm3182_vm8, %v3166_v57, %v12302_v44  ;;  %v3188_v40 = vsel %vm3184_vm9, %v12304_v25, %v3187_v62 }
 0x2e6   : > { %v12420_v18 = vsel %vm2315_vm2, nan, %v18706_v37  ;;  %v12424_v21 = vsel %vm2418_vm12, nan, %v2427_v58  ;;  %v3108_v6 = vadd.s32 536870912, %v12386_v10  ;;  %v3267_v7 = vand.u32 31, %v3265_v43  ;;  %v8136_v51 = vpop.eup %8135 }
 0x2e7   : > { %18707 = vst [vmem:[#allocation23_spill] sm:$0xff] %v12420_v18  ;;  %18708 = vst [vmem:[#allocation21_spill] sm:$0xff] %v12424_v21  ;;  %v12429_v44 = vsel %vm2521_vm14, nan, %v2530_v52  ;;  %vm2630_vm3 = vcmp.eq.s32.totalorder %v12394_v1, 2  ;;  %v2723_v36 = vsel %vm12338_vm13, %v18658_v38, %v2720_v54  ;;  %v12435_v25 = vand.u32 3, %v2724_v16  ;;  %v8138_v9 = vpop.eup %8137 }
 0x2e8   : > { %18709 = vst [vmem:[#allocation72_spill] sm:$0xff] %v12429_v44  ;;  %v2813_v53 = vor.u32 %v2812_v48, %v2811_v60  ;;  %v2917_v22 = vsub.s32 4294967266, %v12409_v11  ;;  %v3010_v59 = vsub.s32 0, %v12407_v24  ;;  %v3189_v42 = vsel %vm3183_vm11, %v3186_v14, %v3188_v40 }
 0x2e9   : > { %v3208_v47 = vadd.s32 1, %v12373_v45  ;;  %vm2627_vm1 = vcmp.eq.s32.totalorder %v12394_v1, 0  ;;  %v2817_v31 = vor.u32 4788187, %v2816_v8  ;;  %v2897_v2 = vadd.s32 %v18711_v33, %v18710_v0 }
 0x2ea   : > { %v2913_v23 = vsub.s32 32, %v12409_v11  ;;  %vm3207_vm4 = vc.u32 %v12380_v39, %v12372_v26  ;;  %v2631_v20 = vxor.u32 2147483648, %v8136_v51  ;;  %8139 = vcosq.f32 %v2723_v36 }
 0x2eb   : > { %v12448_v19 = vshrl.u32 %v3108_v6, 30  ;;  %v12450_v57 = vsub.s32 32, %v3267_v7  ;;  %v2628_v13 = vxor.u32 2147483648, %v8138_v9  ;;  %8141 = vsinq.f32 %v2723_v36 }
 0x2ec   : > { %v3205_v29 = vmul.u32 %v12355_v28, %v3189_v42  ;;  %v3359_v58 = vand.u32 2139095040, %v18712_v12  ;;  %v2820_v62 = vcvt.s32.f32 %v2813_v53  ;;  %v2918_v27 = vadd.s32 127, %v2917_v22 }
 0x2ed   : > { %v7509_v50 = vmin.u32 %v3010_v59, %v12407_v24  ;;  %v3209_v60 = vsel %vm3207_vm4, %v3208_v47, %v12373_v45  ;;  %vm2626_vm7 = vcmp.lt.s32.totalorder %v12394_v1, 2  ;;  %v2818_v48 = vand.u32 2147483647, %v2817_v31 }
 0x2ee   : > { %v2914_v52 = vshll.u32 %v12228_v34, %v12409_v11  ;;  %v2915_v54 = vshrl.u32 %v2897_v2, %v2913_v23  ;;  %v18419_v16 = vand.u32 2147483647, %v18699_v63  ;;  %v3110_v8 = vshll.u32 %v12448_v19, 30  ;;  %v18713_v23 = vld [vmem:[#allocation27_spill] sm:$0xff] }
 0x2ef   : > { %v12461_v28 = vshrl.u32 %v3265_v43, 5  ;;  %v3279_v14 = vshll.u32 %v18504_v41, %v3267_v7  ;;  %v3280_v40 = vshrl.u32 %v18505_v32, %v12450_v57  ;;  %v12466_v37 = vadd.s32 %v3209_v60, %v3205_v29 }
 0x2f0   : > { %v3282_v45 = vshll.u32 %v18505_v32, %v3267_v7  ;;  %v3283_v6 = vshrl.u32 %v18506_v30, %v12450_v57  ;;  %v3360_v34 = vshrl.u32 %v3359_v58, 23  ;;  %v2919_v11 = vshll.u32 %v2918_v27, 23 }
 0x2f1   : > { %v3012_v36 = vclz %v7509_v50  ;;  %v3270_v53 = vshll.u32 %v18507_v15, %v3267_v7  ;;  %v3273_v43 = vshll.u32 %v18508_v5, %v3267_v7  ;;  %vm2624_vm6 = vweird.f32 %v18650_v35 }
 0x2f2   : > { %v3271_v22 = vshrl.u32 %v18508_v5, %v12450_v57  ;;  %v3274_v59 = vshrl.u32 %v18509_v17, %v12450_v57  ;;  %v3276_v42 = vshll.u32 %v18509_v17, %v3267_v7  ;;  %v3277_v47 = vshrl.u32 %v18504_v41, %v12450_v57 }
 0x2f3   : > { %v2632_v31 = vsel %vm2630_vm3, %v2631_v20, %v8138_v9  ;;  %v12484_v0 = vsub.s32 %v12386_v10, %v3110_v8  ;;  %v3260_v33 = vand.u32 8388607, %v18419_v16  ;;  %v3281_v2 = vor.u32 %v3280_v40, %v3279_v14 }
 0x2f4   : > { %vm2740_vm8 = vcmp.lt.s32.totalorder %v18713_v23, 0  ;;  %v3211_v29 = vadd.s32 536870912, %v12466_v37  ;;  %v3284_v58 = vor.u32 %v3283_v6, %v3282_v45  ;;  %vm3288_vm9 = vcmp.lt.s32.totalorder %v12461_v28, 4  ;;  %v8140_v27 = vpop.eup %8139 }
 0x2f5   : > { %v7524_v7 = vadd.s32 4294967169, %v3360_v34  ;;  %v2629_v50 = vsel %vm2627_vm1, %v8136_v51, %v2628_v13  ;;  %v2821_v9 = vmul.f32 %v2820_v62, %v2818_v48  ;;  %v2916_v20 = vor.u32 %v2915_v54, %v2914_v52  ;;  %v8142_v60 = vpop.eup %8141 }
 0x2f6   : > { %v2920_v10 = vor.u32 4788187, %v2919_v11  ;;  %v7510_v8 = vadd.s32 4294967294, %v3012_v36  ;;  %v12493_v4 = vor.u32 %v3271_v22, %v3270_v53  ;;  %v12495_v14 = vor.u32 %v3274_v59, %v3273_v43  ;;  %v18717_v11 = vld [vmem:[#allocation22_spill] sm:$0xff] }
 0x2f7   : > { %v3278_v40 = vor.u32 %v3277_v47, %v3276_v42  ;;  %v3261_v16 = vor.u32 8388608, %v3260_v33  ;;  %vm3285_vm10 = vcmp.lt.s32.totalorder %v12461_v28, 1  ;;  %vm3287_vm11 = vcmp.lt.s32.totalorder %v12461_v28, 3  ;;  %v18718_v47 = vld [vmem:[#allocation28_spill] sm:$0xff] }
 0x2f8   : > { %v3294_v45 = vsel %vm3288_vm9, %v3281_v2, 920167782  ;;  %v3113_v51 = vsub.s32 0, %v12484_v0  ;;  %v12502_v13 = vshrl.u32 %v3211_v29, 30  ;;  %v3298_v62 = vsel %vm3288_vm9, %v3284_v58, 1326507024 }
 0x2f9   : > { %v3366_v48 = vadd.s32 1, %v7524_v7  ;;  %v2633_v52 = vsel %vm2626_vm7, %v2629_v50, %v2632_v31  ;;  %vm2730_vm2 = vcmp.eq.s32.totalorder %v12435_v25, 0  ;;  %v18714_v54 = vand.u32 2147483647, %v18713_v23  ;;  %v18720_v50 = vld [vmem:[#allocation34_spill] sm:$0xff] }
 0x2fa   : > { %v2822_v34 = vxor.u32 2147483648, %v2821_v9  ;;  %v2824_v36 = vsub.s32 4, %v18717_v11  ;;  %v2923_v53 = vcvt.s32.f32 %v2916_v20  ;;  %vm3286_vm13 = vcmp.lt.s32.totalorder %v12461_v28, 2 }
 0x2fb   : > { %vm12511_vm12 = vcmp.le.f32.partialorder %v18714_v54, 0.7853982  ;;  %v3293_v1 = vsel %vm3285_vm10, %v12493_v4, %v12495_v14  ;;  %v3295_v43 = vsel %vm3287_vm11, %v3278_v40, %v3294_v45  ;;  %vm2729_vm14 = vcmp.lt.s32.totalorder %v12435_v25, 2 }
 0x2fc   : > { %v2921_v22 = vand.u32 2147483647, %v2920_v10  ;;  %vm7511_vm15 = vcmp.lt.s32.totalorder %v7510_v8, 0  ;;  %v3297_v59 = vsel %vm3285_vm10, %v12495_v14, %v3278_v40  ;;  %v3299_v42 = vsel %vm3287_vm11, %v3281_v2, %v3298_v62 }
 0x2fd   : > { %vm2843_vm0 = vcmp.lt.s32.totalorder %v18718_v47, 0  ;;  %v7513_v31 = vmin.u32 %v3113_v51, %v12484_v0  ;;  %v3213_v33 = vshll.u32 %v12502_v13, 30  ;;  %v12532_v29 = vshll.u32 %v3261_v16, 8 }
 0x2fe   : > { %vm3367_vm5 = vcmp.gt.s32.totalorder %v3366_v48, 0  ;;  %v12536_v58 = vsel %vm2624_vm6, nan, %v2633_v52  ;;  %vm2733_vm3 = vcmp.eq.s32.totalorder %v12435_v25, 2  ;;  %v3296_v7 = vsel %vm3286_vm13, %v3293_v1, %v3295_v43 }
 0x2ff   : > { %18719 = vst [vmem:[#allocation26_spill] sm:$0xff] %v12536_v58  ;;  %v3462_v2 = vand.u32 2139095040, %v18720_v50  ;;  %v2731_v20 = vxor.u32 2147483648, %v8142_v60  ;;  %v2734_v10 = vxor.u32 2147483648, %v8140_v27  ;;  %v2825_v45 = vsel %vm2740_vm8, %v2824_v36, %v18717_v11 }
 0x300   : > { %v3300_v16 = vsel %vm3286_vm13, %v3297_v59, %v3299_v42  ;;  %v2823_v35 = vsel %vm2740_vm8, %v2822_v34, %v2821_v9  ;;  %v2924_v51 = vmul.f32 %v2923_v53, %v2921_v22  ;;  %v12550_v62 = vsel %vm7511_vm15, 0, %v7510_v8 }
 0x301   : > { %v3368_v52 = vsel %vm3367_vm5, %v3366_v48, 0  ;;  %v3115_v54 = vclz %v7513_v31  ;;  %v12553_v1 = vsub.s32 %v12466_v37, %v3213_v33  ;;  %v3269_v11 = vshrl.u32 %v18507_v15, %v12450_v57  ;;  %v18721_v33 = vld [vmem:[#allocation31_spill] sm:$0xff] }
 0x302   : > { %v12556_v43 = vmul.u32.u64.low %v12532_v29, %v3296_v7  ;;  %v12557_v58 = vmul.u32.u64.high %v12532_v29, %v3296_v7, %v12556_v43  ;;  %v12563_v36 = vmul.u32.u64.low %v12532_v29, %v3300_v16  ;;  %v12564_v9 = vmul.u32.u64.high %v12532_v29, %v3300_v16, %v12563_v36 }
 0x303   : > { %v3463_v34 = vshrl.u32 %v3462_v2, 23  ;;  %v2827_v8 = vsel %vm12511_vm12, 0, %v2825_v45  ;;  %v2927_v48 = vsub.s32 4, %v12163_v46  ;;  %v3290_v37 = vsel %vm3288_vm9, %v3278_v40, 2102212464 }
 0x304   : > { %v3370_v53 = vand.u32 31, %v3368_v52  ;;  %v2732_v22 = vsel %vm2730_vm2, %v8140_v27, %v2731_v20  ;;  %v2735_v57 = vsel %vm2733_vm3, %v2734_v10, %v8142_v60  ;;  %v2925_v59 = vxor.u32 2147483648, %v2924_v51 }
 0x305   : > { %v3020_v42 = vsub.s32 4294967266, %v12550_v62  ;;  %v12579_v31 = vsel %vm12511_vm12, %v18713_v23, %v2823_v35  ;;  %v3000_v7 = vadd.s32 %v18721_v33, %v12174_v55  ;;  %v7514_v2 = vadd.s32 4294967294, %v3115_v54 }
 0x306   : > { %v3216_v40 = vsub.s32 0, %v12553_v1  ;;  %v3016_v45 = vsub.s32 32, %v12550_v62  ;;  %v3289_v27 = vsel %vm3285_vm10, %v3269_v11, %v12493_v4  ;;  %v3291_v60 = vsel %vm3287_vm11, %v12495_v14, %v3290_v37 }
 0x307   : > { %v7528_v20 = vadd.s32 4294967169, %v3463_v34  ;;  %v12593_v6 = vsel %vm2729_vm14, %v2732_v22, %v2735_v57  ;;  %v12595_v10 = vand.u32 3, %v2827_v8  ;;  %v12600_v55 = vsel %vm2843_vm0, %v2927_v48, %v12163_v46 }
 0x308   : > { %v12602_v16 = vsub.s32 32, %v3370_v53  ;;  %8143 = vcosq.f32 %v12579_v31  ;;  %v12607_v4 = vsel %vm2843_vm0, %v2925_v59, %v2924_v51  ;;  %v3021_v14 = vadd.s32 127, %v3020_v42 }
 0x309   : > { %v18420_v25 = vand.u32 2147483647, %v18712_v12  ;;  %vm7515_vm1 = vcmp.lt.s32.totalorder %v7514_v2, 0  ;;  %v7517_v35 = vmin.u32 %v3216_v40, %v12553_v1  ;;  %v3292_v54 = vsel %vm3286_vm13, %v3289_v27, %v3291_v60 }
 0x30a   : > { %v3311_v46 = vadd.s32 1, %v12557_v58  ;;  %v3017_v11 = vshll.u32 %v12407_v24, %v12550_v62  ;;  %v3018_v36 = vshrl.u32 %v3000_v7, %v3016_v45  ;;  %vm3310_vm4 = vc.u32 %v12564_v9, %v12556_v43 }
 0x30b   : > { %v3469_v51 = vadd.s32 1, %v7528_v20  ;;  %v3382_v34 = vshll.u32 %v18504_v41, %v3370_v53  ;;  %v3383_v8 = vshrl.u32 %v18505_v32, %v12602_v16  ;;  %v3385_v48 = vshll.u32 %v18505_v32, %v3370_v53 }
 0x30c   : > { %v3386_v28 = vshrl.u32 %v18506_v30, %v12602_v16  ;;  %v18722_v37 = vand.u32 2147483647, %v18718_v47  ;;  %v3022_v24 = vshll.u32 %v3021_v14, 23  ;;  %v3118_v62 = vsel %vm7515_vm1, 0, %v7514_v2 }
 0x30d   : > { %v3308_v57 = vmul.u32 %v12532_v29, %v3292_v54  ;;  %v12631_v59 = vshrl.u32 %v3368_v52, 5  ;;  %v3218_v42 = vclz %v7517_v35  ;;  %v3312_v33 = vsel %vm3310_vm4, %v3311_v46, %v12557_v58 }
 0x30e   : > { %vm12626_vm7 = vcmp.le.f32.partialorder %v18722_v37, 0.7853982  ;;  %v3373_v7 = vshll.u32 %v18507_v15, %v3370_v53  ;;  %v3376_v40 = vshll.u32 %v18508_v5, %v3370_v53  ;;  %v3374_v45 = vshrl.u32 %v18508_v5, %v12602_v16 }
 0x30f   : > { %v3377_v27 = vshrl.u32 %v18509_v17, %v12602_v16  ;;  %v3379_v60 = vshll.u32 %v18509_v17, %v3370_v53  ;;  %v3380_v29 = vshrl.u32 %v18504_v41, %v12602_v16  ;;  %v3103_v52 = vadd.s32 %v12275_v49, %v12292_v3 }
 0x310   : > { %v3384_v2 = vor.u32 %v3383_v8, %v3382_v34  ;;  %v3387_v58 = vor.u32 %v3386_v28, %v3385_v48  ;;  %vm3470_vm6 = vcmp.gt.s32.totalorder %v3469_v51, 0  ;;  %v3119_v20 = vsub.s32 32, %v3118_v62 }
 0x311   : > { %v12645_v14 = vadd.s32 %v3312_v33, %v3308_v57  ;;  %v3363_v35 = vand.u32 8388607, %v18420_v25  ;;  %vm3391_vm8 = vcmp.lt.s32.totalorder %v12631_v59, 4  ;;  %v12650_v54 = vor.u32 %v3018_v36, %v3017_v11 }
 0x312   : > { %v12652_v53 = vor.u32 4788187, %v3022_v24  ;;  %v3123_v46 = vsub.s32 4294967266, %v3118_v62  ;;  %v7518_v37 = vadd.s32 4294967294, %v3218_v42  ;;  %v12654_v44 = vpop.eup %8143  ;;  %v3375_v49 = vor.u32 %v3374_v45, %v3373_v7 }
 0x313   : > { %v3378_v3 = vor.u32 %v3377_v27, %v3376_v40  ;;  %v3381_v34 = vor.u32 %v3380_v29, %v3379_v60  ;;  %v3471_v8 = vsel %vm3470_vm6, %v3469_v51, 0  ;;  %vm3388_vm9 = vcmp.lt.s32.totalorder %v12631_v59, 1 }
 0x314   : > { %vm3390_vm10 = vcmp.lt.s32.totalorder %v12631_v59, 3  ;;  %v3397_v48 = vsel %vm3391_vm8, %v3384_v2, 920167782  ;;  %v3401_v11 = vsel %vm3391_vm8, %v3387_v58, 1326507024  ;;  %v3120_v36 = vshll.u32 %v12484_v0, %v3118_v62 }
 0x315   : > { %v3121_v28 = vshrl.u32 %v3103_v52, %v3119_v20  ;;  %v3314_v24 = vadd.s32 536870912, %v12645_v14  ;;  %v3364_v57 = vor.u32 8388608, %v3363_v35  ;;  %v3124_v42 = vadd.s32 127, %v3123_v46  ;;  %v18726_v20 = vld [vmem:[#allocation35_spill] sm:$0xff] }
 0x316   : > { %vm7519_vm11 = vcmp.lt.s32.totalorder %v7518_v37, 0  ;;  %vm3389_vm2 = vcmp.lt.s32.totalorder %v12631_v59, 2  ;;  %v3473_v51 = vand.u32 31, %v3471_v8  ;;  %v3396_v33 = vsel %vm3388_vm9, %v3375_v49, %v3378_v3 }
 0x317   : > { %v3398_v7 = vsel %vm3390_vm10, %v3381_v34, %v3397_v48  ;;  %v3400_v40 = vsel %vm3388_vm9, %v3378_v3, %v3381_v34  ;;  %v3402_v0 = vsel %vm3390_vm10, %v3384_v2, %v3401_v11  ;;  %8145 = vsinq.f32 %v12579_v31 }
 0x318   : > { %v12679_v45 = vsel %vm12626_vm7, %v18718_v47, %v12607_v4  ;;  %v3026_v60 = vcvt.s32.f32 %v12650_v54  ;;  %v12685_v29 = vsel %vm7519_vm11, 0, %v7518_v37  ;;  %v12687_v52 = vshrl.u32 %v3314_v24, 30 }
 0x319   : > { %v12689_v2 = vshll.u32 %v3364_v57, 8  ;;  %v3399_v31 = vsel %vm3389_vm2, %v3396_v33, %v3398_v7  ;;  %v3403_v58 = vsel %vm3389_vm2, %v3400_v40, %v3402_v0  ;;  %v12695_v4 = vsub.s32 32, %v3473_v51 }
 0x31a   : > { %18725 = vst [vmem:[#allocation20_spill] sm:$0xff] %v12687_v52  ;;  %v3565_v35 = vand.u32 2139095040, %v18726_v20  ;;  %v3024_v46 = vand.u32 2147483647, %v12652_v53  ;;  %v12699_v48 = vor.u32 %v3121_v28, %v3120_v36  ;;  %v3125_v54 = vshll.u32 %v3124_v42, 23 }
 0x31b   : > { %v3372_v37 = vshrl.u32 %v18507_v15, %v12602_v16  ;;  %v3226_v11 = vsub.s32 4294967266, %v12685_v29  ;;  %v3393_v24 = vsel %vm3391_vm8, %v3381_v34, 2102212464  ;;  %v3316_v28 = vshll.u32 %v12687_v52, 30 }
 0x31c   : > { %v3566_v33 = vshrl.u32 %v3565_v35, 23  ;;  %v12708_v7 = vmul.u32.u64.low %v12689_v2, %v3403_v58  ;;  %v12709_v40 = vmul.u32.u64.high %v12689_v2, %v3403_v58, %v12708_v7  ;;  %v3485_v16 = vshll.u32 %v18504_v41, %v3473_v51 }
 0x31d   : > { %v12712_v53 = vmul.u32.u64.low %v12689_v2, %v3399_v31  ;;  %v12713_v36 = vmul.u32.u64.high %v12689_v2, %v3399_v31, %v12712_v53  ;;  %v3486_v42 = vshrl.u32 %v18505_v32, %v12695_v4  ;;  %v3392_v0 = vsel %vm3388_vm9, %v3372_v37, %v3375_v49 }
 0x31e   : > { %v7532_v34 = vadd.s32 4294967169, %v3566_v33  ;;  %v12722_v35 = vshrl.u32 %v3471_v8, 5  ;;  %v3488_v58 = vshll.u32 %v18505_v32, %v3473_v51  ;;  %v3489_v31 = vshrl.u32 %v18506_v30, %v12695_v4 }
 0x31f   : > { %vm2727_vm12 = vweird.f32 %v18658_v38  ;;  %v3394_v7 = vsel %vm3390_vm10, %v3378_v3, %v3393_v24  ;;  %v3476_v25 = vshll.u32 %v18507_v15, %v3473_v51  ;;  %v3479_v62 = vshll.u32 %v18508_v5, %v3473_v51 }
 0x320   : > { %v3482_v33 = vshll.u32 %v18509_v17, %v3473_v51  ;;  %vm2836_vm13 = vcmp.eq.s32.totalorder %v12595_v10, 2  ;;  %v3477_v49 = vshrl.u32 %v18508_v5, %v12695_v4  ;;  %v3480_v8 = vshrl.u32 %v18509_v17, %v12695_v4 }
 0x321   : > { %v3483_v37 = vshrl.u32 %v18504_v41, %v12695_v4  ;;  %v3572_v27 = vadd.s32 1, %v7532_v34  ;;  %v12740_v57 = vpop.eup %8145  ;;  %v12742_v3 = vmul.f32 %v3026_v60, %v3024_v46  ;;  %v3126_v24 = vor.u32 4788187, %v3125_v54  ;;  %v18728_v54 = vld [vmem:[#allocation29_spill] sm:$0xff] }
 0x322   : > { %v3206_v51 = vadd.s32 %v12372_v26, %v12380_v39  ;;  %v3487_v21 = vor.u32 %v3486_v42, %v3485_v16  ;;  %v3129_v18 = vcvt.s32.f32 %v12699_v48  ;;  %v18727_v12 = vand.u32 2147483647, %v18720_v50 }
 0x323   : > { %v3490_v47 = vor.u32 %v3489_v31, %v3488_v58  ;;  %vm3494_vm14 = vcmp.lt.s32.totalorder %v12722_v35, 4  ;;  %v3222_v23 = vsub.s32 32, %v12685_v29  ;;  %v3227_v34 = vadd.s32 127, %v3226_v11 }
 0x324   : > { %v3466_v52 = vand.u32 8388607, %v18727_v12  ;;  %v12752_v63 = vsub.s32 %v12645_v14, %v3316_v28  ;;  %v3395_v60 = vsel %vm3389_vm2, %v3392_v0, %v3394_v7  ;;  %v3478_v46 = vor.u32 %v3477_v49, %v3476_v25 }
 0x325   : > { %v12756_v26 = vor.u32 %v3480_v8, %v3479_v62  ;;  %v3484_v39 = vor.u32 %v3483_v37, %v3482_v33  ;;  %vm3573_vm15 = vcmp.gt.s32.totalorder %v3572_v27, 0  ;;  %v3414_v48 = vadd.s32 1, %v12713_v36 }
 0x326   : > { %vm3491_vm0 = vcmp.lt.s32.totalorder %v12722_v35, 1  ;;  %vm3493_vm5 = vcmp.lt.s32.totalorder %v12722_v35, 3  ;;  %v3500_v12 = vsel %vm3494_vm14, %v3487_v21, 920167782  ;;  %vm2946_vm3 = vcmp.lt.s32.totalorder %v18728_v54, 0 }
 0x327   : > { %v3127_v14 = vand.u32 2147483647, %v3126_v24  ;;  %vm3413_vm1 = vc.u32 %v12709_v40, %v12712_v53  ;;  %v3467_v25 = vor.u32 8388608, %v3466_v52  ;;  %v3504_v59 = vsel %vm3494_vm14, %v3490_v47, 1326507024 }
 0x328   : > { %v3223_v62 = vshll.u32 %v12553_v1, %v12685_v29  ;;  %v3224_v11 = vshrl.u32 %v3206_v51, %v3222_v23  ;;  %v3319_v28 = vsub.s32 0, %v12752_v63  ;;  %v3574_v16 = vsel %vm3573_vm15, %v3572_v27, 0  ;;  %v18735_v51 = vld [vmem:[#allocation30_spill] sm:$0xff] }
 0x329   : > { %v3411_v42 = vmul.u32 %v12689_v2, %v3395_v60  ;;  %vm3492_vm4 = vcmp.lt.s32.totalorder %v12722_v35, 2  ;;  %v3499_v0 = vsel %vm3491_vm0, %v3478_v46, %v12756_v26  ;;  %v3501_v52 = vsel %vm3493_vm5, %v3484_v39, %v3500_v12 }
 0x32a   : > { %v3228_v58 = vshll.u32 %v3227_v34, 23  ;;  %v3415_v47 = vsel %vm3413_vm1, %v3414_v48, %v12713_v36  ;;  %v3503_v23 = vsel %vm3491_vm0, %v12756_v26, %v3484_v39  ;;  %v3505_v1 = vsel %vm3493_vm5, %v3487_v21, %v3504_v59 }
 0x32b   : > { %v12787_v27 = vsel %vm2727_vm12, nan, %v12593_v6  ;;  %v18730_v29 = vsel %vm12626_vm7, 0, %v12600_v55  ;;  %v12795_v31 = vshll.u32 %v3467_v25, 8  ;;  %v3576_v36 = vand.u32 31, %v3574_v16 }
 0x32c   : > { %18729 = vst [vmem:[#allocation22_spill] sm:$0xff] %v12787_v27  ;;  %v12793_v2 = vand.u32 3, %v18730_v29  ;;  %v18731_v33 = vxor.u32 2147483648, %v12654_v44  ;;  %v18732_v38 = vand.u32 2147483647, %v18728_v54  ;;  %v3030_v55 = vsub.s32 4, %v12351_v61 }
 0x32d   : > { %v3502_v22 = vsel %vm3492_vm4, %v3499_v0, %v3501_v52  ;;  %8147 = vcosq.f32 %v12679_v45  ;;  %v7521_v49 = vmin.u32 %v3319_v28, %v12752_v63  ;;  %v12816_v8 = vadd.s32 %v3415_v47, %v3411_v42 }
 0x32e   : > { %v12803_v21 = vsel %vm2836_vm13, %v18731_v33, %v12740_v57  ;;  %vm12807_vm6 = vcmp.le.f32.partialorder %v18732_v38, 0.7853982  ;;  %v3506_v37 = vsel %vm3492_vm4, %v3503_v23, %v3505_v1  ;;  %v3028_v24 = vxor.u32 2147483648, %v12742_v3 }
 0x32f   : > { %vm3049_vm7 = vcmp.lt.s32.totalorder %v18735_v51, 0  ;;  %v3130_v34 = vmul.f32 %v3129_v18, %v3127_v14  ;;  %v3225_v60 = vor.u32 %v3224_v11, %v3223_v62  ;;  %v3229_v48 = vor.u32 4788187, %v3228_v58 }
 0x330   : > { %v3475_v12 = vshrl.u32 %v18507_v15, %v12695_v4  ;;  %v12825_v25 = vmul.u32.u64.low %v12795_v31, %v3502_v22  ;;  %v12826_v59 = vmul.u32.u64.high %v12795_v31, %v3502_v22, %v12825_v25  ;;  %v12829_v28 = vsub.s32 32, %v3576_v36 }
 0x331   : > { %8149 = vsinq.f32 %v12679_v45  ;;  %v12835_v42 = vsel %vm2946_vm3, %v3030_v55, %v12351_v61  ;;  %v12838_v18 = vmul.u32.u64.low %v12795_v31, %v3506_v37  ;;  %v12839_v14 = vmul.u32.u64.high %v12795_v31, %v3506_v37, %v12838_v18 }
 0x332   : > { %v3321_v62 = vclz %v7521_v49  ;;  %v3417_v11 = vadd.s32 536870912, %v12816_v8  ;;  %v3496_v0 = vsel %vm3494_vm14, %v3484_v39, 2102212464  ;;  %v3029_v45 = vsel %vm2946_vm3, %v3028_v24, %v12742_v3 }
 0x333   : > { %v18736_v52 = vand.u32 2147483647, %v18735_v51  ;;  %v3131_v58 = vxor.u32 2147483648, %v3130_v34  ;;  %v3230_v47 = vand.u32 2147483647, %v3229_v48  ;;  %v3232_v23 = vcvt.s32.f32 %v3225_v60 }
 0x334   : > { %v3495_v1 = vsel %vm3491_vm0, %v3475_v12, %v3478_v46  ;;  %v18427_v29 = vand.u32 2147483647, %v18726_v20  ;;  %v3588_v39 = vshll.u32 %v18504_v41, %v3576_v36  ;;  %v3589_v33 = vshrl.u32 %v18505_v32, %v12829_v28 }
 0x335   : > { %vm12850_vm8 = vcmp.le.f32.partialorder %v18736_v52, 0.7853982  ;;  %v3497_v3 = vsel %vm3493_vm5, %v12756_v26, %v3496_v0  ;;  %v12863_v38 = vshrl.u32 %v3574_v16, 5  ;;  %v3591_v55 = vshll.u32 %v18505_v32, %v3576_v36 }
 0x336   : > { %v3592_v22 = vshrl.u32 %v18506_v30, %v12829_v28  ;;  %v7522_v49 = vadd.s32 4294967294, %v3321_v62  ;;  %v12868_v46 = vshrl.u32 %v3417_v11, 30  ;;  %v3579_v37 = vshll.u32 %v18507_v15, %v3576_v36 }
 0x337   : > { %v3582_v24 = vshll.u32 %v18508_v5, %v3576_v36  ;;  %vm3152_vm9 = vcmp.lt.s32.totalorder %v18695_v56, 0  ;;  %v3580_v60 = vshrl.u32 %v18508_v5, %v12829_v28  ;;  %v3583_v26 = vshrl.u32 %v18509_v17, %v12829_v28  ;;  %v12880_v12 = vpop.eup %8147 }
 0x338   : > { %v3585_v16 = vshll.u32 %v18509_v17, %v3576_v36  ;;  %v3586_v48 = vshrl.u32 %v18504_v41, %v12829_v28  ;;  %v3032_v18 = vsel %vm12807_vm6, %v18728_v54, %v3029_v45  ;;  %v3498_v62 = vsel %vm3492_vm4, %v3495_v1, %v3497_v3 }
 0x339   : > { %v3517_v11 = vadd.s32 1, %v12826_v59  ;;  %v3590_v0 = vor.u32 %v3589_v33, %v3588_v39  ;;  %vm3516_vm10 = vc.u32 %v12839_v14, %v12825_v25  ;;  %v3569_v36 = vand.u32 8388607, %v18427_v29 }
 0x33a   : > { %v3593_v52 = vor.u32 %v3592_v22, %v3591_v55  ;;  %vm3597_vm11 = vcmp.lt.s32.totalorder %v12863_v38, 4  ;;  %v3132_v7 = vsel %vm3049_vm7, %v3131_v58, %v3130_v34  ;;  %v3233_v4 = vmul.f32 %v3232_v23, %v3230_v47 }
 0x33b   : > { %vm7523_vm2 = vcmp.lt.s32.totalorder %v7522_v49, 0  ;;  %v3419_v35 = vshll.u32 %v12868_v46, 30  ;;  %v12896_v45 = vpop.eup %8149  ;;  %v3514_v1 = vmul.u32 %v12795_v31, %v3498_v62  ;;  %v12899_v39 = vor.u32 %v3580_v60, %v3579_v37  ;;  %v18739_v37 = vld [vmem:[#allocation36_spill] sm:$0xff] }
 0x33c   : > { %v12901_v33 = vor.u32 %v3583_v26, %v3582_v24  ;;  %v3587_v3 = vor.u32 %v3586_v48, %v3585_v16  ;;  %v3518_v55 = vsel %vm3516_vm10, %v3517_v11, %v12826_v59  ;;  %vm3594_vm12 = vcmp.lt.s32.totalorder %v12863_v38, 1 }
 0x33d   : > { %vm3596_vm13 = vcmp.lt.s32.totalorder %v12863_v38, 3  ;;  %v3603_v34 = vsel %vm3597_vm11, %v3590_v0, 920167782  ;;  %8151 = vcosq.f32 %v3032_v18  ;;  %v12908_v58 = vsel %vm7523_vm2, 0, %v7522_v49 }
 0x33e   : > { %v3570_v47 = vor.u32 8388608, %v3569_v36  ;;  %v3607_v31 = vsel %vm3597_vm11, %v3593_v52, 1326507024  ;;  %vm2833_vm14 = vcmp.eq.s32.totalorder %v12595_v10, 0  ;;  %v3135_v59 = vsel %vm12850_vm8, %v18735_v51, %v3132_v7 }
 0x33f   : > { %v3234_v23 = vxor.u32 2147483648, %v3233_v4  ;;  %v12917_v22 = vsub.s32 %v12816_v8, %v3419_v35  ;;  %v3668_v24 = vand.u32 2139095040, %v18739_v37  ;;  %v12920_v60 = vadd.s32 %v3518_v55, %v3514_v1 }
 0x340   : > { %vm3595_vm15 = vcmp.lt.s32.totalorder %v12863_v38, 2  ;;  %v3602_v49 = vsel %vm3594_vm12, %v12899_v39, %v12901_v33  ;;  %v3604_v26 = vsel %vm3596_vm13, %v3587_v3, %v3603_v34  ;;  %8153 = vsinq.f32 %v3032_v18 }
 0x341   : > { %v3329_v7 = vsub.s32 4294967266, %v12908_v58  ;;  %v3606_v8 = vsel %vm3594_vm12, %v12901_v33, %v3587_v3  ;;  %v3608_v16 = vsel %vm3596_vm13, %v3590_v0, %v3607_v31  ;;  %vm2939_vm0 = vcmp.eq.s32.totalorder %v12793_v2, 2 }
 0x342   : > { %v3033_v48 = vsel %vm12807_vm6, 0, %v12835_v42  ;;  %8155 = vcosq.f32 %v3135_v59  ;;  %v18740_v62 = vand.u32 2147483647, %v18695_v56  ;;  %v12945_v11 = vshll.u32 %v3570_v47, 8 }
 0x343   : > { %v18743_v36 = vsub.s32 4, %v12448_v19  ;;  %8157 = vsinq.f32 %v3135_v59  ;;  %v3235_v6 = vsel %vm3152_vm9, %v3234_v23, %v3233_v4  ;;  %v3605_v42 = vsel %vm3595_vm15, %v3602_v49, %v3604_v26 }
 0x344   : > { %vm12941_vm5 = vcmp.le.f32.partialorder %v18740_v62, 0.7853982  ;;  %v3422_v52 = vsub.s32 0, %v12917_v22  ;;  %v3520_v35 = vadd.s32 536870912, %v12920_v60  ;;  %v3609_v1 = vsel %vm3595_vm15, %v3606_v8, %v3608_v16 }
 0x345   : > { %v3134_v0 = vsel %vm3049_vm7, %v18743_v36, %v12448_v19  ;;  %v3669_v55 = vshrl.u32 %v3668_v24, 23  ;;  %v12960_v34 = vand.u32 3, %v3033_v48  ;;  %v3309_v19 = vadd.s32 %v12556_v43, %v12564_v9 }
 0x346   : > { %v3325_v47 = vsub.s32 32, %v12908_v58  ;;  %v3330_v31 = vadd.s32 127, %v3329_v7  ;;  %v2940_v4 = vxor.u32 2147483648, %v12880_v12  ;;  %v3136_v59 = vsel %vm12850_vm8, 0, %v3134_v0 }
 0x347   : > { %v12969_v23 = vmul.u32.u64.low %v12945_v11, %v3605_v42  ;;  %v12970_v49 = vmul.u32.u64.high %v12945_v11, %v3605_v42, %v12969_v23  ;;  %vm2936_vm3 = vcmp.eq.s32.totalorder %v12793_v2, 0  ;;  %v3238_v24 = vsel %vm12941_vm5, %v18695_v56, %v3235_v6  ;;  %v8152_v61 = vpop.eup %8151 }
 0x348   : > { %v3578_v43 = vshrl.u32 %v18507_v15, %v12829_v28  ;;  %v12980_v9 = vmul.u32.u64.low %v12945_v11, %v3609_v1  ;;  %v12981_v26 = vmul.u32.u64.high %v12945_v11, %v3609_v1, %v12980_v9  ;;  %v7525_v7 = vmin.u32 %v3422_v52, %v12917_v22 }
 0x349   : > { %v12984_v8 = vshrl.u32 %v3520_v35, 30  ;;  %v3599_v16 = vsel %vm3597_vm11, %v3587_v3, 2102212464  ;;  %v7536_v48 = vadd.s32 4294967169, %v3669_v55  ;;  %v12988_v62 = vand.u32 3, %v3136_v59  ;;  %v18745_v35 = vld [vmem:[#allocation32_spill] sm:$0xff] }
 0x34a   : > { %v3326_v36 = vshll.u32 %v12752_v63, %v12908_v58  ;;  %v3327_v0 = vshrl.u32 %v3309_v19, %v3325_v47  ;;  %v3331_v28 = vshll.u32 %v3330_v31, 23  ;;  %v18744_v6 = vxor.u32 2147483648, %v12740_v57  ;;  %v8154_v3 = vpop.eup %8153  ;;  %v18746_v9 = vld [vmem:[#allocation27_spill] sm:$0xff] }
 0x34b   : > { %vm3039_vm1 = vcmp.eq.s32.totalorder %v12960_v34, 0  ;;  %vm3042_vm4 = vcmp.eq.s32.totalorder %v12960_v34, 2  ;;  %8159 = vcosq.f32 %v3238_v24  ;;  %vm2832_vm6 = vcmp.lt.s32.totalorder %v12595_v10, 2 }
 0x34c   : > { %v12997_v42 = vsel %vm2833_vm14, %v12654_v44, %v18744_v6  ;;  %v3236_v52 = vsub.s32 4, %v12502_v13  ;;  %8161 = vsinq.f32 %v3238_v24  ;;  %v3598_v63 = vsel %vm3594_vm12, %v3578_v43, %v12899_v39  ;;  %v8156_v57 = vpop.eup %8155  ;;  %v18748_v6 = vld [vmem:[#allocation20_spill] sm:$0xff] }
 0x34d   : > { %v3600_v44 = vsel %vm3596_vm13, %v12901_v33, %v3599_v16  ;;  %vm2935_vm7 = vcmp.lt.s32.totalorder %v12793_v2, 2  ;;  %v2937_v58 = vxor.u32 2147483648, %v12896_v45  ;;  %vm3255_vm10 = vcmp.lt.s32.totalorder %v18745_v35, 0  ;;  %v8158_v47 = vpop.eup %8157 }
 0x34e   : > { %v3424_v1 = vclz %v7525_v7  ;;  %v3522_v55 = vshll.u32 %v12984_v8, 30  ;;  %v3675_v19 = vadd.s32 1, %v7536_v48  ;;  %v2941_v39 = vsel %vm2939_vm0, %v2940_v4, %v12896_v45  ;;  %v18747_v4 = vld [vmem:[#allocation28_spill] sm:$0xff] }
 0x34f   : > { %vm3142_vm11 = vcmp.eq.s32.totalorder %v12988_v62, 0  ;;  %v3328_v33 = vor.u32 %v3327_v0, %v3326_v36  ;;  %v3332_v31 = vor.u32 4788187, %v3331_v28  ;;  %v3043_v59 = vxor.u32 2147483648, %v8152_v61 }
 0x350   : > { %vm3145_vm2 = vcmp.eq.s32.totalorder %v12988_v62, 2  ;;  %v3601_v24 = vsel %vm3595_vm15, %v3598_v63, %v3600_v44  ;;  %v3620_v43 = vadd.s32 1, %v12970_v49  ;;  %vm2830_vm12 = vweird.f32 %v18746_v9 }
 0x351   : > { %v3040_v7 = vxor.u32 2147483648, %v8154_v3  ;;  %v3146_v16 = vxor.u32 2147483648, %v8156_v57  ;;  %v3237_v45 = vsel %vm3152_vm9, %v3236_v52, %v12502_v13  ;;  %vm3619_vm13 = vc.u32 %v12981_v26, %v12969_v23 }
 0x352   : > { %vm2933_vm14 = vweird.f32 %v18747_v4  ;;  %vm3036_vm0 = vweird.f32 %v18728_v54  ;;  %vm3139_vm8 = vweird.f32 %v18735_v51  ;;  %v3143_v38 = vxor.u32 2147483648, %v8158_v47 }
 0x353   : > { %v7526_v48 = vadd.s32 4294967294, %v3424_v1  ;;  %v13032_v36 = vsub.s32 %v12920_v60, %v3522_v55  ;;  %vm3676_vm15 = vcmp.gt.s32.totalorder %v3675_v19, 0  ;;  %v3333_v0 = vand.u32 2147483647, %v3332_v31  ;;  %v18749_v1 = vld [vmem:[#allocation37_spill] sm:$0xff] }
 0x354   : > { %v3335_v28 = vcvt.s32.f32 %v3328_v33  ;;  %v3339_v63 = vsub.s32 4, %v18748_v6  ;;  %v3617_v13 = vmul.u32 %v12945_v11, %v3601_v24  ;;  %v2938_v52 = vsel %vm2936_vm3, %v12880_v12, %v2937_v58 }
 0x355   : > { %v3239_v44 = vsel %vm12941_vm5, 0, %v3237_v45  ;;  %v3621_v29 = vsel %vm3619_vm13, %v3620_v43, %v12970_v49  ;;  %v3771_v27 = vand.u32 2139095040, %v18749_v1  ;;  %v3041_v60 = vsel %vm3039_vm1, %v8152_v61, %v3040_v7  ;;  %v8160_v33 = vpop.eup %8159 }
 0x356   : > { %v3044_v55 = vsel %vm3042_vm4, %v3043_v59, %v8154_v3  ;;  %vm3141_vm9 = vcmp.lt.s32.totalorder %v12988_v62, 2  ;;  %v3677_v11 = vsel %vm3676_vm15, %v3675_v19, 0  ;;  %v3144_v12 = vsel %vm3142_vm11, %v8156_v57, %v3143_v38  ;;  %v8162_v58 = vpop.eup %8161 }
 0x357   : > { %v3147_v18 = vsel %vm3145_vm2, %v3146_v16, %v8158_v47  ;;  %vm7527_vm5 = vcmp.lt.s32.totalorder %v7526_v48, 0  ;;  %v3525_v49 = vsub.s32 0, %v13032_v36  ;;  %v13053_v31 = vand.u32 3, %v3239_v44 }
 0x358   : > { %v3336_v61 = vmul.f32 %v3335_v28, %v3333_v0  ;;  %v3340_v3 = vsel %vm3255_vm10, %v3339_v63, %v18748_v6  ;;  %v13058_v59 = vadd.s32 %v3621_v29, %v3617_v13  ;;  %v2839_v57 = vsel %vm2832_vm6, %v12997_v42, %v12803_v21 }
 0x359   : > { %v18750_v19 = vand.u32 2147483647, %v18745_v35  ;;  %v3679_v24 = vand.u32 31, %v3677_v11  ;;  %v3772_v43 = vshrl.u32 %v3771_v27, 23  ;;  %v2942_v7 = vsel %vm2935_vm7, %v2938_v52, %v2941_v39 }
 0x35a   : > { %vm18753_vm1 = vcmp.lt.s32.totalorder %v12960_v34, 2  ;;  %v3148_v16 = vsel %vm3141_vm9, %v3144_v12, %v3147_v18  ;;  %v13076_v45 = vsel %vm7527_vm5, 0, %v7526_v48  ;;  %v3246_v10 = vxor.u32 2147483648, %v8162_v58 }
 0x35b   : > { %vm13066_vm3 = vcmp.le.f32.partialorder %v18750_v19, 0.7853982  ;;  %v3045_v29 = vsel %vm18753_vm1, %v3041_v60, %v3044_v55  ;;  %v3249_v21 = vxor.u32 2147483648, %v8160_v33  ;;  %v7529_v38 = vmin.u32 %v3525_v49, %v13032_v36 }
 0x35c   : > { %v3342_v42 = vsel %vm13066_vm3, 0, %v3340_v3  ;;  %vm3245_vm4 = vcmp.eq.s32.totalorder %v13053_v31, 0  ;;  %vm3248_vm6 = vcmp.eq.s32.totalorder %v13053_v31, 2  ;;  %v3337_v27 = vxor.u32 2147483648, %v3336_v61 }
 0x35d   : > { %v3623_v2 = vadd.s32 536870912, %v13058_v59  ;;  %v13086_v34 = vsel %vm2830_vm12, nan, %v2839_v57  ;;  %v3432_v62 = vsub.s32 4294967266, %v13076_v45  ;;  %v13089_v39 = vsub.s32 32, %v3679_v24 }
 0x35e   : > { %18754 = vst [vmem:[#allocation31_spill] sm:$0xff] %v13086_v34  ;;  %v7540_v48 = vadd.s32 4294967169, %v3772_v43  ;;  %v13093_v0 = vsel %vm2933_vm14, nan, %v2942_v7  ;;  %v13097_v28 = vsel %vm3036_vm0, nan, %v3045_v29  ;;  %v13101_v6 = vsel %vm3139_vm8, nan, %v3148_v16 }
 0x35f   : > { %18755 = vst [vmem:[#allocation35_spill] sm:$0xff] %v13093_v0  ;;  %18756 = vst [vmem:[#allocation29_spill] sm:$0xff] %v13097_v28  ;;  %v13103_v9 = vand.u32 3, %v3342_v42  ;;  %v13105_v63 = vsel %vm3245_vm4, %v8160_v33, %v3246_v10  ;;  %v3250_v13 = vsel %vm3248_vm6, %v3249_v21, %v8162_v58  ;;  %v3412_v52 = vadd.s32 %v12712_v53, %v12709_v40  ;;  %v18758_v58 = vld [vmem:[#allocation38_spill] sm:$0xff]  ;;  %v18759_v21 = vld [vmem:[#allocation33_spill] sm:$0xff] }
 0x360   : > { %18757 = vst [vmem:[#allocation30_spill] sm:$0xff] %v13101_v6  ;;  %v3527_v44 = vclz %v7529_v38  ;;  %v3338_v4 = vsel %vm3255_vm10, %v3337_v27, %v3336_v61  ;;  %v3428_v54 = vsub.s32 32, %v13076_v45  ;;  %v13112_v60 = vshrl.u32 %v3623_v2, 30 }
 0x361   : > { %v18428_v51 = vand.u32 2147483647, %v18739_v37  ;;  %v3433_v55 = vadd.s32 127, %v3432_v62  ;;  %v3691_v12 = vshll.u32 %v18504_v41, %v3679_v24  ;;  %v3692_v33 = vshrl.u32 %v18505_v32, %v13089_v39 }
 0x362   : > { %v3778_v18 = vadd.s32 1, %v7540_v48  ;;  %v13118_v49 = vshrl.u32 %v3677_v11, 5  ;;  %v3694_v40 = vshll.u32 %v18505_v32, %v3679_v24  ;;  %v3695_v53 = vshrl.u32 %v18506_v30, %v13089_v39 }
 0x363   : > { %v3874_v61 = vand.u32 2139095040, %v18758_v58  ;;  %vm3244_vm7 = vcmp.lt.s32.totalorder %v13053_v31, 2  ;;  %v7530_v3 = vadd.s32 4294967294, %v3527_v44  ;;  %v3682_v57 = vshll.u32 %v18507_v15, %v3679_v24 }
 0x364   : > { %v3683_v19 = vshrl.u32 %v18508_v5, %v13089_v39  ;;  %v3685_v43 = vshll.u32 %v18508_v5, %v3679_v24  ;;  %v3625_v11 = vshll.u32 %v13112_v60, 30  ;;  %v3686_v7 = vshrl.u32 %v18509_v17, %v13089_v39 }
 0x365   : > { %v3688_v29 = vshll.u32 %v18509_v17, %v3679_v24  ;;  %v3689_v16 = vshrl.u32 %v18504_v41, %v13089_v39  ;;  %v3341_v10 = vsel %vm13066_vm3, %v18745_v35, %v3338_v4  ;;  %vm3358_vm8 = vcmp.lt.s32.totalorder %v18759_v21, 0 }
 0x366   : > { %v3672_v42 = vand.u32 8388607, %v18428_v51  ;;  %v3693_v38 = vor.u32 %v3692_v33, %v3691_v12  ;;  %vm3779_vm10 = vcmp.gt.s32.totalorder %v3778_v18, 0  ;;  %v3429_v27 = vshll.u32 %v12917_v22, %v13076_v45 }
 0x367   : > { %v3696_v2 = vor.u32 %v3695_v53, %v3694_v40  ;;  %vm3700_vm11 = vcmp.lt.s32.totalorder %v13118_v49, 4  ;;  %v3875_v24 = vshrl.u32 %v3874_v61, 23  ;;  %v3430_v62 = vshrl.u32 %v3412_v52, %v3428_v54 }
 0x368   : > { %v3434_v48 = vshll.u32 %v3433_v55, 23  ;;  %vm7531_vm2 = vcmp.lt.s32.totalorder %v7530_v3, 0  ;;  %v3684_v44 = vor.u32 %v3683_v19, %v3682_v57  ;;  %v13145_v47 = vsub.s32 %v13058_v59, %v3625_v11 }
 0x369   : > { %v3687_v4 = vor.u32 %v3686_v7, %v3685_v43  ;;  %v3690_v6 = vor.u32 %v3689_v16, %v3688_v29  ;;  %v3780_v28 = vsel %vm3779_vm10, %v3778_v18, 0  ;;  %v3442_v12 = vsub.s32 4, %v12868_v46 }
 0x36a   : > { %vm3697_vm12 = vcmp.lt.s32.totalorder %v13118_v49, 1  ;;  %vm3699_vm13 = vcmp.lt.s32.totalorder %v13118_v49, 3  ;;  %v3706_v22 = vsel %vm3700_vm11, %v3693_v38, 920167782  ;;  %8163 = vcosq.f32 %v3341_v10 }
 0x36b   : > { %v3673_v45 = vor.u32 8388608, %v3672_v42  ;;  %v3710_v52 = vsel %vm3700_vm11, %v3696_v2, 1326507024  ;;  %v7544_v54 = vadd.s32 4294967169, %v3875_v24  ;;  %v3431_v59 = vor.u32 %v3430_v62, %v3429_v27 }
 0x36c   : > { %v3435_v55 = vor.u32 4788187, %v3434_v48  ;;  %v3530_v33 = vsel %vm7531_vm2, 0, %v7530_v3  ;;  %v3782_v18 = vand.u32 31, %v3780_v28  ;;  %v3628_v40 = vsub.s32 0, %v13145_v47 }
 0x36d   : > { %vm3698_vm14 = vcmp.lt.s32.totalorder %v13118_v49, 2  ;;  %v3705_v53 = vsel %vm3697_vm12, %v3684_v44, %v3687_v4  ;;  %v3707_v61 = vsel %vm3699_vm13, %v3690_v6, %v3706_v22  ;;  %v3515_v57 = vadd.s32 %v12825_v25, %v12839_v14 }
 0x36e   : > { %v3531_v19 = vsub.s32 32, %v3530_v33  ;;  %v3709_v43 = vsel %vm3697_vm12, %v3687_v4, %v3690_v6  ;;  %v3711_v3 = vsel %vm3699_vm13, %v3693_v38, %v3710_v52  ;;  %v13170_v11 = vsel %vm3244_vm7, %v13105_v63, %v3250_v13 }
 0x36f   : > { %v13175_v7 = vsel %vm3358_vm8, %v3442_v12, %v12868_v46  ;;  %v13177_v29 = vshll.u32 %v3673_v45, 8  ;;  %v3881_v25 = vadd.s32 1, %v7544_v54  ;;  %8165 = vsinq.f32 %v3341_v10 }
 0x370   : > { %v3708_v14 = vsel %vm3698_vm14, %v3705_v53, %v3707_v61  ;;  %v18429_v16 = vand.u32 2147483647, %v18749_v1  ;;  %v13182_v42 = vsub.s32 32, %v3782_v18  ;;  %v3436_v38 = vand.u32 2147483647, %v3435_v55 }
 0x371   : > { %v3438_v31 = vcvt.s32.f32 %v3431_v59  ;;  %v7533_v63 = vmin.u32 %v3628_v40, %v13145_v47  ;;  %v3712_v13 = vsel %vm3698_vm14, %v3709_v43, %v3711_v3  ;;  %v3532_v46 = vshll.u32 %v13032_v36, %v3530_v33 }
 0x372   : > { %v3533_v27 = vshrl.u32 %v3515_v57, %v3531_v19  ;;  %v3535_v2 = vsub.s32 4294967266, %v3530_v33  ;;  %v3681_v10 = vshrl.u32 %v18507_v15, %v13089_v39  ;;  %v3702_v24 = vsel %vm3700_vm11, %v3690_v6, 2102212464 }
 0x373   : > { %v13193_v62 = vmul.u32.u64.low %v13177_v29, %v3708_v14  ;;  %v13194_v48 = vmul.u32.u64.high %v13177_v29, %v3708_v14, %v13193_v62  ;;  %vm3882_vm0 = vcmp.gt.s32.totalorder %v3881_v25, 0  ;;  %v3794_v36 = vshll.u32 %v18504_v41, %v3782_v18 }
 0x374   : > { %v13198_v12 = vmul.u32.u64.low %v13177_v29, %v3712_v13  ;;  %v13199_v22 = vmul.u32.u64.high %v13177_v29, %v3712_v13, %v13198_v12  ;;  %v3795_v45 = vshrl.u32 %v18505_v32, %v13182_v42  ;;  %v13204_v52 = vpop.eup %8163  ;;  %v3630_v39 = vclz %v7533_v63 }
 0x375   : > { %v13206_v54 = vshrl.u32 %v3780_v28, 5  ;;  %v3797_v6 = vshll.u32 %v18505_v32, %v3782_v18  ;;  %v3798_v59 = vshrl.u32 %v18506_v30, %v13182_v42  ;;  %v3536_v55 = vadd.s32 127, %v3535_v2 }
 0x376   : > { %v3785_v33 = vshll.u32 %v18507_v15, %v3782_v18  ;;  %v3788_v40 = vshll.u32 %v18508_v5, %v3782_v18  ;;  %v3883_v53 = vsel %vm3882_vm0, %v3881_v25, 0  ;;  %v3786_v61 = vshrl.u32 %v18508_v5, %v13182_v42 }
 0x377   : > { %v3789_v57 = vshrl.u32 %v18509_v17, %v13182_v42  ;;  %v3791_v28 = vshll.u32 %v18509_v17, %v3782_v18  ;;  %v3792_v19 = vshrl.u32 %v18504_v41, %v13182_v42  ;;  %v3701_v43 = vsel %vm3697_vm12, %v3681_v10, %v3684_v44 }
 0x378   : > { %v3703_v3 = vsel %vm3699_vm13, %v3687_v4, %v3702_v24  ;;  %v3775_v25 = vand.u32 8388607, %v18429_v16  ;;  %v3796_v14 = vor.u32 %v3795_v45, %v3794_v36  ;;  %v7534_v63 = vadd.s32 4294967294, %v3630_v39 }
 0x379   : > { %v3799_v13 = vor.u32 %v3798_v59, %v3797_v6  ;;  %vm3803_vm15 = vcmp.lt.s32.totalorder %v13206_v54, 4  ;;  %v3885_v2 = vand.u32 31, %v3883_v53  ;;  %v13227_v12 = vpop.eup %8165  ;;  %v13230_v51 = vmul.f32 %v3438_v31, %v3436_v38 }
 0x37a   : > { %v13232_v0 = vor.u32 %v3533_v27, %v3532_v46  ;;  %v3537_v44 = vshll.u32 %v3536_v55, 23  ;;  %v3704_v4 = vsel %vm3698_vm14, %v3701_v43, %v3703_v3  ;;  %v13236_v10 = vor.u32 %v3786_v61, %v3785_v33 }
 0x37b   : > { %v13238_v24 = vor.u32 %v3789_v57, %v3788_v40  ;;  %v3793_v36 = vor.u32 %v3792_v19, %v3791_v28  ;;  %v3776_v45 = vor.u32 8388608, %v3775_v25  ;;  %vm3800_vm9 = vcmp.lt.s32.totalorder %v13206_v54, 1  ;;  %v18760_v19 = vld [vmem:[#allocation39_spill] sm:$0xff] }
 0x37c   : > { %vm3802_vm5 = vcmp.lt.s32.totalorder %v13206_v54, 3  ;;  %v3809_v38 = vsel %vm3803_vm15, %v3796_v14, 920167782  ;;  %vm7535_vm3 = vcmp.lt.s32.totalorder %v7534_v63, 0  ;;  %v3723_v31 = vadd.s32 1, %v13194_v48 }
 0x37d   : > { %v3813_v49 = vsel %vm3803_vm15, %v3799_v13, 1326507024  ;;  %v13247_v46 = vsub.s32 32, %v3885_v2  ;;  %v13249_v27 = vor.u32 4788187, %v3537_v44  ;;  %v13253_v39 = vadd.s32 %v12969_v23, %v12981_v26 }
 0x37e   : > { %v3720_v6 = vmul.u32 %v13177_v29, %v3704_v4  ;;  %vm3722_vm1 = vc.u32 %v13199_v22, %v13193_v62  ;;  %vm3801_vm4 = vcmp.lt.s32.totalorder %v13206_v54, 2  ;;  %v3808_v59 = vsel %vm3800_vm9, %v13236_v10, %v13238_v24 }
 0x37f   : > { %v3810_v55 = vsel %vm3802_vm5, %v3793_v36, %v3809_v38  ;;  %v18430_v33 = vand.u32 2147483647, %v18758_v58  ;;  %v13266_v40 = vsel %vm7535_vm3, 0, %v7534_v63  ;;  %v3812_v23 = vsel %vm3800_vm9, %v13238_v24, %v3793_v36 }
 0x380   : > { %v3814_v26 = vsel %vm3802_vm5, %v3796_v14, %v3813_v49  ;;  %v13273_v29 = vshll.u32 %v3776_v45, 8  ;;  %v3724_v61 = vsel %vm3722_vm1, %v3723_v31, %v13194_v48  ;;  %v3897_v57 = vshll.u32 %v18504_v41, %v3885_v2 }
 0x381   : > { %v3898_v28 = vshrl.u32 %v18505_v32, %v13247_v46  ;;  %v3977_v43 = vand.u32 2139095040, %v18760_v19  ;;  %v3811_v3 = vsel %vm3801_vm4, %v3808_v59, %v3810_v55  ;;  %v13282_v25 = vshrl.u32 %v3883_v53, 5 }
 0x382   : > { %v3900_v63 = vshll.u32 %v18505_v32, %v3885_v2  ;;  %v3901_v14 = vshrl.u32 %v18506_v30, %v13247_v46  ;;  %v3815_v48 = vsel %vm3801_vm4, %v3812_v23, %v3814_v26  ;;  %v3888_v13 = vshll.u32 %v18507_v15, %v3885_v2 }
 0x383   : > { %v3891_v44 = vshll.u32 %v18508_v5, %v3885_v2  ;;  %v3894_v4 = vshll.u32 %v18509_v17, %v3885_v2  ;;  %v3889_v45 = vshrl.u32 %v18508_v5, %v13247_v46  ;;  %v3892_v53 = vshrl.u32 %v18509_v17, %v13247_v46 }
 0x384   : > { %v3895_v38 = vshrl.u32 %v18504_v41, %v13247_v46  ;;  %v3978_v31 = vshrl.u32 %v3977_v43, 23  ;;  %v3638_v49 = vsub.s32 4294967266, %v13266_v40  ;;  %v13299_v59 = vadd.s32 %v3724_v61, %v3720_v6 }
 0x385   : > { %v3878_v55 = vand.u32 8388607, %v18430_v33  ;;  %v3899_v23 = vor.u32 %v3898_v28, %v3897_v57  ;;  %v13304_v2 = vmul.u32.u64.low %v13273_v29, %v3811_v3  ;;  %v13305_v26 = vmul.u32.u64.high %v13273_v29, %v3811_v3, %v13304_v2 }
 0x386   : > { %v3902_v16 = vor.u32 %v3901_v14, %v3900_v63  ;;  %vm3906_vm6 = vcmp.lt.s32.totalorder %v13282_v25, 4  ;;  %v3784_v18 = vshrl.u32 %v18507_v15, %v13182_v42  ;;  %v3805_v43 = vsel %vm3803_vm15, %v3793_v36, 2102212464 }
 0x387   : > { %v13314_v6 = vmul.u32.u64.low %v13273_v29, %v3815_v48  ;;  %v13315_v61 = vmul.u32.u64.high %v13273_v29, %v3815_v48, %v13314_v6  ;;  %v13317_v33 = vor.u32 %v3889_v45, %v3888_v13  ;;  %v13319_v57 = vor.u32 %v3892_v53, %v3891_v44  ;;  %v18761_v53 = vld [vmem:[#allocation40_spill] sm:$0xff] }
 0x388   : > { %v3896_v28 = vor.u32 %v3895_v38, %v3894_v4  ;;  %v7548_v3 = vadd.s32 4294967169, %v3978_v31  ;;  %v3726_v63 = vadd.s32 536870912, %v13299_v59  ;;  %vm3903_vm7 = vcmp.lt.s32.totalorder %v13282_v25, 1 }
 0x389   : > { %vm3905_vm10 = vcmp.lt.s32.totalorder %v13282_v25, 3  ;;  %v3912_v42 = vsel %vm3906_vm6, %v3899_v23, 920167782  ;;  %v3541_v36 = vcvt.s32.f32 %v13232_v0  ;;  %v3634_v14 = vsub.s32 32, %v13266_v40 }
 0x38a   : > { %v3879_v48 = vor.u32 8388608, %v3878_v55  ;;  %v3916_v13 = vsel %vm3906_vm6, %v3902_v16, 1326507024  ;;  %vm3242_vm11 = vweird.f32 %v18695_v56  ;;  %v3639_v44 = vadd.s32 127, %v3638_v49 }
 0x38b   : > { %v3804_v4 = vsel %vm3800_vm9, %v3784_v18, %v13236_v10  ;;  %v3806_v45 = vsel %vm3802_vm5, %v13238_v24, %v3805_v43  ;;  %v4080_v38 = vand.u32 2139095040, %v18761_v53  ;;  %vm3348_vm2 = vcmp.eq.s32.totalorder %v13103_v9, 0 }
 0x38c   : > { %vm3351_vm12 = vcmp.eq.s32.totalorder %v13103_v9, 2  ;;  %v18762_v0 = vand.u32 2147483647, %v18759_v21  ;;  %vm3904_vm14 = vcmp.lt.s32.totalorder %v13282_v25, 2  ;;  %v3911_v18 = vsel %vm3903_vm7, %v13317_v33, %v13319_v57 }
 0x38d   : > { %v3913_v10 = vsel %vm3905_vm10, %v3896_v28, %v3912_v42  ;;  %v3984_v24 = vadd.s32 1, %v7548_v3  ;;  %vm3461_vm0 = vcmp.lt.s32.totalorder %v18720_v50, 0  ;;  %v3539_v31 = vand.u32 2147483647, %v13249_v27 }
 0x38e   : > { %vm13342_vm13 = vcmp.le.f32.partialorder %v18762_v0, 0.7853982  ;;  %v13355_v49 = vshrl.u32 %v3726_v63, 30  ;;  %v3915_v55 = vsel %vm3903_vm7, %v13319_v57, %v3896_v28  ;;  %v3917_v43 = vsel %vm3905_vm10, %v3899_v23, %v3916_v13 }
 0x38f   : > { %v3440_v6 = vxor.u32 2147483648, %v13230_v51  ;;  %v3807_v0 = vsel %vm3801_vm4, %v3804_v4, %v3806_v45  ;;  %v3826_v3 = vadd.s32 1, %v13305_v26  ;;  %v13366_v42 = vshll.u32 %v3879_v48, 8 }
 0x390   : > { %vm3347_vm15 = vcmp.lt.s32.totalorder %v13103_v9, 2  ;;  %v3635_v27 = vshll.u32 %v13145_v47, %v13266_v40  ;;  %vm3825_vm9 = vc.u32 %v13315_v61, %v13304_v2  ;;  %v3914_v23 = vsel %vm3904_vm14, %v3911_v18, %v3913_v10 }
 0x391   : > { %v4081_v63 = vshrl.u32 %v4080_v38, 23  ;;  %v18765_v13 = vand.u32 2147483647, %v18720_v50  ;;  %v3636_v48 = vshrl.u32 %v13253_v39, %v3634_v14  ;;  %v3640_v4 = vshll.u32 %v3639_v44, 23 }
 0x392   : > { %v3918_v45 = vsel %vm3904_vm14, %v3915_v55, %v3917_v43  ;;  %vm3985_vm3 = vcmp.gt.s32.totalorder %v3984_v24, 0  ;;  %v3349_v47 = vxor.u32 2147483648, %v13227_v12  ;;  %v3542_v40 = vmul.f32 %v3541_v36, %v3539_v31 }
 0x393   : > { %vm13377_vm5 = vcmp.le.f32.partialorder %v18765_v13, 0.7853982  ;;  %v3728_v34 = vshll.u32 %v13355_v49, 30  ;;  %v3823_v38 = vmul.u32 %v13273_v29, %v3807_v0  ;;  %v3545_v18 = vsub.s32 4, %v12984_v8 }
 0x394   : > { %v3827_v10 = vsel %vm3825_vm9, %v3826_v3, %v13305_v26  ;;  %v13390_v13 = vmul.u32.u64.low %v13366_v42, %v3914_v23  ;;  %v13391_v58 = vmul.u32.u64.high %v13366_v42, %v3914_v23, %v13390_v13  ;;  %v3986_v44 = vsel %vm3985_vm3, %v3984_v24, 0 }
 0x395   : > { %v13395_v39 = vmul.u32.u64.low %v13366_v42, %v3918_v45  ;;  %v13396_v14 = vmul.u32.u64.high %v13366_v42, %v3918_v45, %v13395_v39  ;;  %v7552_v55 = vadd.s32 4294967169, %v4081_v63  ;;  %v3441_v36 = vsel %vm3358_vm8, %v3440_v6, %v13230_v51 }
 0x396   : > { %v3637_v29 = vor.u32 %v3636_v48, %v3635_v27  ;;  %v3641_v31 = vor.u32 4788187, %v3640_v4  ;;  %v3887_v26 = vshrl.u32 %v18507_v15, %v13247_v46  ;;  %v3543_v43 = vxor.u32 2147483648, %v3542_v40 }
 0x397   : > { %v13404_v0 = vsub.s32 %v13299_v59, %v3728_v34  ;;  %v13406_v3 = vadd.s32 %v3827_v10, %v3823_v38  ;;  %v3908_v23 = vsel %vm3906_vm6, %v3896_v28, 2102212464  ;;  %v13413_v24 = vsel %vm3242_vm11, nan, %v13170_v11 }
 0x398   : > { %18768 = vst [vmem:[#allocation36_spill] sm:$0xff] %v13413_v24  ;;  %v3445_v51 = vsel %vm13342_vm13, 0, %v13175_v7  ;;  %v3546_v46 = vsel %vm3461_vm0, %v3545_v18, %v12984_v8  ;;  %v3988_v34 = vand.u32 31, %v3986_v44  ;;  %v3350_v59 = vsel %vm3348_vm2, %v13204_v52, %v3349_v47 }
 0x399   : > { %v18769_v28 = vxor.u32 2147483648, %v13204_v52  ;;  %v3444_v11 = vsel %vm13342_vm13, %v18759_v21, %v3441_v36  ;;  %v4087_v7 = vadd.s32 1, %v7552_v55  ;;  %v3642_v6 = vand.u32 2147483647, %v3641_v31 }
 0x39a   : > { %v3644_v27 = vcvt.s32.f32 %v3637_v29  ;;  %v3907_v8 = vsel %vm3903_vm7, %v3887_v26, %v13317_v33  ;;  %v3909_v63 = vsel %vm3905_vm10, %v13319_v57, %v3908_v23  ;;  %v3544_v52 = vsel %vm3461_vm0, %v3543_v43, %v3542_v40 }
 0x39b   : > { %v3353_v56 = vsel %vm3351_vm12, %v18769_v28, %v13227_v12  ;;  %v3548_v12 = vsel %vm13377_vm5, 0, %v3546_v46  ;;  %v3731_v16 = vsub.s32 0, %v13404_v0  ;;  %v3829_v48 = vadd.s32 536870912, %v13406_v3 }
 0x39c   : > { %v13446_v4 = vsel %vm3347_vm15, %v3350_v59, %v3353_v56  ;;  %v13448_v45 = vand.u32 3, %v3445_v51  ;;  %v3929_v33 = vadd.s32 1, %v13391_v58  ;;  %v13451_v47 = vsub.s32 32, %v3988_v34 }
 0x39d   : > { %8167 = vcosq.f32 %v3444_v11  ;;  %v3910_v57 = vsel %vm3904_vm14, %v3907_v8, %v3909_v63  ;;  %vm3928_vm8 = vc.u32 %v13396_v14, %v13390_v13  ;;  %vm4088_vm1 = vcmp.gt.s32.totalorder %v4087_v7, 0 }
 0x39e   : > { %8169 = vsinq.f32 %v3444_v11  ;;  %v3547_v9 = vsel %vm13377_vm5, %v18720_v50, %v3544_v52  ;;  %v13460_v40 = vand.u32 3, %v3548_v12  ;;  %v13462_v38 = vmul.f32 %v3644_v27, %v3642_v6 }
 0x39f   : > { %v7537_v18 = vmin.u32 %v3731_v16, %v13404_v0  ;;  %v13465_v10 = vshrl.u32 %v3829_v48, 30  ;;  %v18433_v25 = vand.u32 2147483647, %v18760_v19  ;;  %v4089_v39 = vsel %vm4088_vm1, %v4087_v7, 0 }
 0x3a0   : > { %v3926_v55 = vmul.u32 %v13366_v42, %v3910_v57  ;;  %v3930_v36 = vsel %vm3928_vm8, %v3929_v33, %v13391_v58  ;;  %v4000_v29 = vshll.u32 %v18504_v41, %v3988_v34  ;;  %v4001_v54 = vshrl.u32 %v18505_v32, %v13451_v47 }
 0x3a1   : > { %v13473_v31 = vshrl.u32 %v3986_v44, 5  ;;  %v3991_v26 = vshll.u32 %v18507_v15, %v3988_v34  ;;  %v3994_v43 = vshll.u32 %v18508_v5, %v3988_v34  ;;  %v4091_v23 = vand.u32 31, %v4089_v39 }
 0x3a2   : > { %v3992_v51 = vshrl.u32 %v18508_v5, %v13451_v47  ;;  %v3995_v42 = vshrl.u32 %v18509_v17, %v13451_v47  ;;  %v4003_v58 = vshll.u32 %v18505_v32, %v3988_v34  ;;  %v4004_v46 = vshrl.u32 %v18506_v30, %v13451_v47 }
 0x3a3   : > { %vm3564_vm4 = vcmp.lt.s32.totalorder %v18726_v20, 0  ;;  %v3733_v44 = vclz %v7537_v18  ;;  %v3831_v59 = vshll.u32 %v13465_v10, 30  ;;  %v3997_v28 = vshll.u32 %v18509_v17, %v3988_v34 }
 0x3a4   : > { %v3998_v56 = vshrl.u32 %v18504_v41, %v13451_v47  ;;  %8171 = vcosq.f32 %v3547_v9  ;;  %v3981_v11 = vand.u32 8388607, %v18433_v25  ;;  %v4002_v7 = vor.u32 %v4001_v54, %v4000_v29 }
 0x3a5   : > { %v18432_v6 = vand.u32 2147483647, %v18761_v53  ;;  %8173 = vsinq.f32 %v3547_v9  ;;  %v13492_v27 = vadd.s32 %v3930_v36, %v3926_v55  ;;  %vm4009_vm6 = vcmp.lt.s32.totalorder %v13473_v31, 4 }
 0x3a6   : > { %v13495_v8 = vsub.s32 32, %v4091_v23  ;;  %v3646_v63 = vxor.u32 2147483648, %v13462_v38  ;;  %v13498_v34 = vor.u32 %v3992_v51, %v3991_v26  ;;  %v13500_v52 = vor.u32 %v3995_v42, %v3994_v43 }
 0x3a7   : > { %v4005_v12 = vor.u32 %v4004_v46, %v4003_v58  ;;  %v13502_v16 = vpop.eup %8167  ;;  %v7538_v48 = vadd.s32 4294967294, %v3733_v44  ;;  %v13505_v33 = vsub.s32 %v13406_v3, %v3831_v59  ;;  %v3999_v57 = vor.u32 %v3998_v56, %v3997_v28 }
 0x3a8   : > { %vm4006_vm7 = vcmp.lt.s32.totalorder %v13473_v31, 1  ;;  %v13508_v9 = vpop.eup %8169  ;;  %v3982_v18 = vor.u32 8388608, %v3981_v11  ;;  %vm4008_vm10 = vcmp.lt.s32.totalorder %v13473_v31, 3  ;;  %v4015_v55 = vsel %vm4009_vm6, %v4002_v7, 920167782 }
 0x3a9   : > { %v4084_v36 = vand.u32 8388607, %v18432_v6  ;;  %v3932_v29 = vadd.s32 536870912, %v13492_v27  ;;  %vm4007_vm11 = vcmp.lt.s32.totalorder %v13473_v31, 2  ;;  %v4103_v3 = vshll.u32 %v18504_v41, %v4091_v23 }
 0x3aa   : > { %v4104_v54 = vshrl.u32 %v18505_v32, %v13495_v8  ;;  %v4014_v26 = vsel %vm4006_vm7, %v13498_v34, %v13500_v52  ;;  %v4019_v43 = vsel %vm4009_vm6, %v4005_v12, 1326507024  ;;  %v13526_v51 = vshrl.u32 %v4089_v39, 5 }
 0x3ab   : > { %v4106_v42 = vshll.u32 %v18505_v32, %v4091_v23  ;;  %v4016_v58 = vsel %vm4008_vm10, %v3999_v57, %v4015_v55  ;;  %v4094_v46 = vshll.u32 %v18507_v15, %v4091_v23  ;;  %v4097_v44 = vshll.u32 %v18508_v5, %v4091_v23 }
 0x3ac   : > { %v4107_v59 = vshrl.u32 %v18506_v30, %v13495_v8  ;;  %vm3345_vm2 = vweird.f32 %v18745_v35  ;;  %v4095_v28 = vshrl.u32 %v18508_v5, %v13495_v8  ;;  %v4098_v39 = vshrl.u32 %v18509_v17, %v13495_v8 }
 0x3ad   : > { %v4100_v56 = vshll.u32 %v18509_v17, %v4091_v23  ;;  %v4101_v11 = vshrl.u32 %v18504_v41, %v13495_v8  ;;  %v18770_v12 = vand.u32 2147483647, %v18726_v20  ;;  %v13549_v6 = vshrl.u32 %v3932_v29, 30 }
 0x3ae   : > { %v4018_v25 = vsel %vm4006_vm7, %v13500_v52, %v3999_v57  ;;  %v4020_v24 = vsel %vm4008_vm10, %v4002_v7, %v4019_v43  ;;  %v4105_v53 = vor.u32 %v4104_v54, %v4103_v3  ;;  %v13556_v23 = vpop.eup %8171  ;;  %v3647_v19 = vsel %vm3564_vm4, %v3646_v63, %v13462_v38 }
 0x3af   : > { %vm13545_vm12 = vcmp.le.f32.partialorder %v18770_v12, 0.7853982  ;;  %v13561_v12 = vshll.u32 %v3982_v18, 8  ;;  %v4108_v50 = vor.u32 %v4107_v59, %v4106_v42  ;;  %vm4112_vm13 = vcmp.lt.s32.totalorder %v13526_v51, 4  ;;  %v13564_v29 = vpop.eup %8173 }
 0x3b0   : > { %vm7539_vm14 = vcmp.lt.s32.totalorder %v7538_v48, 0  ;;  %v3834_v1 = vsub.s32 0, %v13505_v33  ;;  %v4017_v7 = vsel %vm4007_vm11, %v4014_v26, %v4016_v58  ;;  %v4085_v3 = vor.u32 8388608, %v4084_v36 }
 0x3b1   : > { %v4021_v54 = vsel %vm4007_vm11, %v4018_v25, %v4020_v24  ;;  %v13571_v43 = vor.u32 %v4095_v28, %v4094_v46  ;;  %v13573_v38 = vor.u32 %v4098_v39, %v4097_v44  ;;  %v4102_v63 = vor.u32 %v4101_v11, %v4100_v56 }
 0x3b2   : > { %v3934_v18 = vshll.u32 %v13549_v6, 30  ;;  %vm4109_vm0 = vcmp.lt.s32.totalorder %v13526_v51, 1  ;;  %vm4111_vm15 = vcmp.lt.s32.totalorder %v13526_v51, 3  ;;  %v4118_v42 = vsel %vm4112_vm13, %v4105_v53, 920167782 }
 0x3b3   : > { %v3990_v36 = vshrl.u32 %v18507_v15, %v13451_v47  ;;  %v13583_v26 = vmul.u32.u64.low %v13561_v12, %v4017_v7  ;;  %v13584_v24 = vmul.u32.u64.high %v13561_v12, %v4017_v7, %v13583_v26  ;;  %v4122_v25 = vsel %vm4112_vm13, %v4108_v50, 1326507024 }
 0x3b4   : > { %v13589_v58 = vsel %vm7539_vm14, 0, %v7538_v48  ;;  %v4011_v46 = vsel %vm4009_vm6, %v3999_v57, 2102212464  ;;  %v13594_v44 = vmul.u32.u64.low %v13561_v12, %v4021_v54  ;;  %v13595_v59 = vmul.u32.u64.high %v13561_v12, %v4021_v54, %v13594_v44  ;;  %v18773_v48 = vld [vmem:[#allocation41_spill] sm:$0xff] }
 0x3b5   : > { %vm3451_vm9 = vcmp.eq.s32.totalorder %v13448_v45, 0  ;;  %vm4110_vm5 = vcmp.lt.s32.totalorder %v13526_v51, 2  ;;  %v4117_v47 = vsel %vm4109_vm0, %v13571_v43, %v13573_v38  ;;  %v4119_v50 = vsel %vm4111_vm15, %v4102_v63, %v4118_v42 }
 0x3b6   : > { %v4183_v28 = vand.u32 2139095040, %v18773_v48  ;;  %v7541_v57 = vmin.u32 %v3834_v1, %v13505_v33  ;;  %v13608_v39 = vsub.s32 %v13492_v27, %v3934_v18  ;;  %v4121_v56 = vsel %vm4109_vm0, %v13573_v38, %v4102_v63 }
 0x3b7   : > { %v4123_v11 = vsel %vm4111_vm15, %v4105_v53, %v4122_v25  ;;  %v4010_v7 = vsel %vm4006_vm7, %v3990_v36, %v13498_v34  ;;  %v4012_v54 = vsel %vm4008_vm10, %v13500_v52, %v4011_v46  ;;  %v13621_v42 = vshll.u32 %v4085_v3, 8 }
 0x3b8   : > { %v4184_v1 = vshrl.u32 %v4183_v28, 23  ;;  %v13626_v27 = vsel %vm3345_vm2, nan, %v13446_v4  ;;  %vm3454_vm3 = vcmp.eq.s32.totalorder %v13448_v45, 2  ;;  %v3455_v53 = vxor.u32 2147483648, %v13502_v16 }
 0x3b9   : > { %18774 = vst [vmem:[#allocation32_spill] sm:$0xff] %v13626_v27  ;;  %v4120_v18 = vsel %vm4110_vm5, %v4117_v47, %v4119_v50  ;;  %v3452_v34 = vxor.u32 2147483648, %v13508_v9  ;;  %v3650_v52 = vsel %vm13545_vm12, %v18726_v20, %v3647_v19  ;;  %v4124_v3 = vsel %vm4110_vm5, %v4121_v56, %v4123_v11 }
 0x3ba   : > { %v7556_v36 = vadd.s32 4294967169, %v4184_v1  ;;  %vm3450_vm8 = vcmp.lt.s32.totalorder %v13448_v45, 2  ;;  %vm3557_vm1 = vcmp.eq.s32.totalorder %v13460_v40, 2  ;;  %v3741_v35 = vsub.s32 4294967266, %v13589_v58 }
 0x3bb   : > { %v3836_v4 = vclz %v7541_v57  ;;  %v3937_v25 = vsub.s32 0, %v13608_v39  ;;  %v4013_v46 = vsel %vm4007_vm11, %v4010_v7, %v4012_v54  ;;  %v4032_v44 = vadd.s32 1, %v13584_v24 }
 0x3bc   : > { %v13646_v19 = vmul.u32.u64.low %v13621_v42, %v4120_v18  ;;  %v13647_v47 = vmul.u32.u64.high %v13621_v42, %v4120_v18, %v13646_v19  ;;  %v4190_v50 = vadd.s32 1, %v7556_v36  ;;  %vm3554_vm6 = vcmp.eq.s32.totalorder %v13460_v40, 0 }
 0x3bd   : > { %vm4031_vm7 = vc.u32 %v13595_v59, %v13583_v26  ;;  %v4093_v28 = vshrl.u32 %v18507_v15, %v13495_v8  ;;  %v13656_v57 = vmul.u32.u64.low %v13621_v42, %v4124_v3  ;;  %v13657_v31 = vmul.u32.u64.high %v13621_v42, %v4124_v3, %v13656_v57  ;;  %v18775_v3 = vld [vmem:[#allocation42_spill] sm:$0xff] }
 0x3be   : > { %v3456_v56 = vsel %vm3454_vm3, %v3455_v53, %v13508_v9  ;;  %v3648_v11 = vsub.s32 4, %v13112_v60  ;;  %v3721_v7 = vadd.s32 %v13193_v62, %v13199_v22  ;;  %v4114_v54 = vsel %vm4112_vm13, %v4102_v63, 2102212464 }
 0x3bf   : > { %vm3448_vm10 = vweird.f32 %v18759_v21  ;;  %8175 = vcosq.f32 %v3650_v52  ;;  %v3737_v8 = vsub.s32 32, %v13589_v58  ;;  %v7545_v1 = vmin.u32 %v3937_v25, %v13608_v39 }
 0x3c0   : > { %v4029_v18 = vmul.u32 %v13561_v12, %v4013_v46  ;;  %vm3553_vm11 = vcmp.lt.s32.totalorder %v13460_v40, 2  ;;  %vm3667_vm2 = vcmp.lt.s32.totalorder %v18739_v37, 0  ;;  %v3742_v9 = vadd.s32 127, %v3741_v35 }
 0x3c1   : > { %v7542_v53 = vadd.s32 4294967294, %v3836_v4  ;;  %v4033_v62 = vsel %vm4031_vm7, %v4032_v44, %v13584_v24  ;;  %vm4191_vm13 = vcmp.gt.s32.totalorder %v4190_v50, 0  ;;  %v3453_v22 = vsel %vm3451_vm9, %v13502_v16, %v3452_v34 }
 0x3c2   : > { %v4113_v12 = vsel %vm4109_vm0, %v4093_v28, %v13571_v43  ;;  %v4115_v63 = vsel %vm4111_vm15, %v13573_v38, %v4114_v54  ;;  %v4286_v36 = vand.u32 2139095040, %v18775_v3  ;;  %v3555_v35 = vxor.u32 2147483648, %v13564_v29 }
 0x3c3   : > { %v3558_v4 = vxor.u32 2147483648, %v13556_v23  ;;  %v3649_v24 = vsel %vm3564_vm4, %v3648_v11, %v13112_v60  ;;  %v3738_v16 = vshll.u32 %v13404_v0, %v13589_v58  ;;  %v18776_v34 = vand.u32 2147483647, %v18739_v37 }
 0x3c4   : > { %v3739_v38 = vshrl.u32 %v3721_v7, %v3737_v8  ;;  %v3939_v25 = vclz %v7545_v1  ;;  %v13700_v46 = vadd.s32 %v4033_v62, %v4029_v18  ;;  %v4192_v44 = vsel %vm4191_vm13, %v4190_v50, 0 }
 0x3c5   : > { %vm13696_vm14 = vcmp.le.f32.partialorder %v18776_v34, 0.7853982  ;;  %v3743_v28 = vshll.u32 %v3742_v9, 23  ;;  %vm7543_vm0 = vcmp.lt.s32.totalorder %v7542_v53, 0  ;;  %v4116_v57 = vsel %vm4110_vm5, %v4113_v12, %v4115_v63 }
 0x3c6   : > { %v4135_v60 = vadd.s32 1, %v13647_v47  ;;  %8177 = vsinq.f32 %v3650_v52  ;;  %v3751_v0 = vsub.s32 4, %v13355_v49  ;;  %vm4134_vm4 = vc.u32 %v13657_v31, %v13646_v19 }
 0x3c7   : > { %v4287_v58 = vshrl.u32 %v4286_v36, 23  ;;  %v3457_v11 = vsel %vm3450_vm8, %v3453_v22, %v3456_v56  ;;  %v3559_v50 = vsel %vm3557_vm1, %v3558_v4, %v13564_v29  ;;  %v3651_v51 = vsel %vm13545_vm12, 0, %v3649_v24 }
 0x3c8   : > { %v4194_v7 = vand.u32 31, %v4192_v44  ;;  %v3839_v54 = vsel %vm7543_vm0, 0, %v7542_v53  ;;  %v7546_v8 = vadd.s32 4294967294, %v3939_v25  ;;  %v4035_v52 = vadd.s32 536870912, %v13700_v46 }
 0x3c9   : > { %v4132_v1 = vmul.u32 %v13621_v42, %v4116_v57  ;;  %v3556_v18 = vsel %vm3554_vm6, %v13556_v23, %v3555_v35  ;;  %v3740_v45 = vor.u32 %v3739_v38, %v3738_v16  ;;  %v3744_v56 = vor.u32 4788187, %v3743_v28  ;;  %v13721_v62 = vpop.eup %8175 }
 0x3ca   : > { %v4136_v9 = vsel %vm4134_vm4, %v4135_v60, %v13647_v47  ;;  %v13726_v55 = vsel %vm3667_vm2, %v3751_v0, %v13355_v49  ;;  %v3824_v29 = vadd.s32 %v13304_v2, %v13315_v61  ;;  %v3840_v53 = vsub.s32 32, %v3839_v54  ;;  %v18781_v2 = vld [vmem:[#allocation37_spill] sm:$0xff] }
 0x3cb   : > { %v7560_v42 = vadd.s32 4294967169, %v4287_v58  ;;  %v13732_v22 = vsel %vm3448_vm10, nan, %v3457_v11  ;;  %v13734_v23 = vand.u32 3, %v3651_v51  ;;  %v3844_v12 = vsub.s32 4294967266, %v3839_v54 }
 0x3cc   : > { %18779 = vst [vmem:[#allocation27_spill] sm:$0xff] %v13732_v22  ;;  %v13736_v47 = vsub.s32 32, %v4194_v7  ;;  %v13740_v63 = vsel %vm3553_vm11, %v3556_v18, %v3559_v50  ;;  %vm7547_vm12 = vcmp.lt.s32.totalorder %v7546_v8, 0  ;;  %v13742_v49 = vshrl.u32 %v4035_v52, 30 }
 0x3cd   : > { %v13744_v36 = vadd.s32 %v4136_v9, %v4132_v1  ;;  %v3745_v61 = vand.u32 2147483647, %v3744_v56  ;;  %v3747_v21 = vcvt.s32.f32 %v3740_v45  ;;  %v3841_v4 = vshll.u32 %v13505_v33, %v3839_v54 }
 0x3ce   : > { %v3842_v24 = vshrl.u32 %v3824_v29, %v3840_v53  ;;  %v18438_v40 = vand.u32 2147483647, %v18773_v48  ;;  %v4293_v16 = vadd.s32 1, %v7560_v42  ;;  %v3845_v34 = vadd.s32 127, %v3844_v12 }
 0x3cf   : > { %v13752_v38 = vsel %vm7547_vm12, 0, %v7546_v8  ;;  %v4206_v25 = vshll.u32 %v18504_v41, %v4194_v7  ;;  %v4207_v28 = vshrl.u32 %v18505_v32, %v13736_v47  ;;  %v4037_v60 = vshll.u32 %v13742_v49, 30 }
 0x3d0   : > { %v13757_v57 = vpop.eup %8177  ;;  %v4138_v0 = vadd.s32 536870912, %v13744_v36  ;;  %v13761_v58 = vshrl.u32 %v4192_v44, 5  ;;  %v4197_v33 = vshll.u32 %v18507_v15, %v4194_v7  ;;  %v4200_v11 = vshll.u32 %v18508_v5, %v4194_v7 }
 0x3d1   : > { %v4203_v50 = vshll.u32 %v18509_v17, %v4194_v7  ;;  %v4209_v51 = vshll.u32 %v18505_v32, %v4194_v7  ;;  %v4210_v54 = vshrl.u32 %v18506_v30, %v13736_v47  ;;  %v4198_v8 = vshrl.u32 %v18508_v5, %v13736_v47 }
 0x3d2   : > { %v4201_v52 = vshrl.u32 %v18509_v17, %v13736_v47  ;;  %v4204_v44 = vshrl.u32 %v18504_v41, %v13736_v47  ;;  %vm4294_vm15 = vcmp.gt.s32.totalorder %v4293_v16, 0  ;;  %v3846_v18 = vshll.u32 %v3845_v34, 23 }
 0x3d3   : > { %v4208_v45 = vor.u32 %v4207_v28, %v4206_v25  ;;  %v4295_v56 = vsel %vm4294_vm15, %v4293_v16, 0  ;;  %v13776_v9 = vmul.f32 %v3747_v21, %v3745_v61  ;;  %v13778_v7 = vor.u32 %v3842_v24, %v3841_v4 }
 0x3d4   : > { %v4187_v29 = vand.u32 8388607, %v18438_v40  ;;  %vm4215_vm9 = vcmp.lt.s32.totalorder %v13761_v58, 4  ;;  %v3947_v53 = vsub.s32 4294967266, %v13752_v38  ;;  %v13785_v42 = vsub.s32 %v13700_v46, %v4037_v60 }
 0x3d5   : > { %v13787_v12 = vshrl.u32 %v4138_v0, 30  ;;  %v4211_v35 = vor.u32 %v4210_v54, %v4209_v51  ;;  %v4199_v34 = vor.u32 %v4198_v8, %v4197_v33  ;;  %v4202_v25 = vor.u32 %v4201_v52, %v4200_v11 }
 0x3d6   : > { %v4205_v16 = vor.u32 %v4204_v44, %v4203_v50  ;;  %v4297_v61 = vand.u32 31, %v4295_v56  ;;  %v3847_v21 = vor.u32 4788187, %v3846_v18  ;;  %vm4212_vm5 = vcmp.lt.s32.totalorder %v13761_v58, 1 }
 0x3d7   : > { %18780 = vst [vmem:[#allocation28_spill] sm:$0xff] %v13787_v12  ;;  %vm4214_vm3 = vcmp.lt.s32.totalorder %v13761_v58, 3  ;;  %v4221_v4 = vsel %vm4215_vm9, %v4208_v45, 920167782  ;;  %v3927_v46 = vadd.s32 %v13390_v13, %v13396_v14  ;;  %v3943_v28 = vsub.s32 32, %v13752_v38 }
 0x3d8   : > { %v4188_v60 = vor.u32 8388608, %v4187_v29  ;;  %v3948_v0 = vadd.s32 127, %v3947_v53  ;;  %v4040_v33 = vsub.s32 0, %v13785_v42  ;;  %v4140_v11 = vshll.u32 %v13787_v12, 30 }
 0x3d9   : > { %v4225_v50 = vsel %vm4215_vm9, %v4211_v35, 1326507024  ;;  %vm4213_vm8 = vcmp.lt.s32.totalorder %v13761_v58, 2  ;;  %v4220_v51 = vsel %vm4212_vm5, %v4199_v34, %v4202_v25  ;;  %v4222_v54 = vsel %vm4214_vm3, %v4205_v16, %v4221_v4 }
 0x3da   : > { %v13806_v13 = vsub.s32 32, %v4297_v61  ;;  %v3848_v14 = vand.u32 2147483647, %v3847_v21  ;;  %v3850_v8 = vcvt.s32.f32 %v13778_v7  ;;  %v3944_v44 = vshll.u32 %v13608_v39, %v13752_v38 }
 0x3db   : > { %v3945_v18 = vshrl.u32 %v3927_v46, %v3943_v28  ;;  %v4224_v35 = vsel %vm4212_vm5, %v4202_v25, %v4205_v16  ;;  %v4226_v29 = vsel %vm4214_vm3, %v4208_v45, %v4225_v50  ;;  %v13816_v53 = vshll.u32 %v4188_v60, 8 }
 0x3dc   : > { %v3949_v4 = vshll.u32 %v3948_v0, 23  ;;  %v7549_v40 = vmin.u32 %v4040_v33, %v13785_v42  ;;  %v4223_v7 = vsel %vm4213_vm8, %v4220_v51, %v4222_v54  ;;  %v18443_v21 = vand.u32 2147483647, %v18775_v3 }
 0x3dd   : > { %v13823_v52 = vsub.s32 %v13744_v36, %v4140_v11  ;;  %v4196_v39 = vshrl.u32 %v18507_v15, %v13736_v47  ;;  %v4309_v38 = vshll.u32 %v18504_v41, %v4297_v61  ;;  %v4310_v45 = vshrl.u32 %v18505_v32, %v13806_v13 }
 0x3de   : > { %v4227_v46 = vsel %vm4213_vm8, %v4224_v35, %v4226_v29  ;;  %v13832_v28 = vshrl.u32 %v4295_v56, 5  ;;  %v4312_v60 = vshll.u32 %v18505_v32, %v4297_v61  ;;  %v4313_v0 = vshrl.u32 %v18506_v30, %v13806_v13 }
 0x3df   : > { %v13838_v36 = vmul.u32.u64.low %v13816_v53, %v4223_v7  ;;  %v13839_v33 = vmul.u32.u64.high %v13816_v53, %v4223_v7, %v13838_v36  ;;  %v4300_v47 = vshll.u32 %v18507_v15, %v4297_v61  ;;  %v4303_v11 = vshll.u32 %v18508_v5, %v4297_v61 }
 0x3e0   : > { %vm3657_vm1 = vcmp.eq.s32.totalorder %v13734_v23, 0  ;;  %vm3660_vm6 = vcmp.eq.s32.totalorder %v13734_v23, 2  ;;  %v4301_v56 = vshrl.u32 %v18508_v5, %v13806_v13  ;;  %v4304_v50 = vshrl.u32 %v18509_v17, %v13806_v13 }
 0x3e1   : > { %v4306_v51 = vshll.u32 %v18509_v17, %v4297_v61  ;;  %v4307_v54 = vshrl.u32 %v18504_v41, %v13806_v13  ;;  %v4217_v35 = vsel %vm4215_vm9, %v4205_v16, 2102212464  ;;  %v4311_v24 = vor.u32 %v4310_v45, %v4309_v38 }
 0x3e2   : > { %v13856_v29 = vmul.u32.u64.low %v13816_v53, %v4227_v46  ;;  %v13857_v7 = vmul.u32.u64.high %v13816_v53, %v4227_v46, %v13856_v29  ;;  %vm3770_vm7 = vcmp.lt.s32.totalorder %v18781_v2, 0  ;;  %v4042_v1 = vclz %v7549_v40 }
 0x3e3   : > { %v4290_v22 = vand.u32 8388607, %v18443_v21  ;;  %v4314_v27 = vor.u32 %v4313_v0, %v4312_v60  ;;  %vm4318_vm10 = vcmp.lt.s32.totalorder %v13832_v28, 4  ;;  %v3851_v61 = vmul.f32 %v3850_v8, %v3848_v14  ;;  %v18782_v8 = vld [vmem:[#allocation34_spill] sm:$0xff] }
 0x3e4   : > { %v3946_v48 = vor.u32 %v3945_v18, %v3944_v44  ;;  %v3950_v12 = vor.u32 4788187, %v3949_v4  ;;  %v4216_v16 = vsel %vm4212_vm5, %v4196_v39, %v4199_v34  ;;  %v4218_v46 = vsel %vm4214_vm3, %v4202_v25, %v4217_v35  ;;  %v18783_v18 = vld [vmem:[#allocation43_spill] sm:$0xff] }
 0x3e5   : > { %v13867_v29 = vor.u32 %v4301_v56, %v4300_v47  ;;  %v13869_v38 = vor.u32 %v4304_v50, %v4303_v11  ;;  %v4308_v40 = vor.u32 %v4307_v54, %v4306_v51  ;;  %v4143_v45 = vsub.s32 0, %v13823_v52 }
 0x3e6   : > { %vm4315_vm11 = vcmp.lt.s32.totalorder %v13832_v28, 1  ;;  %vm4317_vm13 = vcmp.lt.s32.totalorder %v13832_v28, 3  ;;  %v4324_v14 = vsel %vm4318_vm10, %v4311_v24, 920167782  ;;  %vm3551_vm0 = vweird.f32 %v18782_v8 }
 0x3e7   : > { %v7550_v34 = vadd.s32 4294967294, %v4042_v1  ;;  %v4291_v44 = vor.u32 8388608, %v4290_v22  ;;  %v4328_v25 = vsel %vm4318_vm10, %v4314_v27, 1326507024  ;;  %v4389_v4 = vand.u32 2139095040, %v18783_v18 }
 0x3e8   : > { %vm3656_vm4 = vcmp.lt.s32.totalorder %v13734_v23, 2  ;;  %v18784_v39 = vand.u32 2147483647, %v18781_v2  ;;  %v3852_v0 = vxor.u32 2147483648, %v3851_v61  ;;  %v3953_v47 = vcvt.s32.f32 %v3946_v48 }
 0x3e9   : > { %v4219_v11 = vsel %vm4213_vm8, %v4216_v16, %v4218_v46  ;;  %v4238_v22 = vadd.s32 1, %v13839_v33  ;;  %vm4316_vm15 = vcmp.lt.s32.totalorder %v13832_v28, 2  ;;  %v4323_v27 = vsel %vm4315_vm11, %v13867_v29, %v13869_v38 }
 0x3ea   : > { %vm13883_vm12 = vcmp.le.f32.partialorder %v18784_v39, 0.7853982  ;;  %v4325_v1 = vsel %vm4317_vm13, %v4308_v40, %v4324_v14  ;;  %v4390_v56 = vshrl.u32 %v4389_v4, 23  ;;  %v7553_v50 = vmin.u32 %v4143_v45, %v13823_v52 }
 0x3eb   : > { %vm4237_vm9 = vc.u32 %v13857_v7, %v13838_v36  ;;  %v4327_v48 = vsel %vm4315_vm11, %v13869_v38, %v4308_v40  ;;  %v4329_v58 = vsel %vm4317_vm13, %v4311_v24, %v4328_v25  ;;  %vm3654_vm5 = vweird.f32 %v18726_v20  ;;  %v18798_v20 = vld [vmem:[#allocation44_spill] sm:$0xff] }
 0x3ec   : > { %v3951_v51 = vand.u32 2147483647, %v3950_v12  ;;  %vm7551_vm3 = vcmp.lt.s32.totalorder %v7550_v34, 0  ;;  %v13906_v54 = vshll.u32 %v4291_v44, 8  ;;  %v7564_v35 = vadd.s32 4294967169, %v4390_v56 }
 0x3ed   : > { %v18787_v16 = vxor.u32 2147483648, %v13757_v57  ;;  %v18788_v45 = vxor.u32 2147483648, %v13721_v62  ;;  %v4235_v24 = vmul.u32 %v13816_v53, %v4219_v11  ;;  %v4326_v12 = vsel %vm4316_vm15, %v4323_v27, %v4325_v1 }
 0x3ee   : > { %v18789_v44 = vxor.u32 2147483648, %v13776_v9  ;;  %v4239_v4 = vsel %vm4237_vm9, %v4238_v22, %v13839_v33  ;;  %v4330_v39 = vsel %vm4316_vm15, %v4327_v48, %v4329_v58  ;;  %v18790_v53 = vsub.s32 4, %v13465_v10 }
 0x3ef   : > { %v3659_v46 = vsel %vm3657_vm1, %v13721_v62, %v18787_v16  ;;  %v3662_v14 = vsel %vm3660_vm6, %v18788_v45, %v13757_v57  ;;  %v4396_v62 = vadd.s32 1, %v7564_v35  ;;  %v3853_v57 = vsel %vm3770_vm7, %v3852_v0, %v3851_v61 }
 0x3f0   : > { %v3750_v25 = vsel %vm3667_vm2, %v18789_v44, %v13776_v9  ;;  %v3855_v11 = vsel %vm3770_vm7, %v18790_v53, %v13465_v10  ;;  %v13936_v27 = vsel %vm7551_vm3, 0, %v7550_v34  ;;  %v4145_v1 = vclz %v7553_v50  ;;  %v18791_v10 = vld [vmem:[#allocation38_spill] sm:$0xff] }
 0x3f1   : > { %v3954_v56 = vmul.f32 %v3953_v47, %v3951_v51  ;;  %v13939_v9 = vmul.u32.u64.low %v13906_v54, %v4326_v12  ;;  %v13940_v33 = vmul.u32.u64.high %v13906_v54, %v4326_v12, %v13939_v9  ;;  %vm4397_vm2 = vcmp.gt.s32.totalorder %v4396_v62, 0 }
 0x3f2   : > { %v13943_v22 = vadd.s32 %v4239_v4, %v4235_v24  ;;  %v4299_v61 = vshrl.u32 %v18507_v15, %v13806_v13  ;;  %v13948_v0 = vmul.u32.u64.low %v13906_v54, %v4330_v39  ;;  %v13949_v48 = vmul.u32.u64.high %v13906_v54, %v4330_v39, %v13948_v0 }
 0x3f3   : > { %vm3873_vm8 = vcmp.lt.s32.totalorder %v18791_v10, 0  ;;  %v4050_v34 = vsub.s32 4294967266, %v13936_v27  ;;  %v4320_v47 = vsel %vm4318_vm10, %v4308_v40, 2102212464  ;;  %v4398_v50 = vsel %vm4397_vm2, %v4396_v62, 0 }
 0x3f4   : > { %v13958_v58 = vsel %vm3551_vm0, nan, %v13740_v63  ;;  %v3753_v13 = vsel %vm13696_vm14, %v18739_v37, %v3750_v25  ;;  %v18793_v51 = vsel %vm13696_vm14, 0, %v13726_v55  ;;  %v7554_v16 = vadd.s32 4294967294, %v4145_v1 }
 0x3f5   : > { %18792 = vst [vmem:[#allocation20_spill] sm:$0xff] %v13958_v58  ;;  %v13967_v35 = vand.u32 3, %v18793_v51  ;;  %v3663_v40 = vsel %vm3656_vm4, %v3659_v46, %v3662_v14  ;;  %v3856_v8 = vsel %vm13883_vm12, %v18781_v2, %v3853_v57  ;;  %v3857_v63 = vsel %vm13883_vm12, 0, %v3855_v11 }
 0x3f6   : > { %v4400_v45 = vand.u32 31, %v4398_v50  ;;  %v3955_v24 = vxor.u32 2147483648, %v3954_v56  ;;  %v4241_v12 = vadd.s32 536870912, %v13943_v22  ;;  %v4319_v43 = vsel %vm4315_vm11, %v4299_v61, %v13867_v29 }
 0x3f7   : > { %v4321_v55 = vsel %vm4317_vm13, %v13869_v38, %v4320_v47  ;;  %8179 = vcosq.f32 %v3753_v13  ;;  %v18794_v23 = vand.u32 2147483647, %v18791_v10  ;;  %v4030_v60 = vadd.s32 %v13583_v26, %v13595_v59 }
 0x3f8   : > { %v4046_v14 = vsub.s32 32, %v13936_v27  ;;  %v4051_v44 = vadd.s32 127, %v4050_v34  ;;  %v13994_v29 = vsel %vm3654_vm5, nan, %v3663_v40  ;;  %8181 = vsinq.f32 %v3753_v13 }
 0x3f9   : > { %vm13985_vm14 = vcmp.le.f32.partialorder %v18794_v23, 0.7853982  ;;  %18797 = vst [vmem:[#allocation33_spill] sm:$0xff] %v13994_v29  ;;  %vm7555_vm1 = vcmp.lt.s32.totalorder %v7554_v16, 0  ;;  %v13996_v38 = vsub.s32 32, %v4400_v45  ;;  %8183 = vcosq.f32 %v3856_v8 }
 0x3fa   : > { %v13998_v25 = vand.u32 3, %v3857_v63  ;;  %v4322_v4 = vsel %vm4316_vm15, %v4319_v43, %v4321_v55  ;;  %v4341_v39 = vadd.s32 1, %v13940_v33  ;;  %v3956_v26 = vsel %vm3873_vm8, %v3955_v24, %v3954_v56 }
 0x3fb   : > { %v14005_v59 = vshrl.u32 %v4241_v12, 30  ;;  %vm4340_vm6 = vc.u32 %v13949_v48, %v13939_v9  ;;  %v4492_v62 = vand.u32 2139095040, %v18798_v20  ;;  %v4047_v57 = vshll.u32 %v13785_v42, %v13936_v27 }
 0x3fc   : > { %v4048_v53 = vshrl.u32 %v4030_v60, %v4046_v14  ;;  %v4052_v11 = vshll.u32 %v4051_v44, 23  ;;  %v14012_v1 = vsel %vm7555_vm1, 0, %v7554_v16  ;;  %v4338_v28 = vmul.u32 %v13906_v54, %v4322_v4 }
 0x3fd   : > { %v18442_v61 = vand.u32 2147483647, %v18783_v18  ;;  %v4412_v56 = vshll.u32 %v18504_v41, %v4400_v45  ;;  %v4413_v0 = vshrl.u32 %v18505_v32, %v13996_v38  ;;  %v4342_v34 = vsel %vm4340_vm6, %v4341_v39, %v13940_v33 }
 0x3fe   : > { %v14020_v47 = vshrl.u32 %v4398_v50, 5  ;;  %v4415_v13 = vshll.u32 %v18505_v32, %v4400_v45  ;;  %v4416_v42 = vshrl.u32 %v18506_v30, %v13996_v38  ;;  %v4243_v27 = vshll.u32 %v14005_v59, 30 }
 0x3ff   : > { %v4403_v54 = vshll.u32 %v18507_v15, %v4400_v45  ;;  %v4406_v51 = vshll.u32 %v18508_v5, %v4400_v45  ;;  %v4493_v16 = vshrl.u32 %v4492_v62, 23  ;;  %v4404_v40 = vshrl.u32 %v18508_v5, %v13996_v38 }
 0x400   : > { %v4407_v33 = vshrl.u32 %v18509_v17, %v13996_v38  ;;  %v4409_v50 = vshll.u32 %v18509_v17, %v4400_v45  ;;  %v4410_v63 = vshrl.u32 %v18504_v41, %v13996_v38  ;;  %8185 = vsinq.f32 %v3856_v8 }
 0x401   : > { %v4049_v24 = vor.u32 %v4048_v53, %v4047_v57  ;;  %v14035_v12 = vadd.s32 %v4342_v34, %v4338_v28  ;;  %v4414_v43 = vor.u32 %v4413_v0, %v4412_v56  ;;  %v14037_v55 = vpop.eup %8179  ;;  %v4053_v23 = vor.u32 4788187, %v4052_v11 }
 0x402   : > { %v4393_v60 = vand.u32 8388607, %v18442_v61  ;;  %v4417_v14 = vor.u32 %v4416_v42, %v4415_v13  ;;  %vm4421_vm7 = vcmp.lt.s32.totalorder %v14020_v47, 4  ;;  %v14042_v44 = vpop.eup %8181  ;;  %v3957_v45 = vsub.s32 4, %v13549_v6  ;;  %v18799_v42 = vld [vmem:[#allocation39_spill] sm:$0xff] }
 0x403   : > { %v3959_v8 = vsel %vm13985_vm14, %v18791_v10, %v3956_v26  ;;  %v4153_v4 = vsub.s32 4294967266, %v14012_v1  ;;  %v7568_v39 = vadd.s32 4294967169, %v4493_v16  ;;  %v14049_v62 = vpop.eup %8183  ;;  %v14052_v57 = vsub.s32 %v13943_v22, %v4243_v27 }
 0x404   : > { %v14054_v53 = vor.u32 %v4404_v40, %v4403_v54  ;;  %v14056_v11 = vor.u32 %v4407_v33, %v4406_v51  ;;  %v4411_v28 = vor.u32 %v4410_v63, %v4409_v50  ;;  %v4344_v56 = vadd.s32 536870912, %v14035_v12 }
 0x405   : > { %vm4418_vm10 = vcmp.lt.s32.totalorder %v14020_v47, 1  ;;  %vm4420_vm11 = vcmp.lt.s32.totalorder %v14020_v47, 3  ;;  %v4427_v26 = vsel %vm4421_vm7, %v4414_v43, 920167782  ;;  %v4054_v0 = vand.u32 2147483647, %v4053_v23 }
 0x406   : > { %v4056_v34 = vcvt.s32.f32 %v4049_v24  ;;  %v4394_v13 = vor.u32 8388608, %v4393_v60  ;;  %v4431_v22 = vsel %vm4421_vm7, %v4417_v14, 1326507024  ;;  %vm3760_vm13 = vcmp.eq.s32.totalorder %v13967_v35, 0 }
 0x407   : > { %vm3763_vm0 = vcmp.eq.s32.totalorder %v13967_v35, 2  ;;  %vm3976_vm4 = vcmp.lt.s32.totalorder %v18799_v42, 0  ;;  %v4133_v27 = vadd.s32 %v13646_v19, %v13657_v31  ;;  %v4149_v54 = vsub.s32 32, %v14012_v1 }
 0x408   : > { %v4154_v51 = vadd.s32 127, %v4153_v4  ;;  %v4499_v16 = vadd.s32 1, %v7568_v39  ;;  %vm3863_vm12 = vcmp.eq.s32.totalorder %v13998_v25, 0  ;;  %vm3866_vm15 = vcmp.eq.s32.totalorder %v13998_v25, 2 }
 0x409   : > { %v4246_v40 = vsub.s32 0, %v14052_v57  ;;  %vm4419_vm9 = vcmp.lt.s32.totalorder %v14020_v47, 2  ;;  %v4426_v33 = vsel %vm4418_vm10, %v14054_v53, %v14056_v11  ;;  %v4428_v19 = vsel %vm4420_vm11, %v4411_v28, %v4427_v26 }
 0x40a   : > { %8187 = vcosq.f32 %v3959_v8  ;;  %v14081_v31 = vshrl.u32 %v4344_v56, 30  ;;  %v4430_v50 = vsel %vm4418_vm10, %v14056_v11, %v4411_v28  ;;  %v4432_v63 = vsel %vm4420_vm11, %v4414_v43, %v4431_v22  ;;  %v8186_v14 = vpop.eup %8185 }
 0x40b   : > { %vm3759_vm5 = vcmp.lt.s32.totalorder %v13967_v35, 2  ;;  %v3764_v24 = vxor.u32 2147483648, %v14037_v55  ;;  %8189 = vsinq.f32 %v3959_v8  ;;  %v4057_v23 = vmul.f32 %v4056_v34, %v4054_v0 }
 0x40c   : > { %18800 = vst [vmem:[#allocation42_spill] sm:$0xff] %v14081_v31  ;;  %v14090_v60 = vshll.u32 %v4394_v13, 8  ;;  %v3761_v4 = vxor.u32 2147483648, %v14042_v44  ;;  %vm3862_vm3 = vcmp.lt.s32.totalorder %v13998_v25, 2  ;;  %v4150_v39 = vshll.u32 %v13823_v52, %v14012_v1 }
 0x40d   : > { %v4429_v56 = vsel %vm4419_vm9, %v4426_v33, %v4428_v19  ;;  %vm4500_vm2 = vcmp.gt.s32.totalorder %v4499_v16, 0  ;;  %v4151_v43 = vshrl.u32 %v4133_v27, %v4149_v54  ;;  %v4155_v26 = vshll.u32 %v4154_v51, 23 }
 0x40e   : > { %v7557_v22 = vmin.u32 %v4246_v40, %v14052_v57  ;;  %v4433_v8 = vsel %vm4419_vm9, %v4430_v50, %v4432_v63  ;;  %v3867_v0 = vxor.u32 2147483648, %v14049_v62  ;;  %v3958_v34 = vsel %vm3873_vm8, %v3957_v45, %v13549_v6 }
 0x40f   : > { %v4060_v13 = vsub.s32 4, %v13742_v49  ;;  %v4346_v52 = vshll.u32 %v14081_v31, 30  ;;  %v4058_v1 = vxor.u32 2147483648, %v4057_v23  ;;  %v4501_v54 = vsel %vm4500_vm2, %v4499_v16, 0 }
 0x410   : > { %v14108_v33 = vmul.u32.u64.low %v14090_v60, %v4429_v56  ;;  %v14109_v27 = vmul.u32.u64.high %v14090_v60, %v4429_v56, %v14108_v33  ;;  %v3864_v51 = vxor.u32 2147483648, %v8186_v14  ;;  %v4402_v40 = vshrl.u32 %v18507_v15, %v13996_v38 }
 0x411   : > { %v14115_v19 = vmul.u32.u64.low %v14090_v60, %v4433_v8  ;;  %v14116_v50 = vmul.u32.u64.high %v14090_v60, %v4433_v8, %v14115_v19  ;;  %v4152_v6 = vor.u32 %v4151_v43, %v4150_v39  ;;  %v4156_v45 = vor.u32 4788187, %v4155_v26 }
 0x412   : > { %18801 = vst [vmem:[#allocation37_spill] sm:$0xff] %v14108_v33  ;;  %v4248_v63 = vclz %v7557_v22  ;;  %v4423_v61 = vsel %vm4421_vm7, %v4411_v28, 2102212464  ;;  %v18803_v21 = vand.u32 2147483647, %v18799_v42  ;;  %v4061_v38 = vsel %vm3976_vm4, %v4060_v13, %v13742_v49 }
 0x413   : > { %18802 = vst [vmem:[#allocation34_spill] sm:$0xff] %v14116_v50  ;;  %v14130_v16 = vsub.s32 %v14035_v12, %v4346_v52  ;;  %v4503_v8 = vand.u32 31, %v4501_v54  ;;  %v3762_v39 = vsel %vm3760_vm13, %v14037_v55, %v3761_v4  ;;  %v3765_v28 = vsel %vm3763_vm0, %v3764_v24, %v14042_v44 }
 0x414   : > { %vm14122_vm8 = vcmp.le.f32.partialorder %v18803_v21, 0.7853982  ;;  %v3960_v21 = vsel %vm13985_vm14, 0, %v3958_v34  ;;  %v4059_v43 = vsel %vm3976_vm4, %v4058_v1, %v4057_v23  ;;  %v14142_v26 = vpop.eup %8187  ;;  %v3865_v49 = vsel %vm3863_vm12, %v14049_v62, %v3864_v51  ;;  %v18806_v51 = vld [vmem:[#allocation40_spill] sm:$0xff] }
 0x415   : > { %v3868_v12 = vsel %vm3866_vm15, %v3867_v0, %v8186_v14  ;;  %v4422_v55 = vsel %vm4418_vm10, %v4402_v40, %v14054_v53  ;;  %v4424_v46 = vsel %vm4420_vm11, %v14056_v11, %v4423_v61  ;;  %v14155_v44 = vpop.eup %8189  ;;  %v4063_v24 = vsel %vm14122_vm8, 0, %v4061_v38 }
 0x416   : > { %v4157_v23 = vand.u32 2147483647, %v4156_v45  ;;  %v4159_v4 = vcvt.s32.f32 %v4152_v6  ;;  %v7558_v22 = vadd.s32 4294967294, %v4248_v63  ;;  %v14161_v62 = vsel %vm3759_vm5, %v3762_v39, %v3765_v28 }
 0x417   : > { %v14166_v53 = vsel %vm14122_vm8, %v18799_v42, %v4059_v43  ;;  %v4349_v14 = vsub.s32 0, %v14130_v16  ;;  %v14169_v61 = vsub.s32 32, %v4503_v8  ;;  %v14173_v11 = vsel %vm3862_vm3, %v3865_v49, %v3868_v12 }
 0x418   : > { %v14175_v0 = vand.u32 3, %v3960_v21  ;;  %v4425_v35 = vsel %vm4419_vm9, %v4422_v55, %v4424_v46  ;;  %v4444_v34 = vadd.s32 1, %v14109_v27  ;;  %v14182_v1 = vand.u32 3, %v4063_v24 }
 0x419   : > { %vm4079_vm14 = vcmp.lt.s32.totalorder %v18806_v51, 0  ;;  %vm4443_vm1 = vc.u32 %v14116_v50, %v14108_v33  ;;  %8191 = vcosq.f32 %v14166_v53  ;;  %v4160_v25 = vmul.f32 %v4159_v4, %v4157_v23 }
 0x41a   : > { %vm7559_vm6 = vcmp.lt.s32.totalorder %v7558_v22, 0  ;;  %v18445_v47 = vand.u32 2147483647, %v18798_v20  ;;  %v7561_v40 = vmin.u32 %v4349_v14, %v14130_v16  ;;  %v4441_v19 = vmul.u32 %v14090_v60, %v4425_v35  ;;  %v18807_v60 = vld [vmem:[#allocation45_spill] sm:$0xff] }
 0x41b   : > { %v4515_v6 = vshll.u32 %v18504_v41, %v4503_v8  ;;  %v4516_v45 = vshrl.u32 %v18505_v32, %v14169_v61  ;;  %v4445_v63 = vsel %vm4443_vm1, %v4444_v34, %v14109_v27  ;;  %v14195_v56 = vshrl.u32 %v4501_v54, 5 }
 0x41c   : > { %v4518_v38 = vshll.u32 %v18505_v32, %v4503_v8  ;;  %v4519_v39 = vshrl.u32 %v18506_v30, %v14169_v61  ;;  %v4251_v28 = vsel %vm7559_vm6, 0, %v7558_v22  ;;  %v4506_v21 = vshll.u32 %v18507_v15, %v4503_v8 }
 0x41d   : > { %v4509_v43 = vshll.u32 %v18508_v5, %v4503_v8  ;;  %v4595_v49 = vand.u32 2139095040, %v18807_v60  ;;  %v18808_v12 = vand.u32 2147483647, %v18806_v51  ;;  %v4507_v27 = vshrl.u32 %v18508_v5, %v14169_v61 }
 0x41e   : > { %v4510_v54 = vshrl.u32 %v18509_v17, %v14169_v61  ;;  %v4512_v46 = vshll.u32 %v18509_v17, %v4503_v8  ;;  %v4513_v24 = vshrl.u32 %v18504_v41, %v14169_v61  ;;  %v4161_v23 = vxor.u32 2147483648, %v4160_v25 }
 0x41f   : > { %vm14205_vm7 = vcmp.le.f32.partialorder %v18808_v12, 0.7853982  ;;  %v14216_v4 = vadd.s32 %v4445_v63, %v4441_v19  ;;  %v4517_v22 = vor.u32 %v4516_v45, %v4515_v6  ;;  %v4596_v14 = vshrl.u32 %v4595_v49, 23 }
 0x420   : > { %v4351_v35 = vclz %v7561_v40  ;;  %v4496_v34 = vand.u32 8388607, %v18445_v47  ;;  %v4520_v12 = vor.u32 %v4519_v39, %v4518_v38  ;;  %vm4524_vm10 = vcmp.lt.s32.totalorder %v14195_v56, 4 }
 0x421   : > { %v4236_v13 = vadd.s32 %v13838_v36, %v13857_v7  ;;  %v4252_v52 = vsub.s32 32, %v4251_v28  ;;  %v4256_v8 = vsub.s32 4294967266, %v4251_v28  ;;  %v7572_v29 = vadd.s32 4294967169, %v4596_v14 }
 0x422   : > { %v4508_v58 = vor.u32 %v4507_v27, %v4506_v21  ;;  %v14223_v18 = vor.u32 %v4510_v54, %v4509_v43  ;;  %v4514_v19 = vor.u32 %v4513_v24, %v4512_v46  ;;  %vm4521_vm11 = vcmp.lt.s32.totalorder %v14195_v56, 1 }
 0x423   : > { %v4447_v40 = vadd.s32 536870912, %v14216_v4  ;;  %vm4523_vm13 = vcmp.lt.s32.totalorder %v14195_v56, 3  ;;  %v4530_v6 = vsel %vm4524_vm10, %v4517_v22, 920167782  ;;  %v4602_v45 = vadd.s32 1, %v7572_v29  ;;  %v14230_v63 = vpop.eup %8191 }
 0x424   : > { %v4162_v36 = vsel %vm4079_vm14, %v4161_v23, %v4160_v25  ;;  %v7562_v7 = vadd.s32 4294967294, %v4351_v35  ;;  %v4497_v38 = vor.u32 8388608, %v4496_v34  ;;  %v4534_v39 = vsel %vm4524_vm10, %v4520_v12, 1326507024  ;;  %v18813_v34 = vld [vmem:[#allocation46_spill] sm:$0xff] }
 0x425   : > { %v4253_v21 = vshll.u32 %v14052_v57, %v4251_v28  ;;  %v4254_v43 = vshrl.u32 %v4236_v13, %v4252_v52  ;;  %v4257_v49 = vadd.s32 127, %v4256_v8  ;;  %vm4603_vm0 = vcmp.gt.s32.totalorder %v4602_v45, 0  ;;  %v18812_v52 = vld [vmem:[#allocation28_spill] sm:$0xff] }
 0x426   : > { %vm4522_vm4 = vcmp.lt.s32.totalorder %v14195_v56, 2  ;;  %v4529_v29 = vsel %vm4521_vm11, %v4508_v58, %v14223_v18  ;;  %v4531_v27 = vsel %vm4523_vm13, %v4514_v19, %v4530_v6  ;;  %v4604_v25 = vsel %vm4603_vm0, %v4602_v45, 0 }
 0x427   : > { %v14243_v54 = vshrl.u32 %v4447_v40, 30  ;;  %v4533_v46 = vsel %vm4521_vm11, %v14223_v18, %v4514_v19  ;;  %v4535_v57 = vsel %vm4523_vm13, %v4517_v22, %v4534_v39  ;;  %v4606_v13 = vand.u32 31, %v4604_v25 }
 0x428   : > { %8193 = vsinq.f32 %v14166_v53  ;;  %vm7563_vm12 = vcmp.lt.s32.totalorder %v7562_v7, 0  ;;  %v14252_v24 = vshll.u32 %v4497_v38, 8  ;;  %v14257_v23 = vsel %vm14205_vm7, %v18806_v51, %v4162_v36 }
 0x429   : > { %18811 = vst [vmem:[#allocation38_spill] sm:$0xff] %v14243_v54  ;;  %v4532_v14 = vsel %vm4522_vm4, %v4529_v29, %v4531_v27  ;;  %v14261_v35 = vsub.s32 32, %v4606_v13  ;;  %v4698_v22 = vand.u32 2139095040, %v18813_v34  ;;  %v14264_v12 = vor.u32 %v4254_v43, %v4253_v21 }
 0x42a   : > { %v4339_v53 = vadd.s32 %v13939_v9, %v13949_v48  ;;  %v4536_v8 = vsel %vm4522_vm4, %v4533_v46, %v4535_v57  ;;  %v4258_v6 = vshll.u32 %v4257_v49, 23  ;;  %v14271_v45 = vsel %vm7563_vm12, 0, %v7562_v7 }
 0x42b   : > { %v4449_v36 = vshll.u32 %v14243_v54, 30  ;;  %v4505_v38 = vshrl.u32 %v18507_v15, %v14169_v61  ;;  %v4526_v39 = vsel %vm4524_vm10, %v4514_v19, 2102212464  ;;  %v4618_v9 = vshll.u32 %v18504_v41, %v4606_v13 }
 0x42c   : > { %v14279_v21 = vmul.u32.u64.low %v14252_v24, %v4532_v14  ;;  %v14280_v43 = vmul.u32.u64.high %v14252_v24, %v4532_v14, %v14279_v21  ;;  %v14285_v48 = vmul.u32.u64.low %v14252_v24, %v4536_v8  ;;  %v14286_v49 = vmul.u32.u64.high %v14252_v24, %v4536_v8, %v14285_v48 }
 0x42d   : > { %v4619_v7 = vshrl.u32 %v18505_v32, %v14261_v35  ;;  %v4699_v29 = vshrl.u32 %v4698_v22, 23  ;;  %v14290_v27 = vshrl.u32 %v4604_v25, 5  ;;  %v4609_v61 = vshll.u32 %v18507_v15, %v4606_v13 }
 0x42e   : > { %v4612_v19 = vshll.u32 %v18508_v5, %v4606_v13  ;;  %v4615_v46 = vshll.u32 %v18509_v17, %v4606_v13  ;;  %v4610_v57 = vshrl.u32 %v18508_v5, %v14261_v35  ;;  %v4613_v14 = vshrl.u32 %v18509_v17, %v14261_v35 }
 0x42f   : > { %v4616_v8 = vshrl.u32 %v18504_v41, %v14261_v35  ;;  %v4621_v48 = vshll.u32 %v18505_v32, %v4606_v13  ;;  %v4259_v22 = vor.u32 4788187, %v4258_v6  ;;  %v4359_v25 = vsub.s32 4294967266, %v14271_v45 }
 0x430   : > { %v4620_v47 = vor.u32 %v4619_v7, %v4618_v9  ;;  %v4622_v28 = vshrl.u32 %v18506_v30, %v14261_v35  ;;  %v4262_v40 = vcvt.s32.f32 %v14264_v12  ;;  %v4355_v20 = vsub.s32 32, %v14271_v45 }
 0x431   : > { %v4525_v54 = vsel %vm4521_vm11, %v4505_v38, %v4508_v58  ;;  %v18814_v33 = vand.u32 2147483647, %v18807_v60  ;;  %v14314_v13 = vsub.s32 %v14216_v4, %v4449_v36  ;;  %v4527_v6 = vsel %vm4523_vm13, %v14223_v18, %v4526_v39 }
 0x432   : > { %v14311_v31 = vpop.eup %8193  ;;  %v4623_v9 = vor.u32 %v4622_v28, %v4621_v48  ;;  %vm4627_vm15 = vcmp.lt.s32.totalorder %v14290_v27, 4  ;;  %v14320_v12 = vor.u32 %v4610_v57, %v4609_v61  ;;  %v14322_v7 = vor.u32 %v4613_v14, %v4612_v19 }
 0x433   : > { %v4599_v50 = vand.u32 8388607, %v18814_v33  ;;  %v4617_v58 = vor.u32 %v4616_v8, %v4615_v46  ;;  %v7576_v38 = vadd.s32 4294967169, %v4699_v29  ;;  %vm3969_vm9 = vcmp.eq.s32.totalorder %v14175_v0, 2 }
 0x434   : > { %v4360_v33 = vadd.s32 127, %v4359_v25  ;;  %vm4624_vm5 = vcmp.lt.s32.totalorder %v14290_v27, 1  ;;  %vm4626_vm3 = vcmp.lt.s32.totalorder %v14290_v27, 3  ;;  %v4633_v4 = vsel %vm4627_vm15, %v4620_v47, 920167782 }
 0x435   : > { %vm3966_vm2 = vcmp.eq.s32.totalorder %v14175_v0, 0  ;;  %v4260_v18 = vand.u32 2147483647, %v4259_v22  ;;  %v4356_v28 = vshll.u32 %v14130_v16, %v14271_v45  ;;  %v4528_v36 = vsel %vm4522_vm4, %v4525_v54, %v4527_v6 }
 0x436   : > { %v4600_v39 = vor.u32 8388608, %v4599_v50  ;;  %vm4069_vm8 = vcmp.eq.s32.totalorder %v14182_v1, 0  ;;  %vm4072_vm1 = vcmp.eq.s32.totalorder %v14182_v1, 2  ;;  %v4452_v29 = vsub.s32 0, %v14314_v13 }
 0x437   : > { %vm4546_vm6 = vc.u32 %v14286_v49, %v14279_v21  ;;  %v4547_v61 = vadd.s32 1, %v14280_v43  ;;  %v4637_v19 = vsel %vm4627_vm15, %v4623_v9, 1326507024  ;;  %vm4625_vm10 = vcmp.lt.s32.totalorder %v14290_v27, 2 }
 0x438   : > { %v4632_v50 = vsel %vm4624_vm5, %v14320_v12, %v14322_v7  ;;  %v4634_v16 = vsel %vm4626_vm3, %v4617_v58, %v4633_v4  ;;  %v4705_v56 = vadd.s32 1, %v7576_v38  ;;  %vm3757_vm11 = vweird.f32 %v18739_v37 }
 0x439   : > { %vm3965_vm13 = vcmp.lt.s32.totalorder %v14175_v0, 2  ;;  %v4357_v54 = vshrl.u32 %v4339_v53, %v4355_v20  ;;  %v4361_v45 = vshll.u32 %v4360_v33, 23  ;;  %v4636_v46 = vsel %vm4624_vm5, %v14322_v7, %v4617_v58 }
 0x43a   : > { %v4638_v57 = vsel %vm4626_vm3, %v4620_v47, %v4637_v19  ;;  %v18815_v14 = vsub.s32 4, %v18812_v52  ;;  %v4263_v48 = vmul.f32 %v4262_v40, %v4260_v18  ;;  %v4544_v20 = vmul.u32 %v14252_v24, %v4528_v36  ;;  %v18816_v47 = vld [vmem:[#allocation41_spill] sm:$0xff] }
 0x43b   : > { %v14364_v53 = vshll.u32 %v4600_v39, 8  ;;  %v4073_v22 = vxor.u32 2147483648, %v14230_v63  ;;  %8195 = vcosq.f32 %v14257_v23  ;;  %v18817_v25 = vand.u32 2147483647, %v18816_v47 }
 0x43c   : > { %v4164_v8 = vsel %vm4079_vm14, %v18815_v14, %v18812_v52  ;;  %v4548_v52 = vsel %vm4546_vm6, %v4547_v61, %v14280_v43  ;;  %v4635_v24 = vsel %vm4625_vm10, %v4632_v50, %v4634_v16  ;;  %vm3963_vm14 = vweird.f32 %v18791_v10 }
 0x43d   : > { %vm14370_vm12 = vcmp.le.f32.partialorder %v18817_v25, 0.7853982  ;;  %8197 = vsinq.f32 %v14257_v23  ;;  %v7565_v40 = vmin.u32 %v4452_v29, %v14314_v13  ;;  %v4639_v9 = vsel %vm4625_vm10, %v4636_v46, %v4638_v57 }
 0x43e   : > { %vm4706_vm4 = vcmp.gt.s32.totalorder %v4705_v56, 0  ;;  %vm4066_vm0 = vweird.f32 %v18799_v42  ;;  %v4070_v38 = vxor.u32 2147483648, %v14311_v31  ;;  %v4266_v33 = vsub.s32 4, %v14005_v59 }
 0x43f   : > { %v4358_v43 = vor.u32 %v4357_v54, %v4356_v28  ;;  %v4362_v4 = vor.u32 4788187, %v4361_v45  ;;  %v4264_v18 = vxor.u32 2147483648, %v4263_v48  ;;  %v14388_v36 = vadd.s32 %v4548_v52, %v4544_v20 }
 0x440   : > { %v14391_v39 = vmul.u32.u64.low %v14364_v53, %v4635_v24  ;;  %v14392_v23 = vmul.u32.u64.high %v14364_v53, %v4635_v24, %v14391_v39  ;;  %v4608_v29 = vshrl.u32 %v18507_v15, %v14261_v35  ;;  %v4707_v50 = vsel %vm4706_vm4, %v4705_v56, 0 }
 0x441   : > { %v14398_v61 = vmul.u32.u64.low %v14364_v53, %v4639_v9  ;;  %v14399_v19 = vmul.u32.u64.high %v14364_v53, %v4639_v9, %v14398_v61  ;;  %v18820_v28 = vxor.u32 2147483648, %v14142_v26  ;;  %vm4182_vm6 = vcmp.lt.s32.totalorder %v18816_v47, 0 }
 0x442   : > { %v4454_v54 = vclz %v7565_v40  ;;  %v4629_v45 = vsel %vm4627_vm15, %v4617_v58, 2102212464  ;;  %v18821_v46 = vxor.u32 2147483648, %v14155_v44  ;;  %v4166_v56 = vsel %vm14205_vm7, 0, %v4164_v8 }
 0x443   : > { %v3971_v16 = vsel %vm3969_vm9, %v18820_v28, %v14155_v44  ;;  %v4363_v57 = vand.u32 2147483647, %v4362_v4  ;;  %v4365_v14 = vcvt.s32.f32 %v4358_v43  ;;  %v4071_v20 = vsel %vm4069_vm8, %v14230_v63, %v4070_v38 }
 0x444   : > { %v3968_v35 = vsel %vm3966_vm2, %v14142_v26, %v18821_v46  ;;  %v4074_v25 = vsel %vm4072_vm1, %v4073_v22, %v14311_v31  ;;  %v4267_v58 = vsel %vm4182_vm6, %v4266_v33, %v14005_v59  ;;  %v4709_v44 = vand.u32 31, %v4707_v50 }
 0x445   : > { %v4265_v52 = vsel %vm4182_vm6, %v4264_v18, %v4263_v48  ;;  %v4550_v24 = vadd.s32 536870912, %v14388_v36  ;;  %v4628_v26 = vsel %vm4624_vm5, %v4608_v29, %v14320_v12  ;;  %v4630_v55 = vsel %vm4626_vm3, %v14322_v7, %v4629_v45  ;;  %v14439_v48 = vpop.eup %8195 }
 0x446   : > { %v14433_v63 = vsel %vm3757_vm11, nan, %v14161_v62  ;;  %v3972_v59 = vsel %vm3965_vm13, %v3968_v35, %v3971_v16  ;;  %v14437_v31 = vand.u32 3, %v4166_v56  ;;  %v7566_v8 = vadd.s32 4294967294, %v4454_v54 }
 0x447   : > { %18822 = vst [vmem:[#allocation39_spill] sm:$0xff] %v14433_v63  ;;  %vm18823_vm7 = vweird.f32 %v18781_v2  ;;  %vm18825_vm15 = vcmp.lt.s32.totalorder %v14182_v1, 2  ;;  %v4269_v37 = vsel %vm14370_vm12, 0, %v4267_v58  ;;  %v4366_v62 = vmul.f32 %v4365_v14, %v4363_v57  ;;  %v8198_v22 = vpop.eup %8197 }
 0x448   : > { %v14444_v12 = vsel %vm18823_vm7, nan, %v14173_v11  ;;  %v4075_v7 = vsel %vm18825_vm15, %v4071_v20, %v4074_v25  ;;  %v14453_v0 = vsel %vm14370_vm12, %v18816_v47, %v4265_v52  ;;  %v4631_v40 = vsel %vm4625_vm10, %v4628_v26, %v4630_v55  ;;  %v18831_v25 = vld [vmem:[#allocation42_spill] sm:$0xff]  ;;  %v18834_v55 = vld [vmem:[#allocation47_spill] sm:$0xff] }
 0x449   : > { %18824 = vst [vmem:[#allocation40_spill] sm:$0xff] %v14444_v12  ;;  %v4650_v2 = vadd.s32 1, %v14392_v23  ;;  %v14458_v11 = vsub.s32 32, %v4709_v44  ;;  %v14462_v1 = vsel %vm3963_vm14, nan, %v3972_v59  ;;  %vm4285_vm9 = vcmp.lt.s32.totalorder %v18775_v3, 0  ;;  %v18832_v52 = vld [vmem:[#allocation34_spill] sm:$0xff] }
 0x44a   : > { %18826 = vst [vmem:[#allocation45_spill] sm:$0xff] %v14462_v1  ;;  %v14465_v9 = vshrl.u32 %v4550_v24, 30  ;;  %vm4649_vm5 = vc.u32 %v14399_v19, %v14391_v39  ;;  %v14471_v6 = vsel %vm4066_vm0, nan, %v4075_v7  ;;  %vm4172_vm3 = vcmp.eq.s32.totalorder %v14437_v31, 0  ;;  %v18833_v24 = vld [vmem:[#allocation37_spill] sm:$0xff] }
 0x44b   : > { %18827 = vst [vmem:[#allocation28_spill] sm:$0xff] %v14471_v6  ;;  %vm4175_vm2 = vcmp.eq.s32.totalorder %v14437_v31, 2  ;;  %v4176_v27 = vxor.u32 2147483648, %v14439_v48  ;;  %v14476_v10 = vand.u32 3, %v4269_v37  ;;  %vm7567_vm8 = vcmp.lt.s32.totalorder %v7566_v8, 0 }
 0x44c   : > { %v4173_v38 = vxor.u32 2147483648, %v8198_v22  ;;  %8199 = vcosq.f32 %v14453_v0  ;;  %v18828_v33 = vand.u32 2147483647, %v18775_v3  ;;  %v4367_v42 = vxor.u32 2147483648, %v4366_v62 }
 0x44d   : > { %v4647_v4 = vmul.u32 %v14364_v53, %v4631_v40  ;;  %v4651_v18 = vsel %vm4649_vm5, %v4650_v2, %v14392_v23  ;;  %v18453_v29 = vand.u32 2147483647, %v18813_v34  ;;  %v4721_v61 = vshll.u32 %v18504_v41, %v4709_v44 }
 0x44e   : > { %vm14481_vm1 = vcmp.le.f32.partialorder %v18828_v33, 0.7853982  ;;  %v4722_v28 = vshrl.u32 %v18505_v32, %v14458_v11  ;;  %v4457_v16 = vsel %vm7567_vm8, 0, %v7566_v8  ;;  %v4552_v54 = vshll.u32 %v14465_v9, 30 }
 0x44f   : > { %v14492_v45 = vshrl.u32 %v4707_v50, 5  ;;  %v4712_v46 = vshll.u32 %v18507_v15, %v4709_v44  ;;  %v4715_v35 = vshll.u32 %v18508_v5, %v4709_v44  ;;  %v4718_v53 = vshll.u32 %v18509_v17, %v4709_v44 }
 0x450   : > { %v4724_v23 = vshll.u32 %v18505_v32, %v4709_v44  ;;  %v4725_v56 = vshrl.u32 %v18506_v30, %v14458_v11  ;;  %v14500_v57 = vadd.s32 %v4651_v18, %v4647_v4  ;;  %v4713_v14 = vshrl.u32 %v18508_v5, %v14458_v11 }
 0x451   : > { %v4716_v50 = vshrl.u32 %v18509_v17, %v14458_v11  ;;  %v4719_v20 = vshrl.u32 %v18504_v41, %v14458_v11  ;;  %v4369_v58 = vsub.s32 4, %v18831_v25  ;;  %v4442_v26 = vadd.s32 %v18833_v24, %v18832_v52 }
 0x452   : > { %v4723_v44 = vor.u32 %v4722_v28, %v4721_v61  ;;  %v4801_v59 = vand.u32 2139095040, %v18834_v55  ;;  %v4368_v8 = vsel %vm4285_vm9, %v4367_v42, %v4366_v62  ;;  %v14515_v7 = vsub.s32 %v14388_v36, %v4552_v54 }
 0x453   : > { %v4702_v37 = vand.u32 8388607, %v18453_v29  ;;  %vm4730_vm10 = vcmp.lt.s32.totalorder %v14492_v45, 4  ;;  %v4458_v40 = vsub.s32 32, %v4457_v16  ;;  %v4462_v2 = vsub.s32 4294967266, %v4457_v16 }
 0x454   : > { %v4726_v33 = vor.u32 %v4725_v56, %v4724_v23  ;;  %v4802_v4 = vshrl.u32 %v4801_v59, 23  ;;  %v4653_v18 = vadd.s32 536870912, %v14500_v57  ;;  %v4714_v61 = vor.u32 %v4713_v14, %v4712_v46 }
 0x455   : > { %v4717_v28 = vor.u32 %v4716_v50, %v4715_v35  ;;  %v4720_v52 = vor.u32 %v4719_v20, %v4718_v53  ;;  %vm4727_vm11 = vcmp.lt.s32.totalorder %v14492_v45, 1  ;;  %vm4729_vm13 = vcmp.lt.s32.totalorder %v14492_v45, 3 }
 0x456   : > { %v4736_v36 = vsel %vm4730_vm10, %v4723_v44, 920167782  ;;  %v7580_v62 = vadd.s32 4294967169, %v4802_v4  ;;  %v14525_v42 = vpop.eup %8199  ;;  %v14530_v54 = vsel %vm4172_vm3, %v14439_v48, %v4173_v38  ;;  %v14534_v46 = vsel %vm4175_vm2, %v4176_v27, %v8198_v22 }
 0x457   : > { %v4555_v35 = vsub.s32 0, %v14515_v7  ;;  %v4703_v53 = vor.u32 8388608, %v4702_v37  ;;  %v14540_v23 = vsel %vm4285_vm9, %v4369_v58, %v18831_v25  ;;  %v4371_v56 = vsel %vm14481_vm1, %v18775_v3, %v4368_v8 }
 0x458   : > { %v4740_v48 = vsel %vm4730_vm10, %v4726_v33, 1326507024  ;;  %v4808_v38 = vadd.s32 1, %v7580_v62  ;;  %v14547_v14 = vshrl.u32 %v4653_v18, 30  ;;  %vm4728_vm0 = vcmp.lt.s32.totalorder %v14492_v45, 2 }
 0x459   : > { %v4735_v22 = vsel %vm4727_vm11, %v4714_v61, %v4717_v28  ;;  %v4737_v27 = vsel %vm4729_vm13, %v4720_v52, %v4736_v36  ;;  %v4459_v50 = vshll.u32 %v14314_v13, %v4457_v16  ;;  %v4460_v20 = vshrl.u32 %v4442_v26, %v4458_v40 }
 0x45a   : > { %v4463_v25 = vadd.s32 127, %v4462_v2  ;;  %vm4809_vm4 = vcmp.gt.s32.totalorder %v4808_v38, 0  ;;  %v7569_v58 = vmin.u32 %v4555_v35, %v14515_v7  ;;  %v4739_v24 = vsel %vm4727_vm11, %v4717_v28, %v4720_v52 }
 0x45b   : > { %v4741_v59 = vsel %vm4729_vm13, %v4723_v44, %v4740_v48  ;;  %v14560_v8 = vshll.u32 %v4703_v53, 8  ;;  %8201 = vsinq.f32 %v14453_v0  ;;  %v4711_v37 = vshrl.u32 %v18507_v15, %v14458_v11 }
 0x45c   : > { %v4738_v13 = vsel %vm4728_vm0, %v4735_v22, %v4737_v27  ;;  %v4810_v16 = vsel %vm4809_vm4, %v4808_v38, 0  ;;  %8203 = vcosq.f32 %v4371_v56  ;;  %v4655_v44 = vshll.u32 %v14547_v14, 30  ;;  %v18835_v38 = vld [vmem:[#allocation48_spill] sm:$0xff] }
 0x45d   : > { %v14572_v2 = vor.u32 %v4460_v20, %v4459_v50  ;;  %v4732_v0 = vsel %vm4730_vm10, %v4720_v52, 2102212464  ;;  %v4742_v11 = vsel %vm4728_vm0, %v4739_v24, %v4741_v59  ;;  %v4812_v33 = vand.u32 31, %v4810_v16 }
 0x45e   : > { %v4464_v4 = vshll.u32 %v4463_v25, 23  ;;  %v4557_v18 = vclz %v7569_v58  ;;  %v14579_v36 = vmul.u32.u64.low %v14560_v8, %v4738_v13  ;;  %v14580_v62 = vmul.u32.u64.high %v14560_v8, %v4738_v13, %v14579_v36 }
 0x45f   : > { %v4731_v35 = vsel %vm4727_vm11, %v4711_v37, %v4714_v61  ;;  %v18454_v53 = vand.u32 2147483647, %v18834_v55  ;;  %v14586_v48 = vsub.s32 32, %v4812_v33  ;;  %v4904_v52 = vand.u32 2139095040, %v18835_v38 }
 0x460   : > { %v14590_v22 = vsub.s32 %v14500_v57, %v4655_v44  ;;  %v4733_v27 = vsel %vm4729_vm13, %v4717_v28, %v4732_v0  ;;  %v14595_v50 = vmul.u32.u64.low %v14560_v8, %v4742_v11  ;;  %v14596_v20 = vmul.u32.u64.high %v14560_v8, %v4742_v11, %v14595_v50 }
 0x461   : > { %v4815_v25 = vshll.u32 %v18507_v15, %v4812_v33  ;;  %v4818_v61 = vshll.u32 %v18508_v5, %v4812_v33  ;;  %v4821_v58 = vshll.u32 %v18509_v17, %v4812_v33  ;;  %v4824_v24 = vshll.u32 %v18504_v41, %v4812_v33 }
 0x462   : > { %v4816_v59 = vshrl.u32 %v18508_v5, %v14586_v48  ;;  %v4819_v57 = vshrl.u32 %v18509_v17, %v14586_v48  ;;  %v4822_v28 = vshrl.u32 %v18504_v41, %v14586_v48  ;;  %v4825_v37 = vshrl.u32 %v18505_v32, %v14586_v48 }
 0x463   : > { %vm4171_vm12 = vcmp.lt.s32.totalorder %v14437_v31, 2  ;;  %vm4278_vm14 = vcmp.eq.s32.totalorder %v14476_v10, 2  ;;  %8205 = vsinq.f32 %v4371_v56  ;;  %v4465_v13 = vor.u32 4788187, %v4464_v4 }
 0x464   : > { %v14612_v44 = vshrl.u32 %v4810_v16, 5  ;;  %v4905_v0 = vshrl.u32 %v4904_v52, 23  ;;  %vm4275_vm6 = vcmp.eq.s32.totalorder %v14476_v10, 0  ;;  %v4468_v11 = vcvt.s32.f32 %v14572_v2 }
 0x465   : > { %v7570_v50 = vadd.s32 4294967294, %v4557_v18  ;;  %v4734_v29 = vsel %vm4728_vm0, %v4731_v35, %v4733_v27  ;;  %v4805_v26 = vand.u32 8388607, %v18454_v53  ;;  %v8202_v40 = vpop.eup %8201  ;;  %v4658_v6 = vsub.s32 0, %v14590_v22  ;;  %v18844_v53 = vld [vmem:[#allocation44_spill] sm:$0xff] }
 0x466   : > { %v4826_v1 = vor.u32 %v4825_v37, %v4824_v24  ;;  %v4827_v56 = vshll.u32 %v18505_v32, %v4812_v33  ;;  %v4828_v16 = vshrl.u32 %v18506_v30, %v14586_v48  ;;  %v14624_v4 = vpop.eup %8203  ;;  %v4753_v2 = vadd.s32 1, %v14580_v62 }
 0x467   : > { %v14627_v18 = vor.u32 %v4816_v59, %v4815_v25  ;;  %v14629_v45 = vor.u32 %v4819_v57, %v4818_v61  ;;  %v4823_v35 = vor.u32 %v4822_v28, %v4821_v58  ;;  %vm4830_vm7 = vcmp.lt.s32.totalorder %v14612_v44, 1 }
 0x468   : > { %v4829_v52 = vor.u32 %v4828_v16, %v4827_v56  ;;  %vm4832_vm15 = vcmp.lt.s32.totalorder %v14612_v44, 3  ;;  %v7584_v27 = vadd.s32 4294967169, %v4905_v0  ;;  %v4466_v24 = vand.u32 2147483647, %v4465_v13 }
 0x469   : > { %vm4752_vm9 = vc.u32 %v14596_v20, %v14579_v36  ;;  %v4806_v33 = vor.u32 8388608, %v4805_v26  ;;  %vm4833_vm5 = vcmp.lt.s32.totalorder %v14612_v44, 4  ;;  %v4276_v37 = vxor.u32 2147483648, %v8202_v40 }
 0x46a   : > { %vm7571_vm3 = vcmp.lt.s32.totalorder %v7570_v50, 0  ;;  %v4750_v25 = vmul.u32 %v14560_v8, %v4734_v29  ;;  %v4839_v61 = vsel %vm4833_vm5, %v4826_v1, 920167782  ;;  %vm4274_vm2 = vcmp.lt.s32.totalorder %v14476_v10, 2 }
 0x46b   : > { %v7573_v58 = vmin.u32 %v4658_v6, %v14590_v22  ;;  %vm4831_vm8 = vcmp.lt.s32.totalorder %v14612_v44, 2  ;;  %v4838_v26 = vsel %vm4830_vm7, %v14627_v18, %v14629_v45  ;;  %v4840_v59 = vsel %vm4832_vm15, %v4823_v35, %v4839_v61 }
 0x46c   : > { %v4754_v57 = vsel %vm4752_vm9, %v4753_v2, %v14580_v62  ;;  %v4842_v29 = vsel %vm4830_vm7, %v14629_v45, %v4823_v35  ;;  %v4843_v8 = vsel %vm4833_vm5, %v4829_v52, 1326507024  ;;  %v4911_v6 = vadd.s32 1, %v7584_v27  ;;  %v18837_v2 = vld [vmem:[#allocation43_spill] sm:$0xff] }
 0x46d   : > { %v18836_v28 = vsel %vm14481_vm1, 0, %v14540_v23  ;;  %v4469_v0 = vmul.f32 %v4468_v11, %v4466_v24  ;;  %v4844_v56 = vsel %vm4832_vm15, %v4826_v1, %v4843_v8  ;;  %v14662_v16 = vshll.u32 %v4806_v33, 8  ;;  %v8206_v62 = vpop.eup %8205  ;;  %v18842_v33 = vld [vmem:[#allocation38_spill] sm:$0xff] }
 0x46e   : > { %v14658_v13 = vand.u32 3, %v18836_v28  ;;  %v18838_v61 = vand.u32 2147483647, %v18837_v2  ;;  %vm4388_vm11 = vcmp.lt.s32.totalorder %v18837_v2, 0  ;;  %v14672_v43 = vsel %vm7571_vm3, 0, %v7570_v50 }
 0x46f   : > { %v4841_v23 = vsel %vm4831_vm8, %v4838_v26, %v4840_v59  ;;  %vm4169_vm1 = vweird.f32 %v18806_v51  ;;  %v4178_v1 = vsel %vm4171_vm12, %v14530_v54, %v14534_v46  ;;  %v18841_v11 = vxor.u32 2147483648, %v14525_v42 }
 0x470   : > { %vm14666_vm10 = vcmp.le.f32.partialorder %v18838_v61, 0.7853982  ;;  %v14685_v27 = vadd.s32 %v4754_v57, %v4750_v25  ;;  %v4845_v50 = vsel %vm4831_vm8, %v4842_v29, %v4844_v56  ;;  %vm4272_vm13 = vweird.f32 %v18816_v47 }
 0x471   : > { %v4280_v52 = vsel %vm4278_vm14, %v18841_v11, %v8202_v40  ;;  %v4277_v24 = vsel %vm4275_vm6, %v14525_v42, %v4276_v37  ;;  %v4472_v26 = vsub.s32 4, %v18842_v33  ;;  %v4660_v31 = vclz %v7573_v58 }
 0x472   : > { %vm4912_vm0 = vcmp.gt.s32.totalorder %v4911_v6, 0  ;;  %vm4377_vm4 = vcmp.lt.s32.totalorder %v14658_v13, 2  ;;  %v4470_v54 = vxor.u32 2147483648, %v4469_v0  ;;  %v4565_v46 = vsub.s32 4294967266, %v14672_v43 }
 0x473   : > { %v14697_v40 = vmul.u32.u64.low %v14662_v16, %v4841_v23  ;;  %v14698_v25 = vmul.u32.u64.high %v14662_v16, %v4841_v23, %v14697_v40  ;;  %v4382_v59 = vxor.u32 2147483648, %v14624_v4  ;;  %v4814_v57 = vshrl.u32 %v18507_v15, %v14586_v48 }
 0x474   : > { %v14705_v42 = vmul.u32.u64.low %v14662_v16, %v4845_v50  ;;  %v14706_v37 = vmul.u32.u64.high %v14662_v16, %v4845_v50, %v14705_v42  ;;  %v4379_v58 = vxor.u32 2147483648, %v8206_v62  ;;  %v4756_v29 = vadd.s32 536870912, %v14685_v27 }
 0x475   : > { %v4835_v8 = vsel %vm4833_vm5, %v4823_v35, 2102212464  ;;  %v4913_v28 = vsel %vm4912_vm0, %v4911_v6, 0  ;;  %vm4378_vm12 = vcmp.eq.s32.totalorder %v14658_v13, 0  ;;  %vm4381_vm14 = vcmp.eq.s32.totalorder %v14658_v13, 2 }
 0x476   : > { %v4473_v56 = vsel %vm4388_vm11, %v4472_v26, %v18842_v33  ;;  %v7574_v48 = vadd.s32 4294967294, %v4660_v31  ;;  %v4471_v61 = vsel %vm4388_vm11, %v4470_v54, %v4469_v0  ;;  %v4545_v23 = vadd.s32 %v14279_v21, %v14286_v49 }
 0x477   : > { %v4561_v11 = vsub.s32 32, %v14672_v43  ;;  %v4566_v50 = vadd.s32 127, %v4565_v46  ;;  %v4281_v35 = vsel %vm4274_vm2, %v4277_v24, %v4280_v52  ;;  %v4834_v6 = vsel %vm4830_vm7, %v4814_v57, %v14627_v18 }
 0x478   : > { %v4836_v33 = vsel %vm4832_vm15, %v14629_v45, %v4835_v8  ;;  %v4915_v26 = vand.u32 31, %v4913_v28  ;;  %v4380_v0 = vsel %vm4378_vm12, %v14624_v4, %v4379_v58  ;;  %v4383_v31 = vsel %vm4381_vm14, %v4382_v59, %v8206_v62 }
 0x479   : > { %v4475_v21 = vsel %vm14666_vm10, 0, %v4473_v56  ;;  %v14732_v49 = vshrl.u32 %v4756_v29, 30  ;;  %v14737_v10 = vsel %vm14666_vm10, %v18837_v2, %v4471_v61  ;;  %v4562_v18 = vshll.u32 %v14515_v7, %v14672_v43 }
 0x47a   : > { %v4575_v52 = vsub.s32 4, %v14465_v9  ;;  %vm7575_vm6 = vcmp.lt.s32.totalorder %v7574_v48, 0  ;;  %v4563_v45 = vshrl.u32 %v4545_v23, %v4561_v11  ;;  %v4567_v24 = vshll.u32 %v4566_v50, 23 }
 0x47b   : > { %v4837_v4 = vsel %vm4831_vm8, %v4834_v6, %v4836_v33  ;;  %v4856_v62 = vadd.s32 1, %v14698_v25  ;;  %v14747_v54 = vsel %vm4169_vm1, nan, %v4178_v1  ;;  %vm4491_vm7 = vcmp.lt.s32.totalorder %v18844_v53, 0 }
 0x47c   : > { %18843 = vst [vmem:[#allocation46_spill] sm:$0xff] %v14747_v54  ;;  %vm4855_vm15 = vc.u32 %v14706_v37, %v14697_v40  ;;  %v14752_v7 = vsub.s32 32, %v4915_v26  ;;  %v14756_v43 = vsel %vm4272_vm13, nan, %v4281_v35  ;;  %v14758_v46 = vand.u32 3, %v4475_v21 }
 0x47d   : > { %18845 = vst [vmem:[#allocation41_spill] sm:$0xff] %v14756_v43  ;;  %v4663_v44 = vsel %vm7575_vm6, 0, %v7574_v48  ;;  %v4758_v59 = vshll.u32 %v14732_v49, 30  ;;  %v4384_v51 = vsel %vm4377_vm4, %v4380_v0, %v4383_v31  ;;  %8207 = vcosq.f32 %v14737_v10 }
 0x47e   : > { %v14767_v1 = vsel %vm4491_vm7, %v4575_v52, %v14465_v9  ;;  %v4853_v57 = vmul.u32 %v14662_v16, %v4837_v4  ;;  %vm4375_vm9 = vweird.f32 %v18775_v3  ;;  %v4564_v47 = vor.u32 %v4563_v45, %v4562_v18 }
 0x47f   : > { %v4568_v42 = vor.u32 4788187, %v4567_v24  ;;  %v4648_v58 = vadd.s32 %v14391_v39, %v14399_v19  ;;  %v4857_v29 = vsel %vm4855_vm15, %v4856_v62, %v14698_v25  ;;  %v4668_v13 = vsub.s32 4294967266, %v4663_v44  ;;  %v18849_v24 = vld [vmem:[#allocation49_spill] sm:$0xff] }
 0x480   : > { %v18456_v8 = vand.u32 2147483647, %v18835_v38  ;;  %v4927_v56 = vshll.u32 %v18504_v41, %v4915_v26  ;;  %v4928_v9 = vshrl.u32 %v18505_v32, %v14752_v7  ;;  %v18846_v48 = vand.u32 2147483647, %v18844_v53 }
 0x481   : > { %v14785_v61 = vsub.s32 %v14685_v27, %v4758_v59  ;;  %v14787_v39 = vshrl.u32 %v4913_v28, 5  ;;  %v4930_v19 = vshll.u32 %v18505_v32, %v4915_v26  ;;  %v4931_v25 = vshrl.u32 %v18506_v30, %v14752_v7 }
 0x482   : > { %vm14780_vm5 = vcmp.le.f32.partialorder %v18846_v48, 0.7853982  ;;  %v4664_v23 = vsub.s32 32, %v4663_v44  ;;  %v14792_v11 = vadd.s32 %v4857_v29, %v4853_v57  ;;  %v4918_v50 = vshll.u32 %v18507_v15, %v4915_v26 }
 0x483   : > { %v4921_v35 = vshll.u32 %v18508_v5, %v4915_v26  ;;  %v4919_v6 = vshrl.u32 %v18508_v5, %v14752_v7  ;;  %v4922_v27 = vshrl.u32 %v18509_v17, %v14752_v7  ;;  %v4924_v28 = vshll.u32 %v18509_v17, %v4915_v26 }
 0x484   : > { %v4925_v33 = vshrl.u32 %v18504_v41, %v14752_v7  ;;  %v4571_v0 = vcvt.s32.f32 %v4564_v47  ;;  %v4669_v31 = vadd.s32 127, %v4668_v13  ;;  %v4908_v21 = vand.u32 8388607, %v18456_v8 }
 0x485   : > { %v4929_v18 = vor.u32 %v4928_v9, %v4927_v56  ;;  %v4761_v52 = vsub.s32 0, %v14785_v61  ;;  %v4932_v45 = vor.u32 %v4931_v25, %v4930_v19  ;;  %vm4936_vm3 = vcmp.lt.s32.totalorder %v14787_v39, 4 }
 0x486   : > { %v5007_v4 = vand.u32 2139095040, %v18849_v24  ;;  %v4569_v62 = vand.u32 2147483647, %v4568_v42  ;;  %v4665_v59 = vshll.u32 %v14590_v22, %v4663_v44  ;;  %v4666_v26 = vshrl.u32 %v4648_v58, %v4664_v23 }
 0x487   : > { %v4859_v57 = vadd.s32 536870912, %v14792_v11  ;;  %v4920_v29 = vor.u32 %v4919_v6, %v4918_v50  ;;  %v4923_v47 = vor.u32 %v4922_v27, %v4921_v35  ;;  %v4926_v13 = vor.u32 %v4925_v33, %v4924_v28  ;;  %v14810_v43 = vpop.eup %8207 }
 0x488   : > { %v5008_v48 = vshrl.u32 %v5007_v4, 23  ;;  %v4670_v56 = vshll.u32 %v4669_v31, 23  ;;  %vm4933_vm2 = vcmp.lt.s32.totalorder %v14787_v39, 1  ;;  %vm4935_vm8 = vcmp.lt.s32.totalorder %v14787_v39, 3 }
 0x489   : > { %v4942_v9 = vsel %vm4936_vm3, %v4929_v18, 920167782  ;;  %v7577_v42 = vmin.u32 %v4761_v52, %v14785_v61  ;;  %v4909_v22 = vor.u32 8388608, %v4908_v21  ;;  %v4946_v44 = vsel %vm4936_vm3, %v4932_v45, 1326507024 }
 0x48a   : > { %v7588_v58 = vadd.s32 4294967169, %v5008_v48  ;;  %v14821_v19 = vsel %vm4375_vm9, nan, %v4384_v51  ;;  %v4572_v25 = vmul.f32 %v4571_v0, %v4569_v62  ;;  %v14826_v50 = vshrl.u32 %v4859_v57, 30  ;;  %v18851_v57 = vld [vmem:[#allocation50_spill] sm:$0xff] }
 0x48b   : > { %18850 = vst [vmem:[#allocation42_spill] sm:$0xff] %v14821_v19  ;;  %vm4934_vm10 = vcmp.lt.s32.totalorder %v14787_v39, 2  ;;  %v4941_v35 = vsel %vm4933_vm2, %v4920_v29, %v4923_v47  ;;  %v4943_v6 = vsel %vm4935_vm8, %v4926_v13, %v4942_v9  ;;  %v4667_v28 = vor.u32 %v4666_v26, %v4665_v59 }
 0x48c   : > { %v5014_v27 = vadd.s32 1, %v7588_v58  ;;  %v4671_v3 = vor.u32 4788187, %v4670_v56  ;;  %v4945_v51 = vsel %vm4933_vm2, %v4923_v47, %v4926_v13  ;;  %v4947_v33 = vsel %vm4935_vm8, %v4929_v18, %v4946_v44 }
 0x48d   : > { %v4763_v0 = vclz %v7577_v42  ;;  %v14837_v31 = vshll.u32 %v4909_v22, 8  ;;  %v18455_v21 = vand.u32 2147483647, %v18849_v24  ;;  %v4861_v52 = vshll.u32 %v14826_v50, 30 }
 0x48e   : > { %vm5015_vm11 = vcmp.gt.s32.totalorder %v5014_v27, 0  ;;  %v4917_v45 = vshrl.u32 %v18507_v15, %v14752_v7  ;;  %v4944_v4 = vsel %vm4934_vm10, %v4941_v35, %v4943_v6  ;;  %v4938_v59 = vsel %vm4936_vm3, %v4926_v13, 2102212464 }
 0x48f   : > { %v5016_v62 = vsel %vm5015_vm11, %v5014_v27, 0  ;;  %v4948_v18 = vsel %vm4934_vm10, %v4945_v51, %v4947_v33  ;;  %v5110_v48 = vand.u32 2139095040, %v18851_v57  ;;  %8209 = vsinq.f32 %v14737_v10 }
 0x490   : > { %v5018_v26 = vand.u32 31, %v5016_v62  ;;  %v4573_v56 = vxor.u32 2147483648, %v4572_v25  ;;  %v4672_v9 = vand.u32 2147483647, %v4671_v3  ;;  %v4674_v42 = vcvt.s32.f32 %v4667_v28 }
 0x491   : > { %v7578_v22 = vadd.s32 4294967294, %v4763_v0  ;;  %v14852_v7 = vmul.u32.u64.low %v14837_v31, %v4944_v4  ;;  %v14853_v44 = vmul.u32.u64.high %v14837_v31, %v4944_v4, %v14852_v7  ;;  %v4937_v13 = vsel %vm4933_vm2, %v4917_v45, %v4920_v29 }
 0x492   : > { %v14856_v58 = vsub.s32 32, %v5018_v26  ;;  %v4939_v35 = vsel %vm4935_vm8, %v4923_v47, %v4938_v59  ;;  %v14863_v6 = vmul.u32.u64.low %v14837_v31, %v4948_v18  ;;  %v14864_v10 = vmul.u32.u64.high %v14837_v31, %v4948_v18, %v14863_v6 }
 0x493   : > { %v14867_v27 = vsub.s32 %v14792_v11, %v4861_v52  ;;  %v5011_v28 = vand.u32 8388607, %v18455_v21  ;;  %v5021_v3 = vshll.u32 %v18507_v15, %v5018_v26  ;;  %v5111_v51 = vshrl.u32 %v5110_v48, 23 }
 0x494   : > { %vm4594_vm1 = vcmp.lt.s32.totalorder %v18807_v60, 0  ;;  %v5022_v29 = vshrl.u32 %v18508_v5, %v14856_v58  ;;  %v5024_v47 = vshll.u32 %v18508_v5, %v5018_v26  ;;  %v5025_v33 = vshrl.u32 %v18509_v17, %v14856_v58 }
 0x495   : > { %v5030_v0 = vshll.u32 %v18504_v41, %v5018_v26  ;;  %v14879_v11 = vshrl.u32 %v5016_v62, 5  ;;  %v5027_v52 = vshll.u32 %v18509_v17, %v5018_v26  ;;  %v5028_v45 = vshrl.u32 %v18504_v41, %v14856_v58 }
 0x496   : > { %v5031_v4 = vshrl.u32 %v18505_v32, %v14856_v58  ;;  %v4485_v59 = vxor.u32 2147483648, %v14810_v43  ;;  %v4574_v18 = vsel %vm4491_vm7, %v4573_v56, %v4572_v25  ;;  %v4675_v48 = vmul.f32 %v4674_v42, %v4672_v9 }
 0x497   : > { %vm7579_vm13 = vcmp.lt.s32.totalorder %v7578_v22, 0  ;;  %v4864_v6 = vsub.s32 0, %v14867_v27  ;;  %v4940_v62 = vsel %vm4934_vm10, %v4937_v13, %v4939_v35  ;;  %v5033_v21 = vshll.u32 %v18505_v32, %v5018_v26 }
 0x498   : > { %v7592_v8 = vadd.s32 4294967169, %v5111_v51  ;;  %vm4481_vm0 = vcmp.eq.s32.totalorder %v14758_v46, 0  ;;  %vm4484_vm4 = vcmp.eq.s32.totalorder %v14758_v46, 2  ;;  %v5023_v23 = vor.u32 %v5022_v29, %v5021_v3 }
 0x499   : > { %v5026_v19 = vor.u32 %v5025_v33, %v5024_v47  ;;  %v5032_v54 = vor.u32 %v5031_v4, %v5030_v0  ;;  %v5034_v25 = vshrl.u32 %v18506_v30, %v14856_v58  ;;  %v4959_v56 = vadd.s32 1, %v14853_v44  ;;  %v8210_v39 = vpop.eup %8209 }
 0x49a   : > { %v5012_v9 = vor.u32 8388608, %v5011_v28  ;;  %v5029_v42 = vor.u32 %v5028_v45, %v5027_v52  ;;  %vm5036_vm12 = vcmp.lt.s32.totalorder %v14879_v11, 1  ;;  %v18852_v26 = vand.u32 2147483647, %v18807_v60 }
 0x49b   : > { %vm4958_vm6 = vc.u32 %v14864_v10, %v14852_v7  ;;  %v5035_v35 = vor.u32 %v5034_v25, %v5033_v21  ;;  %vm5038_vm7 = vcmp.lt.s32.totalorder %v14879_v11, 3  ;;  %vm5039_vm15 = vcmp.lt.s32.totalorder %v14879_v11, 4 }
 0x49c   : > { %vm14901_vm14 = vcmp.le.f32.partialorder %v18852_v26, 0.7853982  ;;  %v4676_v3 = vxor.u32 2147483648, %v4675_v48  ;;  %v14910_v28 = vsel %vm7579_vm13, 0, %v7578_v22  ;;  %v7581_v51 = vmin.u32 %v4864_v6, %v14867_v27 }
 0x49d   : > { %vm5037_vm9 = vcmp.lt.s32.totalorder %v14879_v11, 2  ;;  %v4956_v29 = vmul.u32 %v14837_v31, %v4940_v62  ;;  %v5044_v47 = vsel %vm5036_vm12, %v5023_v23, %v5026_v19  ;;  %v5045_v21 = vsel %vm5039_vm15, %v5032_v54, 920167782 }
 0x49e   : > { %v5117_v33 = vadd.s32 1, %v7592_v8  ;;  %v4482_v0 = vxor.u32 2147483648, %v8210_v39  ;;  %v4960_v52 = vsel %vm4958_vm6, %v4959_v56, %v14853_v44  ;;  %v5046_v22 = vsel %vm5038_vm7, %v5029_v42, %v5045_v21 }
 0x49f   : > { %v14922_v45 = vshll.u32 %v5012_v9, 8  ;;  %v4577_v4 = vsel %vm14780_vm5, %v18844_v53, %v4574_v18  ;;  %v5047_v31 = vsel %vm5037_vm9, %v5044_v47, %v5046_v22  ;;  %v5048_v6 = vsel %vm5036_vm12, %v5026_v19, %v5029_v42 }
 0x4a0   : > { %v5049_v8 = vsel %vm5039_vm15, %v5035_v35, 1326507024  ;;  %v4677_v44 = vsel %vm4594_vm1, %v4676_v3, %v4675_v48  ;;  %v4771_v62 = vsub.s32 4294967266, %v14910_v28  ;;  %v4866_v25 = vclz %v7581_v51 }
 0x4a1   : > { %v5050_v56 = vsel %vm5038_vm7, %v5032_v54, %v5049_v8  ;;  %v14938_v9 = vadd.s32 %v4960_v52, %v4956_v29  ;;  %v18457_v26 = vand.u32 2147483647, %v18851_v57  ;;  %vm5118_vm3 = vcmp.gt.s32.totalorder %v5117_v33, 0 }
 0x4a2   : > { %v5051_v18 = vsel %vm5037_vm9, %v5048_v6, %v5050_v56  ;;  %v5020_v35 = vshrl.u32 %v18507_v15, %v14856_v58  ;;  %v14946_v47 = vmul.u32.u64.low %v14922_v45, %v5047_v31  ;;  %v14947_v48 = vmul.u32.u64.high %v14922_v45, %v5047_v31, %v14946_v47 }
 0x4a3   : > { %v5119_v3 = vsel %vm5118_vm3, %v5117_v33, 0  ;;  %v5041_v54 = vsel %vm5039_vm15, %v5029_v42, 2102212464  ;;  %v14953_v51 = vmul.u32.u64.low %v14922_v45, %v5051_v18  ;;  %v14954_v29 = vmul.u32.u64.high %v14922_v45, %v5051_v18, %v14953_v51 }
 0x4a4   : > { %v5121_v21 = vand.u32 31, %v5119_v3  ;;  %v14959_v52 = vsel %vm4481_vm0, %v14810_v43, %v4482_v0  ;;  %v14963_v58 = vsel %vm4484_vm4, %v4485_v59, %v8210_v39  ;;  %8211 = vcosq.f32 %v4577_v4 }
 0x4a5   : > { %v18855_v33 = vsel %vm14780_vm5, 0, %v14767_v1  ;;  %8213 = vsinq.f32 %v4577_v4  ;;  %v4678_v22 = vsub.s32 4, %v14547_v14  ;;  %v7582_v31 = vadd.s32 4294967294, %v4866_v25 }
 0x4a6   : > { %v14969_v42 = vand.u32 3, %v18855_v33  ;;  %v5122_v6 = vsub.s32 32, %v5121_v21  ;;  %v4680_v43 = vsel %vm14901_vm14, %v18807_v60, %v4677_v44  ;;  %v4751_v59 = vadd.s32 %v14579_v36, %v14596_v20 }
 0x4a7   : > { %v5040_v39 = vsel %vm5036_vm12, %v5020_v35, %v5023_v23  ;;  %v5042_v1 = vsel %vm5038_vm7, %v5026_v19, %v5041_v54  ;;  %v4767_v16 = vsub.s32 32, %v14910_v28  ;;  %v4772_v0 = vadd.s32 127, %v4771_v62 }
 0x4a8   : > { %v4962_v4 = vadd.s32 536870912, %v14938_v9  ;;  %v5114_v8 = vand.u32 8388607, %v18457_v26  ;;  %v5124_v25 = vshll.u32 %v18507_v15, %v5121_v21  ;;  %v5125_v44 = vshrl.u32 %v18508_v5, %v5122_v6 }
 0x4a9   : > { %v5127_v36 = vshll.u32 %v18508_v5, %v5121_v21  ;;  %v5133_v20 = vshll.u32 %v18504_v41, %v5121_v21  ;;  %vm7583_vm5 = vcmp.lt.s32.totalorder %v7582_v31, 0  ;;  %v5043_v19 = vsel %vm5037_vm9, %v5040_v39, %v5042_v1 }
 0x4aa   : > { %v14991_v23 = vshrl.u32 %v5119_v3, 5  ;;  %v5128_v62 = vshrl.u32 %v18509_v17, %v5122_v6  ;;  %v5062_v56 = vadd.s32 1, %v14947_v48  ;;  %v5130_v18 = vshll.u32 %v18509_v17, %v5121_v21 }
 0x4ab   : > { %v5131_v35 = vshrl.u32 %v18504_v41, %v5122_v6  ;;  %v5134_v54 = vshrl.u32 %v18505_v32, %v5122_v6  ;;  %v14998_v51 = vshrl.u32 %v4962_v4, 30  ;;  %vm5061_vm2 = vc.u32 %v14954_v29, %v14946_v47 }
 0x4ac   : > { %v5115_v33 = vor.u32 8388608, %v5114_v8  ;;  %v5136_v11 = vshll.u32 %v18505_v32, %v5121_v21  ;;  %v5126_v3 = vor.u32 %v5125_v44, %v5124_v25  ;;  %v5129_v39 = vor.u32 %v5128_v62, %v5127_v36 }
 0x4ad   : > { %v5135_v1 = vor.u32 %v5134_v54, %v5133_v20  ;;  %v5137_v26 = vshrl.u32 %v18506_v30, %v5122_v6  ;;  %v4768_v12 = vshll.u32 %v14785_v61, %v14910_v28  ;;  %v4769_v63 = vshrl.u32 %v4751_v59, %v4767_v16 }
 0x4ae   : > { %v5059_v57 = vmul.u32 %v14922_v45, %v5043_v19  ;;  %vm5139_vm8 = vcmp.lt.s32.totalorder %v14991_v23, 1  ;;  %v15008_v4 = vpop.eup %8211  ;;  %vm4480_vm10 = vcmp.lt.s32.totalorder %v14758_v46, 2  ;;  %v4773_v8 = vshll.u32 %v4772_v0, 23 }
 0x4af   : > { %v5063_v21 = vsel %vm5061_vm2, %v5062_v56, %v14947_v48  ;;  %v5132_v25 = vor.u32 %v5131_v35, %v5130_v18  ;;  %vm5142_vm11 = vcmp.lt.s32.totalorder %v14991_v23, 4  ;;  %v15013_v44 = vpop.eup %8213  ;;  %v15016_v36 = vsel %vm7583_vm5, 0, %v7582_v31 }
 0x4b0   : > { %v4964_v61 = vshll.u32 %v14998_v51, 30  ;;  %vm5141_vm13 = vcmp.lt.s32.totalorder %v14991_v23, 3  ;;  %v15020_v28 = vshll.u32 %v5115_v33, 8  ;;  %v5138_v45 = vor.u32 %v5137_v26, %v5136_v11 }
 0x4b1   : > { %vm5140_vm0 = vcmp.lt.s32.totalorder %v14991_v23, 2  ;;  %v5147_v48 = vsel %vm5139_vm8, %v5126_v3, %v5129_v39  ;;  %v5148_v59 = vsel %vm5142_vm11, %v5135_v1, 920167782  ;;  %v4679_v31 = vsel %vm4594_vm1, %v4678_v22, %v14547_v14 }
 0x4b2   : > { %8215 = vcosq.f32 %v4680_v43  ;;  %v15030_v16 = vadd.s32 %v5063_v21, %v5059_v57  ;;  %v5123_v0 = vshrl.u32 %v18507_v15, %v5122_v6  ;;  %vm4478_vm4 = vweird.f32 %v18837_v2 }
 0x4b3   : > { %v4770_v26 = vor.u32 %v4769_v63, %v4768_v12  ;;  %v4774_v20 = vor.u32 4788187, %v4773_v8  ;;  %v5144_v19 = vsel %vm5142_vm11, %v5132_v25, 2102212464  ;;  %v5149_v62 = vsel %vm5141_vm13, %v5132_v25, %v5148_v59  ;;  %v18856_v8 = vld [vmem:[#allocation51_spill] sm:$0xff] }
 0x4b4   : > { %8217 = vsinq.f32 %v4680_v43  ;;  %v4874_v56 = vsub.s32 4294967266, %v15016_v36  ;;  %v15040_v14 = vsub.s32 %v14938_v9, %v4964_v61  ;;  %v5150_v57 = vsel %vm5140_vm0, %v5147_v48, %v5149_v62 }
 0x4b5   : > { %v5151_v22 = vsel %vm5139_vm8, %v5129_v39, %v5132_v25  ;;  %v5152_v63 = vsel %vm5142_vm11, %v5138_v45, 1326507024  ;;  %v15049_v12 = vmul.u32.u64.low %v15020_v28, %v5150_v57  ;;  %v15050_v6 = vmul.u32.u64.high %v15020_v28, %v5150_v57, %v15049_v12 }
 0x4b6   : > { %v4854_v43 = vadd.s32 %v14697_v40, %v14706_v37  ;;  %v5065_v9 = vadd.s32 536870912, %v15030_v16  ;;  %v5143_v18 = vsel %vm5139_vm8, %v5123_v0, %v5126_v3  ;;  %v5145_v35 = vsel %vm5141_vm13, %v5129_v39, %v5144_v19 }
 0x4b7   : > { %vm4697_vm1 = vcmp.lt.s32.totalorder %v18813_v34, 0  ;;  %v4775_v54 = vand.u32 2147483647, %v4774_v20  ;;  %v4777_v33 = vcvt.s32.f32 %v4770_v26  ;;  %v5153_v11 = vsel %vm5141_vm13, %v5135_v1, %v5152_v63 }
 0x4b8   : > { %v5213_v21 = vand.u32 2139095040, %v18856_v8  ;;  %v4870_v25 = vsub.s32 32, %v15016_v36  ;;  %v4875_v40 = vadd.s32 127, %v4874_v56  ;;  %v4967_v37 = vsub.s32 0, %v15040_v14 }
 0x4b9   : > { %v5154_v3 = vsel %vm5140_vm0, %v5151_v22, %v5153_v11  ;;  %v5146_v39 = vsel %vm5140_vm0, %v5143_v18, %v5145_v35  ;;  %v4487_v1 = vsel %vm4480_vm10, %v14959_v52, %v14963_v58  ;;  %vm4587_vm12 = vcmp.eq.s32.totalorder %v14969_v42, 2 }
 0x4ba   : > { %v15071_v61 = vmul.u32.u64.low %v15020_v28, %v5154_v3  ;;  %v15072_v45 = vmul.u32.u64.high %v15020_v28, %v5154_v3, %v15071_v61  ;;  %v5214_v48 = vshrl.u32 %v5213_v21, 23  ;;  %v4681_v59 = vsel %vm14901_vm14, 0, %v4679_v31 }
 0x4bb   : > { %v18857_v0 = vand.u32 2147483647, %v18813_v34  ;;  %v15087_v26 = vshrl.u32 %v5065_v9, 30  ;;  %v4588_v20 = vxor.u32 2147483648, %v15008_v4  ;;  %v4781_v19 = vsub.s32 4, %v14732_v49 }
 0x4bc   : > { %v5165_v46 = vadd.s32 1, %v15050_v6  ;;  %v7596_v52 = vadd.s32 4294967169, %v5214_v48  ;;  %v15092_v58 = vpop.eup %8215  ;;  %v4778_v62 = vmul.f32 %v4777_v33, %v4775_v54  ;;  %v4871_v13 = vshll.u32 %v14867_v27, %v15016_v36 }
 0x4bd   : > { %vm15083_vm6 = vcmp.le.f32.partialorder %v18857_v0, 0.7853982  ;;  %v4872_v31 = vshrl.u32 %v4854_v43, %v4870_v25  ;;  %v5162_v56 = vmul.u32 %v15020_v28, %v5146_v39  ;;  %v4876_v57 = vshll.u32 %v4875_v40, 23 }
 0x4be   : > { %v7585_v22 = vmin.u32 %v4967_v37, %v15040_v14  ;;  %vm5164_vm14 = vc.u32 %v15072_v45, %v15049_v12  ;;  %v5220_v63 = vadd.s32 1, %v7596_v52  ;;  %v15100_v9 = vpop.eup %8217  ;;  %v15104_v18 = vsel %vm4478_vm4, nan, %v4487_v1 }
 0x4bf   : > { %vm4584_vm7 = vcmp.eq.s32.totalorder %v14969_v42, 0  ;;  %v4585_v27 = vxor.u32 2147483648, %v15013_v44  ;;  %v5067_v36 = vshll.u32 %v15087_v26, 30  ;;  %v15112_v28 = vsel %vm4587_vm12, %v4588_v20, %v15013_v44  ;;  %v18860_v44 = vld [vmem:[#allocation52_spill] sm:$0xff] }
 0x4c0   : > { %v15114_v43 = vand.u32 3, %v4681_v59  ;;  %v5166_v35 = vsel %vm5164_vm14, %v5165_v46, %v15050_v6  ;;  %vm5221_vm15 = vcmp.gt.s32.totalorder %v5220_v63, 0  ;;  %v4779_v54 = vxor.u32 2147483648, %v4778_v62 }
 0x4c1   : > { %v15120_v2 = vsel %vm4697_vm1, %v4781_v19, %v14732_v49  ;;  %vm4800_vm9 = vcmp.lt.s32.totalorder %v18834_v55, 0  ;;  %v4873_v33 = vor.u32 %v4872_v31, %v4871_v13  ;;  %v5167_v11 = vadd.s32 %v5166_v35, %v5162_v56 }
 0x4c2   : > { %v4877_v21 = vor.u32 4788187, %v4876_v57  ;;  %v4969_v25 = vclz %v7585_v22  ;;  %v5222_v40 = vsel %vm5221_vm15, %v5220_v63, 0  ;;  %v5316_v37 = vand.u32 2139095040, %v18860_v44 }
 0x4c3   : > { %v15127_v6 = vsel %vm4584_vm7, %v15008_v4, %v4585_v27  ;;  %v15130_v3 = vsub.s32 %v15030_v16, %v5067_v36  ;;  %v5168_v39 = vadd.s32 536870912, %v5167_v11  ;;  %v18459_v49 = vand.u32 2147483647, %v18856_v8 }
 0x4c4   : > { %v5224_v59 = vand.u32 31, %v5222_v40  ;;  %v4780_v0 = vsel %vm4697_vm1, %v4779_v54, %v4778_v62  ;;  %v4880_v4 = vcvt.s32.f32 %v4873_v33  ;;  %v4884_v20 = vsub.s32 4, %v14826_v50 }
 0x4c5   : > { %v15141_v16 = vshrl.u32 %v5168_v39, 30  ;;  %v4878_v19 = vand.u32 2147483647, %v4877_v21  ;;  %v7586_v46 = vadd.s32 4294967294, %v4969_v25  ;;  %v5317_v13 = vshrl.u32 %v5316_v37, 23 }
 0x4c6   : > { %v5225_v52 = vsub.s32 32, %v5224_v59  ;;  %v5070_v31 = vsub.s32 0, %v15130_v3  ;;  %v5217_v57 = vand.u32 8388607, %v18459_v49  ;;  %v5227_v22 = vshll.u32 %v18507_v15, %v5224_v59 }
 0x4c7   : > { %v5170_v56 = vshll.u32 %v15141_v16, 30  ;;  %v5230_v63 = vshll.u32 %v18508_v5, %v5224_v59  ;;  %v5236_v36 = vshll.u32 %v18504_v41, %v5224_v59  ;;  %v15152_v35 = vshrl.u32 %v5222_v40, 5 }
 0x4c8   : > { %v5228_v62 = vshrl.u32 %v18508_v5, %v5225_v52  ;;  %v5231_v27 = vshrl.u32 %v18509_v17, %v5225_v52  ;;  %v5233_v54 = vshll.u32 %v18509_v17, %v5224_v59  ;;  %v5234_v33 = vshrl.u32 %v18504_v41, %v5225_v52 }
 0x4c9   : > { %v5237_v21 = vshrl.u32 %v18505_v32, %v5225_v52  ;;  %v4783_v25 = vsel %vm15083_vm6, %v18813_v34, %v4780_v0  ;;  %v4881_v37 = vmul.f32 %v4880_v4, %v4878_v19  ;;  %v15163_v39 = vsel %vm4800_vm9, %v4884_v20, %v14826_v50 }
 0x4ca   : > { %v7600_v49 = vadd.s32 4294967169, %v5317_v13  ;;  %vm7587_vm3 = vcmp.lt.s32.totalorder %v7586_v46, 0  ;;  %v15165_v40 = vsub.s32 %v5167_v11, %v5170_v56  ;;  %v5218_v48 = vor.u32 8388608, %v5217_v57 }
 0x4cb   : > { %v5229_v61 = vor.u32 %v5228_v62, %v5227_v22  ;;  %vm4583_vm5 = vcmp.lt.s32.totalorder %v14969_v42, 2  ;;  %vm4687_vm2 = vcmp.eq.s32.totalorder %v15114_v43, 0  ;;  %vm4690_vm8 = vcmp.eq.s32.totalorder %v15114_v43, 2 }
 0x4cc   : > { %v5232_v1 = vor.u32 %v5231_v27, %v5230_v63  ;;  %v5238_v0 = vor.u32 %v5237_v21, %v5236_v36  ;;  %v5239_v4 = vshll.u32 %v18505_v32, %v5224_v59  ;;  %v5240_v19 = vshrl.u32 %v18506_v30, %v5225_v52 }
 0x4cd   : > { %8219 = vcosq.f32 %v4783_v25  ;;  %v18861_v50 = vand.u32 2147483647, %v18834_v55  ;;  %v7589_v20 = vmin.u32 %v5070_v31, %v15130_v3  ;;  %v5235_v13 = vor.u32 %v5234_v33, %v5233_v54 }
 0x4ce   : > { %vm5242_vm11 = vcmp.lt.s32.totalorder %v15152_v35, 1  ;;  %v15181_v56 = vsel %vm7587_vm3, 0, %v7586_v46  ;;  %v5241_v57 = vor.u32 %v5240_v19, %v5239_v4  ;;  %vm5244_vm13 = vcmp.lt.s32.totalorder %v15152_v35, 3 }
 0x4cf   : > { %vm15174_vm10 = vcmp.le.f32.partialorder %v18861_v50, 0.7853982  ;;  %v5323_v59 = vadd.s32 1, %v7600_v49  ;;  %vm4581_vm0 = vweird.f32 %v18844_v53  ;;  %vm4686_vm4 = vcmp.lt.s32.totalorder %v15114_v43, 2 }
 0x4d0   : > { %v5173_v22 = vsub.s32 0, %v15165_v40  ;;  %vm5243_vm1 = vcmp.lt.s32.totalorder %v15152_v35, 2  ;;  %vm5245_vm12 = vcmp.lt.s32.totalorder %v15152_v35, 4  ;;  %v15189_v31 = vshll.u32 %v5218_v48, 8 }
 0x4d1   : > { %8221 = vsinq.f32 %v4783_v25  ;;  %v4882_v62 = vxor.u32 2147483648, %v4881_v37  ;;  %v5250_v46 = vsel %vm5242_vm11, %v5229_v61, %v5232_v1  ;;  %v5251_v49 = vsel %vm5245_vm12, %v5238_v0, 920167782 }
 0x4d2   : > { %v4977_v63 = vsub.s32 4294967266, %v15181_v56  ;;  %v5072_v27 = vclz %v7589_v20  ;;  %v5252_v36 = vsel %vm5244_vm13, %v5235_v13, %v5251_v49  ;;  %v5254_v54 = vsel %vm5242_vm11, %v5232_v1, %v5235_v13 }
 0x4d3   : > { %v4957_v48 = vadd.s32 %v14852_v7, %v14864_v10  ;;  %v5253_v33 = vsel %vm5243_vm1, %v5250_v46, %v5252_v36  ;;  %v5255_v21 = vsel %vm5245_vm12, %v5241_v57, 1326507024  ;;  %vm5324_vm14 = vcmp.gt.s32.totalorder %v5323_v59, 0 }
 0x4d4   : > { %v7593_v25 = vmin.u32 %v5173_v22, %v15165_v40  ;;  %v5256_v4 = vsel %vm5244_vm13, %v5238_v0, %v5255_v21  ;;  %v15210_v19 = vmul.u32.u64.low %v15189_v31, %v5253_v33  ;;  %v15211_v50 = vmul.u32.u64.high %v15189_v31, %v5253_v33, %v15210_v19 }
 0x4d5   : > { %v4883_v7 = vsel %vm4800_vm9, %v4882_v62, %v4881_v37  ;;  %v5226_v10 = vshrl.u32 %v18507_v15, %v5225_v52  ;;  %v5257_v20 = vsel %vm5243_vm1, %v5254_v54, %v5256_v4  ;;  %v5325_v57 = vsel %vm5324_vm14, %v5323_v59, 0 }
 0x4d6   : > { %v4973_v46 = vsub.s32 32, %v15181_v56  ;;  %v4978_v22 = vadd.s32 127, %v4977_v63  ;;  %v7590_v49 = vadd.s32 4294967294, %v5072_v27  ;;  %v5247_v0 = vsel %vm5245_vm12, %v5235_v13, 2102212464 }
 0x4d7   : > { %v18864_v36 = vsel %vm15083_vm6, 0, %v15120_v2  ;;  %v15229_v37 = vmul.u32.u64.low %v15189_v31, %v5257_v20  ;;  %v15230_v52 = vmul.u32.u64.high %v15189_v31, %v5257_v20, %v15229_v37  ;;  %v5327_v62 = vand.u32 31, %v5325_v57  ;;  %v15232_v54 = vpop.eup %8219 }
 0x4d8   : > { %v15226_v33 = vand.u32 3, %v18864_v36  ;;  %v4590_v59 = vsel %vm4583_vm5, %v15127_v6, %v15112_v28  ;;  %v18865_v13 = vxor.u32 2147483648, %v15100_v9  ;;  %v18866_v2 = vxor.u32 2147483648, %v15092_v58 }
 0x4d9   : > { %v5175_v27 = vclz %v7593_v25  ;;  %v4886_v21 = vsel %vm15174_vm10, %v18834_v55, %v4883_v7  ;;  %v4887_v42 = vsel %vm15174_vm10, 0, %v15163_v39  ;;  %v5246_v28 = vsel %vm5242_vm11, %v5226_v10, %v5229_v61 }
 0x4da   : > { %v4689_v23 = vsel %vm4687_vm2, %v15092_v58, %v18865_v13  ;;  %v4692_v63 = vsel %vm4690_vm8, %v18866_v2, %v15100_v9  ;;  %v5248_v6 = vsel %vm5244_vm13, %v5232_v1, %v5247_v0  ;;  %v4974_v58 = vshll.u32 %v15040_v14, %v15181_v56 }
 0x4db   : > { %v4975_v4 = vshrl.u32 %v4957_v48, %v4973_v46  ;;  %v4979_v9 = vshll.u32 %v4978_v22, 23  ;;  %vm7591_vm6 = vcmp.lt.s32.totalorder %v7590_v49, 0  ;;  %v8222_v25 = vpop.eup %8221  ;;  %v15262_v7 = vsel %vm4581_vm0, nan, %v4590_v59 }
 0x4dc   : > { %18867 = vst [vmem:[#allocation34_spill] sm:$0xff] %v15262_v7  ;;  %v4693_v39 = vsel %vm4686_vm4, %v4689_v23, %v4692_v63  ;;  %vm4793_vm7 = vcmp.eq.s32.totalorder %v15226_v33, 2  ;;  %v15267_v61 = vsub.s32 32, %v5327_v62  ;;  %v15269_v11 = vand.u32 3, %v4887_v42 }
 0x4dd   : > { %v7594_v1 = vadd.s32 4294967294, %v5175_v27  ;;  %v5249_v14 = vsel %vm5243_vm1, %v5246_v28, %v5248_v6  ;;  %v5268_v56 = vadd.s32 1, %v15211_v50  ;;  %vm4790_vm15 = vcmp.eq.s32.totalorder %v15226_v33, 0 }
 0x4de   : > { %v4794_v53 = vxor.u32 2147483648, %v15232_v54  ;;  %8223 = vcosq.f32 %v4886_v21  ;;  %v15276_v48 = vsel %vm7591_vm6, 0, %v7590_v49  ;;  %vm5267_vm9 = vc.u32 %v15230_v52, %v15210_v19 }
 0x4df   : > { %vm4684_vm3 = vweird.f32 %v18807_v60  ;;  %v4791_v43 = vxor.u32 2147483648, %v8222_v25  ;;  %8225 = vsinq.f32 %v4886_v21  ;;  %v4976_v10 = vor.u32 %v4975_v4, %v4974_v58 }
 0x4e0   : > { %v4980_v20 = vor.u32 4788187, %v4979_v9  ;;  %v5265_v35 = vmul.u32 %v15189_v31, %v5249_v14  ;;  %v18461_v46 = vand.u32 2147483647, %v18860_v44  ;;  %v5339_v22 = vshll.u32 %v18504_v41, %v5327_v62 }
 0x4e1   : > { %v5340_v0 = vshrl.u32 %v18505_v32, %v15267_v61  ;;  %vm4789_vm5 = vcmp.lt.s32.totalorder %v15226_v33, 2  ;;  %v5080_v49 = vsub.s32 4294967266, %v15276_v48  ;;  %vm7595_vm2 = vcmp.lt.s32.totalorder %v7594_v1, 0 }
 0x4e2   : > { %v5269_v36 = vsel %vm5267_vm9, %v5268_v56, %v15211_v50  ;;  %v15289_v37 = vshrl.u32 %v5325_v57, 5  ;;  %v5330_v59 = vshll.u32 %v18507_v15, %v5327_v62  ;;  %v5333_v31 = vshll.u32 %v18508_v5, %v5327_v62 }
 0x4e3   : > { %v5336_v13 = vshll.u32 %v18509_v17, %v5327_v62  ;;  %v5342_v23 = vshll.u32 %v18505_v32, %v5327_v62  ;;  %vm4903_vm8 = vcmp.lt.s32.totalorder %v18835_v38, 0  ;;  %v5331_v2 = vshrl.u32 %v18508_v5, %v15267_v61 }
 0x4e4   : > { %v5334_v63 = vshrl.u32 %v18509_v17, %v15267_v61  ;;  %v5337_v50 = vshrl.u32 %v18504_v41, %v15267_v61  ;;  %v5343_v57 = vshrl.u32 %v18506_v30, %v15267_v61  ;;  %v4795_v27 = vsel %vm4793_vm7, %v4794_v53, %v8222_v25 }
 0x4e5   : > { %v4987_v21 = vsub.s32 4, %v14998_v51  ;;  %v15307_v62 = vadd.s32 %v5269_v36, %v5265_v35  ;;  %v5341_v42 = vor.u32 %v5340_v0, %v5339_v22  ;;  %v5060_v28 = vadd.s32 %v14946_v47, %v14954_v29 }
 0x4e6   : > { %v5076_v6 = vsub.s32 32, %v15276_v48  ;;  %v5320_v58 = vand.u32 8388607, %v18461_v46  ;;  %vm5348_vm10 = vcmp.lt.s32.totalorder %v15289_v37, 4  ;;  %v4981_v4 = vand.u32 2147483647, %v4980_v20 }
 0x4e7   : > { %v4983_v9 = vcvt.s32.f32 %v4976_v10  ;;  %v5081_v14 = vadd.s32 127, %v5080_v49  ;;  %v15316_v25 = vsel %vm7595_vm2, 0, %v7594_v1  ;;  %v5332_v56 = vor.u32 %v5331_v2, %v5330_v59 }
 0x4e8   : > { %v5335_v53 = vor.u32 %v5334_v63, %v5333_v31  ;;  %v5338_v35 = vor.u32 %v5337_v50, %v5336_v13  ;;  %v5344_v22 = vor.u32 %v5343_v57, %v5342_v23  ;;  %v15318_v0 = vpop.eup %8223  ;;  %v5271_v47 = vadd.s32 536870912, %v15307_v62 }
 0x4e9   : > { %vm5345_vm11 = vcmp.lt.s32.totalorder %v15289_v37, 1  ;;  %vm5347_vm13 = vcmp.lt.s32.totalorder %v15289_v37, 3  ;;  %v5354_v29 = vsel %vm5348_vm10, %v5341_v42, 920167782  ;;  %v8226_v10 = vpop.eup %8225  ;;  %v4792_v1 = vsel %vm4790_vm15, %v15232_v54, %v4791_v43 }
 0x4ea   : > { %v5077_v20 = vshll.u32 %v15130_v3, %v15276_v48  ;;  %v5078_v49 = vshrl.u32 %v5060_v28, %v5076_v6  ;;  %v5321_v36 = vor.u32 8388608, %v5320_v58  ;;  %v15332_v59 = vsel %vm4684_vm3, nan, %v4693_v39  ;;  %v18869_v39 = vld [vmem:[#allocation53_spill] sm:$0xff] }
 0x4eb   : > { %18868 = vst [vmem:[#allocation37_spill] sm:$0xff] %v15332_v59  ;;  %v5082_v31 = vshll.u32 %v5081_v14, 23  ;;  %v5183_v13 = vsub.s32 4294967266, %v15316_v25  ;;  %vm5346_vm0 = vcmp.lt.s32.totalorder %v15289_v37, 2  ;;  %vm4787_vm4 = vweird.f32 %v18813_v34 }
 0x4ec   : > { %vm4893_vm1 = vcmp.eq.s32.totalorder %v15269_v11, 0  ;;  %vm4896_vm12 = vcmp.eq.s32.totalorder %v15269_v11, 2  ;;  %v5353_v3 = vsel %vm5345_vm11, %v5332_v56, %v5335_v53  ;;  %v5355_v54 = vsel %vm5347_vm13, %v5338_v35, %v5354_v29 }
 0x4ed   : > { %v5358_v60 = vsel %vm5348_vm10, %v5344_v22, 1326507024  ;;  %v5419_v48 = vand.u32 2139095040, %v18869_v39  ;;  %v4796_v43 = vsel %vm4789_vm5, %v4792_v1, %v4795_v27  ;;  %v4984_v23 = vmul.f32 %v4983_v9, %v4981_v4 }
 0x4ee   : > { %v15351_v2 = vsel %vm4903_vm8, %v4987_v21, %v14998_v51  ;;  %v15353_v63 = vshrl.u32 %v5271_v47, 30  ;;  %v4897_v50 = vxor.u32 2147483648, %v15318_v0  ;;  %v18870_v57 = vand.u32 2147483647, %v18835_v38 }
 0x4ef   : > { %v5079_v6 = vor.u32 %v5078_v49, %v5077_v20  ;;  %v15362_v58 = vshll.u32 %v5321_v36, 8  ;;  %v5420_v33 = vshrl.u32 %v5419_v48, 23  ;;  %v5083_v27 = vor.u32 4788187, %v5082_v31 }
 0x4f0   : > { %vm15358_vm14 = vcmp.le.f32.partialorder %v18870_v57, 0.7853982  ;;  %v5356_v4 = vsel %vm5346_vm0, %v5353_v3, %v5355_v54  ;;  %v5357_v51 = vsel %vm5345_vm11, %v5335_v53, %v5338_v35  ;;  %v5359_v21 = vsel %vm5347_vm13, %v5341_v42, %v5358_v60 }
 0x4f1   : > { %v5163_v9 = vadd.s32 %v15049_v12, %v15072_v45  ;;  %v5179_v14 = vsub.s32 32, %v15316_v25  ;;  %v5184_v22 = vadd.s32 127, %v5183_v13  ;;  %v7604_v47 = vadd.s32 4294967169, %v5420_v33 }
 0x4f2   : > { %v4894_v29 = vxor.u32 2147483648, %v8226_v10  ;;  %v4985_v1 = vxor.u32 2147483648, %v4984_v23  ;;  %v5273_v20 = vshll.u32 %v15353_v63, 30  ;;  %v5329_v49 = vshrl.u32 %v18507_v15, %v15267_v61 }
 0x4f3   : > { %v5360_v36 = vsel %vm5346_vm0, %v5357_v51, %v5359_v21  ;;  %v15379_v31 = vmul.u32.u64.low %v15362_v58, %v5356_v4  ;;  %v15380_v42 = vmul.u32.u64.high %v15362_v58, %v5356_v4, %v15379_v31  ;;  %v5426_v12 = vadd.s32 1, %v7604_v47  ;;  %v18873_v21 = vld [vmem:[#allocation54_spill] sm:$0xff] }
 0x4f4   : > { %v5084_v45 = vand.u32 2147483647, %v5083_v27  ;;  %v5086_v3 = vcvt.s32.f32 %v5079_v6  ;;  %v5350_v13 = vsel %vm5348_vm10, %v5338_v35, 2102212464  ;;  %v18460_v54 = vand.u32 2147483647, %v18869_v39 }
 0x4f5   : > { %v5180_v60 = vshll.u32 %v15165_v40, %v15316_v25  ;;  %v5181_v61 = vshrl.u32 %v5163_v9, %v5179_v14  ;;  %v5185_v48 = vshll.u32 %v5184_v22, 23  ;;  %vm5427_vm6 = vcmp.gt.s32.totalorder %v5426_v12, 0 }
 0x4f6   : > { %v15389_v57 = vsub.s32 %v15307_v62, %v5273_v20  ;;  %v15392_v33 = vmul.u32.u64.low %v15362_v58, %v5360_v36  ;;  %v15393_v4 = vmul.u32.u64.high %v15362_v58, %v5360_v36, %v15392_v33  ;;  %v5428_v27 = vsel %vm5427_vm6, %v5426_v12, 0 }
 0x4f7   : > { %v5349_v6 = vsel %vm5345_vm11, %v5329_v49, %v5332_v56  ;;  %v5351_v35 = vsel %vm5347_vm13, %v5335_v53, %v5350_v13  ;;  %v5430_v51 = vand.u32 31, %v5428_v27  ;;  %v5522_v40 = vand.u32 2139095040, %v18873_v21 }
 0x4f8   : > { %v15402_v25 = vsel %vm4787_vm4, nan, %v4796_v43  ;;  %v4895_v62 = vsel %vm4893_vm1, %v15318_v0, %v4894_v29  ;;  %v4898_v9 = vsel %vm4896_vm12, %v4897_v50, %v8226_v10  ;;  %vm5006_vm7 = vcmp.lt.s32.totalorder %v18849_v24, 0 }
 0x4f9   : > { %18874 = vst [vmem:[#allocation47_spill] sm:$0xff] %v15402_v25  ;;  %v4986_v53 = vsel %vm4903_vm8, %v4985_v1, %v4984_v23  ;;  %v5087_v14 = vmul.f32 %v5086_v3, %v5084_v45  ;;  %v5090_v34 = vsub.s32 4, %v15087_v26  ;;  %v15416_v43 = vsub.s32 32, %v5430_v51 }
 0x4fa   : > { %vm4892_vm15 = vcmp.lt.s32.totalorder %v15269_v11, 2  ;;  %v5182_v0 = vor.u32 %v5181_v61, %v5180_v60  ;;  %v5186_v22 = vor.u32 4788187, %v5185_v48  ;;  %v5276_v10 = vsub.s32 0, %v15389_v57 }
 0x4fb   : > { %v5352_v50 = vsel %vm5346_vm0, %v5349_v6, %v5351_v35  ;;  %v5371_v47 = vadd.s32 1, %v15380_v42  ;;  %v5423_v29 = vand.u32 8388607, %v18460_v54  ;;  %v5433_v23 = vshll.u32 %v18507_v15, %v5430_v51 }
 0x4fc   : > { %v5523_v1 = vshrl.u32 %v5522_v40, 23  ;;  %v18875_v20 = vand.u32 2147483647, %v18849_v24  ;;  %v5434_v36 = vshrl.u32 %v18508_v5, %v15416_v43  ;;  %v5436_v37 = vshll.u32 %v18508_v5, %v5430_v51 }
 0x4fd   : > { %v5437_v12 = vshrl.u32 %v18509_v17, %v15416_v43  ;;  %v5442_v45 = vshll.u32 %v18504_v41, %v5430_v51  ;;  %v15438_v3 = vshrl.u32 %v5428_v27, 5  ;;  %v5439_v13 = vshll.u32 %v18509_v17, %v5430_v51 }
 0x4fe   : > { %vm15428_vm9 = vcmp.le.f32.partialorder %v18875_v20, 0.7853982  ;;  %v5440_v60 = vshrl.u32 %v18504_v41, %v15416_v43  ;;  %v5443_v61 = vshrl.u32 %v18505_v32, %v15416_v43  ;;  %v5088_v48 = vxor.u32 2147483648, %v5087_v14 }
 0x4ff   : > { %v5187_v33 = vand.u32 2147483647, %v5186_v22  ;;  %v5189_v6 = vcvt.s32.f32 %v5182_v0  ;;  %vm5370_vm3 = vc.u32 %v15393_v4, %v15379_v31  ;;  %v7597_v35 = vmin.u32 %v5276_v10, %v15389_v57 }
 0x500   : > { %v5368_v40 = vmul.u32 %v15362_v58, %v5352_v50  ;;  %v5445_v27 = vshll.u32 %v18505_v32, %v5430_v51  ;;  %v7608_v20 = vadd.s32 4294967169, %v5523_v1  ;;  %vm4890_vm5 = vweird.f32 %v18834_v55  ;;  %v18878_v50 = vld [vmem:[#allocation50_spill] sm:$0xff] }
 0x501   : > { %v5435_v54 = vor.u32 %v5434_v36, %v5433_v23  ;;  %v5438_v46 = vor.u32 %v5437_v12, %v5436_v37  ;;  %v5444_v56 = vor.u32 %v5443_v61, %v5442_v45  ;;  %v5446_v25 = vshrl.u32 %v18506_v30, %v15416_v43 }
 0x502   : > { %v5372_v0 = vsel %vm5370_vm3, %v5371_v47, %v15380_v42  ;;  %v5424_v22 = vor.u32 8388608, %v5423_v29  ;;  %v5441_v59 = vor.u32 %v5440_v60, %v5439_v13  ;;  %vm5448_vm2 = vcmp.lt.s32.totalorder %v15438_v3, 1 }
 0x503   : > { %v5091_v58 = vsel %vm5006_vm7, %v5090_v34, %v15087_v26  ;;  %v5447_v51 = vor.u32 %v5446_v25, %v5445_v27  ;;  %vm5450_vm8 = vcmp.lt.s32.totalorder %v15438_v3, 3  ;;  %vm5451_vm10 = vcmp.lt.s32.totalorder %v15438_v3, 4 }
 0x504   : > { %v5089_v10 = vsel %vm5006_vm7, %v5088_v48, %v5087_v14  ;;  %vm5109_vm11 = vcmp.lt.s32.totalorder %v18878_v50, 0  ;;  %v5190_v23 = vmul.f32 %v5189_v6, %v5187_v33  ;;  %v5278_v42 = vclz %v7597_v35 }
 0x505   : > { %vm5449_vm13 = vcmp.lt.s32.totalorder %v15438_v3, 2  ;;  %v15464_v47 = vadd.s32 %v5372_v0, %v5368_v40  ;;  %v5456_v29 = vsel %vm5448_vm2, %v5435_v54, %v5438_v46  ;;  %v5457_v26 = vsel %vm5451_vm10, %v5444_v56, 920167782 }
 0x506   : > { %v5529_v25 = vadd.s32 1, %v7608_v20  ;;  %v4899_v34 = vsel %vm4892_vm15, %v4895_v62, %v4898_v9  ;;  %v4989_v14 = vsel %vm15358_vm14, %v18835_v38, %v4986_v53  ;;  %v5458_v1 = vsel %vm5450_vm8, %v5441_v59, %v5457_v26 }
 0x507   : > { %v15477_v36 = vshll.u32 %v5424_v22, 8  ;;  %v5093_v37 = vsel %vm15428_vm9, 0, %v5091_v58  ;;  %v5459_v12 = vsel %vm5449_vm13, %v5456_v29, %v5458_v1  ;;  %v5460_v45 = vsel %vm5448_vm2, %v5438_v46, %v5441_v59 }
 0x508   : > { %v5461_v11 = vsel %vm5451_vm10, %v5447_v51, 1326507024  ;;  %v5092_v62 = vsel %vm15428_vm9, %v18849_v24, %v5089_v10  ;;  %v5191_v9 = vxor.u32 2147483648, %v5190_v23  ;;  %v7598_v53 = vadd.s32 4294967294, %v5278_v42 }
 0x509   : > { %v5462_v13 = vsel %vm5450_vm8, %v5444_v56, %v5461_v11  ;;  %v5374_v60 = vadd.s32 536870912, %v15464_v47  ;;  %v18463_v48 = vand.u32 2147483647, %v18873_v21  ;;  %vm5530_vm0 = vcmp.gt.s32.totalorder %v5529_v25, 0 }
 0x50a   : > { %v5463_v61 = vsel %vm5449_vm13, %v5460_v45, %v5462_v13  ;;  %v5432_v33 = vshrl.u32 %v18507_v15, %v15416_v43  ;;  %v15499_v6 = vmul.u32.u64.low %v15477_v36, %v5459_v12  ;;  %v15500_v49 = vmul.u32.u64.high %v15477_v36, %v5459_v12, %v15499_v6 }
 0x50b   : > { %v5531_v35 = vsel %vm5530_vm0, %v5529_v25, 0  ;;  %v18879_v40 = vand.u32 2147483647, %v18878_v50  ;;  %v5453_v27 = vsel %vm5451_vm10, %v5441_v59, 2102212464  ;;  %v15517_v22 = vsel %vm4890_vm5, nan, %v4899_v34 }
 0x50c   : > { %v15512_v20 = vmul.u32.u64.low %v15477_v36, %v5463_v61  ;;  %v15513_v0 = vmul.u32.u64.high %v15477_v36, %v5463_v61, %v15512_v20  ;;  %v5533_v43 = vand.u32 31, %v5531_v35  ;;  %18882 = vst [vmem:[#allocation48_spill] sm:$0xff] %v15517_v22  ;;  %8227 = vcosq.f32 %v4989_v14 }
 0x50d   : > { %vm15505_vm4 = vcmp.le.f32.partialorder %v18879_v40, 0.7853982  ;;  %v18883_v58 = vsel %vm15358_vm14, 0, %v15351_v2  ;;  %vm7599_vm1 = vcmp.lt.s32.totalorder %v7598_v53, 0  ;;  %8229 = vsinq.f32 %v4989_v14 }
 0x50e   : > { %v15523_v51 = vand.u32 3, %v18883_v58  ;;  %v15525_v10 = vand.u32 3, %v5093_v37  ;;  %v15527_v59 = vshrl.u32 %v5374_v60, 30  ;;  %v5534_v42 = vsub.s32 32, %v5533_v43 }
 0x50f   : > { %8231 = vcosq.f32 %v5092_v62  ;;  %v5193_v29 = vsub.s32 4, %v15141_v16  ;;  %v5452_v55 = vsel %vm5448_vm2, %v5432_v33, %v5435_v54  ;;  %v5454_v28 = vsel %vm5450_vm8, %v5438_v46, %v5453_v27 }
 0x510   : > { %8233 = vsinq.f32 %v5092_v62  ;;  %v5192_v2 = vsel %vm5109_vm11, %v5191_v9, %v5190_v23  ;;  %v15536_v26 = vsel %vm7599_vm1, 0, %v7598_v53  ;;  %v5526_v25 = vand.u32 8388607, %v18463_v48 }
 0x511   : > { %v5536_v34 = vshll.u32 %v18507_v15, %v5533_v43  ;;  %v5537_v14 = vshrl.u32 %v18508_v5, %v5534_v42  ;;  %v5539_v1 = vshll.u32 %v18508_v5, %v5533_v43  ;;  %v5545_v54 = vshll.u32 %v18504_v41, %v5533_v43 }
 0x512   : > { %v5376_v37 = vshll.u32 %v15527_v59, 30  ;;  %v5455_v46 = vsel %vm5449_vm13, %v5452_v55, %v5454_v28  ;;  %v15547_v12 = vshrl.u32 %v5531_v35, 5  ;;  %v5540_v23 = vshrl.u32 %v18509_v17, %v5534_v42 }
 0x513   : > { %v5474_v45 = vadd.s32 1, %v15500_v49  ;;  %v5542_v11 = vshll.u32 %v18509_v17, %v5533_v43  ;;  %v5543_v62 = vshrl.u32 %v18504_v41, %v5534_v42  ;;  %v5546_v9 = vshrl.u32 %v18505_v32, %v5534_v42 }
 0x514   : > { %v5286_v53 = vsub.s32 4294967266, %v15536_v26  ;;  %vm5473_vm12 = vc.u32 %v15513_v0, %v15499_v6  ;;  %v5527_v13 = vor.u32 8388608, %v5526_v25  ;;  %v5548_v3 = vshll.u32 %v18505_v32, %v5533_v43 }
 0x515   : > { %v5538_v60 = vor.u32 %v5537_v14, %v5536_v34  ;;  %v5541_v61 = vor.u32 %v5540_v23, %v5539_v1  ;;  %v5547_v33 = vor.u32 %v5546_v9, %v5545_v54  ;;  %v5549_v35 = vshrl.u32 %v18506_v30, %v5534_v42 }
 0x516   : > { %v5266_v40 = vadd.s32 %v15210_v19, %v15230_v52  ;;  %v15562_v27 = vsub.s32 %v15464_v47, %v5376_v37  ;;  %v5471_v20 = vmul.u32 %v15477_v36, %v5455_v46  ;;  %vm5551_vm14 = vcmp.lt.s32.totalorder %v15547_v12, 1  ;;  %v8228_v58 = vpop.eup %8227 }
 0x517   : > { %vm4999_vm6 = vcmp.eq.s32.totalorder %v15523_v51, 2  ;;  %v5195_v43 = vsel %vm15505_vm4, %v18878_v50, %v5192_v2  ;;  %v5475_v55 = vsel %vm5473_vm12, %v5474_v45, %v15500_v49  ;;  %v5544_v28 = vor.u32 %v5543_v62, %v5542_v11  ;;  %v8230_v19 = vpop.eup %8229 }
 0x518   : > { %vm5554_vm7 = vcmp.lt.s32.totalorder %v15547_v12, 4  ;;  %vm4996_vm15 = vcmp.eq.s32.totalorder %v15523_v51, 0  ;;  %v5282_v52 = vsub.s32 32, %v15536_v26  ;;  %v5287_v47 = vadd.s32 127, %v5286_v53 }
 0x519   : > { %vm5553_vm9 = vcmp.lt.s32.totalorder %v15547_v12, 3  ;;  %v15575_v36 = vshll.u32 %v5527_v13, 8  ;;  %v15577_v25 = vpop.eup %8231  ;;  %v5550_v34 = vor.u32 %v5549_v35, %v5548_v3  ;;  %vm5552_vm3 = vcmp.lt.s32.totalorder %v15547_v12, 2 }
 0x51a   : > { %v5559_v49 = vsel %vm5551_vm14, %v5538_v60, %v5541_v61  ;;  %v5560_v2 = vsel %vm5554_vm7, %v5547_v33, 920167782  ;;  %v8234_v14 = vpop.eup %8233  ;;  %v5000_v1 = vxor.u32 2147483648, %v8228_v58  ;;  %v5379_v54 = vsub.s32 0, %v15562_v27 }
 0x51b   : > { %v15585_v37 = vadd.s32 %v5475_v55, %v5471_v20  ;;  %v5535_v46 = vshrl.u32 %v18507_v15, %v5534_v42  ;;  %v5194_v23 = vsel %vm5109_vm11, %v5193_v29, %v15141_v16  ;;  %8235 = vcosq.f32 %v5195_v43 }
 0x51c   : > { %v5556_v45 = vsel %vm5554_vm7, %v5544_v28, 2102212464  ;;  %v5561_v11 = vsel %vm5553_vm9, %v5544_v28, %v5560_v2  ;;  %vm4995_vm5 = vcmp.lt.s32.totalorder %v15523_v51, 2  ;;  %v5283_v62 = vshll.u32 %v15389_v57, %v15536_v26 }
 0x51d   : > { %v5284_v9 = vshrl.u32 %v5266_v40, %v5282_v52  ;;  %v5288_v53 = vshll.u32 %v5287_v47, 23  ;;  %v5562_v42 = vsel %vm5552_vm3, %v5559_v49, %v5561_v11  ;;  %vm5099_vm2 = vcmp.eq.s32.totalorder %v15525_v10, 0 }
 0x51e   : > { %v5563_v16 = vsel %vm5551_vm14, %v5541_v61, %v5544_v28  ;;  %v5564_v29 = vsel %vm5554_vm7, %v5550_v34, 1326507024  ;;  %v15606_v13 = vmul.u32.u64.low %v15575_v36, %v5562_v42  ;;  %v15607_v3 = vmul.u32.u64.high %v15575_v36, %v5562_v42, %v15606_v13  ;;  %v18884_v28 = vld [vmem:[#allocation55_spill] sm:$0xff] }
 0x51f   : > { %v7601_v57 = vmin.u32 %v5379_v54, %v15562_v27  ;;  %v5477_v26 = vadd.s32 536870912, %v15585_v37  ;;  %v5555_v35 = vsel %vm5551_vm14, %v5535_v46, %v5538_v60  ;;  %v5557_v40 = vsel %vm5553_vm9, %v5541_v61, %v5556_v45 }
 0x520   : > { %v4997_v20 = vxor.u32 2147483648, %v8230_v19  ;;  %8237 = vsinq.f32 %v5195_v43  ;;  %v5565_v55 = vsel %vm5553_vm9, %v5547_v33, %v5564_v29  ;;  %v5625_v52 = vand.u32 2139095040, %v18884_v28 }
 0x521   : > { %v5196_v47 = vsel %vm15505_vm4, 0, %v5194_v23  ;;  %v5285_v34 = vor.u32 %v5284_v9, %v5283_v62  ;;  %v5289_v49 = vor.u32 4788187, %v5288_v53  ;;  %v5566_v2 = vsel %vm5552_vm3, %v5563_v16, %v5565_v55 }
 0x522   : > { %v5558_v60 = vsel %vm5552_vm3, %v5555_v35, %v5557_v40  ;;  %v15626_v61 = vmul.u32.u64.low %v15575_v36, %v5566_v2  ;;  %v15627_v54 = vmul.u32.u64.high %v15575_v36, %v5566_v2, %v15626_v61  ;;  %v5626_v43 = vshrl.u32 %v5625_v52, 23 }
 0x523   : > { %v5001_v33 = vsel %vm4999_vm6, %v5000_v1, %v8230_v19  ;;  %vm5102_vm8 = vcmp.eq.s32.totalorder %v15525_v10, 2  ;;  %v5381_v56 = vclz %v7601_v57  ;;  %v15632_v46 = vshrl.u32 %v5477_v26, 30 }
 0x524   : > { %v4998_v23 = vsel %vm4996_vm15, %v8228_v58, %v4997_v20  ;;  %v15636_v45 = vand.u32 3, %v5196_v47  ;;  %v5577_v12 = vadd.s32 1, %v15607_v3  ;;  %v7612_v11 = vadd.s32 4294967169, %v5626_v43 }
 0x525   : > { %v5100_v62 = vxor.u32 2147483648, %v8234_v14  ;;  %v5103_v9 = vxor.u32 2147483648, %v15577_v25  ;;  %v5296_v53 = vsub.s32 4, %v15353_v63  ;;  %v5574_v19 = vmul.u32 %v15575_v36, %v5558_v60  ;;  %v8236_v1 = vpop.eup %8235 }
 0x526   : > { %v5290_v42 = vand.u32 2147483647, %v5289_v49  ;;  %v5292_v16 = vcvt.s32.f32 %v5285_v34  ;;  %vm5576_vm10 = vc.u32 %v15627_v54, %v15606_v13  ;;  %v5632_v29 = vadd.s32 1, %v7612_v11 }
 0x527   : > { %vm5098_vm11 = vcmp.lt.s32.totalorder %v15525_v10, 2  ;;  %v18885_v58 = vand.u32 2147483647, %v18856_v8  ;;  %v7602_v26 = vadd.s32 4294967294, %v5381_v56  ;;  %v5479_v35 = vshll.u32 %v15632_v46, 30 }
 0x528   : > { %v15654_v36 = vsel %vm4995_vm5, %v4998_v23, %v5001_v33  ;;  %vm5212_vm0 = vcmp.lt.s32.totalorder %v18856_v8, 0  ;;  %v5578_v40 = vsel %vm5576_vm10, %v5577_v12, %v15607_v3  ;;  %vm5633_vm4 = vcmp.gt.s32.totalorder %v5632_v29, 0  ;;  %v18888_v3 = vld [vmem:[#allocation56_spill] sm:$0xff] }
 0x529   : > { %vm15647_vm13 = vcmp.le.f32.partialorder %v18885_v58, 0.7853982  ;;  %v5101_v20 = vsel %vm5099_vm2, %v15577_v25, %v5100_v62  ;;  %v5104_v55 = vsel %vm5102_vm8, %v5103_v9, %v8234_v14  ;;  %v15666_v52 = vsel %vm5212_vm0, %v5296_v53, %v15353_v63 }
 0x52a   : > { %v5579_v51 = vadd.s32 %v5578_v40, %v5574_v19  ;;  %v8238_v47 = vpop.eup %8237  ;;  %vm5202_vm1 = vcmp.eq.s32.totalorder %v15636_v45, 0  ;;  %v5293_v34 = vmul.f32 %v5292_v16, %v5290_v42  ;;  %v5634_v49 = vsel %vm5633_vm4, %v5632_v29, 0 }
 0x52b   : > { %v5728_v2 = vand.u32 2139095040, %v18888_v3  ;;  %vm7603_vm12 = vcmp.lt.s32.totalorder %v7602_v26, 0  ;;  %v15671_v60 = vsub.s32 %v15585_v37, %v5479_v35  ;;  %v18462_v14 = vand.u32 2147483647, %v18884_v28 }
 0x52c   : > { %v5580_v25 = vadd.s32 536870912, %v5579_v51  ;;  %v15676_v61 = vsel %vm5098_vm11, %v5101_v20, %v5104_v55  ;;  %vm5205_vm14 = vcmp.eq.s32.totalorder %v15636_v45, 2  ;;  %v5636_v43 = vand.u32 31, %v5634_v49 }
 0x52d   : > { %v5203_v33 = vxor.u32 2147483648, %v8238_v47  ;;  %v5206_v56 = vxor.u32 2147483648, %v8236_v1  ;;  %v5369_v37 = vadd.s32 %v15379_v31, %v15393_v4  ;;  %v5294_v12 = vxor.u32 2147483648, %v5293_v34 }
 0x52e   : > { %v15684_v23 = vshrl.u32 %v5580_v25, 30  ;;  %v15686_v11 = vsel %vm7603_vm12, 0, %v7602_v26  ;;  %v5637_v10 = vsub.s32 32, %v5636_v43  ;;  %v5729_v62 = vshrl.u32 %v5728_v2, 23 }
 0x52f   : > { %v5482_v9 = vsub.s32 0, %v15671_v60  ;;  %v5629_v53 = vand.u32 8388607, %v18462_v14  ;;  %v5635_v19 = vshrl.u32 %v5634_v49, 5  ;;  %v5639_v42 = vshll.u32 %v18507_v15, %v5636_v43 }
 0x530   : > { %v5640_v16 = vshrl.u32 %v18508_v5, %v5637_v10  ;;  %v5642_v29 = vshll.u32 %v18508_v5, %v5636_v43  ;;  %v5643_v31 = vshrl.u32 %v18509_v17, %v5637_v10  ;;  %v5648_v4 = vshll.u32 %v18504_v41, %v5636_v43 }
 0x531   : > { %v5582_v58 = vshll.u32 %v15684_v23, 30  ;;  %v5645_v26 = vshll.u32 %v18509_v17, %v5636_v43  ;;  %v5646_v35 = vshrl.u32 %v18504_v41, %v5637_v10  ;;  %v5649_v40 = vshrl.u32 %v18505_v32, %v5637_v10 }
 0x532   : > { %v5204_v20 = vsel %vm5202_vm1, %v8236_v1, %v5203_v33  ;;  %v5207_v55 = vsel %vm5205_vm14, %v5206_v56, %v8238_v47  ;;  %v5295_v49 = vsel %vm5212_vm0, %v5294_v12, %v5293_v34  ;;  %v7616_v2 = vadd.s32 4294967169, %v5729_v62 }
 0x533   : > { %v5389_v25 = vsub.s32 4294967266, %v15686_v11  ;;  %v7605_v14 = vmin.u32 %v5482_v9, %v15671_v60  ;;  %v5630_v48 = vor.u32 8388608, %v5629_v53  ;;  %v5641_v63 = vor.u32 %v5640_v16, %v5639_v42 }
 0x534   : > { %vm4993_vm6 = vweird.f32 %v18835_v38  ;;  %vm5096_vm7 = vweird.f32 %v18849_v24  ;;  %v5644_v22 = vor.u32 %v5643_v31, %v5642_v29  ;;  %v5650_v7 = vor.u32 %v5649_v40, %v5648_v4 }
 0x535   : > { %v5651_v1 = vshll.u32 %v18505_v32, %v5636_v43  ;;  %v5652_v47 = vshrl.u32 %v18506_v30, %v5637_v10  ;;  %vm5201_vm15 = vcmp.lt.s32.totalorder %v15636_v45, 2  ;;  %v15713_v34 = vsub.s32 %v5579_v51, %v5582_v58 }
 0x536   : > { %v5638_v33 = vshrl.u32 %v18507_v15, %v5637_v10  ;;  %v5647_v56 = vor.u32 %v5646_v35, %v5645_v26  ;;  %vm5654_vm9 = vcmp.lt.s32.totalorder %v5635_v19, 1  ;;  %v5385_v12 = vsub.s32 32, %v15686_v11 }
 0x537   : > { %v5653_v62 = vor.u32 %v5652_v47, %v5651_v1  ;;  %vm5656_vm3 = vcmp.lt.s32.totalorder %v5635_v19, 3  ;;  %v5735_v9 = vadd.s32 1, %v7616_v2  ;;  %v5390_v53 = vadd.s32 127, %v5389_v25 }
 0x538   : > { %vm5655_vm5 = vcmp.lt.s32.totalorder %v5635_v19, 2  ;;  %vm5657_vm2 = vcmp.lt.s32.totalorder %v5635_v19, 4  ;;  %v5670_v42 = vshll.u32 %v5630_v48, 8  ;;  %v5484_v43 = vclz %v7605_v14 }
 0x539   : > { %v5659_v16 = vsel %vm5657_vm2, %v5647_v56, 2102212464  ;;  %v5662_v29 = vsel %vm5654_vm9, %v5641_v63, %v5644_v22  ;;  %v5663_v31 = vsel %vm5657_vm2, %v5650_v7, 920167782  ;;  %v5585_v51 = vsub.s32 0, %v15713_v34 }
 0x53a   : > { %v5658_v10 = vsel %vm5654_vm9, %v5638_v33, %v5641_v63  ;;  %v5664_v4 = vsel %vm5656_vm3, %v5647_v56, %v5663_v31  ;;  %v5666_v58 = vsel %vm5654_vm9, %v5644_v22, %v5647_v56  ;;  %v5660_v26 = vsel %vm5656_vm3, %v5644_v22, %v5659_v16 }
 0x53b   : > { %v5665_v35 = vsel %vm5655_vm5, %v5662_v29, %v5664_v4  ;;  %v5667_v40 = vsel %vm5657_vm2, %v5653_v62, 1326507024  ;;  %vm5736_vm8 = vcmp.gt.s32.totalorder %v5735_v9, 0  ;;  %v5298_v48 = vsel %vm15647_vm13, %v18856_v8, %v5295_v49 }
 0x53c   : > { %v5668_v14 = vsel %vm5656_vm3, %v5650_v7, %v5667_v40  ;;  %v15728_v2 = vmul.u32.u64.low %v5670_v42, %v5665_v35  ;;  %v15729_v25 = vmul.u32.u64.high %v5670_v42, %v5665_v35, %v15728_v2  ;;  %v5386_v63 = vshll.u32 %v15562_v27, %v15686_v11 }
 0x53d   : > { %v5387_v1 = vshrl.u32 %v5369_v37, %v5385_v12  ;;  %v5669_v22 = vsel %vm5655_vm5, %v5666_v58, %v5668_v14  ;;  %v5737_v47 = vsel %vm5736_vm8, %v5735_v9, 0  ;;  %v5391_v33 = vshll.u32 %v5390_v53, 23 }
 0x53e   : > { %v7606_v56 = vadd.s32 4294967294, %v5484_v43  ;;  %v7609_v62 = vmin.u32 %v5585_v51, %v15713_v34  ;;  %v5661_v16 = vsel %vm5655_vm5, %v5658_v10, %v5660_v26  ;;  %v5725_v7 = vand.u32 2147483647, %v18888_v3 }
 0x53f   : > { %v15737_v49 = vmul.u32.u64.low %v5670_v42, %v5669_v22  ;;  %v15738_v29 = vmul.u32.u64.high %v5670_v42, %v5669_v22, %v15737_v49  ;;  %v5739_v31 = vand.u32 31, %v5737_v47  ;;  %v15744_v27 = vsel %vm4993_vm6, nan, %v15654_v36 }
 0x540   : > { %v15749_v37 = vsel %vm5096_vm7, nan, %v15676_v61  ;;  %8239 = vcosq.f32 %v5298_v48  ;;  %v5680_v11 = vadd.s32 1, %v15729_v25  ;;  %v15754_v19 = vsel %vm5201_vm15, %v5204_v20, %v5207_v55 }
 0x541   : > { %v18889_v12 = vsel %vm15647_vm13, 0, %v15666_v52  ;;  %v5677_v38 = vmul.u32 %v5670_v42, %v5661_v16  ;;  %v5740_v36 = vsub.s32 32, %v5739_v31  ;;  %8241 = vsinq.f32 %v5298_v48 }
 0x542   : > { %v15760_v9 = vand.u32 3, %v18889_v12  ;;  %v5388_v53 = vor.u32 %v5387_v1, %v5386_v63  ;;  %v5399_v24 = vsub.s32 4, %v15527_v59  ;;  %v5587_v61 = vclz %v7609_v62 }
 0x543   : > { %v5392_v43 = vor.u32 4788187, %v5391_v33  ;;  %vm7607_vm10 = vcmp.lt.s32.totalorder %v7606_v56, 0  ;;  %vm5679_vm11 = vc.u32 %v15738_v29, %v15728_v2  ;;  %v5732_v45 = vand.u32 8388607, %v5725_v7 }
 0x544   : > { %v5681_v57 = vsel %vm5679_vm11, %v5680_v11, %v15729_v25  ;;  %v5742_v52 = vshll.u32 %v18507_v15, %v5739_v31  ;;  %v5745_v20 = vshll.u32 %v18508_v5, %v5739_v31  ;;  %v5751_v55 = vshll.u32 %v18504_v41, %v5739_v31 }
 0x545   : > { %v15771_v42 = vadd.s32 %v5681_v57, %v5677_v38  ;;  %v15773_v51 = vshrl.u32 %v5737_v47, 5  ;;  %v5743_v10 = vshrl.u32 %v18508_v5, %v5740_v36  ;;  %v5746_v4 = vshrl.u32 %v18509_v17, %v5740_v36 }
 0x546   : > { %v7610_v58 = vadd.s32 4294967294, %v5587_v61  ;;  %v5748_v26 = vshll.u32 %v18509_v17, %v5739_v31  ;;  %v5749_v35 = vshrl.u32 %v18504_v41, %v5740_v36  ;;  %v5752_v40 = vshrl.u32 %v18505_v32, %v5740_v36 }
 0x547   : > { %v5472_v48 = vadd.s32 %v15499_v6, %v15513_v0  ;;  %v15783_v14 = vsel %vm7607_vm10, 0, %v7606_v56  ;;  %v5683_v25 = vadd.s32 536870912, %v15771_v42  ;;  %v5754_v63 = vshll.u32 %v18505_v32, %v5739_v31 }
 0x548   : > { %v5733_v1 = vor.u32 8388608, %v5732_v45  ;;  %v5744_v22 = vor.u32 %v5743_v10, %v5742_v52  ;;  %v5747_v47 = vor.u32 %v5746_v4, %v5745_v20  ;;  %v5753_v33 = vor.u32 %v5752_v40, %v5751_v55 }
 0x549   : > { %vm5308_vm13 = vcmp.eq.s32.totalorder %v15760_v9, 2  ;;  %v5393_v62 = vand.u32 2147483647, %v5392_v43  ;;  %v5395_v16 = vcvt.s32.f32 %v5388_v53  ;;  %v5755_v49 = vshrl.u32 %v18506_v30, %v5740_v36 }
 0x54a   : > { %vm5757_vm0 = vcmp.lt.s32.totalorder %v15773_v51, 1  ;;  %v8240_v6 = vpop.eup %8239  ;;  %vm5305_vm4 = vcmp.eq.s32.totalorder %v15760_v9, 0  ;;  %vm5315_vm1 = vcmp.lt.s32.totalorder %v18860_v44, 0  ;;  %v5492_v0 = vsub.s32 4294967266, %v15783_v14 }
 0x54b   : > { %vm7611_vm12 = vcmp.lt.s32.totalorder %v7610_v58, 0  ;;  %v5750_v56 = vor.u32 %v5749_v35, %v5748_v26  ;;  %vm5760_vm14 = vcmp.lt.s32.totalorder %v15773_v51, 4  ;;  %v15794_v31 = vshrl.u32 %v5683_v25, 30  ;;  %v8242_v38 = vpop.eup %8241 }
 0x54c   : > { %v5741_v11 = vshrl.u32 %v18507_v15, %v5740_v36  ;;  %v5756_v12 = vor.u32 %v5755_v49, %v5754_v63  ;;  %vm5759_vm6 = vcmp.lt.s32.totalorder %v15773_v51, 3  ;;  %vm5758_vm7 = vcmp.lt.s32.totalorder %v15773_v51, 2 }
 0x54d   : > { %v5765_v53 = vsel %vm5757_vm0, %v5744_v22, %v5747_v47  ;;  %v5766_v61 = vsel %vm5760_vm14, %v5753_v33, 920167782  ;;  %v5773_v43 = vshll.u32 %v5733_v1, 8  ;;  %vm5304_vm15 = vcmp.lt.s32.totalorder %v15760_v9, 2 }
 0x54e   : > { %v5309_v45 = vxor.u32 2147483648, %v8240_v6  ;;  %v5396_v57 = vmul.f32 %v5395_v16, %v5393_v62  ;;  %v5488_v52 = vsub.s32 32, %v15783_v14  ;;  %v5762_v36 = vsel %vm5760_vm14, %v5750_v56, 2102212464 }
 0x54f   : > { %v18890_v20 = vand.u32 2147483647, %v18860_v44  ;;  %v5493_v10 = vadd.s32 127, %v5492_v0  ;;  %v15814_v4 = vsel %vm7611_vm12, 0, %v7610_v58  ;;  %v5767_v26 = vsel %vm5759_vm6, %v5750_v56, %v5766_v61 }
 0x550   : > { %v5770_v35 = vsel %vm5760_vm14, %v5756_v12, 1326507024  ;;  %v5685_v40 = vshll.u32 %v15794_v31, 30  ;;  %v5761_v25 = vsel %vm5757_vm0, %v5741_v11, %v5744_v22  ;;  %v5768_v63 = vsel %vm5758_vm7, %v5765_v53, %v5767_v26  ;;  %v18893_v53 = vld [vmem:[#allocation57_spill] sm:$0xff] }
 0x551   : > { %vm15809_vm9 = vcmp.le.f32.partialorder %v18890_v20, 0.7853982  ;;  %v5769_v1 = vsel %vm5757_vm0, %v5747_v47, %v5750_v56  ;;  %vm5418_vm3 = vcmp.lt.s32.totalorder %v18869_v39, 0  ;;  %v5763_v58 = vsel %vm5759_vm6, %v5747_v47, %v5762_v36 }
 0x552   : > { %v5771_v62 = vsel %vm5759_vm6, %v5753_v33, %v5770_v35  ;;  %v15832_v16 = vmul.u32.u64.low %v5773_v43, %v5768_v63  ;;  %v15833_v49 = vmul.u32.u64.high %v5773_v43, %v5768_v63, %v15832_v16  ;;  %vm5199_vm5 = vweird.f32 %v18878_v50 }
 0x553   : > { %v5306_v22 = vxor.u32 2147483648, %v8242_v38  ;;  %v5397_v0 = vxor.u32 2147483648, %v5396_v57  ;;  %v5489_v11 = vshll.u32 %v15671_v60, %v15783_v14  ;;  %v5490_v56 = vshrl.u32 %v5472_v48, %v5488_v52 }
 0x554   : > { %vm5302_vm2 = vweird.f32 %v18856_v8  ;;  %v5494_v12 = vshll.u32 %v5493_v10, 23  ;;  %v5595_v47 = vsub.s32 4294967266, %v15814_v4  ;;  %v5772_v33 = vsel %vm5758_vm7, %v5769_v1, %v5771_v62 }
 0x555   : > { %v5831_v61 = vand.u32 2139095040, %v18893_v53  ;;  %v15845_v36 = vsub.s32 %v15771_v42, %v5685_v40  ;;  %v5764_v20 = vsel %vm5758_vm7, %v5761_v25, %v5763_v58  ;;  %v5310_v60 = vsel %vm5308_vm13, %v5309_v45, %v8242_v38 }
 0x556   : > { %v15849_v26 = vmul.u32.u64.low %v5773_v43, %v5772_v33  ;;  %v15850_v35 = vmul.u32.u64.high %v5773_v43, %v5772_v33, %v15849_v26  ;;  %v5400_v48 = vsel %vm5315_vm1, %v5399_v24, %v15527_v59  ;;  %v18894_v14 = vand.u32 2147483647, %v18869_v39 }
 0x557   : > { %v5783_v51 = vadd.s32 1, %v15833_v49  ;;  %v5832_v52 = vshrl.u32 %v5831_v61, 23  ;;  %v5307_v10 = vsel %vm5305_vm4, %v8240_v6, %v5306_v22  ;;  %v5398_v38 = vsel %vm5315_vm1, %v5397_v0, %v5396_v57  ;;  %v18897_v26 = vld [vmem:[#allocation58_spill] sm:$0xff] }
 0x558   : > { %vm15861_vm8 = vcmp.le.f32.partialorder %v18894_v14, 0.7853982  ;;  %v5491_v45 = vor.u32 %v5490_v56, %v5489_v11  ;;  %v5502_v40 = vsub.s32 4, %v15632_v46  ;;  %v5495_v25 = vor.u32 4788187, %v5494_v12 }
 0x559   : > { %v5575_v59 = vadd.s32 %v15606_v13, %v15627_v54  ;;  %v5780_v24 = vmul.u32 %v5773_v43, %v5764_v20  ;;  %v7620_v63 = vadd.s32 4294967169, %v5832_v52  ;;  %v5591_v1 = vsub.s32 32, %v15814_v4 }
 0x55a   : > { %v5596_v58 = vadd.s32 127, %v5595_v47  ;;  %v5688_v62 = vsub.s32 0, %v15845_v36  ;;  %vm5782_vm10 = vc.u32 %v15850_v35, %v15832_v16  ;;  %v5311_v6 = vsel %vm5304_vm15, %v5307_v10, %v5310_v60 }
 0x55b   : > { %v5402_v57 = vsel %vm15809_vm9, 0, %v5400_v48  ;;  %v5784_v22 = vsel %vm5782_vm10, %v5783_v51, %v15833_v49  ;;  %v5838_v0 = vadd.s32 1, %v7620_v63  ;;  %v5401_v13 = vsel %vm15809_vm9, %v18860_v44, %v5398_v38 }
 0x55c   : > { %v5498_v54 = vcvt.s32.f32 %v5491_v45  ;;  %v5503_v43 = vsel %vm5418_vm3, %v5502_v40, %v15632_v46  ;;  %v18466_v11 = vand.u32 2147483647, %v18893_v53  ;;  %v5496_v56 = vand.u32 2147483647, %v5495_v25 }
 0x55d   : > { %v5592_v9 = vshll.u32 %v15713_v34, %v15814_v4  ;;  %v5785_v12 = vadd.s32 %v5784_v22, %v5780_v24  ;;  %vm5839_vm11 = vcmp.gt.s32.totalorder %v5838_v0, 0  ;;  %v5593_v47 = vshrl.u32 %v5575_v59, %v5591_v1 }
 0x55e   : > { %v5597_v49 = vshll.u32 %v5596_v58, 23  ;;  %v7613_v33 = vmin.u32 %v5688_v62, %v15845_v36  ;;  %v5840_v61 = vsel %vm5839_vm11, %v5838_v0, 0  ;;  %v15895_v55 = vsel %vm5199_vm5, nan, %v15754_v19 }
 0x55f   : > { %v5786_v20 = vadd.s32 536870912, %v5785_v12  ;;  %v5842_v46 = vand.u32 31, %v5840_v61  ;;  %v5934_v60 = vand.u32 2139095040, %v18897_v26  ;;  %v15900_v48 = vsel %vm5302_vm2, nan, %v5311_v6 }
 0x560   : > { %8243 = vcosq.f32 %v5401_v13  ;;  %v15902_v34 = vand.u32 3, %v5402_v57  ;;  %v5505_v4 = vsel %vm15861_vm8, 0, %v5503_v43  ;;  %v5499_v14 = vmul.f32 %v5498_v54, %v5496_v56 }
 0x561   : > { %8245 = vsinq.f32 %v5401_v13  ;;  %v15906_v51 = vshrl.u32 %v5786_v20, 30  ;;  %v5843_v50 = vsub.s32 32, %v5842_v46  ;;  %v5594_v19 = vor.u32 %v5593_v47, %v5592_v9 }
 0x562   : > { %v5598_v52 = vor.u32 4788187, %v5597_v49  ;;  %v5690_v10 = vclz %v7613_v33  ;;  %v5835_v38 = vand.u32 8388607, %v18466_v11  ;;  %v5841_v45 = vshrl.u32 %v5840_v61, 5 }
 0x563   : > { %v5788_v8 = vshll.u32 %v15906_v51, 30  ;;  %v5845_v40 = vshll.u32 %v18507_v15, %v5842_v46  ;;  %v5935_v25 = vshrl.u32 %v5934_v60, 23  ;;  %v5846_v59 = vshrl.u32 %v18508_v5, %v5843_v50 }
 0x564   : > { %v5848_v24 = vshll.u32 %v18508_v5, %v5842_v46  ;;  %v5849_v63 = vshrl.u32 %v18509_v17, %v5843_v50  ;;  %v5854_v1 = vshll.u32 %v18504_v41, %v5842_v46  ;;  %v5851_v62 = vshll.u32 %v18509_v17, %v5842_v46 }
 0x565   : > { %v15916_v58 = vsub.s32 %v5785_v12, %v5788_v8  ;;  %v5852_v6 = vshrl.u32 %v18504_v41, %v5843_v50  ;;  %v5855_v57 = vshrl.u32 %v18505_v32, %v5843_v50  ;;  %v5500_v22 = vxor.u32 2147483648, %v5499_v14 }
 0x566   : > { %v15921_v0 = vand.u32 3, %v5505_v4  ;;  %v5601_v13 = vcvt.s32.f32 %v5594_v19  ;;  %v7614_v54 = vadd.s32 4294967294, %v5690_v10  ;;  %v5599_v43 = vand.u32 2147483647, %v5598_v52 }
 0x567   : > { %v5836_v56 = vor.u32 8388608, %v5835_v38  ;;  %v5857_v9 = vshll.u32 %v18505_v32, %v5842_v46  ;;  %v7624_v47 = vadd.s32 4294967169, %v5935_v25  ;;  %v5847_v49 = vor.u32 %v5846_v59, %v5845_v40 }
 0x568   : > { %v5850_v33 = vor.u32 %v5849_v63, %v5848_v24  ;;  %v5856_v12 = vor.u32 %v5855_v57, %v5854_v1  ;;  %v5858_v61 = vshrl.u32 %v18506_v30, %v5843_v50  ;;  %v5791_v20 = vsub.s32 0, %v15916_v58 }
 0x569   : > { %v5844_v60 = vshrl.u32 %v18507_v15, %v5843_v50  ;;  %v5853_v8 = vor.u32 %v5852_v6, %v5851_v62  ;;  %vm5860_vm13 = vcmp.lt.s32.totalorder %v5841_v45, 1  ;;  %vm5521_vm0 = vcmp.lt.s32.totalorder %v18873_v21, 0 }
 0x56a   : > { %v15927_v4 = vpop.eup %8243  ;;  %vm7615_vm4 = vcmp.lt.s32.totalorder %v7614_v54, 0  ;;  %v5859_v19 = vor.u32 %v5858_v61, %v5857_v9  ;;  %vm5862_vm1 = vcmp.lt.s32.totalorder %v5841_v45, 3  ;;  %vm5863_vm12 = vcmp.lt.s32.totalorder %v5841_v45, 4 }
 0x56b   : > { %v15930_v46 = vpop.eup %8245  ;;  %v5501_v52 = vsel %vm5418_vm3, %v5500_v22, %v5499_v14  ;;  %vm5861_vm14 = vcmp.lt.s32.totalorder %v5841_v45, 2  ;;  %v5865_v10 = vsel %vm5863_vm12, %v5853_v8, 2102212464  ;;  %v5876_v38 = vshll.u32 %v5836_v56, 8 }
 0x56c   : > { %v5602_v50 = vmul.f32 %v5601_v13, %v5599_v43  ;;  %v5868_v40 = vsel %vm5860_vm13, %v5847_v49, %v5850_v33  ;;  %v5869_v25 = vsel %vm5863_vm12, %v5856_v12, 920167782  ;;  %v5941_v59 = vadd.s32 1, %v7624_v47 }
 0x56d   : > { %v15937_v24 = vsel %vm7615_vm4, 0, %v7614_v54  ;;  %v7617_v63 = vmin.u32 %v5791_v20, %v15916_v58  ;;  %v5864_v1 = vsel %vm5860_vm13, %v5844_v60, %v5847_v49  ;;  %v5870_v62 = vsel %vm5862_vm1, %v5853_v8, %v5869_v25 }
 0x56e   : > { %v5866_v14 = vsel %vm5862_vm1, %v5850_v33, %v5865_v10  ;;  %v5871_v6 = vsel %vm5861_vm14, %v5868_v40, %v5870_v62  ;;  %v5872_v57 = vsel %vm5860_vm13, %v5850_v33, %v5853_v8  ;;  %v5873_v22 = vsel %vm5863_vm12, %v5859_v19, 1326507024 }
 0x56f   : > { %v5412_v13 = vxor.u32 2147483648, %v15927_v4  ;;  %v5874_v43 = vsel %vm5862_vm1, %v5856_v12, %v5873_v22  ;;  %v15948_v54 = vmul.u32.u64.low %v5876_v38, %v5871_v6  ;;  %v15949_v56 = vmul.u32.u64.high %v5876_v38, %v5871_v6, %v15948_v54 }
 0x570   : > { %v5504_v9 = vsel %vm15861_vm8, %v18869_v39, %v5501_v52  ;;  %v5603_v47 = vxor.u32 2147483648, %v5602_v50  ;;  %v5875_v49 = vsel %vm5861_vm14, %v5872_v57, %v5874_v43  ;;  %vm5942_vm6 = vcmp.gt.s32.totalorder %v5941_v59, 0 }
 0x571   : > { %v18898_v33 = vand.u32 2147483647, %v18873_v21  ;;  %v5698_v12 = vsub.s32 4294967266, %v15937_v24  ;;  %v5867_v20 = vsel %vm5861_vm14, %v5864_v1, %v5866_v14  ;;  %v18464_v60 = vand.u32 2147483647, %v18897_v26 }
 0x572   : > { %v5943_v8 = vsel %vm5942_vm6, %v5941_v59, 0  ;;  %v5793_v19 = vclz %v7617_v63  ;;  %v15965_v42 = vmul.u32.u64.low %v5876_v38, %v5875_v49  ;;  %v15966_v52 = vmul.u32.u64.high %v5876_v38, %v5875_v49, %v15965_v42 }
 0x573   : > { %vm15958_vm7 = vcmp.le.f32.partialorder %v18898_v33, 0.7853982  ;;  %v5945_v10 = vand.u32 31, %v5943_v8  ;;  %v5409_v40 = vxor.u32 2147483648, %v15930_v46  ;;  %8247 = vcosq.f32 %v5504_v9 }
 0x574   : > { %v5605_v25 = vsub.s32 4, %v15684_v23  ;;  %v5886_v62 = vadd.s32 1, %v15949_v56  ;;  %v5678_v6 = vadd.s32 %v15728_v2, %v15738_v29  ;;  %v5694_v45 = vsub.s32 32, %v15937_v24 }
 0x575   : > { %v5883_v1 = vmul.u32 %v5876_v38, %v5867_v20  ;;  %v5946_v14 = vsub.s32 32, %v5945_v10  ;;  %vm5411_vm15 = vcmp.eq.s32.totalorder %v15902_v34, 2  ;;  %8249 = vsinq.f32 %v5504_v9 }
 0x576   : > { %v5604_v59 = vsel %vm5521_vm0, %v5603_v47, %v5602_v50  ;;  %v5699_v63 = vadd.s32 127, %v5698_v12  ;;  %v5938_v57 = vand.u32 8388607, %v18464_v60  ;;  %v5695_v22 = vshll.u32 %v15845_v36, %v15937_v24 }
 0x577   : > { %v7618_v43 = vadd.s32 4294967294, %v5793_v19  ;;  %vm5885_vm9 = vc.u32 %v15966_v52, %v15948_v54  ;;  %v5948_v2 = vshll.u32 %v18507_v15, %v5945_v10  ;;  %v5949_v38 = vshrl.u32 %v18508_v5, %v5946_v14 }
 0x578   : > { %v5887_v29 = vsel %vm5885_vm9, %v5886_v62, %v15949_v56  ;;  %v5951_v9 = vshll.u32 %v18508_v5, %v5945_v10  ;;  %v5957_v50 = vshll.u32 %v18504_v41, %v5945_v10  ;;  %v5696_v47 = vshrl.u32 %v5678_v6, %v5694_v45 }
 0x579   : > { %v5888_v49 = vadd.s32 %v5887_v29, %v5883_v1  ;;  %v15988_v33 = vshrl.u32 %v5943_v8, 5  ;;  %v5952_v36 = vshrl.u32 %v18509_v17, %v5946_v14  ;;  %vm5408_vm3 = vcmp.eq.s32.totalorder %v15902_v34, 0 }
 0x57a   : > { %v5700_v24 = vshll.u32 %v5699_v63, 23  ;;  %v5954_v12 = vshll.u32 %v18509_v17, %v5945_v10  ;;  %v5955_v20 = vshrl.u32 %v18504_v41, %v5946_v14  ;;  %v5958_v56 = vshrl.u32 %v18505_v32, %v5946_v14 }
 0x57b   : > { %vm7619_vm5 = vcmp.lt.s32.totalorder %v7618_v43, 0  ;;  %v5889_v19 = vadd.s32 536870912, %v5888_v49  ;;  %v5939_v42 = vor.u32 8388608, %v5938_v57  ;;  %v5960_v62 = vshll.u32 %v18505_v32, %v5945_v10 }
 0x57c   : > { %v5950_v6 = vor.u32 %v5949_v38, %v5948_v2  ;;  %v5953_v45 = vor.u32 %v5952_v36, %v5951_v9  ;;  %v5959_v8 = vor.u32 %v5958_v56, %v5957_v50  ;;  %v5961_v1 = vshrl.u32 %v18506_v30, %v5946_v14 }
 0x57d   : > { %v5606_v63 = vsel %vm5521_vm0, %v5605_v25, %v15684_v23  ;;  %v5607_v29 = vsel %vm15958_vm7, %v18873_v21, %v5604_v59  ;;  %v16003_v60 = vshrl.u32 %v5889_v19, 30  ;;  %vm5963_vm2 = vcmp.lt.s32.totalorder %v15988_v33, 1  ;;  %v16006_v57 = vpop.eup %8247 }
 0x57e   : > { %v5697_v10 = vor.u32 %v5696_v47, %v5695_v22  ;;  %v5701_v2 = vor.u32 4788187, %v5700_v24  ;;  %v5956_v38 = vor.u32 %v5955_v20, %v5954_v12  ;;  %vm5966_vm8 = vcmp.lt.s32.totalorder %v15988_v33, 4 }
 0x57f   : > { %vm5407_vm10 = vcmp.lt.s32.totalorder %v15902_v34, 2  ;;  %v16011_v9 = vsel %vm7619_vm5, 0, %v7618_v43  ;;  %v5891_v23 = vshll.u32 %v16003_v60, 30  ;;  %vm5965_vm11 = vcmp.lt.s32.totalorder %v15988_v33, 3  ;;  %v8250_v59 = vpop.eup %8249 }
 0x580   : > { %v16015_v25 = vshll.u32 %v5939_v42, 8  ;;  %v5962_v50 = vor.u32 %v5961_v1, %v5960_v62  ;;  %vm5964_vm13 = vcmp.lt.s32.totalorder %v15988_v33, 2  ;;  %v5971_v22 = vsel %vm5963_vm2, %v5950_v6, %v5953_v45 }
 0x581   : > { %v5972_v47 = vsel %vm5966_vm8, %v5959_v8, 920167782  ;;  %v5413_v43 = vsel %vm5411_vm15, %v5412_v13, %v15930_v46  ;;  %8251 = vcosq.f32 %v5607_v29  ;;  %v16027_v36 = vsub.s32 %v5888_v49, %v5891_v23 }
 0x582   : > { %v5947_v24 = vshrl.u32 %v18507_v15, %v5946_v14  ;;  %vm5511_vm0 = vcmp.eq.s32.totalorder %v15921_v0, 0  ;;  %vm5514_vm4 = vcmp.eq.s32.totalorder %v15921_v0, 2  ;;  %v5608_v12 = vsel %vm15958_vm7, 0, %v5606_v63 }
 0x583   : > { %8253 = vsinq.f32 %v5607_v29  ;;  %v5968_v20 = vsel %vm5966_vm8, %v5956_v38, 2102212464  ;;  %v5973_v56 = vsel %vm5965_vm11, %v5956_v38, %v5972_v47  ;;  %v5702_v13 = vand.u32 2147483647, %v5701_v2 }
 0x584   : > { %v5704_v19 = vcvt.s32.f32 %v5697_v10  ;;  %v5801_v49 = vsub.s32 4294967266, %v16011_v9  ;;  %v5974_v14 = vsel %vm5964_vm13, %v5971_v22, %v5973_v56  ;;  %v5975_v42 = vsel %vm5963_vm2, %v5953_v45, %v5956_v38 }
 0x585   : > { %v5976_v61 = vsel %vm5966_vm8, %v5962_v50, 1326507024  ;;  %v16046_v62 = vmul.u32.u64.low %v16015_v25, %v5974_v14  ;;  %v16047_v1 = vmul.u32.u64.high %v16015_v25, %v5974_v14, %v16046_v62  ;;  %v5410_v63 = vsel %vm5408_vm3, %v15927_v4, %v5409_v40  ;;  %v18901_v50 = vld [vmem:[#allocation59_spill] sm:$0xff] }
 0x586   : > { %v5894_v29 = vsub.s32 0, %v16027_v36  ;;  %v5967_v10 = vsel %vm5963_vm2, %v5947_v24, %v5950_v6  ;;  %v5969_v2 = vsel %vm5965_vm11, %v5953_v45, %v5968_v20  ;;  %vm5405_vm1 = vweird.f32 %v18860_v44 }
 0x587   : > { %v16061_v38 = vand.u32 3, %v5608_v12  ;;  %v5781_v23 = vadd.s32 %v15832_v16, %v15850_v35  ;;  %v5977_v46 = vsel %vm5965_vm11, %v5959_v8, %v5976_v61  ;;  %v6037_v4 = vand.u32 2139095040, %v18901_v50 }
 0x588   : > { %vm5510_vm12 = vcmp.lt.s32.totalorder %v15921_v0, 2  ;;  %v5705_v40 = vmul.f32 %v5704_v19, %v5702_v13  ;;  %v5797_v6 = vsub.s32 32, %v16011_v9  ;;  %v5802_v22 = vadd.s32 127, %v5801_v49 }
 0x589   : > { %v5978_v45 = vsel %vm5964_vm13, %v5975_v42, %v5977_v46  ;;  %v18902_v47 = vand.u32 2147483647, %v18884_v28  ;;  %v5970_v16 = vsel %vm5964_vm13, %v5967_v10, %v5969_v2  ;;  %v6038_v12 = vshrl.u32 %v6037_v4, 23 }
 0x58a   : > { %v16081_v35 = vmul.u32.u64.low %v16015_v25, %v5978_v45  ;;  %v16082_v8 = vmul.u32.u64.high %v16015_v25, %v5978_v45, %v16081_v35  ;;  %v5512_v20 = vxor.u32 2147483648, %v8250_v59  ;;  %v5515_v56 = vxor.u32 2147483648, %v16006_v57 }
 0x58b   : > { %vm16074_vm14 = vcmp.le.f32.partialorder %v18902_v47, 0.7853982  ;;  %vm5624_vm6 = vcmp.lt.s32.totalorder %v18884_v28, 0  ;;  %v7621_v13 = vmin.u32 %v5894_v29, %v16027_v36  ;;  %v5414_v19 = vsel %vm5407_vm10, %v5410_v63, %v5413_v43  ;;  %v8252_v42 = vpop.eup %8251  ;;  %v18905_v35 = vld [vmem:[#allocation60_spill] sm:$0xff] }
 0x58c   : > { %v5708_v49 = vsub.s32 4, %v15794_v31  ;;  %v5989_v33 = vadd.s32 1, %v16047_v1  ;;  %v7628_v14 = vadd.s32 4294967169, %v6038_v12  ;;  %v5706_v61 = vxor.u32 2147483648, %v5705_v40 }
 0x58d   : > { %v5798_v10 = vshll.u32 %v15916_v58, %v16011_v9  ;;  %v5799_v2 = vshrl.u32 %v5781_v23, %v5797_v6  ;;  %v5986_v46 = vmul.u32 %v16015_v25, %v5970_v16  ;;  %v8254_v4 = vpop.eup %8253  ;;  %vm5614_vm7 = vcmp.eq.s32.totalorder %v16061_v38, 0 }
 0x58e   : > { %v5803_v29 = vshll.u32 %v5802_v22, 23  ;;  %vm5988_vm15 = vc.u32 %v16082_v8, %v16046_v62  ;;  %v6044_v34 = vadd.s32 1, %v7628_v14  ;;  %v5513_v43 = vsel %vm5511_vm0, %v16006_v57, %v5512_v20 }
 0x58f   : > { %v5516_v63 = vsel %vm5514_vm4, %v5515_v56, %v8250_v59  ;;  %vm5617_vm9 = vcmp.eq.s32.totalorder %v16061_v38, 2  ;;  %v5896_v58 = vclz %v7621_v13  ;;  %v5618_v9 = vxor.u32 2147483648, %v8252_v42 }
 0x590   : > { %v16106_v25 = vsel %vm5624_vm6, %v5708_v49, %v15794_v31  ;;  %v5990_v23 = vsel %vm5988_vm15, %v5989_v33, %v16047_v1  ;;  %vm6045_vm3 = vcmp.gt.s32.totalorder %v6044_v34, 0  ;;  %v5615_v6 = vxor.u32 2147483648, %v8254_v4 }
 0x591   : > { %v5707_v22 = vsel %vm5624_vm6, %v5706_v61, %v5705_v40  ;;  %v5800_v57 = vor.u32 %v5799_v2, %v5798_v10  ;;  %v5991_v45 = vadd.s32 %v5990_v23, %v5986_v46  ;;  %v5804_v47 = vor.u32 4788187, %v5803_v29 }
 0x592   : > { %v18465_v59 = vand.u32 2147483647, %v18901_v50  ;;  %v6046_v16 = vsel %vm6045_vm3, %v6044_v34, 0  ;;  %v6140_v12 = vand.u32 2139095040, %v18905_v35  ;;  %v16115_v20 = vsel %vm5405_vm1, nan, %v5414_v19 }
 0x593   : > { %vm5613_vm5 = vcmp.lt.s32.totalorder %v16061_v38, 2  ;;  %v7622_v31 = vadd.s32 4294967294, %v5896_v58  ;;  %v5992_v1 = vadd.s32 536870912, %v5991_v45  ;;  %v16120_v56 = vsel %vm5510_vm12, %v5513_v43, %v5516_v63 }
 0x594   : > { %v5619_v40 = vsel %vm5617_vm9, %v5618_v9, %v8254_v4  ;;  %v5711_v13 = vsel %vm16074_vm14, 0, %v16106_v25  ;;  %v6048_v49 = vand.u32 31, %v6046_v16  ;;  %v5616_v44 = vsel %vm5614_vm7, %v8252_v42, %v5615_v6 }
 0x595   : > { %v16132_v19 = vsel %vm16074_vm14, %v18884_v28, %v5707_v22  ;;  %vm5727_vm2 = vcmp.lt.s32.totalorder %v18888_v3, 0  ;;  %v5807_v0 = vcvt.s32.f32 %v5800_v57  ;;  %v16135_v33 = vshrl.u32 %v5992_v1, 30 }
 0x596   : > { %v5805_v14 = vand.u32 2147483647, %v5804_v47  ;;  %v6041_v61 = vand.u32 8388607, %v18465_v59  ;;  %v6049_v10 = vsub.s32 32, %v6048_v49  ;;  %v6141_v2 = vshrl.u32 %v6140_v12, 23 }
 0x597   : > { %vm7623_vm8 = vcmp.lt.s32.totalorder %v7622_v31, 0  ;;  %v5994_v46 = vshll.u32 %v16135_v33, 30  ;;  %v6047_v42 = vshrl.u32 %v6046_v16, 5  ;;  %v6051_v4 = vshll.u32 %v18507_v15, %v6048_v49 }
 0x598   : > { %v6052_v29 = vshrl.u32 %v18508_v5, %v6049_v10  ;;  %v6054_v34 = vshll.u32 %v18508_v5, %v6048_v49  ;;  %v6055_v43 = vshrl.u32 %v18509_v17, %v6049_v10  ;;  %v6060_v63 = vshll.u32 %v18504_v41, %v6048_v49 }
 0x599   : > { %v16145_v58 = vsub.s32 %v5991_v45, %v5994_v46  ;;  %v6057_v9 = vshll.u32 %v18509_v17, %v6048_v49  ;;  %v6058_v23 = vshrl.u32 %v18504_v41, %v6049_v10  ;;  %v6061_v6 = vshrl.u32 %v18505_v32, %v6049_v10 }
 0x59a   : > { %v5620_v22 = vsel %vm5613_vm5, %v5616_v44, %v5619_v40  ;;  %8255 = vcosq.f32 %v16132_v19  ;;  %vm16155_vm10 = vcmp.le.f32.partialorder %v5725_v7, 0.7853982  ;;  %v5811_v45 = vsub.s32 4, %v15906_v51 }
 0x59b   : > { %v7632_v47 = vadd.s32 4294967169, %v6141_v2  ;;  %v5808_v16 = vmul.f32 %v5807_v0, %v5805_v14  ;;  %v16161_v12 = vsel %vm7623_vm8, 0, %v7622_v31  ;;  %v6042_v1 = vor.u32 8388608, %v6041_v61 }
 0x59c   : > { %v6053_v46 = vor.u32 %v6052_v29, %v6051_v4  ;;  %vm5508_vm11 = vweird.f32 %v18869_v39  ;;  %vm5611_vm13 = vweird.f32 %v18873_v21  ;;  %v6056_v38 = vor.u32 %v6055_v43, %v6054_v34 }
 0x59d   : > { %v6062_v40 = vor.u32 %v6061_v6, %v6060_v63  ;;  %v6063_v7 = vshll.u32 %v18505_v32, %v6048_v49  ;;  %v6064_v44 = vshrl.u32 %v18506_v30, %v6049_v10  ;;  %v5997_v59 = vsub.s32 0, %v16145_v58 }
 0x59e   : > { %v6050_v2 = vshrl.u32 %v18507_v15, %v6049_v10  ;;  %v6059_v0 = vor.u32 %v6058_v23, %v6057_v9  ;;  %vm6066_vm0 = vcmp.lt.s32.totalorder %v6047_v42, 1  ;;  %v5812_v31 = vsel %vm5727_vm2, %v5811_v45, %v15906_v51 }
 0x59f   : > { %v6065_v14 = vor.u32 %v6064_v44, %v6063_v7  ;;  %vm6068_vm4 = vcmp.lt.s32.totalorder %v6047_v42, 3  ;;  %v6147_v61 = vadd.s32 1, %v7632_v47  ;;  %v5809_v4 = vxor.u32 2147483648, %v5808_v16 }
 0x5a0   : > { %vm6067_vm1 = vcmp.lt.s32.totalorder %v6047_v42, 2  ;;  %vm6069_vm12 = vcmp.lt.s32.totalorder %v6047_v42, 4  ;;  %v6082_v29 = vshll.u32 %v6042_v1, 8  ;;  %v5904_v49 = vsub.s32 4294967266, %v16161_v12 }
 0x5a1   : > { %v6071_v34 = vsel %vm6069_vm12, %v6059_v0, 2102212464  ;;  %v6074_v43 = vsel %vm6066_vm0, %v6053_v46, %v6056_v38  ;;  %v6075_v63 = vsel %vm6069_vm12, %v6062_v40, 920167782  ;;  %v7625_v10 = vmin.u32 %v5997_v59, %v16145_v58 }
 0x5a2   : > { %v6070_v9 = vsel %vm6066_vm0, %v6050_v2, %v6053_v46  ;;  %v6076_v23 = vsel %vm6068_vm4, %v6059_v0, %v6075_v63  ;;  %v6078_v51 = vsel %vm6066_vm0, %v6056_v38, %v6059_v0  ;;  %v6072_v6 = vsel %vm6068_vm4, %v6056_v38, %v6071_v34 }
 0x5a3   : > { %v6077_v45 = vsel %vm6067_vm1, %v6074_v43, %v6076_v23  ;;  %v6079_v47 = vsel %vm6069_vm12, %v6065_v14, 1326507024  ;;  %vm6148_vm6 = vcmp.gt.s32.totalorder %v6147_v61, 0  ;;  %v5814_v1 = vsel %vm16155_vm10, 0, %v5812_v31 }
 0x5a4   : > { %v6080_v7 = vsel %vm6068_vm4, %v6062_v40, %v6079_v47  ;;  %v16183_v44 = vmul.u32.u64.low %v6082_v29, %v6077_v45  ;;  %v16184_v11 = vmul.u32.u64.high %v6082_v29, %v6077_v45, %v16183_v44  ;;  %v16187_v59 = vpop.eup %8255  ;;  %v5810_v46 = vsel %vm5727_vm2, %v5809_v4, %v5808_v16 }
 0x5a5   : > { %v5884_v38 = vadd.s32 %v15948_v54, %v15966_v52  ;;  %v6081_v2 = vsel %vm6067_vm1, %v6078_v51, %v6080_v7  ;;  %v6149_v0 = vsel %vm6148_vm6, %v6147_v61, 0  ;;  %v5900_v14 = vsub.s32 32, %v16161_v12 }
 0x5a6   : > { %v5905_v31 = vadd.s32 127, %v5904_v49  ;;  %v6073_v40 = vsel %vm6067_vm1, %v6070_v9, %v6072_v6  ;;  %v18468_v34 = vand.u32 2147483647, %v18905_v35  ;;  %v5999_v43 = vclz %v7625_v10 }
 0x5a7   : > { %v16197_v63 = vmul.u32.u64.low %v6082_v29, %v6081_v2  ;;  %v16198_v23 = vmul.u32.u64.high %v6082_v29, %v6081_v2, %v16197_v63  ;;  %v6151_v45 = vand.u32 31, %v6149_v0  ;;  %v16203_v16 = vsel %vm5508_vm11, nan, %v16120_v56 }
 0x5a8   : > { %18908 = vst [vmem:[#allocation43_spill] sm:$0xff] %v16203_v16  ;;  %v16207_v54 = vsel %vm5611_vm13, nan, %v5620_v22  ;;  %v16213_v52 = vand.u32 3, %v5711_v13  ;;  %v6092_v42 = vadd.s32 1, %v16184_v11  ;;  %8257 = vsinq.f32 %v16132_v19 }
 0x5a9   : > { %18909 = vst [vmem:[#allocation38_spill] sm:$0xff] %v16207_v54  ;;  %v16217_v61 = vand.u32 3, %v5814_v1  ;;  %v6089_v4 = vmul.u32 %v6082_v29, %v6073_v40  ;;  %v6152_v39 = vsub.s32 32, %v6151_v45  ;;  %v5721_v56 = vxor.u32 2147483648, %v16187_v59 }
 0x5aa   : > { %v5813_v21 = vsel %vm16155_vm10, %v18888_v3, %v5810_v46  ;;  %v5901_v24 = vshll.u32 %v16027_v36, %v16161_v12  ;;  %v6144_v25 = vand.u32 8388607, %v18468_v34  ;;  %v5902_v13 = vshrl.u32 %v5884_v38, %v5900_v14 }
 0x5ab   : > { %v5906_v22 = vshll.u32 %v5905_v31, 23  ;;  %v7626_v49 = vadd.s32 4294967294, %v5999_v43  ;;  %vm6091_vm14 = vc.u32 %v16198_v23, %v16183_v44  ;;  %v6154_v29 = vshll.u32 %v18507_v15, %v6151_v45 }
 0x5ac   : > { %v6093_v19 = vsel %vm6091_vm14, %v6092_v42, %v16184_v11  ;;  %v6157_v10 = vshll.u32 %v18508_v5, %v6151_v45  ;;  %v6163_v57 = vshll.u32 %v18504_v41, %v6151_v45  ;;  %v16233_v51 = vshrl.u32 %v6149_v0, 5 }
 0x5ad   : > { %v6094_v9 = vadd.s32 %v6093_v19, %v6089_v4  ;;  %v6155_v36 = vshrl.u32 %v18508_v5, %v6152_v39  ;;  %v6158_v12 = vshrl.u32 %v18509_v17, %v6152_v39  ;;  %8259 = vcosq.f32 %v5813_v21 }
 0x5ae   : > { %v6160_v6 = vshll.u32 %v18509_v17, %v6151_v45  ;;  %v6161_v47 = vshrl.u32 %v18504_v41, %v6152_v39  ;;  %v6164_v11 = vshrl.u32 %v18505_v32, %v6152_v39  ;;  %vm7627_vm7 = vcmp.lt.s32.totalorder %v7626_v49, 0 }
 0x5af   : > { %v6095_v1 = vadd.s32 536870912, %v6094_v9  ;;  %v6145_v7 = vor.u32 8388608, %v6144_v25  ;;  %v6166_v46 = vshll.u32 %v18505_v32, %v6151_v45  ;;  %v5903_v38 = vor.u32 %v5902_v13, %v5901_v24 }
 0x5b0   : > { %v6156_v2 = vor.u32 %v6155_v36, %v6154_v29  ;;  %v6159_v0 = vor.u32 %v6158_v12, %v6157_v10  ;;  %v6165_v14 = vor.u32 %v6164_v11, %v6163_v57  ;;  %vm5720_vm15 = vcmp.eq.s32.totalorder %v16213_v52, 2 }
 0x5b1   : > { %v5907_v31 = vor.u32 4788187, %v5906_v22  ;;  %v16242_v40 = vshrl.u32 %v6095_v1, 30  ;;  %v6167_v43 = vshrl.u32 %v18506_v30, %v6152_v39  ;;  %vm6169_vm9 = vcmp.lt.s32.totalorder %v16233_v51, 1 }
 0x5b2   : > { %vm5717_vm3 = vcmp.eq.s32.totalorder %v16213_v52, 0  ;;  %8261 = vsinq.f32 %v5813_v21  ;;  %v16247_v63 = vsel %vm7627_vm7, 0, %v7626_v49  ;;  %v6162_v42 = vor.u32 %v6161_v47, %v6160_v6  ;;  %v8258_v45 = vpop.eup %8257 }
 0x5b3   : > { %vm6172_vm5 = vcmp.lt.s32.totalorder %v16233_v51, 4  ;;  %v6097_v4 = vshll.u32 %v16242_v40, 30  ;;  %v6153_v24 = vshrl.u32 %v18507_v15, %v6152_v39  ;;  %v6168_v25 = vor.u32 %v6167_v43, %v6166_v46 }
 0x5b4   : > { %vm6171_vm2 = vcmp.lt.s32.totalorder %v16233_v51, 3  ;;  %vm5830_vm8 = vcmp.lt.s32.totalorder %v18893_v53, 0  ;;  %vm6170_vm10 = vcmp.lt.s32.totalorder %v16233_v51, 2  ;;  %v6177_v21 = vsel %vm6169_vm9, %v6156_v2, %v6159_v0 }
 0x5b5   : > { %v6178_v13 = vsel %vm6172_vm5, %v6165_v14, 920167782  ;;  %v6185_v22 = vshll.u32 %v6145_v7, 8  ;;  %vm5716_vm11 = vcmp.lt.s32.totalorder %v16213_v52, 2  ;;  %v5908_v49 = vand.u32 2147483647, %v5907_v31 }
 0x5b6   : > { %v5910_v19 = vcvt.s32.f32 %v5903_v38  ;;  %v16260_v29 = vsub.s32 %v6094_v9, %v6097_v4  ;;  %v6174_v39 = vsel %vm6172_vm5, %v6162_v42, 2102212464  ;;  %v5718_v10 = vxor.u32 2147483648, %v8258_v45 }
 0x5b7   : > { %v6007_v57 = vsub.s32 4294967266, %v16247_v63  ;;  %v6179_v36 = vsel %vm6171_vm2, %v6162_v42, %v6178_v13  ;;  %v6182_v12 = vsel %vm6172_vm5, %v6168_v25, 1326507024  ;;  %v18910_v6 = vand.u32 2147483647, %v18893_v53  ;;  %v8260_v46 = vpop.eup %8259 }
 0x5b8   : > { %v6100_v9 = vsub.s32 0, %v16260_v29  ;;  %v6173_v11 = vsel %vm6169_vm9, %v6153_v24, %v6156_v2  ;;  %v6180_v1 = vsel %vm6170_vm10, %v6177_v21, %v6179_v36  ;;  %v6181_v7 = vsel %vm6169_vm9, %v6159_v0, %v6162_v42 }
 0x5b9   : > { %vm16271_vm13 = vcmp.le.f32.partialorder %v18910_v6, 0.7853982  ;;  %v6175_v38 = vsel %vm6171_vm2, %v6159_v0, %v6174_v39  ;;  %v6183_v31 = vsel %vm6171_vm2, %v6165_v14, %v6182_v12  ;;  %v5911_v25 = vmul.f32 %v5910_v19, %v5908_v49  ;;  %v18913_v39 = vld [vmem:[#allocation61_spill] sm:$0xff] }
 0x5ba   : > { %v16286_v43 = vmul.u32.u64.low %v6185_v22, %v6180_v1  ;;  %v16287_v4 = vmul.u32.u64.high %v6185_v22, %v6180_v1, %v16286_v43  ;;  %v5914_v2 = vsub.s32 4, %v16003_v60  ;;  %v5987_v24 = vadd.s32 %v16046_v62, %v16082_v8 }
 0x5bb   : > { %v7629_v21 = vmin.u32 %v6100_v9, %v16260_v29  ;;  %v6003_v42 = vsub.s32 32, %v16247_v63  ;;  %v6008_v13 = vadd.s32 127, %v6007_v57  ;;  %v6184_v0 = vsel %vm6170_vm10, %v6181_v7, %v6183_v31 }
 0x5bc   : > { %v6243_v14 = vand.u32 2139095040, %v18913_v39  ;;  %v6176_v12 = vsel %vm6170_vm10, %v6173_v11, %v6175_v38  ;;  %v16300_v49 = vmul.u32.u64.low %v6185_v22, %v6184_v0  ;;  %v16301_v19 = vmul.u32.u64.high %v6185_v22, %v6184_v0, %v16300_v49  ;;  %v8262_v6 = vpop.eup %8261 }
 0x5bd   : > { %v6102_v36 = vclz %v7629_v21  ;;  %v5722_v62 = vsel %vm5720_vm15, %v5721_v56, %v8258_v45  ;;  %vm5820_vm0 = vcmp.eq.s32.totalorder %v16217_v61, 0  ;;  %vm5933_vm4 = vcmp.lt.s32.totalorder %v18897_v26, 0 }
 0x5be   : > { %v6195_v8 = vadd.s32 1, %v16287_v4  ;;  %v6244_v57 = vshrl.u32 %v6243_v14, 23  ;;  %v5719_v51 = vsel %vm5717_vm3, %v16187_v59, %v5718_v10  ;;  %v5912_v9 = vxor.u32 2147483648, %v5911_v25 }
 0x5bf   : > { %v5915_v11 = vsel %vm5830_vm8, %v5914_v2, %v16003_v60  ;;  %v7630_v1 = vadd.s32 4294967294, %v6102_v36  ;;  %v6004_v56 = vshll.u32 %v16145_v58, %v16247_v63  ;;  %v6005_v45 = vshrl.u32 %v5987_v24, %v6003_v42  ;;  %v18914_v36 = vld [vmem:[#allocation62_spill] sm:$0xff] }
 0x5c0   : > { %v6192_v7 = vmul.u32 %v6185_v22, %v6176_v12  ;;  %v7636_v38 = vadd.s32 4294967169, %v6244_v57  ;;  %vm5823_vm1 = vcmp.eq.s32.totalorder %v16217_v61, 2  ;;  %v6009_v31 = vshll.u32 %v6008_v13, 23 }
 0x5c1   : > { %vm7631_vm12 = vcmp.lt.s32.totalorder %v7630_v1, 0  ;;  %vm6194_vm6 = vc.u32 %v16301_v19, %v16286_v43  ;;  %v16323_v59 = vsel %vm5716_vm11, %v5719_v51, %v5722_v62  ;;  %v5917_v60 = vsel %vm16271_vm13, 0, %v5915_v11 }
 0x5c2   : > { %v6196_v10 = vsel %vm6194_vm6, %v6195_v8, %v16287_v4  ;;  %v6250_v58 = vadd.s32 1, %v7636_v38  ;;  %v5821_v63 = vxor.u32 2147483648, %v8262_v6  ;;  %v5824_v22 = vxor.u32 2147483648, %v8260_v46 }
 0x5c3   : > { %v6017_v2 = vsub.s32 4, %v16135_v33  ;;  %v16329_v24 = vsel %vm7631_vm12, 0, %v7630_v1  ;;  %v5913_v21 = vsel %vm5830_vm8, %v5912_v9, %v5911_v25  ;;  %v6006_v42 = vor.u32 %v6005_v45, %v6004_v56 }
 0x5c4   : > { %v6197_v13 = vadd.s32 %v6196_v10, %v6192_v7  ;;  %vm6251_vm14 = vcmp.gt.s32.totalorder %v6250_v58, 0  ;;  %v6010_v52 = vor.u32 4788187, %v6009_v31  ;;  %v18467_v0 = vand.u32 2147483647, %v18913_v39 }
 0x5c5   : > { %v6252_v14 = vsel %vm6251_vm14, %v6250_v58, 0  ;;  %v6346_v12 = vand.u32 2139095040, %v18914_v36  ;;  %v16335_v4 = vand.u32 3, %v5917_v60  ;;  %v6110_v49 = vsub.s32 4294967266, %v16329_v24 }
 0x5c6   : > { %v6198_v62 = vadd.s32 536870912, %v6197_v13  ;;  %v6254_v8 = vand.u32 31, %v6252_v14  ;;  %v16340_v57 = vsel %vm5820_vm0, %v8260_v46, %v5821_v63  ;;  %v16344_v25 = vsel %vm5823_vm1, %v5824_v22, %v8262_v6 }
 0x5c7   : > { %v16349_v51 = vsel %vm16271_vm13, %v18893_v53, %v5913_v21  ;;  %v16354_v9 = vsel %vm5933_vm4, %v6017_v2, %v16135_v33  ;;  %v6013_v11 = vcvt.s32.f32 %v6006_v42  ;;  %v6090_v1 = vadd.s32 %v16183_v44, %v16198_v23 }
 0x5c8   : > { %v16358_v46 = vshrl.u32 %v6198_v62, 30  ;;  %v6255_v56 = vsub.s32 32, %v6254_v8  ;;  %v6011_v45 = vand.u32 2147483647, %v6010_v52  ;;  %v6106_v6 = vsub.s32 32, %v16329_v24 }
 0x5c9   : > { %v6247_v47 = vand.u32 8388607, %v18467_v0  ;;  %v6347_v7 = vshrl.u32 %v6346_v12, 23  ;;  %v6111_v38 = vadd.s32 127, %v6110_v49  ;;  %v6253_v60 = vshrl.u32 %v6252_v14, 5 }
 0x5ca   : > { %v6200_v31 = vshll.u32 %v16358_v46, 30  ;;  %v6257_v33 = vshll.u32 %v18507_v15, %v6254_v8  ;;  %v6258_v10 = vshrl.u32 %v18508_v5, %v6255_v56  ;;  %v6260_v44 = vshll.u32 %v18508_v5, %v6254_v8 }
 0x5cb   : > { %v6261_v23 = vshrl.u32 %v18509_v17, %v6255_v56  ;;  %v6266_v58 = vshll.u32 %v18504_v41, %v6254_v8  ;;  %v6263_v22 = vshll.u32 %v18509_v17, %v6254_v8  ;;  %v6264_v2 = vshrl.u32 %v18504_v41, %v6255_v56 }
 0x5cc   : > { %v16369_v63 = vsub.s32 %v6197_v13, %v6200_v31  ;;  %v6267_v21 = vshrl.u32 %v18505_v32, %v6255_v56  ;;  %v6014_v42 = vmul.f32 %v6013_v11, %v6011_v45  ;;  %v6107_v52 = vshll.u32 %v16260_v29, %v16329_v24 }
 0x5cd   : > { %v6248_v14 = vor.u32 8388608, %v6247_v47  ;;  %v7640_v12 = vadd.s32 4294967169, %v6347_v7  ;;  %v6108_v49 = vshrl.u32 %v6090_v1, %v6106_v6  ;;  %v6112_v62 = vshll.u32 %v6111_v38, 23 }
 0x5ce   : > { %v6203_v0 = vsub.s32 0, %v16369_v63  ;;  %v6269_v34 = vshll.u32 %v18505_v32, %v6254_v8  ;;  %v18915_v13 = vand.u32 2147483647, %v18897_v26  ;;  %v6259_v54 = vor.u32 %v6258_v10, %v6257_v33 }
 0x5cf   : > { %v6262_v16 = vor.u32 %v6261_v23, %v6260_v44  ;;  %v6268_v11 = vor.u32 %v6267_v21, %v6266_v58  ;;  %v6270_v45 = vshrl.u32 %v18506_v30, %v6255_v56  ;;  %vm5714_vm15 = vweird.f32 %v18884_v28 }
 0x5d0   : > { %vm16380_vm7 = vcmp.le.f32.partialorder %v18915_v13, 0.7853982  ;;  %v7633_v29 = vmin.u32 %v6203_v0, %v16369_v63  ;;  %v6256_v24 = vshrl.u32 %v18507_v15, %v6255_v56  ;;  %v6265_v1 = vor.u32 %v6264_v2, %v6263_v22 }
 0x5d1   : > { %vm6272_vm9 = vcmp.lt.s32.totalorder %v6253_v60, 1  ;;  %vm5819_vm3 = vcmp.lt.s32.totalorder %v16217_v61, 2  ;;  %8263 = vcosq.f32 %v16349_v51  ;;  %v6271_v8 = vor.u32 %v6270_v45, %v6269_v34 }
 0x5d2   : > { %vm6274_vm5 = vcmp.lt.s32.totalorder %v6253_v60, 3  ;;  %vm6275_vm2 = vcmp.lt.s32.totalorder %v6253_v60, 4  ;;  %v6205_v6 = vclz %v7633_v29  ;;  %vm6273_vm8 = vcmp.lt.s32.totalorder %v6253_v60, 2 }
 0x5d3   : > { %v6277_v47 = vsel %vm6275_vm2, %v6265_v1, 2102212464  ;;  %v6288_v7 = vshll.u32 %v6248_v14, 8  ;;  %v6015_v38 = vxor.u32 2147483648, %v6014_v42  ;;  %v6280_v33 = vsel %vm6272_vm9, %v6259_v54, %v6262_v16 }
 0x5d4   : > { %v6281_v0 = vsel %vm6275_vm2, %v6268_v11, 920167782  ;;  %v6353_v56 = vadd.s32 1, %v7640_v12  ;;  %v6109_v10 = vor.u32 %v6108_v49, %v6107_v52  ;;  %v6113_v44 = vor.u32 4788187, %v6112_v62 }
 0x5d5   : > { %v6276_v23 = vsel %vm6272_vm9, %v6256_v24, %v6259_v54  ;;  %v6282_v58 = vsel %vm6274_vm5, %v6265_v1, %v6281_v0  ;;  %v6278_v34 = vsel %vm6274_vm5, %v6262_v16, %v6277_v47  ;;  %v6284_v2 = vsel %vm6272_vm9, %v6262_v16, %v6265_v1 }
 0x5d6   : > { %v6283_v22 = vsel %vm6273_vm8, %v6280_v33, %v6282_v58  ;;  %v6285_v21 = vsel %vm6275_vm2, %v6271_v8, 1326507024  ;;  %v7634_v14 = vadd.s32 4294967294, %v6205_v6  ;;  %v6016_v54 = vsel %vm5933_vm4, %v6015_v38, %v6014_v42 }
 0x5d7   : > { %v6286_v13 = vsel %vm6274_vm5, %v6268_v11, %v6285_v21  ;;  %v16400_v45 = vmul.u32.u64.low %v6288_v7, %v6283_v22  ;;  %v16401_v29 = vmul.u32.u64.high %v6288_v7, %v6283_v22, %v16400_v45  ;;  %v18470_v12 = vand.u32 2147483647, %v18914_v36 }
 0x5d8   : > { %v6287_v52 = vsel %vm6273_vm8, %v6284_v2, %v6286_v13  ;;  %vm6354_vm10 = vcmp.gt.s32.totalorder %v6353_v56, 0  ;;  %v6114_v49 = vand.u32 2147483647, %v6113_v44  ;;  %v6116_v62 = vcvt.s32.f32 %v6109_v10 }
 0x5d9   : > { %v6279_v16 = vsel %vm6273_vm8, %v6276_v23, %v6278_v34  ;;  %v6355_v24 = vsel %vm6354_vm10, %v6353_v56, 0  ;;  %v6020_v11 = vsel %vm16380_vm7, 0, %v16354_v9  ;;  %8265 = vsinq.f32 %v16349_v51 }
 0x5da   : > { %v16412_v1 = vmul.u32.u64.low %v6288_v7, %v6287_v52  ;;  %v16413_v8 = vmul.u32.u64.high %v6288_v7, %v6287_v52, %v16412_v1  ;;  %v6357_v6 = vand.u32 31, %v6355_v24  ;;  %v6019_v42 = vsel %vm16380_vm7, %v18897_v26, %v6016_v54 }
 0x5db   : > { %vm7635_vm11 = vcmp.lt.s32.totalorder %v7634_v14, 0  ;;  %v6298_v47 = vadd.s32 1, %v16401_v29  ;;  %v16420_v60 = vpop.eup %8263  ;;  %v16425_v38 = vsel %vm5714_vm15, nan, %v16323_v59  ;;  %v6295_v9 = vmul.u32 %v6288_v7, %v6279_v16 }
 0x5dc   : > { %v6350_v33 = vand.u32 8388607, %v18470_v12  ;;  %v6358_v0 = vsub.s32 32, %v6357_v6  ;;  %v16433_v51 = vsel %vm5819_vm3, %v16340_v57, %v16344_v25  ;;  %vm5926_vm13 = vcmp.eq.s32.totalorder %v16335_v4, 2 }
 0x5dd   : > { %v16436_v31 = vand.u32 3, %v6020_v11  ;;  %vm6036_vm0 = vcmp.lt.s32.totalorder %v18901_v50, 0  ;;  %v6117_v28 = vmul.f32 %v6116_v62, %v6114_v49  ;;  %8267 = vcosq.f32 %v6019_v42 }
 0x5de   : > { %v18918_v59 = vand.u32 2147483647, %v18901_v50  ;;  %v16445_v56 = vsel %vm7635_vm11, 0, %v7634_v14  ;;  %vm6297_vm1 = vc.u32 %v16413_v8, %v16400_v45  ;;  %v6360_v61 = vshll.u32 %v18507_v15, %v6357_v6 }
 0x5df   : > { %v6299_v57 = vsel %vm6297_vm1, %v6298_v47, %v16401_v29  ;;  %v6361_v25 = vshrl.u32 %v18508_v5, %v6358_v0  ;;  %v6363_v10 = vshll.u32 %v18508_v5, %v6357_v6  ;;  %v6369_v44 = vshll.u32 %v18504_v41, %v6357_v6 }
 0x5e0   : > { %vm16441_vm4 = vcmp.le.f32.partialorder %v18918_v59, 0.7853982  ;;  %v6300_v23 = vadd.s32 %v6299_v57, %v6295_v9  ;;  %v6351_v58 = vor.u32 8388608, %v6350_v33  ;;  %v16454_v34 = vshrl.u32 %v6355_v24, 5 }
 0x5e1   : > { %v6364_v22 = vshrl.u32 %v18509_v17, %v6358_v0  ;;  %v6118_v2 = vxor.u32 2147483648, %v6117_v28  ;;  %v6366_v21 = vshll.u32 %v18509_v17, %v6357_v6  ;;  %v6367_v14 = vshrl.u32 %v18504_v41, %v6358_v0 }
 0x5e2   : > { %v6370_v13 = vshrl.u32 %v18505_v32, %v6358_v0  ;;  %vm5923_vm12 = vcmp.eq.s32.totalorder %v16335_v4, 0  ;;  %8269 = vsinq.f32 %v6019_v42  ;;  %v6213_v29 = vsub.s32 4294967266, %v16445_v56 }
 0x5e3   : > { %v6301_v54 = vadd.s32 536870912, %v6300_v23  ;;  %v6372_v52 = vshll.u32 %v18505_v32, %v6357_v6  ;;  %v6362_v49 = vor.u32 %v6361_v25, %v6360_v61  ;;  %v6365_v62 = vor.u32 %v6364_v22, %v6363_v10  ;;  %v8266_v42 = vpop.eup %8265 }
 0x5e4   : > { %v6371_v16 = vor.u32 %v6370_v13, %v6369_v44  ;;  %v6373_v24 = vshrl.u32 %v18506_v30, %v6358_v0  ;;  %v5927_v11 = vxor.u32 2147483648, %v16420_v60  ;;  %v6193_v1 = vadd.s32 %v16286_v43, %v16301_v19 }
 0x5e5   : > { %v16467_v47 = vshrl.u32 %v6301_v54, 30  ;;  %vm6375_vm6 = vcmp.lt.s32.totalorder %v16454_v34, 1  ;;  %v6119_v9 = vsel %vm6036_vm0, %v6118_v2, %v6117_v28  ;;  %v6368_v33 = vor.u32 %v6367_v14, %v6366_v21 }
 0x5e6   : > { %vm6378_vm14 = vcmp.lt.s32.totalorder %v16454_v34, 4  ;;  %v16473_v6 = vshll.u32 %v6351_v58, 8  ;;  %v6209_v59 = vsub.s32 32, %v16445_v56  ;;  %v6214_v61 = vadd.s32 127, %v6213_v29 }
 0x5e7   : > { %v6303_v57 = vshll.u32 %v16467_v47, 30  ;;  %vm6377_vm7 = vcmp.lt.s32.totalorder %v16454_v34, 3  ;;  %v6374_v43 = vor.u32 %v6373_v24, %v6372_v52  ;;  %vm6376_vm15 = vcmp.lt.s32.totalorder %v16454_v34, 2  ;;  %v8268_v25 = vpop.eup %8267 }
 0x5e8   : > { %v6383_v19 = vsel %vm6375_vm6, %v6362_v49, %v6365_v62  ;;  %v6384_v28 = vsel %vm6378_vm14, %v6371_v16, 920167782  ;;  %v5924_v10 = vxor.u32 2147483648, %v8266_v42  ;;  %v16485_v44 = vsel %vm5926_vm13, %v5927_v11, %v8266_v42 }
 0x5e9   : > { %v16487_v58 = vsub.s32 %v6300_v23, %v6303_v57  ;;  %v6359_v22 = vshrl.u32 %v18507_v15, %v6358_v0  ;;  %vm6029_vm9 = vcmp.eq.s32.totalorder %v16436_v31, 2  ;;  %v6122_v2 = vsel %vm16441_vm4, %v18901_v50, %v6119_v9  ;;  %v18921_v57 = vld [vmem:[#allocation63_spill] sm:$0xff] }
 0x5ea   : > { %v6210_v21 = vshll.u32 %v16369_v63, %v16445_v56  ;;  %v6380_v14 = vsel %vm6378_vm14, %v6368_v33, 2102212464  ;;  %v6385_v13 = vsel %vm6377_vm7, %v6368_v33, %v6384_v28  ;;  %vm6026_vm3 = vcmp.eq.s32.totalorder %v16436_v31, 0 }
 0x5eb   : > { %v6211_v23 = vshrl.u32 %v6193_v1, %v6209_v59  ;;  %v6215_v29 = vshll.u32 %v6214_v61, 23  ;;  %v6306_v0 = vsub.s32 0, %v16487_v58  ;;  %v6386_v54 = vsel %vm6376_vm15, %v6383_v19, %v6385_v13 }
 0x5ec   : > { %v6387_v52 = vsel %vm6375_vm6, %v6365_v62, %v6368_v33  ;;  %v6388_v63 = vsel %vm6378_vm14, %v6374_v43, 1326507024  ;;  %v16509_v56 = vmul.u32.u64.low %v16473_v6, %v6386_v54  ;;  %v16510_v24 = vmul.u32.u64.high %v16473_v6, %v6386_v54, %v16509_v56  ;;  %v8270_v11 = vpop.eup %8269 }
 0x5ed   : > { %v6120_v1 = vsub.s32 4, %v16242_v40  ;;  %vm6139_vm5 = vcmp.lt.s32.totalorder %v18905_v35, 0  ;;  %v7637_v42 = vmin.u32 %v6306_v0, %v16487_v58  ;;  %v6379_v9 = vsel %vm6375_vm6, %v6359_v22, %v6362_v49 }
 0x5ee   : > { %v6381_v33 = vsel %vm6377_vm7, %v6365_v62, %v6380_v14  ;;  %vm5817_vm2 = vweird.f32 %v18888_v3  ;;  %v5925_v59 = vsel %vm5923_vm12, %v16420_v60, %v5924_v10  ;;  %8271 = vcosq.f32 %v6122_v2 }
 0x5ef   : > { %v6389_v61 = vsel %vm6377_vm7, %v6371_v16, %v6388_v63  ;;  %v6449_v43 = vand.u32 2139095040, %v18921_v57  ;;  %vm5922_vm8 = vcmp.lt.s32.totalorder %v16335_v4, 2  ;;  %vm6025_vm10 = vcmp.lt.s32.totalorder %v16436_v31, 2 }
 0x5f0   : > { %v6212_v49 = vor.u32 %v6211_v23, %v6210_v21  ;;  %v6216_v19 = vor.u32 4788187, %v6215_v29  ;;  %v6308_v28 = vclz %v7637_v42  ;;  %v6390_v62 = vsel %vm6376_vm15, %v6387_v52, %v6389_v61 }
 0x5f1   : > { %v6382_v22 = vsel %vm6376_vm15, %v6379_v9, %v6381_v33  ;;  %v16534_v60 = vmul.u32.u64.low %v16473_v6, %v6390_v62  ;;  %v16535_v10 = vmul.u32.u64.high %v16473_v6, %v6390_v62, %v16534_v60  ;;  %v6450_v16 = vshrl.u32 %v6449_v43, 23 }
 0x5f2   : > { %v6027_v14 = vxor.u32 2147483648, %v8270_v11  ;;  %v6030_v13 = vxor.u32 2147483648, %v8268_v25  ;;  %v6121_v0 = vsel %vm6036_vm0, %v6120_v1, %v16242_v40  ;;  %v7638_v21 = vadd.s32 4294967294, %v6308_v28 }
 0x5f3   : > { %8273 = vsinq.f32 %v6122_v2  ;;  %v6223_v23 = vsub.s32 4, %v16358_v46  ;;  %v6401_v29 = vadd.s32 1, %v16510_v24  ;;  %v7644_v54 = vadd.s32 4294967169, %v6450_v16 }
 0x5f4   : > { %v6217_v34 = vand.u32 2147483647, %v6216_v19  ;;  %v6219_v52 = vcvt.s32.f32 %v6212_v49  ;;  %vm7639_vm11 = vcmp.lt.s32.totalorder %v7638_v21, 0  ;;  %v6398_v63 = vmul.u32 %v16473_v6, %v6382_v22 }
 0x5f5   : > { %v6296_v42 = vadd.s32 %v16400_v45, %v16413_v8  ;;  %v6311_v9 = vsel %vm7639_vm11, 0, %v7638_v21  ;;  %vm6400_vm13 = vc.u32 %v16535_v10, %v16509_v56  ;;  %v6456_v40 = vadd.s32 1, %v7644_v54 }
 0x5f6   : > { %v6031_v2 = vsel %vm6029_vm9, %v6030_v13, %v8270_v11  ;;  %v6123_v1 = vsel %vm16441_vm4, 0, %v6121_v0  ;;  %v6312_v33 = vsub.s32 32, %v6311_v9  ;;  %v6316_v61 = vsub.s32 4294967266, %v6311_v9 }
 0x5f7   : > { %v6028_v43 = vsel %vm6026_vm3, %v8268_v25, %v6027_v14  ;;  %v16556_v45 = vsel %vm6139_vm5, %v6223_v23, %v16358_v46  ;;  %v6402_v8 = vsel %vm6400_vm13, %v6401_v29, %v16510_v24  ;;  %vm6457_vm0 = vcmp.gt.s32.totalorder %v6456_v40, 0  ;;  %v18922_v25 = vld [vmem:[#allocation64_spill] sm:$0xff] }
 0x5f8   : > { %v6220_v6 = vmul.f32 %v6219_v52, %v6217_v34  ;;  %v6317_v49 = vadd.s32 127, %v6316_v61  ;;  %v6403_v19 = vadd.s32 %v6402_v8, %v6398_v63  ;;  %v18469_v11 = vand.u32 2147483647, %v18921_v57  ;;  %v16560_v7 = vpop.eup %8271 }
 0x5f9   : > { %v6313_v28 = vshll.u32 %v16487_v58, %v6311_v9  ;;  %v6314_v62 = vshrl.u32 %v6296_v42, %v6312_v33  ;;  %v6458_v22 = vsel %vm6457_vm0, %v6456_v40, 0  ;;  %v6552_v60 = vand.u32 2139095040, %v18922_v25 }
 0x5fa   : > { %v16567_v46 = vsel %vm5817_vm2, nan, %v16433_v51  ;;  %v18923_v24 = vand.u32 2147483647, %v18905_v35  ;;  %v6318_v14 = vshll.u32 %v6317_v49, 23  ;;  %v6404_v13 = vadd.s32 536870912, %v6403_v19 }
 0x5fb   : > { %v16578_v58 = vsel %vm5922_vm8, %v5925_v59, %v16485_v44  ;;  %v16582_v0 = vsel %vm6025_vm10, %v6028_v43, %v6031_v2  ;;  %v16584_v3 = vand.u32 3, %v6123_v1  ;;  %v6460_v51 = vand.u32 31, %v6458_v22 }
 0x5fc   : > { %vm16571_vm4 = vcmp.le.f32.partialorder %v18923_v24, 0.7853982  ;;  %v6133_v21 = vxor.u32 2147483648, %v16560_v7  ;;  %v6221_v23 = vxor.u32 2147483648, %v6220_v6  ;;  %v16590_v54 = vshrl.u32 %v6404_v13, 30 }
 0x5fd   : > { %v16592_v34 = vpop.eup %8273  ;;  %v6315_v4 = vor.u32 %v6314_v62, %v6313_v28  ;;  %v6453_v31 = vand.u32 8388607, %v18469_v11  ;;  %v6461_v44 = vsub.s32 32, %v6460_v51  ;;  %v6553_v59 = vshrl.u32 %v6552_v60, 23 }
 0x5fe   : > { %v6319_v52 = vor.u32 4788187, %v6318_v14  ;;  %v6406_v63 = vshll.u32 %v16590_v54, 30  ;;  %v16597_v42 = vshrl.u32 %v6458_v22, 5  ;;  %v6463_v9 = vshll.u32 %v18507_v15, %v6460_v51 }
 0x5ff   : > { %v6464_v40 = vshrl.u32 %v18508_v5, %v6461_v44  ;;  %v6466_v2 = vshll.u32 %v18508_v5, %v6460_v51  ;;  %v6467_v1 = vshrl.u32 %v18509_v17, %v6461_v44  ;;  %v6472_v33 = vshll.u32 %v18504_v41, %v6460_v51 }
 0x600   : > { %vm6129_vm1 = vcmp.eq.s32.totalorder %v16584_v3, 0  ;;  %vm6132_vm12 = vcmp.eq.s32.totalorder %v16584_v3, 2  ;;  %v16606_v61 = vsub.s32 %v6403_v19, %v6406_v63  ;;  %v6469_v43 = vshll.u32 %v18509_v17, %v6460_v51 }
 0x601   : > { %v6470_v8 = vshrl.u32 %v18504_v41, %v6461_v44  ;;  %v6473_v49 = vshrl.u32 %v18505_v32, %v6461_v44  ;;  %v6130_v28 = vxor.u32 2147483648, %v16592_v34  ;;  %v6222_v62 = vsel %vm6139_vm5, %v6221_v23, %v6220_v6 }
 0x602   : > { %v6454_v22 = vor.u32 8388608, %v6453_v31  ;;  %v7648_v60 = vadd.s32 4294967169, %v6553_v59  ;;  %v6320_v24 = vand.u32 2147483647, %v6319_v52  ;;  %v6322_v14 = vcvt.s32.f32 %v6315_v4 }
 0x603   : > { %v6409_v13 = vsub.s32 0, %v16606_v61  ;;  %v6465_v11 = vor.u32 %v6464_v40, %v6463_v9  ;;  %vm5920_vm6 = vweird.f32 %v18893_v53  ;;  %vm6023_vm14 = vweird.f32 %v18897_v26 }
 0x604   : > { %v6468_v19 = vor.u32 %v6467_v1, %v6466_v2  ;;  %v6474_v63 = vor.u32 %v6473_v49, %v6472_v33  ;;  %v6475_v12 = vshll.u32 %v18505_v32, %v6460_v51  ;;  %v6476_v29 = vshrl.u32 %v18506_v30, %v6461_v44 }
 0x605   : > { %vm6128_vm7 = vcmp.lt.s32.totalorder %v16584_v3, 2  ;;  %v7641_v6 = vmin.u32 %v6409_v13, %v16606_v61  ;;  %v6462_v23 = vshrl.u32 %v18507_v15, %v6461_v44  ;;  %v6471_v4 = vor.u32 %v6470_v8, %v6469_v43 }
 0x606   : > { %vm6478_vm15 = vcmp.lt.s32.totalorder %v16597_v42, 1  ;;  %v6477_v31 = vor.u32 %v6476_v29, %v6475_v12  ;;  %vm6480_vm9 = vcmp.lt.s32.totalorder %v16597_v42, 3  ;;  %v18472_v59 = vand.u32 2147483647, %v18922_v25 }
 0x607   : > { %v6559_v52 = vadd.s32 1, %v7648_v60  ;;  %v6411_v9 = vclz %v7641_v6  ;;  %vm6479_vm3 = vcmp.lt.s32.totalorder %v16597_v42, 2  ;;  %vm6481_vm5 = vcmp.lt.s32.totalorder %v16597_v42, 4 }
 0x608   : > { %v6494_v51 = vshll.u32 %v6454_v22, 8  ;;  %v6323_v40 = vmul.f32 %v6322_v14, %v6320_v24  ;;  %v6483_v2 = vsel %vm6481_vm5, %v6471_v4, 2102212464  ;;  %v6486_v44 = vsel %vm6478_vm15, %v6465_v11, %v6468_v19 }
 0x609   : > { %v6487_v1 = vsel %vm6481_vm5, %v6474_v63, 920167782  ;;  %v7642_v33 = vadd.s32 4294967294, %v6411_v9  ;;  %v6482_v12 = vsel %vm6478_vm15, %v6462_v23, %v6465_v11  ;;  %v6490_v43 = vsel %vm6478_vm15, %v6468_v19, %v6471_v4 }
 0x60a   : > { %v6488_v29 = vsel %vm6480_vm9, %v6471_v4, %v6487_v1  ;;  %v6484_v8 = vsel %vm6480_vm9, %v6468_v19, %v6483_v2  ;;  %v6491_v22 = vsel %vm6481_vm5, %v6477_v31, 1326507024  ;;  %vm6560_vm2 = vcmp.gt.s32.totalorder %v6559_v52, 0 }
 0x60b   : > { %v6489_v49 = vsel %vm6479_vm3, %v6486_v44, %v6488_v29  ;;  %vm7643_vm8 = vcmp.lt.s32.totalorder %v7642_v33, 0  ;;  %v6492_v60 = vsel %vm6480_vm9, %v6474_v63, %v6491_v22  ;;  %v6131_v14 = vsel %vm6129_vm1, %v16560_v7, %v6130_v28 }
 0x60c   : > { %v16641_v24 = vmul.u32.u64.low %v6494_v51, %v6489_v49  ;;  %v16642_v11 = vmul.u32.u64.high %v6494_v51, %v6489_v49, %v16641_v24  ;;  %v6134_v13 = vsel %vm6132_vm12, %v6133_v21, %v16592_v34  ;;  %v18926_v19 = vand.u32 2147483647, %v18913_v39 }
 0x60d   : > { %v6493_v63 = vsel %vm6479_vm3, %v6490_v43, %v6492_v60  ;;  %v6561_v23 = vsel %vm6560_vm2, %v6559_v52, 0  ;;  %v6225_v28 = vsel %vm16571_vm4, %v18905_v35, %v6222_v62  ;;  %v6324_v4 = vxor.u32 2147483648, %v6323_v40 }
 0x60e   : > { %vm16655_vm10 = vcmp.le.f32.partialorder %v18926_v19, 0.7853982  ;;  %v6485_v7 = vsel %vm6479_vm3, %v6482_v12, %v6484_v8  ;;  %v6556_v21 = vand.u32 8388607, %v18472_v59  ;;  %v16668_v34 = vsel %vm7643_vm8, 0, %v7642_v33 }
 0x60f   : > { %v16670_v31 = vmul.u32.u64.low %v6494_v51, %v6493_v63  ;;  %v16671_v9 = vmul.u32.u64.high %v6494_v51, %v6493_v63, %v16670_v31  ;;  %v6563_v2 = vand.u32 31, %v6561_v23  ;;  %v16676_v52 = vsel %vm5920_vm6, nan, %v16578_v58 }
 0x610   : > { %v16681_v62 = vsel %vm6023_vm14, nan, %v16582_v0  ;;  %vm6242_vm11 = vcmp.lt.s32.totalorder %v18913_v39, 0  ;;  %v6504_v42 = vadd.s32 1, %v16642_v11  ;;  %v16687_v44 = vsel %vm6128_vm7, %v6131_v14, %v6134_v13 }
 0x611   : > { %v18929_v1 = vsel %vm16571_vm4, 0, %v16556_v45  ;;  %v6501_v58 = vmul.u32 %v6494_v51, %v6485_v7  ;;  %v6564_v33 = vsub.s32 32, %v6563_v2  ;;  %8275 = vcosq.f32 %v6225_v28 }
 0x612   : > { %v16693_v53 = vand.u32 3, %v18929_v1  ;;  %v6326_v26 = vsub.s32 4, %v16467_v47  ;;  %v6399_v0 = vadd.s32 %v16509_v56, %v16535_v10  ;;  %v6419_v12 = vsub.s32 4294967266, %v16668_v34 }
 0x613   : > { %v6325_v3 = vsel %vm6242_vm11, %v6324_v4, %v6323_v40  ;;  %v6415_v29 = vsub.s32 32, %v16668_v34  ;;  %vm6503_vm13 = vc.u32 %v16671_v9, %v16641_v24  ;;  %v6557_v45 = vor.u32 8388608, %v6556_v21 }
 0x614   : > { %v6505_v16 = vsel %vm6503_vm13, %v6504_v42, %v16642_v11  ;;  %v6566_v51 = vshll.u32 %v18507_v15, %v6563_v2  ;;  %v6569_v43 = vshll.u32 %v18508_v5, %v6563_v2  ;;  %v6575_v8 = vshll.u32 %v18504_v41, %v6563_v2 }
 0x615   : > { %v6506_v56 = vadd.s32 %v6505_v16, %v6501_v58  ;;  %v16708_v10 = vshrl.u32 %v6561_v23, 5  ;;  %v6567_v49 = vshrl.u32 %v18508_v5, %v6564_v33  ;;  %v6570_v40 = vshrl.u32 %v18509_v17, %v6564_v33 }
 0x616   : > { %v6420_v22 = vadd.s32 127, %v6419_v12  ;;  %v6572_v60 = vshll.u32 %v18509_v17, %v6563_v2  ;;  %v6573_v14 = vshrl.u32 %v18504_v41, %v6564_v33  ;;  %v6576_v11 = vshrl.u32 %v18505_v32, %v6564_v33 }
 0x617   : > { %8277 = vsinq.f32 %v6225_v28  ;;  %v6507_v13 = vadd.s32 536870912, %v6506_v56  ;;  %v6578_v19 = vshll.u32 %v18505_v32, %v6563_v2  ;;  %v16716_v63 = vshll.u32 %v6557_v45, 8 }
 0x618   : > { %v6328_v23 = vsel %vm16655_vm10, %v18913_v39, %v6325_v3  ;;  %v6568_v4 = vor.u32 %v6567_v49, %v6566_v51  ;;  %v6571_v7 = vor.u32 %v6570_v40, %v6569_v43  ;;  %v6577_v21 = vor.u32 %v6576_v11, %v6575_v8 }
 0x619   : > { %v6416_v31 = vshll.u32 %v16606_v61, %v16668_v34  ;;  %v16723_v42 = vshrl.u32 %v6507_v13, 30  ;;  %v6579_v1 = vshrl.u32 %v18506_v30, %v6564_v33  ;;  %vm6581_vm0 = vcmp.lt.s32.totalorder %v16708_v10, 1 }
 0x61a   : > { %vm6126_vm4 = vweird.f32 %v18901_v50  ;;  %v6417_v28 = vshrl.u32 %v6399_v0, %v6415_v29  ;;  %v6421_v2 = vshll.u32 %v6420_v22, 23  ;;  %v6574_v58 = vor.u32 %v6573_v14, %v6572_v60 }
 0x61b   : > { %vm6584_vm1 = vcmp.lt.s32.totalorder %v16708_v10, 4  ;;  %v6509_v12 = vshll.u32 %v16723_v42, 30  ;;  %v6565_v3 = vshrl.u32 %v18507_v15, %v6564_v33  ;;  %v6580_v45 = vor.u32 %v6579_v1, %v6578_v19  ;;  %v8276_v61 = vpop.eup %8275 }
 0x61c   : > { %vm6583_vm12 = vcmp.lt.s32.totalorder %v16708_v10, 3  ;;  %8279 = vcosq.f32 %v6328_v23  ;;  %vm6582_vm6 = vcmp.lt.s32.totalorder %v16708_v10, 2  ;;  %v6589_v34 = vsel %vm6581_vm0, %v6568_v4, %v6571_v7 }
 0x61d   : > { %v6590_v0 = vsel %vm6584_vm1, %v6577_v21, 920167782  ;;  %v6327_v29 = vsel %vm6242_vm11, %v6326_v26, %v16467_v47  ;;  %8281 = vsinq.f32 %v6328_v23  ;;  %vm6345_vm14 = vcmp.lt.s32.totalorder %v18914_v36, 0 }
 0x61e   : > { %v16741_v33 = vsub.s32 %v6506_v56, %v6509_v12  ;;  %v6586_v16 = vsel %vm6584_vm1, %v6574_v58, 2102212464  ;;  %v6418_v51 = vor.u32 %v6417_v28, %v6416_v31  ;;  %v6422_v43 = vor.u32 4788187, %v6421_v2 }
 0x61f   : > { %v6591_v8 = vsel %vm6583_vm12, %v6574_v58, %v6590_v0  ;;  %v6594_v49 = vsel %vm6584_vm1, %v6580_v45, 1326507024  ;;  %v6585_v47 = vsel %vm6581_vm0, %v6565_v3, %v6568_v4  ;;  %v6593_v56 = vsel %vm6581_vm0, %v6571_v7, %v6574_v58  ;;  %v18933_v58 = vld [vmem:[#allocation65_spill] sm:$0xff] }
 0x620   : > { %v6512_v40 = vsub.s32 0, %v16741_v33  ;;  %v6592_v26 = vsel %vm6582_vm6, %v6589_v34, %v6591_v8  ;;  %v18930_v22 = vand.u32 2147483647, %v18914_v36  ;;  %v6587_v14 = vsel %vm6583_vm12, %v6571_v7, %v6586_v16 }
 0x621   : > { %v6595_v11 = vsel %vm6583_vm12, %v6577_v21, %v6594_v49  ;;  %v16767_v13 = vmul.u32.u64.low %v16716_v63, %v6592_v26  ;;  %v16768_v19 = vmul.u32.u64.high %v16716_v63, %v6592_v26, %v16767_v13  ;;  %v8278_v23 = vpop.eup %8277  ;;  %vm6231_vm15 = vcmp.lt.s32.totalorder %v16693_v53, 2 }
 0x622   : > { %vm16758_vm7 = vcmp.le.f32.partialorder %v18930_v22, 0.7853982  ;;  %v6236_v4 = vxor.u32 2147483648, %v8276_v61  ;;  %v6329_v31 = vsel %vm16655_vm10, 0, %v6327_v29  ;;  %v6429_v1 = vsub.s32 4, %v16590_v54 }
 0x623   : > { %v7645_v28 = vmin.u32 %v6512_v40, %v16741_v33  ;;  %v6423_v7 = vand.u32 2147483647, %v6422_v43  ;;  %v6425_v2 = vcvt.s32.f32 %v6418_v51  ;;  %v6596_v21 = vsel %vm6582_vm6, %v6593_v56, %v6595_v11 }
 0x624   : > { %v6655_v12 = vand.u32 2139095040, %v18933_v58  ;;  %v6588_v45 = vsel %vm6582_vm6, %v6585_v47, %v6587_v14  ;;  %v16782_v34 = vmul.u32.u64.low %v16716_v63, %v6596_v21  ;;  %v16783_v0 = vmul.u32.u64.high %v16716_v63, %v6596_v21, %v16782_v34 }
 0x625   : > { %v6514_v3 = vclz %v7645_v28  ;;  %v6233_v6 = vxor.u32 2147483648, %v8278_v23  ;;  %vm6235_vm9 = vcmp.eq.s32.totalorder %v16693_v53, 2  ;;  %v6607_v29 = vadd.s32 1, %v16768_v19 }
 0x626   : > { %v6656_v16 = vshrl.u32 %v6655_v12, 23  ;;  %v16790_v51 = vsel %vm6126_vm4, nan, %v16687_v44  ;;  %vm6232_vm3 = vcmp.eq.s32.totalorder %v16693_v53, 0  ;;  %v16793_v43 = vand.u32 3, %v6329_v31  ;;  %v16795_v8 = vpop.eup %8279 }
 0x627   : > { %v7646_v10 = vadd.s32 4294967294, %v6514_v3  ;;  %v6426_v49 = vmul.f32 %v6425_v2, %v6423_v7  ;;  %v6430_v40 = vsel %vm6345_vm14, %v6429_v1, %v16590_v54  ;;  %v6604_v47 = vmul.u32 %v16716_v63, %v6588_v45  ;;  %v16801_v56 = vpop.eup %8281  ;;  %v18934_v2 = vld [vmem:[#allocation67_spill] sm:$0xff] }
 0x628   : > { %v7652_v26 = vadd.s32 4294967169, %v6656_v16  ;;  %v6237_v50 = vsel %vm6235_vm9, %v6236_v4, %v8278_v23  ;;  %v6502_v44 = vadd.s32 %v16641_v24, %v16671_v9  ;;  %vm6606_vm2 = vc.u32 %v16783_v0, %v16767_v13 }
 0x629   : > { %vm7647_vm5 = vcmp.lt.s32.totalorder %v7646_v10, 0  ;;  %v6234_v22 = vsel %vm6232_vm3, %v8276_v61, %v6233_v6  ;;  %v6608_v11 = vsel %vm6606_vm2, %v6607_v29, %v16768_v19  ;;  %v6432_v54 = vsel %vm16758_vm7, 0, %v6430_v40 }
 0x62a   : > { %v6517_v14 = vsel %vm7647_vm5, 0, %v7646_v10  ;;  %v6662_v31 = vadd.s32 1, %v7652_v26  ;;  %v6427_v23 = vxor.u32 2147483648, %v6426_v49  ;;  %vm6448_vm8 = vcmp.lt.s32.totalorder %v18921_v57, 0 }
 0x62b   : > { %v6518_v63 = vsub.s32 32, %v6517_v14  ;;  %v6519_v1 = vshll.u32 %v16741_v33, %v6517_v14  ;;  %v6522_v28 = vsub.s32 4294967266, %v6517_v14  ;;  %v6609_v24 = vadd.s32 %v6608_v11, %v6604_v47 }
 0x62c   : > { %v18471_v9 = vand.u32 2147483647, %v18933_v58  ;;  %vm6663_vm10 = vcmp.gt.s32.totalorder %v6662_v31, 0  ;;  %v6758_v19 = vand.u32 2139095040, %v18934_v2  ;;  %v16816_v21 = vsel %vm6231_vm15, %v6234_v22, %v6237_v50 }
 0x62d   : > { %v6520_v4 = vshrl.u32 %v6502_v44, %v6518_v63  ;;  %v6523_v61 = vadd.s32 127, %v6522_v28  ;;  %v6664_v7 = vsel %vm6663_vm10, %v6662_v31, 0  ;;  %v16818_v12 = vand.u32 3, %v6432_v54 }
 0x62e   : > { %v6610_v33 = vadd.s32 536870912, %v6609_v24  ;;  %v6666_v3 = vand.u32 31, %v6664_v7  ;;  %v6428_v16 = vsel %vm6345_vm14, %v6427_v23, %v6426_v49  ;;  %v6532_v10 = vsub.s32 4, %v16723_v42 }
 0x62f   : > { %v6521_v6 = vor.u32 %v6520_v4, %v6519_v1  ;;  %v6524_v29 = vshll.u32 %v6523_v61, 23  ;;  %v6659_v50 = vand.u32 8388607, %v18471_v9  ;;  %v6759_v44 = vshrl.u32 %v6758_v19, 23 }
 0x630   : > { %v16825_v40 = vshrl.u32 %v6610_v33, 30  ;;  %v6667_v53 = vsub.s32 32, %v6666_v3  ;;  %v6665_v14 = vshrl.u32 %v6664_v7, 5  ;;  %v6669_v11 = vshll.u32 %v18507_v15, %v6666_v3 }
 0x631   : > { %v6525_v47 = vor.u32 4788187, %v6524_v29  ;;  %v6528_v26 = vcvt.s32.f32 %v6521_v6  ;;  %v6672_v31 = vshll.u32 %v18508_v5, %v6666_v3  ;;  %v6678_v1 = vshll.u32 %v18504_v41, %v6666_v3 }
 0x632   : > { %v6612_v22 = vshll.u32 %v16825_v40, 30  ;;  %v6670_v49 = vshrl.u32 %v18508_v5, %v6667_v53  ;;  %v6673_v63 = vshrl.u32 %v18509_v17, %v6667_v53  ;;  %v6675_v23 = vshll.u32 %v18509_v17, %v6666_v3 }
 0x633   : > { %v6526_v54 = vand.u32 2147483647, %v6525_v47  ;;  %v6676_v4 = vshrl.u32 %v18504_v41, %v6667_v53  ;;  %v6679_v61 = vshrl.u32 %v18505_v32, %v6667_v53  ;;  %v6431_v7 = vsel %vm16758_vm7, %v18914_v36, %v6428_v16 }
 0x634   : > { %v16835_v28 = vsub.s32 %v6609_v24, %v6612_v22  ;;  %v16846_v33 = vsel %vm6448_vm8, %v6532_v10, %v16723_v42  ;;  %v6660_v6 = vor.u32 8388608, %v6659_v50  ;;  %v18935_v24 = vand.u32 2147483647, %v18921_v57 }
 0x635   : > { %v6529_v19 = vmul.f32 %v6528_v26, %v6526_v54  ;;  %v6681_v22 = vshll.u32 %v18505_v32, %v6666_v3  ;;  %v6755_v60 = vand.u32 2147483647, %v18934_v2  ;;  %v7656_v16 = vadd.s32 4294967169, %v6759_v44 }
 0x636   : > { %vm16850_vm11 = vcmp.le.f32.partialorder %v18935_v24, 0.7853982  ;;  %v6615_v47 = vsub.s32 0, %v16835_v28  ;;  %v6671_v26 = vor.u32 %v6670_v49, %v6669_v11  ;;  %v6674_v54 = vor.u32 %v6673_v63, %v6672_v31 }
 0x637   : > { %v6680_v9 = vor.u32 %v6679_v61, %v6678_v1  ;;  %v6682_v42 = vshrl.u32 %v18506_v30, %v6667_v53  ;;  %v6668_v50 = vshrl.u32 %v18507_v15, %v6667_v53  ;;  %v6677_v24 = vor.u32 %v6676_v4, %v6675_v23 }
 0x638   : > { %v7649_v10 = vmin.u32 %v6615_v47, %v16835_v28  ;;  %vm6684_vm13 = vcmp.lt.s32.totalorder %v6665_v14, 1  ;;  %v6530_v45 = vxor.u32 2147483648, %v6529_v19  ;;  %vm6686_vm0 = vcmp.lt.s32.totalorder %v6665_v14, 3 }
 0x639   : > { %v6683_v34 = vor.u32 %v6682_v42, %v6681_v22  ;;  %vm6687_vm4 = vcmp.lt.s32.totalorder %v6665_v14, 4  ;;  %vm6685_vm1 = vcmp.lt.s32.totalorder %v6665_v14, 2  ;;  %v6700_v44 = vshll.u32 %v6660_v6, 8 }
 0x63a   : > { %v6617_v59 = vclz %v7649_v10  ;;  %v6689_v3 = vsel %vm6687_vm4, %v6677_v24, 2102212464  ;;  %v6605_v11 = vadd.s32 %v16767_v13, %v16783_v0  ;;  %v6692_v31 = vsel %vm6684_vm13, %v6671_v26, %v6674_v54 }
 0x63b   : > { %v6693_v49 = vsel %vm6687_vm4, %v6680_v9, 920167782  ;;  %v6765_v63 = vadd.s32 1, %v7656_v16  ;;  %v6688_v1 = vsel %vm6684_vm13, %v6668_v50, %v6671_v26  ;;  %v6690_v23 = vsel %vm6686_vm0, %v6674_v54, %v6689_v3 }
 0x63c   : > { %v7650_v53 = vadd.s32 4294967294, %v6617_v59  ;;  %v6694_v4 = vsel %vm6686_vm0, %v6677_v24, %v6693_v49  ;;  %v6531_v61 = vsel %vm6448_vm8, %v6530_v45, %v6529_v19  ;;  %v6696_v47 = vsel %vm6684_vm13, %v6674_v54, %v6677_v24 }
 0x63d   : > { %v6695_v6 = vsel %vm6685_vm1, %v6692_v31, %v6694_v4  ;;  %v6697_v13 = vsel %vm6687_vm4, %v6683_v34, 1326507024  ;;  %v6691_v26 = vsel %vm6685_vm1, %v6688_v1, %v6690_v23  ;;  %vm6766_vm6 = vcmp.gt.s32.totalorder %v6765_v63, 0 }
 0x63e   : > { %vm7651_vm12 = vcmp.lt.s32.totalorder %v7650_v53, 0  ;;  %v6698_v0 = vsel %vm6686_vm0, %v6680_v9, %v6697_v13  ;;  %v16874_v22 = vmul.u32.u64.low %v6700_v44, %v6695_v6  ;;  %v16875_v59 = vmul.u32.u64.high %v6700_v44, %v6695_v6, %v16874_v22 }
 0x63f   : > { %v6620_v16 = vsel %vm7651_vm12, 0, %v7650_v53  ;;  %v6699_v42 = vsel %vm6685_vm1, %v6696_v47, %v6698_v0  ;;  %vm6338_vm14 = vcmp.eq.s32.totalorder %v16793_v43, 2  ;;  %v6767_v34 = vsel %vm6766_vm6, %v6765_v63, 0 }
 0x640   : > { %v6621_v45 = vsub.s32 32, %v6620_v16  ;;  %v6622_v19 = vshll.u32 %v16835_v28, %v6620_v16  ;;  %v6625_v54 = vsub.s32 4294967266, %v6620_v16  ;;  %vm6335_vm7 = vcmp.eq.s32.totalorder %v16793_v43, 0 }
 0x641   : > { %v6534_v9 = vsel %vm16850_vm11, %v18921_v57, %v6531_v61  ;;  %v16886_v10 = vmul.u32.u64.low %v6700_v44, %v6699_v42  ;;  %v16887_v50 = vmul.u32.u64.high %v6700_v44, %v6699_v42, %v16886_v10  ;;  %v6769_v24 = vand.u32 31, %v6767_v34 }
 0x642   : > { %8283 = vcosq.f32 %v6431_v7  ;;  %v6623_v14 = vshrl.u32 %v6605_v11, %v6621_v45  ;;  %v6626_v3 = vadd.s32 127, %v6625_v54  ;;  %v6710_v31 = vadd.s32 1, %v16875_v59 }
 0x643   : > { %8285 = vsinq.f32 %v6431_v7  ;;  %v6535_v28 = vsel %vm16850_vm11, 0, %v16846_v33  ;;  %vm6551_vm15 = vcmp.lt.s32.totalorder %v18922_v25, 0  ;;  %v6707_v49 = vmul.u32 %v6700_v44, %v6691_v26 }
 0x644   : > { %v6770_v63 = vsub.s32 32, %v6769_v24  ;;  %vm6334_vm9 = vcmp.lt.s32.totalorder %v16793_v43, 2  ;;  %8287 = vcosq.f32 %v6534_v9  ;;  %v6624_v53 = vor.u32 %v6623_v14, %v6622_v19 }
 0x645   : > { %v6627_v1 = vshll.u32 %v6626_v3, 23  ;;  %v6762_v11 = vand.u32 8388607, %v6755_v60  ;;  %v18938_v23 = vand.u32 2147483647, %v18922_v25  ;;  %vm6709_vm5 = vc.u32 %v16887_v50, %v16874_v22 }
 0x646   : > { %v6772_v33 = vshll.u32 %v18507_v15, %v6769_v24  ;;  %v6775_v29 = vshll.u32 %v18508_v5, %v6769_v24  ;;  %v6781_v44 = vshll.u32 %v18504_v41, %v6769_v24  ;;  %v6631_v61 = vcvt.s32.f32 %v6624_v53 }
 0x647   : > { %vm16899_vm3 = vcmp.le.f32.partialorder %v18938_v23, 0.7853982  ;;  %v6628_v4 = vor.u32 4788187, %v6627_v1  ;;  %v6711_v6 = vsel %vm6709_vm5, %v6710_v31, %v16875_v59  ;;  %v6773_v47 = vshrl.u32 %v18508_v5, %v6770_v63 }
 0x648   : > { %8289 = vsinq.f32 %v6534_v9  ;;  %v6712_v13 = vadd.s32 %v6711_v6, %v6707_v49  ;;  %v16910_v0 = vshrl.u32 %v6767_v34, 5  ;;  %v6776_v16 = vshrl.u32 %v18509_v17, %v6770_v63 }
 0x649   : > { %v6629_v26 = vand.u32 2147483647, %v6628_v4  ;;  %v6778_v42 = vshll.u32 %v18509_v17, %v6769_v24  ;;  %v6779_v45 = vshrl.u32 %v18504_v41, %v6770_v63  ;;  %v6782_v19 = vshrl.u32 %v18505_v32, %v6770_v63 }
 0x64a   : > { %v6713_v54 = vadd.s32 536870912, %v6712_v13  ;;  %v6763_v10 = vor.u32 8388608, %v6762_v11  ;;  %v6784_v14 = vshll.u32 %v18505_v32, %v6769_v24  ;;  %v6785_v59 = vshrl.u32 %v18506_v30, %v6770_v63 }
 0x64b   : > { %v6632_v5 = vmul.f32 %v6631_v61, %v6629_v26  ;;  %v6774_v9 = vor.u32 %v6773_v47, %v6772_v33  ;;  %v6777_v3 = vor.u32 %v6776_v16, %v6775_v29  ;;  %v6783_v34 = vor.u32 %v6782_v19, %v6781_v44 }
 0x64c   : > { %v18941_v31 = vxor.u32 2147483648, %v16795_v8  ;;  %v16923_v49 = vand.u32 3, %v6535_v28  ;;  %v16925_v41 = vshrl.u32 %v6713_v54, 30  ;;  %vm6787_vm2 = vcmp.lt.s32.totalorder %v16910_v0, 1  ;;  %v8284_v53 = vpop.eup %8283 }
 0x64d   : > { %v18942_v32 = vxor.u32 2147483648, %v16801_v56  ;;  %v6633_v24 = vxor.u32 2147483648, %v6632_v5  ;;  %v6780_v1 = vor.u32 %v6779_v45, %v6778_v42  ;;  %vm6790_vm8 = vcmp.lt.s32.totalorder %v16910_v0, 4  ;;  %v8286_v11 = vpop.eup %8285 }
 0x64e   : > { %v6340_v17 = vsel %vm6338_vm14, %v18941_v31, %v16801_v56  ;;  %vm6438_vm10 = vcmp.eq.s32.totalorder %v16818_v12, 0  ;;  %vm6441_vm11 = vcmp.eq.s32.totalorder %v16818_v12, 2  ;;  %v6715_v28 = vshll.u32 %v16925_v41, 30  ;;  %v8288_v56 = vpop.eup %8287 }
 0x64f   : > { %v6337_v30 = vsel %vm6335_vm7, %v16795_v8, %v18942_v32  ;;  %v6786_v23 = vor.u32 %v6785_v59, %v6784_v14  ;;  %vm6789_vm13 = vcmp.lt.s32.totalorder %v16910_v0, 3  ;;  %v16938_v33 = vshll.u32 %v6763_v10, 8 }
 0x650   : > { %v6634_v8 = vsel %vm6551_vm15, %v6633_v24, %v6632_v5  ;;  %vm6788_vm0 = vcmp.lt.s32.totalorder %v16910_v0, 2  ;;  %v6795_v29 = vsel %vm6787_vm2, %v6774_v9, %v6777_v3  ;;  %v6796_v44 = vsel %vm6790_vm8, %v6783_v34, 920167782 }
 0x651   : > { %v16949_v4 = vsel %vm6334_vm9, %v6337_v30, %v6340_v17  ;;  %vm6541_vm4 = vcmp.eq.s32.totalorder %v16923_v49, 0  ;;  %v16952_v61 = vsub.s32 %v6712_v13, %v6715_v28  ;;  %v6771_v6 = vshrl.u32 %v18507_v15, %v6770_v63 }
 0x652   : > { %vm6437_vm1 = vcmp.lt.s32.totalorder %v16818_v12, 2  ;;  %v6635_v47 = vsub.s32 4, %v16825_v40  ;;  %v6637_v16 = vsel %vm16899_vm3, %v18922_v25, %v6634_v8  ;;  %v6792_v26 = vsel %vm6790_vm8, %v6780_v1, 2102212464  ;;  %v8290_v42 = vpop.eup %8289 }
 0x653   : > { %v6797_v43 = vsel %vm6789_vm13, %v6780_v1, %v6796_v44  ;;  %vm6229_vm12 = vweird.f32 %v18905_v35  ;;  %v6442_v13 = vxor.u32 2147483648, %v8284_v53  ;;  %vm6544_vm6 = vcmp.eq.s32.totalorder %v16923_v49, 2 }
 0x654   : > { %v6718_v15 = vsub.s32 0, %v16952_v61  ;;  %v6798_v63 = vsel %vm6788_vm0, %v6795_v29, %v6797_v43  ;;  %v6799_v45 = vsel %vm6787_vm2, %v6777_v3, %v6780_v1  ;;  %v6800_v19 = vsel %vm6790_vm8, %v6786_v23, 1326507024 }
 0x655   : > { %v16974_v54 = vmul.u32.u64.low %v16938_v33, %v6798_v63  ;;  %v16975_v10 = vmul.u32.u64.high %v16938_v33, %v6798_v63, %v16974_v54  ;;  %vm6332_vm14 = vweird.f32 %v18913_v39  ;;  %vm6435_vm7 = vweird.f32 %v18914_v36  ;;  %v18946_v36 = vld [vmem:[#allocation68_spill] sm:$0xff] }
 0x656   : > { %8291 = vcosq.f32 %v6637_v16  ;;  %v7653_v14 = vmin.u32 %v6718_v15, %v16952_v61  ;;  %v6791_v59 = vsel %vm6787_vm2, %v6771_v6, %v6774_v9  ;;  %v6793_v5 = vsel %vm6789_vm13, %v6777_v3, %v6792_v26 }
 0x657   : > { %v6439_v31 = vxor.u32 2147483648, %v8286_v11  ;;  %v6636_v17 = vsel %vm6551_vm15, %v6635_v47, %v16825_v40  ;;  %8293 = vsinq.f32 %v6637_v16  ;;  %v6801_v32 = vsel %vm6789_vm13, %v6783_v34, %v6800_v19 }
 0x658   : > { %vm6538_vm9 = vweird.f32 %v18921_v57  ;;  %v6542_v30 = vxor.u32 2147483648, %v8290_v42  ;;  %v6545_v24 = vxor.u32 2147483648, %v8288_v56  ;;  %v6720_v1 = vclz %v7653_v14  ;;  %v18949_v57 = vld [vmem:[#allocation10_spill] sm:$0xff] }
 0x659   : > { %v6802_v9 = vsel %vm6788_vm0, %v6799_v45, %v6801_v32  ;;  %v6738_v28 = vsub.s32 4, %v16925_v41  ;;  %v6794_v3 = vsel %vm6788_vm0, %v6791_v59, %v6793_v5  ;;  %vm6540_vm15 = vcmp.lt.s32.totalorder %v16923_v49, 2 }
 0x65a   : > { %v16997_v23 = vmul.u32.u64.low %v16938_v33, %v6802_v9  ;;  %v16998_v40 = vmul.u32.u64.high %v16938_v33, %v6802_v9, %v16997_v23  ;;  %v6638_v34 = vsel %vm16899_vm3, 0, %v6636_v17  ;;  %vm6654_vm5 = vcmp.lt.s32.totalorder %v18933_v58, 0 }
 0x65b   : > { %v7654_v8 = vadd.s32 4294967294, %v6720_v1  ;;  %v6440_v29 = vsel %vm6438_vm10, %v8284_v53, %v6439_v31  ;;  %v6443_v44 = vsel %vm6441_vm11, %v6442_v13, %v8286_v11  ;;  %v6708_v0 = vadd.s32 %v16874_v22, %v16887_v50  ;;  %v18947_v1 = vld [vmem:[#allocation69_spill] sm:$0xff] }
 0x65c   : > { %v6813_v6 = vadd.s32 1, %v16975_v10  ;;  %v6543_v47 = vsel %vm6541_vm4, %v8288_v56, %v6542_v30  ;;  %v6546_v7 = vsel %vm6544_vm6, %v6545_v24, %v8290_v42  ;;  %v6810_v16 = vmul.u32 %v16938_v33, %v6794_v3 }
 0x65d   : > { %vm7655_vm3 = vcmp.lt.s32.totalorder %v7654_v8, 0  ;;  %v17016_v26 = vand.u32 3, %v6638_v34  ;;  %v6739_v11 = vsel %vm6654_vm5, %v6738_v28, %v16925_v41  ;;  %vm6812_vm2 = vc.u32 %v16998_v40, %v16974_v54  ;;  %v18948_v28 = vld [vmem:[#allocation9_spill] sm:$0xff] }
 0x65e   : > { %v6723_v53 = vsel %vm7655_vm3, 0, %v7654_v8  ;;  %v6444_v22 = vsel %vm6437_vm1, %v6440_v29, %v6443_v44  ;;  %v17029_v33 = vsel %vm6229_vm12, nan, %v16816_v21  ;;  %v6547_v42 = vsel %vm6540_vm15, %v6543_v47, %v6546_v7  ;;  %v18950_v34 = vld [vmem:[#allocation17_spill] sm:$0xff]  ;;  %v18952_v47 = vld [vmem:[#allocation66_spill] sm:$0xff] }
 0x65f   : > { %v6724_v50 = vsub.s32 32, %v6723_v53  ;;  %v6725_v56 = vshll.u32 %v16952_v61, %v6723_v53  ;;  %v6728_v43 = vsub.s32 4294967266, %v6723_v53  ;;  %v18943_v41 = vand.u32 2147483647, %v18933_v58 }
 0x660   : > { %v6814_v12 = vsel %vm6812_vm2, %v6813_v6, %v16975_v10  ;;  %v8292_v15 = vpop.eup %8291  ;;  %v17045_v49 = vsel %vm6332_vm14, nan, %v16949_v4  ;;  %v17049_v19 = vsel %vm6435_vm7, nan, %v6444_v22  ;;  %vm6643_vm10 = vcmp.lt.s32.totalorder %v17016_v26, 2 }
 0x661   : > { %vm17035_vm8 = vcmp.le.f32.partialorder %v18943_v41, 0.7853982  ;;  %v6726_v63 = vshrl.u32 %v6708_v0, %v6724_v50  ;;  %v6729_v61 = vadd.s32 127, %v6728_v43  ;;  %v6815_v35 = vadd.s32 %v6814_v12, %v6810_v16  ;;  %v8294_v21 = vpop.eup %8293  ;;  %v18951_v0 = vld [vmem:[#allocation12_spill] sm:$0xff]  ;;  %v18955_v50 = vld [vmem:[#allocation71_spill] sm:$0xff]  ;;  %v18956_v43 = vld [vmem:[#allocation70_spill] sm:$0xff] }
 0x662   : > { %v6741_v45 = vsel %vm17035_vm8, 0, %v6739_v11  ;;  %vm6644_vm11 = vcmp.eq.s32.totalorder %v17016_v26, 0  ;;  %vm6647_vm13 = vcmp.eq.s32.totalorder %v17016_v26, 2  ;;  %v17056_v5 = vsel %vm6538_vm9, nan, %v6547_v42  ;;  %v18953_v16 = vld [vmem:[#allocation8_spill] sm:$0xff]  ;;  %v18954_v11 = vld [vmem:[#allocation18_spill] sm:$0xff] }
 0x663   : > { %v6727_v10 = vor.u32 %v6726_v63, %v6725_v56  ;;  %v6730_v14 = vshll.u32 %v6729_v61, 23  ;;  %v6816_v59 = vadd.s32 536870912, %v6815_v35  ;;  %vm6641_vm0 = vweird.f32 %v18922_v25 }
 0x664   : > { %v6648_v39 = vxor.u32 2147483648, %v8292_v15  ;;  %v17059_v4 = vand.u32 3, %v6741_v45  ;;  %v17062_v31 = vmul.f32 0.5, %v18946_v36  ;;  %v6645_v17 = vxor.u32 2147483648, %v8294_v21 }
 0x665   : > { %v6731_v32 = vor.u32 4788187, %v6730_v14  ;;  %v6734_v30 = vcvt.s32.f32 %v6727_v10  ;;  %v6817_v24 = vshrl.u32 %v6816_v59, 30  ;;  %v17065_v9 = vmul.f32 0.5, %v18947_v1  ;;  %v18959_v10 = vld [vmem:[#allocation13_spill] sm:$0xff]  ;;  %v18960_v59 = vld [vmem:[#allocation19_spill] sm:$0xff] }
 0x666   : > { %v17068_v3 = vmul.f32 0.5, %v18948_v28  ;;  %v17071_v23 = vmul.f32 0.5, %v18949_v57  ;;  %v17074_v8 = vmul.f32 0.5, %v18950_v34  ;;  %vm6757_vm4 = vcmp.lt.s32.totalorder %v18934_v2, 0  ;;  %v18964_v1 = vld [vmem:[#allocation11_spill] sm:$0xff] }
 0x667   : > { %v6732_v29 = vand.u32 2147483647, %v6731_v32  ;;  %v6818_v44 = vshll.u32 %v6817_v24, 30  ;;  %v17078_v6 = vmul.f32 0.5, %v18951_v0  ;;  %v17081_v7 = vmul.f32 0.5, %v18952_v47  ;;  %v18961_v32 = vld [vmem:[#allocation14_spill] sm:$0xff] }
 0x668   : > { %v17084_v53 = vmul.f32 0.5, %v18953_v16  ;;  %v17087_v22 = vmul.f32 0.5, %v18954_v11  ;;  %v17090_v56 = vmul.f32 0.5, %v18955_v50  ;;  %v17093_v42 = vmul.f32 0.5, %v18956_v43  ;;  %v18966_v11 = vld [vmem:[#allocation25_spill] sm:$0xff]  ;;  %v18967_v43 = vld [vmem:[#allocation23_spill] sm:$0xff] }
 0x669   : > { %v6646_v41 = vsel %vm6644_vm11, %v8292_v15, %v6645_v17  ;;  %v6649_v12 = vsel %vm6647_vm13, %v6648_v39, %v8294_v21  ;;  %v6735_v63 = vmul.f32 %v6734_v30, %v6732_v29  ;;  %v17099_v61 = vsub.s32 %v6815_v35, %v6818_v44  ;;  %v18962_v17 = vld [vmem:[#allocation15_spill] sm:$0xff]  ;;  %v18963_v30 = vld [vmem:[#allocation16_spill] sm:$0xff] }
 0x66a   : > { %vm17103_vm1 = vcmp.le.f32.partialorder %v6755_v60, 0.7853982  ;;  %v17108_v14 = vmul.f32 0.5, %v18959_v10  ;;  %v17111_v36 = vmul.f32 0.5, %v18960_v59  ;;  %v17114_v15 = vmul.f32 0.5, %v18961_v32  ;;  %v18965_v44 = vld [vmem:[#allocation24_spill] sm:$0xff] }
 0x66b   : > { %v17117_v21 = vmul.f32 0.5, %v18962_v17  ;;  %v6736_v35 = vxor.u32 2147483648, %v6735_v63  ;;  %v6821_v39 = vsub.s32 0, %v17099_v61  ;;  %v17121_v60 = vmul.f32 0.5, %v18963_v30  ;;  %v18970_v59 = vld [vmem:[#allocation26_spill] sm:$0xff]  ;;  %v18972_v30 = vld [vmem:[#allocation31_spill] sm:$0xff] }
 0x66c   : > { %v17124_v28 = vmul.f32 0.5, %v18964_v1  ;;  %v6650_v57 = vsel %vm6643_vm10, %v6646_v41, %v6649_v12  ;;  %v6811_v34 = vadd.s32 %v16974_v54, %v16998_v40  ;;  %v6841_v29 = vsub.s32 4, %v6817_v24  ;;  %v18968_v54 = vld [vmem:[#allocation21_spill] sm:$0xff]  ;;  %v18969_v41 = vld [vmem:[#allocation72_spill] sm:$0xff] }
 0x66d   : > { %v17131_v0 = vmul.f32 0.5, %v18965_v44  ;;  %v6737_v47 = vsel %vm6654_vm5, %v6736_v35, %v6735_v63  ;;  %v7657_v16 = vmin.u32 %v6821_v39, %v17099_v61  ;;  %v17137_v50 = vmul.f32 0.5, %v18966_v11  ;;  %v18971_v35 = vld [vmem:[#allocation22_spill] sm:$0xff]  ;;  %v18973_v44 = vld [vmem:[#allocation35_spill] sm:$0xff] }
 0x66e   : > { %v17140_v10 = vmul.f32 0.5, %v18967_v43  ;;  %v6740_v26 = vsel %vm17035_vm8, %v18933_v58, %v6737_v47  ;;  %v17146_v40 = vmul.f32 0.5, %v18968_v54  ;;  %v17149_v12 = vmul.f32 0.5, %v18969_v41  ;;  %v18974_v43 = vld [vmem:[#allocation29_spill] sm:$0xff] }
 0x66f   : > { %v17152_v63 = vmul.f32 0.5, %v18970_v59  ;;  %v17156_v32 = vsel %vm6641_vm0, nan, %v6650_v57  ;;  %8295 = vcosq.f32 %v6740_v26  ;;  %v6823_v17 = vclz %v7657_v16  ;;  %v18976_v57 = vld [vmem:[#allocation30_spill] sm:$0xff]  ;;  %v18978_v16 = vld [vmem:[#allocation36_spill] sm:$0xff] }
 0x670   : > { %v17159_v39 = vmul.f32 0.5, %v18971_v35  ;;  %8297 = vsinq.f32 %v6740_v26  ;;  %v6842_v13 = vsel %vm6757_vm4, %v6841_v29, %v6817_v24  ;;  %v17164_v1 = vmul.f32 0.5, %v18972_v30  ;;  %v18980_v26 = vld [vmem:[#allocation32_spill] sm:$0xff]  ;;  %v18982_v24 = vld [vmem:[#allocation27_spill] sm:$0xff] }
 0x671   : > { %v17167_v47 = vmul.f32 0.5, %v18973_v44  ;;  %v7658_v11 = vadd.s32 4294967294, %v6823_v17  ;;  %v17170_v25 = vmul.f32 0.5, %v18974_v43  ;;  %v17173_v54 = vmul.f32 0.5, %v18976_v57  ;;  %v18984_v35 = vld [vmem:[#allocation20_spill] sm:$0xff]  ;;  %v18986_v44 = vld [vmem:[#allocation33_spill] sm:$0xff] }
 0x672   : > { %v17176_v41 = vmul.f32 0.5, %v18978_v16  ;;  %v17179_v59 = vmul.f32 0.5, %v18980_v26  ;;  %v17182_v29 = vmul.f32 0.5, %v18982_v24  ;;  %v17185_v30 = vmul.f32 0.5, %v18984_v35  ;;  %v18988_v57 = vld [vmem:[#allocation39_spill] sm:$0xff]  ;;  %v18990_v16 = vld [vmem:[#allocation40_spill] sm:$0xff] }
 0x673   : > { %18975 = vst [vmem:[#allocation44_spill] sm:$0xff] %v17170_v25  ;;  %18977 = vst [vmem:[#allocation49_spill] sm:$0xff] %v17173_v54  ;;  %v17188_v17 = vmul.f32 0.5, %v18986_v44  ;;  %vm7659_vm12 = vcmp.lt.s32.totalorder %v7658_v11, 0  ;;  %v6844_v43 = vsel %vm17103_vm1, 0, %v6842_v13  ;;  %v17193_v54 = vmul.f32 0.5, %v18988_v57 }
 0x674   : > { %18979 = vst [vmem:[#allocation51_spill] sm:$0xff] %v17176_v41  ;;  %18981 = vst [vmem:[#allocation52_spill] sm:$0xff] %v17179_v59  ;;  %v17196_v41 = vmul.f32 0.5, %v18990_v16  ;;  %vm6747_vm6 = vcmp.eq.s32.totalorder %v17059_v4, 0  ;;  %vm6750_vm14 = vcmp.eq.s32.totalorder %v17059_v4, 2  ;;  %v6826_v26 = vsel %vm7659_vm12, 0, %v7658_v11 }
 0x675   : > { %18983 = vst [vmem:[#allocation53_spill] sm:$0xff] %v17182_v29  ;;  %18985 = vst [vmem:[#allocation54_spill] sm:$0xff] %v17185_v30  ;;  %v18992_v24 = vld [vmem:[#allocation45_spill] sm:$0xff]  ;;  %v18994_v44 = vld [vmem:[#allocation28_spill] sm:$0xff]  ;;  %v6827_v13 = vsub.s32 32, %v6826_v26  ;;  %v6828_v57 = vshll.u32 %v17099_v61, %v6826_v26  ;;  %v17213_v59 = vand.u32 3, %v6844_v43  ;;  %vm6744_vm9 = vweird.f32 %v18933_v58 }
 0x676   : > { %18987 = vst [vmem:[#allocation50_spill] sm:$0xff] %v17188_v17  ;;  %18989 = vst [vmem:[#allocation55_spill] sm:$0xff] %v17193_v54  ;;  %v17201_v35 = vmul.f32 0.5, %v18992_v24  ;;  %v17204_v17 = vmul.f32 0.5, %v18994_v44  ;;  %v18996_v30 = vld [vmem:[#allocation46_spill] sm:$0xff]  ;;  %v6831_v54 = vsub.s32 4294967266, %v6826_v26  ;;  %vm6847_vm2 = vweird.f32 %v18934_v2 }
 0x677   : > { %18991 = vst [vmem:[#allocation56_spill] sm:$0xff] %v17196_v41  ;;  %v17207_v29 = vmul.f32 0.5, %v18996_v30  ;;  %v18998_v16 = vld [vmem:[#allocation41_spill] sm:$0xff]  ;;  %v19000_v25 = vld [vmem:[#allocation42_spill] sm:$0xff]  ;;  %v17219_v24 = vmul.f32 0.5, %v15104_v18  ;;  %vm6746_vm7 = vcmp.lt.s32.totalorder %v17059_v4, 2  ;;  %v6829_v30 = vshrl.u32 %v6811_v34, %v6827_v13 }
 0x678   : > { %18993 = vst [vmem:[#allocation57_spill] sm:$0xff] %v17201_v35  ;;  %18995 = vst [vmem:[#allocation58_spill] sm:$0xff] %v17204_v17  ;;  %v17211_v41 = vmul.f32 0.5, %v18998_v16  ;;  %v17216_v11 = vmul.f32 0.5, %v19000_v25  ;;  %v19001_v44 = vld [vmem:[#allocation34_spill] sm:$0xff]  ;;  %v19002_v61 = vld [vmem:[#allocation37_spill] sm:$0xff] }
 0x679   : > { %18997 = vst [vmem:[#allocation59_spill] sm:$0xff] %v17207_v29  ;;  %v17222_v17 = vmul.f32 0.5, %v19001_v44  ;;  %v6832_v29 = vadd.s32 127, %v6831_v54  ;;  %v17226_v26 = vmul.f32 0.5, %v19002_v61  ;;  %v19003_v16 = vld [vmem:[#allocation47_spill] sm:$0xff]  ;;  %v19004_v43 = vld [vmem:[#allocation48_spill] sm:$0xff]  ;;  %v8296_v34 = vpop.eup %8295  ;;  %v6830_v54 = vor.u32 %v6829_v30, %v6828_v57 }
 0x67a   : > { %18999 = vst [vmem:[#allocation60_spill] sm:$0xff] %v17211_v41  ;;  %v17229_v41 = vmul.f32 0.5, %v19003_v16  ;;  %v17232_v35 = vmul.f32 0.5, %v19004_v43  ;;  %v17235_v25 = vmul.f32 0.5, %v15744_v27  ;;  %v17238_v18 = vmul.f32 0.5, %v15749_v37  ;;  %v8298_v43 = vpop.eup %8297  ;;  %v19009_v27 = vld [vmem:[#allocation43_spill] sm:$0xff] }
 0x67b   : > { %v17241_v44 = vmul.f32 0.5, %v15895_v55  ;;  %v6833_v13 = vshll.u32 %v6832_v29, 23  ;;  %v17244_v61 = vmul.f32 0.5, %v15900_v48  ;;  %v17247_v16 = vmul.f32 0.5, %v16115_v20  ;;  %v19010_v37 = vld [vmem:[#allocation38_spill] sm:$0xff] }
 0x67c   : > { %19005 = vst [vmem:[#allocation61_spill] sm:$0xff] %v17235_v25  ;;  %19006 = vst [vmem:[#allocation62_spill] sm:$0xff] %v17238_v18  ;;  %v17251_v25 = vmul.f32 0.5, %v19009_v27  ;;  %v17254_v18 = vmul.f32 0.5, %v19010_v37  ;;  %v17257_v55 = vmul.f32 0.5, %v16425_v38  ;;  %v17260_v29 = vmul.f32 0.5, %v16567_v46 }
 0x67d   : > { %19007 = vst [vmem:[#allocation63_spill] sm:$0xff] %v17244_v61  ;;  %19008 = vst [vmem:[#allocation64_spill] sm:$0xff] %v17247_v16  ;;  %v6748_v48 = vxor.u32 2147483648, %v8298_v43  ;;  %v6751_v57 = vxor.u32 2147483648, %v8296_v34  ;;  %v6834_v30 = vor.u32 4788187, %v6833_v13  ;;  %v6837_v20 = vcvt.s32.f32 %v6830_v54 }
 0x67e   : > { %19011 = vst [vmem:[#allocation65_spill] sm:$0xff] %v17260_v29  ;;  %v17263_v16 = vmul.f32 0.5, %v16676_v52  ;;  %v17266_v61 = vmul.f32 0.5, %v16681_v62  ;;  %v17269_v27 = vmul.f32 0.5, %v16790_v51  ;;  %v17272_v37 = vmul.f32 0.5, %v17029_v33 }
 0x67f   : > { %v6835_v38 = vand.u32 2147483647, %v6834_v30  ;;  %v17275_v46 = vmul.f32 0.5, %v17045_v49  ;;  %v17278_v29 = vmul.f32 0.5, %v17049_v19  ;;  %v17281_v54 = vmul.f32 0.5, %v17056_v5 }
 0x680   : > { %v17284_v52 = vmul.f32 0.5, %v17156_v32  ;;  %v17287_v62 = vadd.f32 0.5, %v17062_v31  ;;  %v17290_v51 = vadd.f32 0.5, %v17065_v9  ;;  %v17293_v33 = vadd.f32 0.5, %v17068_v3 }
 0x681   : > { %v6749_v49 = vsel %vm6747_vm6, %v8296_v34, %v6748_v48  ;;  %v6752_v19 = vsel %vm6750_vm14, %v6751_v57, %v8298_v43  ;;  %v6838_v5 = vmul.f32 %v6837_v20, %v6835_v38  ;;  %v17300_v13 = vadd.f32 0.5, %v17071_v23  ;;  %v19037_v20 = vld [vmem:[#allocation51_spill] sm:$0xff]  ;;  %v19039_v38 = vld [vmem:[#allocation52_spill] sm:$0xff] }
 0x682   : > { %v17303_v32 = vadd.f32 0.5, %v17074_v8  ;;  %v17306_v31 = vadd.f32 0.5, %v17078_v6  ;;  %v17309_v9 = vadd.f32 0.5, %v17081_v7  ;;  %v17312_v3 = vadd.f32 0.5, %v17084_v53 }
 0x683   : > { %v6839_v34 = vxor.u32 2147483648, %v6838_v5  ;;  %v17315_v48 = vadd.f32 0.5, %v17087_v22  ;;  %v17318_v43 = vadd.f32 0.5, %v17090_v56  ;;  %v17321_v23 = vadd.f32 0.5, %v17093_v42 }
 0x684   : > { %19012 = vst [vmem:[#allocation67_spill] sm:$0xff] %v17306_v31  ;;  %19013 = vst [vmem:[#allocation68_spill] sm:$0xff] %v17309_v9  ;;  %v6753_v8 = vsel %vm6746_vm7, %v6749_v49, %v6752_v19  ;;  %v17326_v6 = vadd.f32 0.5, %v17108_v14  ;;  %v17329_v7 = vadd.f32 0.5, %v17111_v36  ;;  %v17332_v53 = vadd.f32 0.5, %v17114_v15  ;;  %v19041_v49 = vld [vmem:[#allocation53_spill] sm:$0xff] }
 0x685   : > { %19014 = vst [vmem:[#allocation69_spill] sm:$0xff] %v17312_v3  ;;  %19015 = vst [vmem:[#allocation9_spill] sm:$0xff] %v17315_v48  ;;  %v6840_v22 = vsel %vm6757_vm4, %v6839_v34, %v6838_v5  ;;  %v17337_v56 = vadd.f32 0.5, %v17117_v21  ;;  %v17340_v42 = vadd.f32 0.5, %v17121_v60  ;;  %v17343_v4 = vadd.f32 0.5, %v17124_v28  ;;  %v19045_v34 = vld [vmem:[#allocation50_spill] sm:$0xff] }
 0x686   : > { %19016 = vst [vmem:[#allocation10_spill] sm:$0xff] %v17318_v43  ;;  %19017 = vst [vmem:[#allocation17_spill] sm:$0xff] %v17321_v23  ;;  %v6843_v14 = vsel %vm17103_vm1, %v18934_v2, %v6840_v22  ;;  %v17349_v36 = vadd.f32 0.5, %v17131_v0  ;;  %v17352_v15 = vadd.f32 0.5, %v17137_v50  ;;  %v17355_v57 = vadd.f32 0.5, %v17140_v10  ;;  %v19033_v10 = vld [vmem:[#allocation44_spill] sm:$0xff] }
 0x687   : > { %19018 = vst [vmem:[#allocation12_spill] sm:$0xff] %v17326_v6  ;;  %19019 = vst [vmem:[#allocation66_spill] sm:$0xff] %v17329_v7  ;;  %v6754_v21 = vsel %vm6744_vm9, nan, %v6753_v8  ;;  %8299 = vcosq.f32 %v6843_v14  ;;  %v17360_v60 = vadd.f32 0.5, %v17146_v40  ;;  %v17363_v28 = vadd.f32 0.5, %v17149_v12  ;;  %v19035_v12 = vld [vmem:[#allocation49_spill] sm:$0xff] }
 0x688   : > { %19020 = vst [vmem:[#allocation8_spill] sm:$0xff] %v17332_v53  ;;  %19021 = vst [vmem:[#allocation18_spill] sm:$0xff] %v17337_v56  ;;  %8301 = vsinq.f32 %v6843_v14  ;;  %v17366_v45 = vadd.f32 0.5, %v17152_v63  ;;  %v17369_v0 = vadd.f32 0.5, %v17159_v39  ;;  %v17372_v50 = vadd.f32 0.5, %v17164_v1  ;;  %v19047_v22 = vld [vmem:[#allocation55_spill] sm:$0xff] }
 0x689   : > { %19022 = vst [vmem:[#allocation71_spill] sm:$0xff] %v17340_v42  ;;  %19023 = vst [vmem:[#allocation70_spill] sm:$0xff] %v17343_v4  ;;  %vm6853_vm15 = vcmp.eq.s32.totalorder %v17213_v59, 2  ;;  %v17376_v58 = vadd.f32 0.5, %v17167_v47  ;;  %v17379_v40 = vadd.f32 0.5, %v19033_v10  ;;  %v17382_v30 = vadd.f32 0.5, %v19035_v12 }
 0x68a   : > { %19024 = vst [vmem:[#allocation13_spill] sm:$0xff] %v17349_v36  ;;  %19025 = vst [vmem:[#allocation19_spill] sm:$0xff] %v17352_v15  ;;  %v17385_v63 = vadd.f32 0.5, %v19037_v20  ;;  %vm6850_vm5 = vcmp.eq.s32.totalorder %v17213_v59, 0  ;;  %v6920_v39 = vmul.f32 0.5, %v6754_v21  ;;  %v17389_v1 = vadd.f32 0.5, %v19039_v38 }
 0x68b   : > { %19026 = vst [vmem:[#allocation14_spill] sm:$0xff] %v17355_v57  ;;  %19027 = vst [vmem:[#allocation15_spill] sm:$0xff] %v17360_v60  ;;  %v17392_v19 = vadd.f32 0.5, %v19041_v49  ;;  %v19043_v47 = vld [vmem:[#allocation54_spill] sm:$0xff]  ;;  %vm6849_vm3 = vcmp.lt.s32.totalorder %v17213_v59, 2  ;;  %v17399_v8 = vadd.f32 0.5, %v19045_v34 }
 0x68c   : > { %19028 = vst [vmem:[#allocation16_spill] sm:$0xff] %v17363_v28  ;;  %19029 = vst [vmem:[#allocation11_spill] sm:$0xff] %v17366_v45  ;;  %v17395_v5 = vadd.f32 0.5, %v19043_v47  ;;  %v17402_v14 = vadd.f32 0.5, %v19047_v22  ;;  %v19049_v10 = vld [vmem:[#allocation56_spill] sm:$0xff]  ;;  %v19051_v21 = vld [vmem:[#allocation57_spill] sm:$0xff] }
 0x68d   : > { %19030 = vst [vmem:[#allocation24_spill] sm:$0xff] %v17369_v0  ;;  %19031 = vst [vmem:[#allocation25_spill] sm:$0xff] %v17372_v50  ;;  %v17405_v12 = vadd.f32 0.5, %v19049_v10  ;;  %v17408_v20 = vadd.f32 0.5, %v19051_v21  ;;  %v19053_v38 = vld [vmem:[#allocation58_spill] sm:$0xff]  ;;  %v19055_v47 = vld [vmem:[#allocation59_spill] sm:$0xff] }
 0x68e   : > { %19032 = vst [vmem:[#allocation23_spill] sm:$0xff] %v17376_v58  ;;  %19034 = vst [vmem:[#allocation21_spill] sm:$0xff] %v17379_v40  ;;  %v17412_v49 = vadd.f32 0.5, %v19053_v38  ;;  %v17421_v22 = vadd.f32 0.5, %v17216_v11  ;;  %v17424_v10 = vadd.f32 0.5, %v17219_v24  ;;  %v17427_v21 = vadd.f32 0.5, %v17222_v17 }
 0x68f   : > { %19036 = vst [vmem:[#allocation72_spill] sm:$0xff] %v17382_v30  ;;  %19038 = vst [vmem:[#allocation26_spill] sm:$0xff] %v17385_v63  ;;  %v17433_v38 = vadd.f32 0.5, %v17229_v41  ;;  %v19067_v11 = vld [vmem:[#allocation62_spill] sm:$0xff]  ;;  %v17445_v24 = vadd.f32 0.5, %v17241_v44  ;;  %v19070_v17 = vld [vmem:[#allocation63_spill] sm:$0xff] }
 0x690   : > { %19040 = vst [vmem:[#allocation22_spill] sm:$0xff] %v17389_v1  ;;  %19042 = vst [vmem:[#allocation31_spill] sm:$0xff] %v17392_v19  ;;  %v19057_v19 = vld [vmem:[#allocation60_spill] sm:$0xff]  ;;  %v17454_v41 = vadd.f32 0.5, %v17251_v25  ;;  %v17466_v44 = vadd.f32 0.5, %v17263_v16  ;;  %v17632_v1 = vld [vmem:[%s8598_s30 + $0x108] sm:$0xff] }
 0x691   : > { %19044 = vst [vmem:[#allocation35_spill] sm:$0xff] %v17395_v5  ;;  %19046 = vst [vmem:[#allocation29_spill] sm:$0xff] %v17399_v8  ;;  %v17415_v5 = vadd.f32 0.5, %v19055_v47  ;;  %v17418_v34 = vadd.f32 0.5, %v19057_v19  ;;  %v17436_v47 = vadd.f32 0.5, %v17232_v35  ;;  %v19065_v19 = vld [vmem:[#allocation61_spill] sm:$0xff]  ;;  %v8300_v25 = vpop.eup %8299 }
 0x692   : > { %19048 = vst [vmem:[#allocation30_spill] sm:$0xff] %v17402_v14  ;;  %19050 = vst [vmem:[#allocation36_spill] sm:$0xff] %v17405_v12  ;;  %v17457_v35 = vadd.f32 0.5, %v17254_v18  ;;  %v17475_v18 = vadd.f32 0.5, %v17272_v37  ;;  %v8302_v16 = vpop.eup %8301  ;;  %v17580_v2 = vld [vmem:[%s8598_s30 + $0xa0] sm:$0xff]  ;;  %v17620_v12 = vld [vmem:[%s8598_s30 + $0xf0] sm:$0xff] }
 0x693   : > { %19052 = vst [vmem:[#allocation32_spill] sm:$0xff] %v17408_v20  ;;  %19054 = vst [vmem:[#allocation27_spill] sm:$0xff] %v17412_v49  ;;  %v17430_v20 = vadd.f32 0.5, %v17226_v26  ;;  %v19072_v26 = vld [vmem:[#allocation64_spill] sm:$0xff]  ;;  %v6851_v37 = vxor.u32 2147483648, %v8302_v16  ;;  %v17616_v49 = vld [vmem:[%s8598_s30 + $0xe8] sm:$0xff] }
 0x694   : > { %19056 = vst [vmem:[#allocation20_spill] sm:$0xff] %v17415_v5  ;;  %19058 = vst [vmem:[#allocation33_spill] sm:$0xff] %v17418_v34  ;;  %v17439_v34 = vadd.f32 0.5, %v19065_v19  ;;  %v17460_v19 = vadd.f32 0.5, %v17257_v55  ;;  %v17478_v55 = vadd.f32 0.5, %v17275_v46  ;;  %v17492_v46 = vld [vmem:[%s8598_s30] sm:$0xff] }
 0x695   : > { %19059 = vst [vmem:[#allocation39_spill] sm:$0xff] %v17421_v22  ;;  %19060 = vst [vmem:[#allocation40_spill] sm:$0xff] %v17424_v10  ;;  %v17442_v22 = vadd.f32 0.5, %v19067_v11  ;;  %v19077_v11 = vld [vmem:[#allocation65_spill] sm:$0xff]  ;;  %vm6986_vm8 = vcmp.lt.f32.partialorder %v17492_v46, 3.0  ;;  %v17604_v10 = vld [vmem:[%s8598_s30 + $0xd0] sm:$0xff] }
 0x696   : > { %19061 = vst [vmem:[#allocation45_spill] sm:$0xff] %v17427_v21  ;;  %19062 = vst [vmem:[#allocation28_spill] sm:$0xff] %v17430_v20  ;;  %v17448_v21 = vadd.f32 0.5, %v19070_v17  ;;  %v17451_v20 = vadd.f32 0.5, %v19072_v26  ;;  %v17469_v17 = vadd.f32 0.5, %v17266_v61  ;;  %v17472_v26 = vadd.f32 0.5, %v17269_v27 }
 0x697   : > { %19063 = vst [vmem:[#allocation46_spill] sm:$0xff] %v17433_v38  ;;  %19064 = vst [vmem:[#allocation41_spill] sm:$0xff] %v17436_v47  ;;  %v17484_v61 = vadd.f32 0.5, %v17281_v54  ;;  %v17487_v27 = vadd.f32 0.5, %v17284_v52  ;;  %v17504_v54 = vld [vmem:[%s8598_s30 + $0x18] sm:$0xff]  ;;  %v17596_v47 = vld [vmem:[%s8598_s30 + $0xc0] sm:$0xff] }
 0x698   : > { %19066 = vst [vmem:[#allocation42_spill] sm:$0xff] %v17439_v34  ;;  %19068 = vst [vmem:[#allocation34_spill] sm:$0xff] %v17442_v22  ;;  %v17463_v22 = vadd.f32 0.5, %v19077_v11  ;;  %v17481_v11 = vadd.f32 0.5, %v17278_v29  ;;  %v17496_v29 = vld [vmem:[%s8598_s30 + $0x8] sm:$0xff]  ;;  %vm6989_vm13 = vcmp.lt.f32.partialorder %v17504_v54, 3.0 }
 0x699   : > { %19069 = vst [vmem:[#allocation37_spill] sm:$0xff] %v17445_v24  ;;  %19071 = vst [vmem:[#allocation47_spill] sm:$0xff] %v17448_v21  ;;  %vm6987_vm10 = vcmp.lt.f32.partialorder %v17496_v29, 3.0  ;;  %v17588_v21 = vld [vmem:[%s8598_s30 + $0xb0] sm:$0xff]  ;;  %v17592_v24 = vld [vmem:[%s8598_s30 + $0xb8] sm:$0xff]  ;;  %v8474_v42 = vmov 0.0  }
 0x69a   : > { %19073 = vst [vmem:[#allocation48_spill] sm:$0xff] %v17451_v20  ;;  %19074 = vst [vmem:[#allocation43_spill] sm:$0xff] %v17454_v41  ;;  %v17572_v41 = vld [vmem:[%s8598_s30 + $0x90] sm:$0xff]  ;;  %v17576_v20 = vld [vmem:[%s8598_s30 + $0x98] sm:$0xff]  ;;  %v17696_v56 = vsel %vm6986_vm8, 1.0, %v8474_v42  ;;  %v17701_v53 = vsel %vm6987_vm10, 1.0, %v8474_v42 }
 0x69b   : > { %19075 = vst [vmem:[#allocation38_spill] sm:$0xff] %v17457_v35  ;;  %19076 = vst [vmem:[#allocation44_spill] sm:$0xff] %v17460_v19  ;;  %v17554_v19 = vld [vmem:[%s8598_s30 + $0x70] sm:$0xff]  ;;  %v17558_v35 = vld [vmem:[%s8598_s30 + $0x78] sm:$0xff]  ;;  %v17711_v6 = vsel %vm6989_vm13, 1.0, %v8474_v42 }
 0x69c   : > { %19078 = vst [vmem:[#allocation49_spill] sm:$0xff] %v17463_v22  ;;  %19079 = vst [vmem:[#allocation51_spill] sm:$0xff] %v17466_v44  ;;  %v6854_v44 = vxor.u32 2147483648, %v8300_v25  ;;  %v17550_v22 = vld [vmem:[%s8598_s30 + $0x68] sm:$0xff]  ;;  %v17608_v5 = vld [vmem:[%s8598_s30 + $0xd8] sm:$0xff] }
 0x69d   : > { %19080 = vst [vmem:[#allocation52_spill] sm:$0xff] %v17469_v17  ;;  %19081 = vst [vmem:[#allocation53_spill] sm:$0xff] %v17472_v26  ;;  %v17489_v26 = vadd.f32 0.5, %v6920_v39  ;;  %v17510_v39 = vld [vmem:[%s8598_s30 + $0x20] sm:$0xff]  ;;  %v17540_v17 = vld [vmem:[%s8598_s30 + $0x58] sm:$0xff] }
 0x69e   : > { %19082 = vst [vmem:[#allocation54_spill] sm:$0xff] %v17475_v18  ;;  %19083 = vst [vmem:[#allocation50_spill] sm:$0xff] %v17478_v55  ;;  %v6855_v52 = vsel %vm6853_vm15, %v6854_v44, %v8302_v16  ;;  %vm6990_vm0 = vcmp.lt.f32.partialorder %v17510_v39, 3.0  ;;  %v6852_v44 = vsel %vm6850_vm5, %v8300_v25, %v6851_v37  ;;  %v17528_v16 = vld [vmem:[%s8598_s30 + $0x40] sm:$0xff]  ;;  %v17532_v55 = vld [vmem:[%s8598_s30 + $0x48] sm:$0xff]  ;;  %vm6997_vm9 = vcmp.lt.f32.partialorder %v17540_v17, 3.0 }
 0x69f   : > { %19084 = vst [vmem:[#allocation55_spill] sm:$0xff] %v17481_v11  ;;  %19085 = vst [vmem:[#allocation56_spill] sm:$0xff] %v17484_v61  ;;  %v17500_v11 = vld [vmem:[%s8598_s30 + $0x10] sm:$0xff]  ;;  %v17522_v61 = vld [vmem:[%s8598_s30 + $0x38] sm:$0xff]  ;;  %vm6994_vm6 = vcmp.lt.f32.partialorder %v17528_v16, 3.0  ;;  %vm6995_vm14 = vcmp.lt.f32.partialorder %v17532_v55, 3.0  ;;  %v6856_v25 = vsel %vm6849_vm3, %v6852_v44, %v6855_v52 }
 0x6a0   : > { %19086 = vst [vmem:[#allocation57_spill] sm:$0xff] %v17487_v27  ;;  %19087 = vst [vmem:[#allocation58_spill] sm:$0xff] %v17489_v26  ;;  %vm6988_vm11 = vcmp.lt.f32.partialorder %v17500_v11, 3.0  ;;  %v17514_v26 = vld [vmem:[%s8598_s30 + $0x28] sm:$0xff]  ;;  %v17518_v27 = vld [vmem:[%s8598_s30 + $0x30] sm:$0xff]  ;;  %vm6993_vm12 = vcmp.lt.f32.partialorder %v17522_v61, 3.0 }
 0x6a1   : > { %vm6991_vm4 = vcmp.lt.f32.partialorder %v17514_v26, 3.0  ;;  %vm6992_vm1 = vcmp.lt.f32.partialorder %v17518_v27, 3.0  ;;  %v17536_v18 = vld [vmem:[%s8598_s30 + $0x50] sm:$0xff]  ;;  %v17546_v37 = vld [vmem:[%s8598_s30 + $0x60] sm:$0xff]  ;;  %v6857_v59 = vsel %vm6847_vm2, nan, %v6856_v25  ;;  %v17568_v44 = vld [vmem:[%s8598_s30 + $0x88] sm:$0xff] }
 0x6a2   : > { %v17564_v52 = vld [vmem:[%s8598_s30 + $0x80] sm:$0xff]  ;;  %v17584_v25 = vld [vmem:[%s8598_s30 + $0xa8] sm:$0xff]  ;;  %v6921_v34 = vmul.f32 0.5, %v6857_v59  ;;  %v17624_v14 = vld [vmem:[%s8598_s30 + $0xf8] sm:$0xff]  ;;  %v17706_v7 = vsel %vm6988_vm11, 1.0, %v8474_v42  ;;  %v17732_v54 = vsel %vm6990_vm0, 1.0, %v8474_v42 }
 0x6a3   : > { %v17600_v38 = vld [vmem:[%s8598_s30 + $0xc8] sm:$0xff]  ;;  %v17612_v59 = vld [vmem:[%s8598_s30 + $0xe0] sm:$0xff]  ;;  %v17636_v63 = vld [vmem:[%s8598_s30 + $0x110] sm:$0xff]  ;;  %19089 = vst [vmem:[#allocation60_spill] sm:$0xff] %v17732_v54  ;;  %v17737_v43 = vsel %vm6991_vm4, 1.0, %v8474_v42  ;;  %v17742_v48 = vsel %vm6992_vm1, 1.0, %v8474_v42 }
 0x6a4   : > { %v17628_v8 = vld [vmem:[%s8598_s30 + $0x100] sm:$0xff]  ;;  %v17640_v30 = vld [vmem:[%s8598_s30 + $0x118] sm:$0xff]  ;;  %v17648_v58 = vld [vmem:[%s8598_s30 + $0x128] sm:$0xff]  ;;  %v17659_v45 = vadd.f32 0.5, %v6921_v34  ;;  %19090 = vst [vmem:[#allocation61_spill] sm:$0xff] %v17737_v43  ;;  %v17747_v3 = vsel %vm6993_vm12, 1.0, %v8474_v42 }
 0x6a5   : > { %v17644_v40 = vld [vmem:[%s8598_s30 + $0x120] sm:$0xff]  ;;  %v17652_v50 = vld [vmem:[%s8598_s30 + $0x130] sm:$0xff]  ;;  %v17656_v0 = vld [vmem:[%s8598_s30 + $0x138] sm:$0xff]  ;;  %19091 = vst [vmem:[#allocation62_spill] sm:$0xff] %v17742_v48  ;;  %v17768_v61 = vsel %vm6994_vm6, 1.0, %v8474_v42  ;;  %vm19095_vm12 = vcmp.lt.f32.partialorder %v17536_v18, 3.0 }
 0x6a6   : > { %19088 = vst [vmem:[#allocation59_spill] sm:$0xff] %v17659_v45  ;;  %v17662_v28 = vld [vmem:[%s8598_s30 + $0x140] sm:$0xff]  ;;  %v17666_v60 = vld [vmem:[%s8598_s30 + $0x148] sm:$0xff]  ;;  %v17670_v57 = vld [vmem:[%s8598_s30 + $0x150] sm:$0xff]  ;;  %v17778_v48 = vsel %vm19095_vm12, 1.0, %v8474_v42  ;;  %v17783_v43 = vsel %vm6997_vm9, 1.0, %v8474_v42 }
 0x6a7   : > { %v17674_v15 = vld [vmem:[%s8598_s30 + $0x158] sm:$0xff]  ;;  %v17678_v34 = vld [vmem:[%s8598_s30 + $0x160] sm:$0xff]  ;;  %v17682_v45 = vld [vmem:[%s8598_s30 + $0x168] sm:$0xff]  ;;  %19092 = vst [vmem:[#allocation63_spill] sm:$0xff] %v17747_v3  ;;  %v17773_v3 = vsel %vm6995_vm14, 1.0, %v8474_v42  ;;  %vm19098_vm12 = vcmp.lt.f32.partialorder %v17546_v37, 3.0 }
 0x6a8   : > { %vm7029_vm7 = vcmp.lt.f32.partialorder %v17674_v15, 3.0  ;;  %vm7030_vm3 = vcmp.lt.f32.partialorder %v17678_v34, 3.0  ;;  %vm7031_vm15 = vcmp.lt.f32.partialorder %v17682_v45, 3.0  ;;  %v17686_v36 = vld [vmem:[%s8598_s30 + $0x170] sm:$0xff]  ;;  %v17690_v4 = vld [vmem:[%s8598_s30 + $0x178] sm:$0xff]  ;;  %v17714_v46 = vld [vmem:[%s8598_s30 + $0x180] sm:$0xff] }
 0x6a9   : > { %vm7032_vm5 = vcmp.lt.f32.partialorder %v17686_v36, 3.0  ;;  %vm7034_vm8 = vcmp.lt.f32.partialorder %v17714_v46, 3.0  ;;  %v17718_v29 = vld [vmem:[%s8598_s30 + $0x188] sm:$0xff]  ;;  %v17722_v23 = vld [vmem:[%s8598_s30 + $0x190] sm:$0xff]  ;;  %v17726_v11 = vld [vmem:[%s8598_s30 + $0x198] sm:$0xff]  ;;  %19093 = vst [vmem:[#allocation64_spill] sm:$0xff] %v17768_v61 }
 0x6aa   : > { %vm7035_vm10 = vcmp.lt.f32.partialorder %v17718_v29, 3.0  ;;  %vm7036_vm11 = vcmp.lt.f32.partialorder %v17722_v23, 3.0  ;;  %vm7037_vm2 = vcmp.lt.f32.partialorder %v17726_v11, 3.0  ;;  %v17750_v39 = vld [vmem:[%s8598_s30 + $0x1a0] sm:$0xff]  ;;  %v17754_v26 = vld [vmem:[%s8598_s30 + $0x1a8] sm:$0xff]  ;;  %v17758_v9 = vld [vmem:[%s8598_s30 + $0x1b0] sm:$0xff] }
 0x6ab   : > { %vm7038_vm13 = vcmp.lt.f32.partialorder %v17750_v39, 3.0  ;;  %v17762_v27 = vld [vmem:[%s8598_s30 + $0x1b8] sm:$0xff]  ;;  %19094 = vst [vmem:[#allocation65_spill] sm:$0xff] %v17773_v3  ;;  %19096 = vst [vmem:[#allocation73_spill] sm:$0xff] %v17778_v48  ;;  %v8359_v16 = vld [vmem:[%s8598_s30 + $0x1c0] sm:$0xff]  ;;  %v17792_v18 = vsel %vm19098_vm12, 1.0, %v8474_v42 }
 0x6ac   : > { %19097 = vst [vmem:[#allocation74_spill] sm:$0xff] %v17783_v43  ;;  %v8360_v61 = vld [vmem:[%s8598_s30 + $0x1c8] sm:$0xff]  ;;  %v8361_v55 = vld [vmem:[%s8598_s30 + $0x1d0] sm:$0xff]  ;;  %v8362_v3 = vld [vmem:[%s8598_s30 + $0x1d8] sm:$0xff]  ;;  %vm19100_vm0 = vcmp.lt.f32.partialorder %v17550_v22, 3.0  ;;  %vm19101_vm9 = vcmp.lt.f32.partialorder %v17554_v19, 3.0 }
 0x6ad   : > { %19099 = vst [vmem:[#allocation75_spill] sm:$0xff] %v17792_v18  ;;  %v17797_v17 = vsel %vm19100_vm0, 1.0, %v8474_v42  ;;  %v17802_v43 = vsel %vm19101_vm9, 1.0, %v8474_v42  ;;  %vm19102_vm14 = vcmp.lt.f32.partialorder %v17558_v35, 3.0  ;;  %v8363_v31 = vld [vmem:[%s8598_s30 + $0x1e0] sm:$0xff]  ;;  %v8364_v37 = vld [vmem:[%s8598_s30 + $0x1e8] sm:$0xff] }
 0x6ae   : > { %v17807_v48 = vsel %vm19102_vm14, 1.0, %v8474_v42  ;;  %vm7046_vm4 = vcmp.lt.f32.partialorder %v8363_v31, 3.0  ;;  %vm7047_vm12 = vcmp.lt.f32.partialorder %v8364_v37, 3.0  ;;  %v8365_v18 = vld [vmem:[%s8598_s30 + $0x1f0] sm:$0xff]  ;;  %v8366_v54 = vld [vmem:[%s8598_s30 + $0x1f8] sm:$0xff]  ;;  %vm19104_vm0 = vcmp.lt.f32.partialorder %v17564_v52, 3.0 }
 0x6af   : > { %19103 = vst [vmem:[#allocation76_spill] sm:$0xff] %v17807_v48  ;;  %v17816_v22 = vsel %vm19104_vm0, 1.0, %v8474_v42  ;;  %vm19105_vm9 = vcmp.lt.f32.partialorder %v17568_v44, 3.0  ;;  %vm19106_vm14 = vcmp.lt.f32.partialorder %v17572_v41, 3.0  ;;  %vm19107_vm1 = vcmp.lt.f32.partialorder %v17576_v20, 3.0 }
 0x6b0   : > { %v17821_v19 = vsel %vm19105_vm9, 1.0, %v8474_v42  ;;  %v17826_v35 = vsel %vm19106_vm14, 1.0, %v8474_v42  ;;  %v17831_v48 = vsel %vm19107_vm1, 1.0, %v8474_v42  ;;  %vm19108_vm6 = vcmp.lt.f32.partialorder %v17580_v2, 3.0 }
 0x6b1   : > { %v17836_v52 = vsel %vm19108_vm6, 1.0, %v8474_v42  ;;  %vm19109_vm0 = vcmp.lt.f32.partialorder %v17584_v25, 3.0  ;;  %vm19110_vm9 = vcmp.lt.f32.partialorder %v17588_v21, 3.0  ;;  %vm19111_vm14 = vcmp.lt.f32.partialorder %v17592_v24, 3.0 }
 0x6b2   : > { %v17841_v44 = vsel %vm19109_vm0, 1.0, %v8474_v42  ;;  %v17846_v41 = vsel %vm19110_vm9, 1.0, %v8474_v42  ;;  %v17851_v20 = vsel %vm19111_vm14, 1.0, %v8474_v42  ;;  %vm19112_vm1 = vcmp.lt.f32.partialorder %v17596_v47, 3.0 }
 0x6b3   : > { %v17856_v2 = vsel %vm19112_vm1, 1.0, %v8474_v42  ;;  %vm19113_vm6 = vcmp.lt.f32.partialorder %v17600_v38, 3.0  ;;  %vm19114_vm0 = vcmp.lt.f32.partialorder %v17604_v10, 3.0  ;;  %vm19115_vm9 = vcmp.lt.f32.partialorder %v17608_v5, 3.0 }
 0x6b4   : > { %v17861_v25 = vsel %vm19113_vm6, 1.0, %v8474_v42  ;;  %v17866_v21 = vsel %vm19114_vm0, 1.0, %v8474_v42  ;;  %v17871_v24 = vsel %vm19115_vm9, 1.0, %v8474_v42  ;;  %vm19116_vm14 = vcmp.lt.f32.partialorder %v17612_v59, 3.0 }
 0x6b5   : > { %v17876_v47 = vsel %vm19116_vm14, 1.0, %v8474_v42  ;;  %vm19117_vm1 = vcmp.lt.f32.partialorder %v17616_v49, 3.0  ;;  %vm19118_vm6 = vcmp.lt.f32.partialorder %v17620_v12, 3.0  ;;  %vm19119_vm0 = vcmp.lt.f32.partialorder %v17624_v14, 3.0 }
 0x6b6   : > { %v17881_v38 = vsel %vm19117_vm1, 1.0, %v8474_v42  ;;  %v17886_v10 = vsel %vm19118_vm6, 1.0, %v8474_v42  ;;  %v17891_v5 = vsel %vm19119_vm0, 1.0, %v8474_v42  ;;  %vm19120_vm9 = vcmp.lt.f32.partialorder %v17628_v8, 3.0 }
 0x6b7   : > { %v17896_v59 = vsel %vm19120_vm9, 1.0, %v8474_v42  ;;  %vm19121_vm14 = vcmp.lt.f32.partialorder %v17632_v1, 3.0  ;;  %vm19122_vm1 = vcmp.lt.f32.partialorder %v17636_v63, 3.0  ;;  %vm19123_vm6 = vcmp.lt.f32.partialorder %v17640_v30, 3.0 }
 0x6b8   : > { %v17901_v49 = vsel %vm19121_vm14, 1.0, %v8474_v42  ;;  %v17906_v12 = vsel %vm19122_vm1, 1.0, %v8474_v42  ;;  %v17911_v14 = vsel %vm19123_vm6, 1.0, %v8474_v42  ;;  %vm19124_vm0 = vcmp.lt.f32.partialorder %v17644_v40, 3.0 }
 0x6b9   : > { %v17916_v8 = vsel %vm19124_vm0, 1.0, %v8474_v42  ;;  %vm19125_vm9 = vcmp.lt.f32.partialorder %v17648_v58, 3.0  ;;  %vm19126_vm14 = vcmp.lt.f32.partialorder %v17652_v50, 3.0  ;;  %vm19127_vm1 = vcmp.lt.f32.partialorder %v17656_v0, 3.0 }
 0x6ba   : > { %v17921_v1 = vsel %vm19125_vm9, 1.0, %v8474_v42  ;;  %v17926_v63 = vsel %vm19126_vm14, 1.0, %v8474_v42  ;;  %v17931_v30 = vsel %vm19127_vm1, 1.0, %v8474_v42  ;;  %vm19128_vm6 = vcmp.lt.f32.partialorder %v17662_v28, 3.0 }
 0x6bb   : > { %v17936_v40 = vsel %vm19128_vm6, 1.0, %v8474_v42  ;;  %vm19129_vm0 = vcmp.lt.f32.partialorder %v17666_v60, 3.0  ;;  %vm19130_vm9 = vcmp.lt.f32.partialorder %v17670_v57, 3.0  ;;  %v17951_v0 = vsel %vm7029_vm7, 1.0, %v8474_v42 }
 0x6bc   : > { %v17941_v58 = vsel %vm19129_vm0, 1.0, %v8474_v42  ;;  %v17946_v50 = vsel %vm19130_vm9, 1.0, %v8474_v42  ;;  %v17956_v28 = vsel %vm7030_vm3, 1.0, %v8474_v42  ;;  %v17961_v60 = vsel %vm7031_vm15, 1.0, %v8474_v42 }
 0x6bd   : > { %v17966_v57 = vsel %vm7032_vm5, 1.0, %v8474_v42  ;;  %vm19131_vm14 = vcmp.lt.f32.partialorder %v17690_v4, 3.0  ;;  %v17976_v34 = vsel %vm7034_vm8, 1.0, %v8474_v42  ;;  %v17981_v45 = vsel %vm7035_vm10, 1.0, %v8474_v42 }
 0x6be   : > { %v17971_v15 = vsel %vm19131_vm14, 1.0, %v8474_v42  ;;  %v17986_v36 = vsel %vm7036_vm11, 1.0, %v8474_v42  ;;  %v17991_v4 = vsel %vm7037_vm2, 1.0, %v8474_v42  ;;  %v17996_v46 = vsel %vm7038_vm13, 1.0, %v8474_v42 }
 0x6bf   : > { %19132 = vst [vmem:[#allocation77_spill] sm:$0xff] %v17996_v46  ;;  %vm19133_vm7 = vcmp.lt.f32.partialorder %v17754_v26, 3.0  ;;  %vm19135_vm15 = vcmp.lt.f32.partialorder %v17758_v9, 3.0  ;;  %vm19137_vm5 = vcmp.lt.f32.partialorder %v17762_v27, 3.0  ;;  %vm19139_vm3 = vcmp.lt.f32.partialorder %v8359_v16, 3.0 }
 0x6c0   : > { %v18001_v29 = vsel %vm19133_vm7, 1.0, %v8474_v42  ;;  %v18006_v23 = vsel %vm19135_vm15, 1.0, %v8474_v42  ;;  %v18011_v11 = vsel %vm19137_vm5, 1.0, %v8474_v42  ;;  %v18015_v39 = vsel %vm19139_vm3, 1.0, %v8474_v42 }
 0x6c1   : > { %19134 = vst [vmem:[#allocation78_spill] sm:$0xff] %v18001_v29  ;;  %19136 = vst [vmem:[#allocation79_spill] sm:$0xff] %v18006_v23  ;;  %vm19141_vm2 = vcmp.lt.f32.partialorder %v8360_v61, 3.0  ;;  %vm19143_vm8 = vcmp.lt.f32.partialorder %v8361_v55, 3.0  ;;  %vm19145_vm10 = vcmp.lt.f32.partialorder %v8362_v3, 3.0  ;;  %v18031_v27 = vsel %vm7046_vm4, 1.0, %v8474_v42 }
 0x6c2   : > { %19138 = vst [vmem:[#allocation80_spill] sm:$0xff] %v18011_v11  ;;  %19140 = vst [vmem:[#allocation81_spill] sm:$0xff] %v18015_v39  ;;  %v18019_v46 = vsel %vm19141_vm2, 1.0, %v8474_v42  ;;  %v18023_v26 = vsel %vm19143_vm8, 1.0, %v8474_v42  ;;  %v18027_v9 = vsel %vm19145_vm10, 1.0, %v8474_v42  ;;  %v18035_v16 = vsel %vm7047_vm12, 1.0, %v8474_v42 }
 0x6c3   : > { %19142 = vst [vmem:[#allocation82_spill] sm:$0xff] %v18019_v46  ;;  %19144 = vst [vmem:[#allocation83_spill] sm:$0xff] %v18023_v26  ;;  %vm19149_vm11 = vcmp.lt.f32.partialorder %v8365_v18, 3.0  ;;  %vm19151_vm13 = vcmp.lt.f32.partialorder %v8366_v54, 3.0  ;;  %v7178_v3 = vmul.f32 %v17696_v56, %v17287_v62  ;;  %v7179_v31 = vmul.f32 %v17701_v53, %v17290_v51  ;;  %v19153_v18 = vld [vmem:[#allocation60_spill] sm:$0xff]  ;;  %v19158_v46 = vld [vmem:[#allocation69_spill] sm:$0xff] }
 0x6c4   : > { %19146 = vst [vmem:[#allocation84_spill] sm:$0xff] %v18027_v9  ;;  %19147 = vst [vmem:[#allocation85_spill] sm:$0xff] %v18031_v27  ;;  %v18039_v61 = vsel %vm19149_vm11, 1.0, %v8474_v42  ;;  %v18043_v55 = vsel %vm19151_vm13, 1.0, %v8474_v42  ;;  %v7180_v37 = vmul.f32 %v17706_v7, %v17293_v33  ;;  %v7182_v27 = vmul.f32 %v19153_v18, %v17303_v32  ;;  %v19155_v9 = vld [vmem:[#allocation61_spill] sm:$0xff]  ;;  %v19156_v42 = vld [vmem:[#allocation68_spill] sm:$0xff] }
 0x6c5   : > { %19148 = vst [vmem:[#allocation86_spill] sm:$0xff] %v18035_v16  ;;  %19150 = vst [vmem:[#allocation87_spill] sm:$0xff] %v18039_v61  ;;  %v7181_v16 = vmul.f32 %v17711_v6, %v17300_v13  ;;  %v19154_v61 = vld [vmem:[#allocation67_spill] sm:$0xff]  ;;  %v19160_v39 = vld [vmem:[#allocation9_spill] sm:$0xff] }
 0x6c6   : > { %19152 = vst [vmem:[#allocation88_spill] sm:$0xff] %v18043_v55  ;;  %v7183_v54 = vmul.f32 %v19155_v9, %v19154_v61  ;;  %v19157_v55 = vld [vmem:[#allocation62_spill] sm:$0xff]  ;;  %v19159_v62 = vld [vmem:[#allocation63_spill] sm:$0xff]  ;;  %v19161_v51 = vld [vmem:[#allocation64_spill] sm:$0xff] }
 0x6c7   : > { %v7184_v26 = vmul.f32 %v19157_v55, %v19156_v42  ;;  %v7185_v56 = vmul.f32 %v19159_v62, %v19158_v46  ;;  %v7186_v53 = vmul.f32 %v19161_v51, %v19160_v39  ;;  %v19162_v11 = vld [vmem:[#allocation10_spill] sm:$0xff]  ;;  %v19163_v33 = vld [vmem:[#allocation65_spill] sm:$0xff]  ;;  %v19166_v29 = vld [vmem:[#allocation12_spill] sm:$0xff]  ;;  %7242 = vst [vmem:[%s18071_s17] sm:$0xff] %v7178_v3 }
 0x6c8   : > { %v7187_v7 = vmul.f32 %v19163_v33, %v19162_v11  ;;  %v19164_v23 = vld [vmem:[#allocation17_spill] sm:$0xff]  ;;  %v19167_v32 = vld [vmem:[#allocation74_spill] sm:$0xff]  ;;  %7243 = vst [vmem:[%s18071_s17 + $0x8] sm:$0xff] %v7179_v31  ;;  %7244 = vst [vmem:[%s18071_s17 + $0x10] sm:$0xff] %v7180_v37 }
 0x6c9   : > { %v19165_v13 = vld [vmem:[#allocation73_spill] sm:$0xff]  ;;  %v7189_v18 = vmul.f32 %v19167_v32, %v19166_v29  ;;  %7245 = vst [vmem:[%s18071_s17 + $0x18] sm:$0xff] %v7181_v16  ;;  %v19168_v46 = vld [vmem:[#allocation66_spill] sm:$0xff]  ;;  %v19169_v29 = vld [vmem:[#allocation75_spill] sm:$0xff] }
 0x6ca   : > { %v7188_v6 = vmul.f32 %v19165_v13, %v19164_v23  ;;  %v7190_v23 = vmul.f32 %v19169_v29, %v19168_v46  ;;  %v19170_v11 = vld [vmem:[#allocation8_spill] sm:$0xff]  ;;  %v19171_v9 = vld [vmem:[#allocation18_spill] sm:$0xff]  ;;  %v19172_v55 = vld [vmem:[#allocation71_spill] sm:$0xff]  ;;  %7246 = vst [vmem:[%s18071_s17 + $0x20] sm:$0xff] %v7182_v27 }
 0x6cb   : > { %v7191_v39 = vmul.f32 %v17797_v17, %v19170_v11  ;;  %v7192_v61 = vmul.f32 %v17802_v43, %v19171_v9  ;;  %v19173_v42 = vld [vmem:[#allocation76_spill] sm:$0xff]  ;;  %7247 = vst [vmem:[%s18071_s17 + $0x28] sm:$0xff] %v7183_v54  ;;  %7248 = vst [vmem:[%s18071_s17 + $0x30] sm:$0xff] %v7184_v26  ;;  %v19174_v16 = vld [vmem:[#allocation70_spill] sm:$0xff] }
 0x6cc   : > { %v7193_v62 = vmul.f32 %v19173_v42, %v19172_v55  ;;  %7249 = vst [vmem:[%s18071_s17 + $0x38] sm:$0xff] %v7185_v56  ;;  %v7194_v3 = vmul.f32 %v17816_v22, %v19174_v16  ;;  %v19175_v31 = vld [vmem:[#allocation13_spill] sm:$0xff]  ;;  %v19176_v37 = vld [vmem:[#allocation19_spill] sm:$0xff]  ;;  %v19177_v51 = vld [vmem:[#allocation14_spill] sm:$0xff] }
 0x6cd   : > { %v7195_v17 = vmul.f32 %v17821_v19, %v19175_v31  ;;  %v7196_v43 = vmul.f32 %v17826_v35, %v19176_v37  ;;  %v7197_v33 = vmul.f32 %v17831_v48, %v19177_v51  ;;  %7250 = vst [vmem:[%s18071_s17 + $0x40] sm:$0xff] %v7186_v53  ;;  %7251 = vst [vmem:[%s18071_s17 + $0x48] sm:$0xff] %v7187_v7  ;;  %v19178_v26 = vld [vmem:[#allocation15_spill] sm:$0xff]  ;;  %v19179_v27 = vld [vmem:[#allocation16_spill] sm:$0xff] }
 0x6ce   : > { %7252 = vst [vmem:[%s18071_s17 + $0x50] sm:$0xff] %v7188_v6  ;;  %7253 = vst [vmem:[%s18071_s17 + $0x58] sm:$0xff] %v7189_v18  ;;  %v7198_v22 = vmul.f32 %v17836_v52, %v19178_v26  ;;  %v7199_v19 = vmul.f32 %v17841_v44, %v19179_v27  ;;  %v19180_v54 = vld [vmem:[#allocation11_spill] sm:$0xff]  ;;  %v19181_v56 = vld [vmem:[#allocation24_spill] sm:$0xff] }
 0x6cf   : > { %v7200_v35 = vmul.f32 %v17846_v41, %v19180_v54  ;;  %v7201_v48 = vmul.f32 %v17851_v20, %v19181_v56  ;;  %7254 = vst [vmem:[%s18071_s17 + $0x60] sm:$0xff] %v7190_v23  ;;  %7255 = vst [vmem:[%s18071_s17 + $0x68] sm:$0xff] %v7191_v39  ;;  %v19182_v53 = vld [vmem:[#allocation25_spill] sm:$0xff]  ;;  %v19183_v7 = vld [vmem:[#allocation23_spill] sm:$0xff] }
 0x6d0   : > { %7256 = vst [vmem:[%s18071_s17 + $0x70] sm:$0xff] %v7192_v61  ;;  %7257 = vst [vmem:[%s18071_s17 + $0x78] sm:$0xff] %v7193_v62  ;;  %v7202_v52 = vmul.f32 %v17856_v2, %v19182_v53  ;;  %v7203_v44 = vmul.f32 %v17861_v25, %v19183_v7  ;;  %v19184_v13 = vld [vmem:[#allocation21_spill] sm:$0xff]  ;;  %v19185_v6 = vld [vmem:[#allocation72_spill] sm:$0xff] }
 0x6d1   : > { %v7204_v41 = vmul.f32 %v17866_v21, %v19184_v13  ;;  %v7205_v20 = vmul.f32 %v17871_v24, %v19185_v6  ;;  %7258 = vst [vmem:[%s18071_s17 + $0x80] sm:$0xff] %v7194_v3  ;;  %7259 = vst [vmem:[%s18071_s17 + $0x88] sm:$0xff] %v7195_v17  ;;  %v19186_v32 = vld [vmem:[#allocation26_spill] sm:$0xff]  ;;  %v19188_v46 = vld [vmem:[#allocation31_spill] sm:$0xff] }
 0x6d2   : > { %7260 = vst [vmem:[%s18071_s17 + $0x90] sm:$0xff] %v7196_v43  ;;  %7261 = vst [vmem:[%s18071_s17 + $0x98] sm:$0xff] %v7197_v33  ;;  %v7206_v2 = vmul.f32 %v17876_v47, %v19186_v32  ;;  %v19187_v18 = vld [vmem:[#allocation22_spill] sm:$0xff]  ;;  %v7208_v21 = vmul.f32 %v17886_v10, %v19188_v46  ;;  %v19189_v29 = vld [vmem:[#allocation35_spill] sm:$0xff] }
 0x6d3   : > { %v7207_v25 = vmul.f32 %v17881_v38, %v19187_v18  ;;  %v7209_v24 = vmul.f32 %v17891_v5, %v19189_v29  ;;  %7262 = vst [vmem:[%s18071_s17 + $0xa0] sm:$0xff] %v7198_v22  ;;  %7263 = vst [vmem:[%s18071_s17 + $0xa8] sm:$0xff] %v7199_v19  ;;  %v19190_v23 = vld [vmem:[#allocation29_spill] sm:$0xff]  ;;  %v19191_v11 = vld [vmem:[#allocation30_spill] sm:$0xff] }
 0x6d4   : > { %7264 = vst [vmem:[%s18071_s17 + $0xb0] sm:$0xff] %v7200_v35  ;;  %7265 = vst [vmem:[%s18071_s17 + $0xb8] sm:$0xff] %v7201_v48  ;;  %v7210_v47 = vmul.f32 %v17896_v59, %v19190_v23  ;;  %v7211_v38 = vmul.f32 %v17901_v49, %v19191_v11  ;;  %v19192_v39 = vld [vmem:[#allocation36_spill] sm:$0xff]  ;;  %v19194_v61 = vld [vmem:[#allocation27_spill] sm:$0xff] }
 0x6d5   : > { %v7212_v10 = vmul.f32 %v17906_v12, %v19192_v39  ;;  %v19193_v9 = vld [vmem:[#allocation32_spill] sm:$0xff]  ;;  %7266 = vst [vmem:[%s18071_s17 + $0xc0] sm:$0xff] %v7202_v52  ;;  %7267 = vst [vmem:[%s18071_s17 + $0xc8] sm:$0xff] %v7203_v44  ;;  %v7214_v59 = vmul.f32 %v17916_v8, %v19194_v61  ;;  %v19196_v42 = vld [vmem:[#allocation33_spill] sm:$0xff] }
 0x6d6   : > { %v7213_v5 = vmul.f32 %v17911_v14, %v19193_v9  ;;  %7268 = vst [vmem:[%s18071_s17 + $0xd0] sm:$0xff] %v7204_v41  ;;  %7269 = vst [vmem:[%s18071_s17 + $0xd8] sm:$0xff] %v7205_v20  ;;  %v19195_v55 = vld [vmem:[#allocation20_spill] sm:$0xff]  ;;  %v7216_v12 = vmul.f32 %v17926_v63, %v19196_v42  ;;  %v19197_v62 = vld [vmem:[#allocation39_spill] sm:$0xff] }
 0x6d7   : > { %v7215_v49 = vmul.f32 %v17921_v1, %v19195_v55  ;;  %v7217_v14 = vmul.f32 %v17931_v30, %v19197_v62  ;;  %7270 = vst [vmem:[%s18071_s17 + $0xe0] sm:$0xff] %v7206_v2  ;;  %7271 = vst [vmem:[%s18071_s17 + $0xe8] sm:$0xff] %v7207_v25  ;;  %v19198_v16 = vld [vmem:[#allocation40_spill] sm:$0xff]  ;;  %v19199_v3 = vld [vmem:[#allocation45_spill] sm:$0xff] }
 0x6d8   : > { %7272 = vst [vmem:[%s18071_s17 + $0xf0] sm:$0xff] %v7208_v21  ;;  %7273 = vst [vmem:[%s18071_s17 + $0xf8] sm:$0xff] %v7209_v24  ;;  %v7218_v8 = vmul.f32 %v17936_v40, %v19198_v16  ;;  %v7219_v1 = vmul.f32 %v17941_v58, %v19199_v3  ;;  %v19200_v31 = vld [vmem:[#allocation28_spill] sm:$0xff]  ;;  %v19201_v30 = vld [vmem:[#allocation46_spill] sm:$0xff] }
 0x6d9   : > { %v7220_v63 = vmul.f32 %v17946_v50, %v19200_v31  ;;  %v7221_v17 = vmul.f32 %v17951_v0, %v19201_v30  ;;  %7274 = vst [vmem:[%s18071_s17 + $0x100] sm:$0xff] %v7210_v47  ;;  %7275 = vst [vmem:[%s18071_s17 + $0x108] sm:$0xff] %v7211_v38  ;;  %v19202_v37 = vld [vmem:[#allocation41_spill] sm:$0xff]  ;;  %v19203_v43 = vld [vmem:[#allocation42_spill] sm:$0xff] }
 0x6da   : > { %7276 = vst [vmem:[%s18071_s17 + $0x110] sm:$0xff] %v7212_v10  ;;  %7277 = vst [vmem:[%s18071_s17 + $0x118] sm:$0xff] %v7213_v5  ;;  %v7222_v40 = vmul.f32 %v17956_v28, %v19202_v37  ;;  %v7223_v58 = vmul.f32 %v17961_v60, %v19203_v43  ;;  %v19204_v51 = vld [vmem:[#allocation34_spill] sm:$0xff]  ;;  %v19205_v33 = vld [vmem:[#allocation37_spill] sm:$0xff] }
 0x6db   : > { %v7224_v50 = vmul.f32 %v17966_v57, %v19204_v51  ;;  %v7225_v0 = vmul.f32 %v17971_v15, %v19205_v33  ;;  %7278 = vst [vmem:[%s18071_s17 + $0x120] sm:$0xff] %v7214_v59  ;;  %7279 = vst [vmem:[%s18071_s17 + $0x128] sm:$0xff] %v7215_v49  ;;  %v19206_v28 = vld [vmem:[#allocation47_spill] sm:$0xff]  ;;  %v19207_v26 = vld [vmem:[#allocation48_spill] sm:$0xff] }
 0x6dc   : > { %7280 = vst [vmem:[%s18071_s17 + $0x130] sm:$0xff] %v7216_v12  ;;  %7281 = vst [vmem:[%s18071_s17 + $0x138] sm:$0xff] %v7217_v14  ;;  %v7226_v60 = vmul.f32 %v17976_v34, %v19206_v28  ;;  %v7227_v22 = vmul.f32 %v17981_v45, %v19207_v26  ;;  %v19208_v57 = vld [vmem:[#allocation43_spill] sm:$0xff]  ;;  %v19209_v15 = vld [vmem:[#allocation38_spill] sm:$0xff] }
 0x6dd   : > { %v7228_v27 = vmul.f32 %v17986_v36, %v19208_v57  ;;  %v7229_v19 = vmul.f32 %v17991_v4, %v19209_v15  ;;  %7282 = vst [vmem:[%s18071_s17 + $0x140] sm:$0xff] %v7218_v8  ;;  %7283 = vst [vmem:[%s18071_s17 + $0x148] sm:$0xff] %v7219_v1  ;;  %v19210_v54 = vld [vmem:[#allocation44_spill] sm:$0xff]  ;;  %v19211_v35 = vld [vmem:[#allocation77_spill] sm:$0xff] }
 0x6de   : > { %7284 = vst [vmem:[%s18071_s17 + $0x150] sm:$0xff] %v7220_v63  ;;  %7285 = vst [vmem:[%s18071_s17 + $0x158] sm:$0xff] %v7221_v17  ;;  %v7230_v34 = vmul.f32 %v19211_v35, %v19210_v54  ;;  %v19212_v56 = vld [vmem:[#allocation49_spill] sm:$0xff]  ;;  %v19213_v48 = vld [vmem:[#allocation78_spill] sm:$0xff] }
 0x6df   : > { %v7231_v45 = vmul.f32 %v19213_v48, %v19212_v56  ;;  %v19214_v53 = vld [vmem:[#allocation51_spill] sm:$0xff]  ;;  %v19216_v7 = vld [vmem:[#allocation52_spill] sm:$0xff]  ;;  %7286 = vst [vmem:[%s18071_s17 + $0x160] sm:$0xff] %v7222_v40  ;;  %7287 = vst [vmem:[%s18071_s17 + $0x168] sm:$0xff] %v7223_v58 }
 0x6e0   : > { %v19215_v52 = vld [vmem:[#allocation79_spill] sm:$0xff]  ;;  %v19217_v44 = vld [vmem:[#allocation80_spill] sm:$0xff]  ;;  %7288 = vst [vmem:[%s18071_s17 + $0x170] sm:$0xff] %v7224_v50  ;;  %7289 = vst [vmem:[%s18071_s17 + $0x178] sm:$0xff] %v7225_v0 }
 0x6e1   : > { %v7232_v36 = vmul.f32 %v19215_v52, %v19214_v53  ;;  %v7233_v4 = vmul.f32 %v19217_v44, %v19216_v7  ;;  %v19218_v13 = vld [vmem:[#allocation53_spill] sm:$0xff]  ;;  %v19220_v20 = vld [vmem:[#allocation54_spill] sm:$0xff]  ;;  %v19223_v25 = vld [vmem:[#allocation83_spill] sm:$0xff]  ;;  %7290 = vst [vmem:[%s18071_s17 + $0x180] sm:$0xff] %v7226_v60 }
 0x6e2   : > { %v19219_v41 = vld [vmem:[#allocation81_spill] sm:$0xff]  ;;  %v19221_v32 = vld [vmem:[#allocation82_spill] sm:$0xff]  ;;  %v19224_v21 = vld [vmem:[#allocation55_spill] sm:$0xff]  ;;  %7291 = vst [vmem:[%s18071_s17 + $0x188] sm:$0xff] %v7227_v22 }
 0x6e3   : > { %v7234_v6 = vmul.f32 %v19219_v41, %v19218_v13  ;;  %v7235_v2 = vmul.f32 %v19221_v32, %v19220_v20  ;;  %v19222_v18 = vld [vmem:[#allocation50_spill] sm:$0xff]  ;;  %v19225_v29 = vld [vmem:[#allocation84_spill] sm:$0xff]  ;;  %7292 = vst [vmem:[%s18071_s17 + $0x190] sm:$0xff] %v7228_v27  ;;  %7293 = vst [vmem:[%s18071_s17 + $0x198] sm:$0xff] %v7229_v19 }
 0x6e4   : > { %v7236_v46 = vmul.f32 %v19223_v25, %v19222_v18  ;;  %v7237_v24 = vmul.f32 %v19225_v29, %v19224_v21  ;;  %v19226_v23 = vld [vmem:[#allocation56_spill] sm:$0xff]  ;;  %v19227_v47 = vld [vmem:[#allocation85_spill] sm:$0xff]  ;;  %v19229_v39 = vld [vmem:[#allocation86_spill] sm:$0xff]  ;;  %7294 = vst [vmem:[%s18071_s17 + $0x1a0] sm:$0xff] %v7230_v34 }
 0x6e5   : > { %v7238_v11 = vmul.f32 %v19227_v47, %v19226_v23  ;;  %v19228_v38 = vld [vmem:[#allocation57_spill] sm:$0xff]  ;;  %v19230_v9 = vld [vmem:[#allocation58_spill] sm:$0xff]  ;;  %v19231_v5 = vld [vmem:[#allocation87_spill] sm:$0xff]  ;;  %7295 = vst [vmem:[%s18071_s17 + $0x1a8] sm:$0xff] %v7231_v45 }
 0x6e6   : > { %v7239_v10 = vmul.f32 %v19229_v39, %v19228_v38  ;;  %v7240_v61 = vmul.f32 %v19231_v5, %v19230_v9  ;;  %v19232_v59 = vld [vmem:[#allocation59_spill] sm:$0xff]  ;;  %v19233_v55 = vld [vmem:[#allocation88_spill] sm:$0xff]  ;;  %7296 = vst [vmem:[%s18071_s17 + $0x1b0] sm:$0xff] %v7232_v36  ;;  %7297 = vst [vmem:[%s18071_s17 + $0x1b8] sm:$0xff] %v7233_v4 }
 0x6e7   : > { %v7241_v49 = vmul.f32 %v19233_v55, %v19232_v59  ;;  %7298 = vst [vmem:[%s18071_s17 + $0x1c0] sm:$0xff] %v7234_v6  ;;  %7299 = vst [vmem:[%s18071_s17 + $0x1c8] sm:$0xff] %v7235_v2 }
 0x6e8   : > { %7300 = vst [vmem:[%s18071_s17 + $0x1d0] sm:$0xff] %v7236_v46  ;;  %7301 = vst [vmem:[%s18071_s17 + $0x1d8] sm:$0xff] %v7237_v24 }
 0x6e9   : > { %7302 = vst [vmem:[%s18071_s17 + $0x1e0] sm:$0xff] %v7238_v11  ;;  %7303 = vst [vmem:[%s18071_s17 + $0x1e8] sm:$0xff] %v7239_v10 }
 0x6ea   : > { %7304 = vst [vmem:[%s18071_s17 + $0x1f0] sm:$0xff] %v7240_v61  ;;  %7305 = vst [vmem:[%s18071_s17 + $0x1f8] sm:$0xff] %v7241_v49 }
 0x6eb   : > { %8410 = shalt.err (!%p8407_p2)
}
 0x6ec   : > { %s8411_s13 = scalar_lea.hbm %s18226_s29, 8192  ;;  %s8415_s20 = scalar_lea.hbm %s18293_s1, 16384 }
 0x6ed   : > { %p8412_p4 = scmp.ne.s32.totalorder %s18226_s29, %s8411_s13  ;;  %p8416_p9 = scmp.lt.u32.totalorder %s18226_s29, %s18293_s1 }
 0x6ee   : > { %p8417_p1 = scmp.lt.u32.totalorder %s8415_s20, %s8411_s13  ;;  %p8419_p6 = scmp.lt.u32.totalorder %s8411_s13, %s18226_s29 }
 0x6ef   : > { %p8413_p5 = pnand %p8412_p4, %p19234_p11 }
 0x6f0   : > { %p8418_p3 = por %p8417_p1, %p8416_p9 }
 0x6f1   : > { %p8414_p7 = pneg %p8413_p5 }
 0x6f2   : > { %p8420_p12 = por %p8419_p6, %p8418_p3 }
 0x6f4   : > { %p8421_p13 = pnand %p8420_p12, %p8414_p7 }
 0x6f6   : > { %8424 = shalt.err (!%p8421_p13)
}
 0x6f7   : > { %s8476_s24 = smov 1024   ;;  %s8477_s26 = smov 64  }
 0x6f8   : > { %7992 = dma.vmem_to_hbm [thread:$0]  (%p19234_p11), %s18228_s27, 8192, %s18226_s29, %s7307_s2, %s8476_s24, %s8476_s24, %s8477_s26  }
 0x6f9 PF: > { %s7336_s30 = sand.u32 1, %s8451_s6   ;;  %p19235_p8 = scmp.ne.s32.totalorder %s18476_s19, 0 }
 0x6fa   : > { %p19236_p10 = scmp.ge.s32.totalorder %s8463_s9, 2  ;;  %s7337_s17 = scalar_lea.sflag [#allocation4], %s7336_s30 }
 0x6fc   : > { %p7999_p0 = pnand %p19236_p10, %p19235_p8 }
 0x6fe   : > { %8446 = dma.done.wait (!%p7999_p0), %s7337_s17, 8192  }
 0x6ff   : > { %8448 = vsyncadd (!%p7999_p0), %s7337_s17, 4294959104  ;;  %p14_p2 = scmp.ge.s32.totalorder %s8513_s12, 4   ;;  %s19237_s6 = smov %s8455_s7 }
 0x700   : > { %s19238_s7 = smov %s8459_s8  ;;  %s19239_s8 = smov %s8525_s15 }
 0x701   : > { %s19240_s9 = smov %s8513_s12  ;;  %16 = sbr.rel (!%p14_p2) target bundleno = 5 (0x5), region = 69 }
 0x708   :  { %7342 = vsyncpa [#allocation3], 1 }
 0x709   :  { %7344 = vsyncpa [#allocation3 + $0x1], 1 }
 0x70a   :  { %7345 = vsyncpa [#allocation4], 1 }
 0x70b   :  { %7347 = vsyncpa [#allocation4 + $0x1], 1 }

</bundles_post_ra>
